<compile_context>
chip_gen: v6e
topology: v6e:2x2x1
jax: 0.10.0
libtpu: 0.0.40
codegen_flags: <defaults>
</compile_context>

<pallas_src>
import functools

import numpy as np
import jax
import jax.numpy as jnp
from jax import lax
from jax.experimental import pallas as pl
from jax.experimental.pallas import tpu as pltpu

CMAX = 32        # hidden-layer channel count (every hidden layer is 32 wide)
C0 = 16          # layer-0 input-channel pad (bf16 sublane tile) -> K0 = 144
CLAST = 8        # final-layer row pad (cout = 1 -> 8-sublane minimum)
NTAPS = 9        # 3x3 conv taps
LANE_PAD = 128   # flat zero border around the activation interior (>= W+1)


# ----------------------------------------------------------------------------
# In-kernel fused Conv3x3(pad=1)+PReLU x4 + Conv3x3 stack (one MXU matmul per
# layer, activations resident in a VMEM scratch with zero borders).
# ----------------------------------------------------------------------------
def _cnn5(x_chans, pad_ref, patch_ref, w0_ref, wm_ref, wl_ref,
          b_ref, a_ref, ml_ref, mr_ref, HW, W):
    """x_chans:  list of (1, HW) f32 layer-0 input channels
       pad_ref:  (CMAX, HW + 2*LANE_PAD) f32  activation buffer (zero borders)
       patch_ref:(NTAPS*CMAX, >=HW)      bf16 im2col matrix (matmul RHS)
       w0_ref:   (CMAX, NTAPS*C0)        bf16 layer-0 weights (trimmed K)
       wm_ref:   (n_mid, CMAX, NTAPS*CMAX) bf16 hidden-layer weights
       wl_ref:   (CLAST, NTAPS*CMAX)     bf16 final layer (row 0 is real)
       b_ref: (L, CMAX, 1) f32   a_ref: (L-1, CMAX, 1) f32
       ml_ref/mr_ref: (1, HW) f32 horizontal border masks
       returns (1, HW) f32: channel 0 of the final layer (bias added)."""
    OFF = LANE_PAD
    n_mid = wm_ref.shape[0]
    cin = len(x_chans)

    # Zero only the two border strips; the interior is overwritten below.
    # The zero borders provide the vertical (row) zero padding of every layer.
    pad_ref[:, 0:OFF] = jnp.zeros((CMAX, OFF), jnp.float32)
    pad_ref[:, OFF + HW:OFF + HW + OFF] = jnp.zeros((CMAX, OFF), jnp.float32)

    # Layer-0 input: real channels + zeroed dead channels up to C0.
    for c, xc in enumerate(x_chans):
        pad_ref[c:c + 1, OFF:OFF + HW] = xc
    pad_ref[cin:C0, OFF:OFF + HW] = jnp.zeros((C0 - cin, HW), jnp.float32)

    mask_l = ml_ref[...]            # kills the dx = -1 wrap at col 0
    mask_r = mr_ref[...]            # kills the dx = +1 wrap at col W-1

    def build_patch(csize):
        # 9 shifted / masked copies of the current activation; VPU math stays
        # f32, cast to bf16 only at the matmul boundary.
        for k in range(NTAPS):
            dy, dx = k // 3 - 1, k % 3 - 1
            s = dy * W + dx
            sh = pad_ref[0:csize, OFF + s:OFF + s + HW]
            if dx == -1:
                sh = sh * mask_l
            elif dx == 1:
                sh = sh * mask_r
            patch_ref[k * csize:(k + 1) * csize, 0:HW] = sh.astype(jnp.bfloat16)

    def bias_prelu_store(acc, l):
        acc = acc + b_ref[l]                               # (CMAX, 1) bcast
        acc = jnp.where(acc >= 0.0, acc, a_ref[l] * acc)   # PReLU (f32)
        pad_ref[:, OFF:OFF + HW] = acc                     # next layer input

    # ---- layer 0: trimmed K = 9*C0 ------------------------------------------
    build_patch(C0)
    acc = jnp.dot(w0_ref[...], patch_ref[0:NTAPS * C0, 0:HW],
                  preferred_element_type=jnp.float32)
    bias_prelu_store(acc, 0)
    # ---- hidden layers -------------------------------------------------------
    for l in range(n_mid):
        build_patch(CMAX)
        acc = jnp.dot(wm_ref[l], patch_ref[0:NTAPS * CMAX, 0:HW],
                      preferred_element_type=jnp.float32)
        bias_prelu_store(acc, l + 1)
    # ---- final layer: trimmed M = CLAST, only channel 0 real, no PReLU ------
    build_patch(CMAX)
    acc = jnp.dot(wl_ref[...], patch_ref[0:NTAPS * CMAX, 0:HW],
                  preferred_element_type=jnp.float32)       # (CLAST, HW)
    return acc[0:1, :] + b_ref[n_mid + 1][0:1, :]


# ----------------------------------------------------------------------------
# Fully fused LPD step kernel.
# ----------------------------------------------------------------------------
def _lpd_step_kernel(f_ref, h_ref, g_ref, opT_ref, fbpT_ref,
                     dw0, dwm, dwl, db, da, dml, dmr,
                     pw0, pwm, pwl, pb, pa, pml, pmr,
                     f_out_ref, h_out_ref,
                     pad_d, pad_p, patch,
                     *, S, W, D, HW, AD):
    f32 = jnp.float32
    f_cat = f_ref[...]                                   # (1, S*HW)

    # ---- forward projection of all splits + split->full row interleave ------
    # The interleave permutation is pre-folded into opT (zero block structure);
    # LHS is broadcast to 8 sublanes so the MXU sees an aligned (8, K) tile.
    sino = jnp.dot(jnp.broadcast_to(f_cat, (8, S * HW)), opT_ref[...],
                   preferred_element_type=f32)[0:1, :]    # (1, AD)

    # ---- dual update: u = [h, sino_reco, g_expand];  h_new = h + dual(u) ----
    d_out = _cnn5([h_ref[...], sino, g_ref[...]],
                  pad_d, patch, dw0, dwm, dwl, db, da, dml, dmr, AD, D)
    h_new = h_ref[...] + d_out
    h_out_ref[...] = h_new                                # lane-dense (1, AD)

    # ---- FBP of strided rows of h_new, averaged over splits -----------------
    # (strided-row selection and the 1/S average are pre-folded into fbpT)
    adjoint = jnp.dot(jnp.broadcast_to(h_new, (8, AD)), fbpT_ref[...],
                      preferred_element_type=f32)[0:1, :]  # (1, HW)

    # ---- mean of f over splits ----------------------------------------------
    fm = f_cat[0:1, 0:HW]
    for s in range(1, S):
        fm = fm + f_cat[0:1, s * HW:(s + 1) * HW]
    f_mean = fm * (1.0 / S)

    # ---- primal update: u = [f_mean, adjoint];  f_new = f_mean + primal(u) --
    p_out = _cnn5([f_mean, adjoint],
                  pad_p, patch, pw0, pwm, pwl, pb, pa, pml, pmr, HW, W)
    f_out_ref[...] = f_mean + p_out                       # lane-dense (1, HW)


def lpd_step(f, g, g_expand, h, opT_big, fbpT, dual_pack, primal_pack,
             num_of_splits, averaged):
    """LPD_step.forward equivalent (num_of_splits == 2 path, averaged == 1),
    fused into a single pallas_call."""
    _, S, H, W = f.shape
    A_split, D = g.shape[2], g.shape[3]
    A_full = S * A_split
    HW, AD = H * W, A_full * D
    assert HW % 128 == 0 and AD % 128 == 0              # lane-dense layout
    assert LANE_PAD >= W + 1 and LANE_PAD >= D + 1      # zero-border coverage

    f_cat = f[0].reshape(1, S * HW).astype(jnp.float32)
    h_row = h.reshape(1, AD).astype(jnp.float32)
    g_row = g_expand.reshape(1, AD).astype(jnp.float32)
    dp, pp = dual_pack, primal_pack

    kern = functools.partial(_lpd_step_kernel, S=S, W=W, D=D, HW=HW, AD=AD)
    vspec = pl.BlockSpec(memory_space=pltpu.MemorySpace.VMEM)
    f_out, h_out = pl.pallas_call(
        kern,
        out_shape=(jax.ShapeDtypeStruct((1, HW), jnp.float32),
                   jax.ShapeDtypeStruct((1, AD), jnp.float32)),
        in_specs=[vspec] * 19,
        out_specs=(vspec, vspec),
        scratch_shapes=[
            pltpu.VMEM((CMAX, AD + 2 * LANE_PAD), jnp.float32),     # dual act
            pltpu.VMEM((CMAX, HW + 2 * LANE_PAD), jnp.float32),     # primal act
            pltpu.VMEM((NTAPS * CMAX, max(AD, HW)), jnp.bfloat16),  # im2col
        ],
    )(f_cat, h_row, g_row, opT_big, fbpT,
      dp['w0'], dp['wmid'], dp['wlast'], dp['b'], dp['a'], dp['ml'], dp['mr'],
      pp['w0'], pp['wmid'], pp['wlast'], pp['b'], pp['a'], pp['ml'], pp['mr'])
    return f_out.reshape(H, W)[None, None, :, :], h_out.reshape(A_full, D)


# ----------------------------------------------------------------------------
# One-time packing (hoisted out of the iterative hot path).
# ----------------------------------------------------------------------------
def prep_cnn_params(params, H, W):
    """params: list of (w OIHW, b, alpha_or_None) -> packed dict.
    Matmul weights go to bf16 (f32 accumulation in-kernel); bias/PReLU f32."""
    n_layers = len(params)
    wmid, b_list, a_list = [], [], []
    w0 = wlast = None
    for i, (w, b, alpha) in enumerate(params):
        cout, cin = w.shape[0], w.shape[1]
        # (Cout,Cin,3,3) -> (Cout,ky,kx,Cin) -> (Cout,9,Cin): column = k*Cpad+ci
        wt = jnp.transpose(w, (0, 2, 3, 1)).reshape(cout, NTAPS, cin)
        if i == 0:                                   # trimmed K: pad cin -> C0
            wt = jnp.pad(wt, ((0, CMAX - cout), (0, 0), (0, C0 - cin)))
            w0 = wt.reshape(CMAX, NTAPS * C0).astype(jnp.bfloat16)
        elif i == n_layers - 1:                      # trimmed M: cout -> CLAST
            wt = jnp.pad(wt, ((0, CLAST - cout), (0, 0), (0, CMAX - cin)))
            wlast = wt.reshape(CLAST, NTAPS * CMAX).astype(jnp.bfloat16)
        else:
            wt = jnp.pad(wt, ((0, CMAX - cout), (0, 0), (0, CMAX - cin)))
            wmid.append(wt.reshape(CMAX, NTAPS * CMAX).astype(jnp.bfloat16))
        b_list.append(jnp.pad(b, (0, CMAX - cout)).reshape(CMAX, 1))
        if i < n_layers - 1:
            a = alpha if alpha is not None else jnp.zeros((cout,), jnp.float32)
            a_list.append(jnp.pad(a, (0, CMAX - cout)).reshape(CMAX, 1))
    # static horizontal-border masks (no in-kernel int div/mod)
    col = np.arange(H * W, dtype=np.int32) % W
    mask_l = jnp.asarray((col >= 1).astype(np.float32)).reshape(1, H * W)
    mask_r = jnp.asarray((col <= W - 2).astype(np.float32)).reshape(1, H * W)
    return dict(w0=w0, wmid=jnp.stack(wmid), wlast=wlast,
                b=jnp.stack(b_list).astype(jnp.float32),
                a=jnp.stack(a_list).astype(jnp.float32),
                ml=mask_l, mr=mask_r)


def prep_operators(op_mats, fbp_mats, D):
    """Fold the split->full row interleave (forward) and the strided-row
    selection + 1/S average (FBP) into dense matrices so both become single
    lane-dense matmuls inside the kernel.
    op_mats: (S, A_split*D, H*W);  fbp_mats: (S, H*W, A_split*D)."""
    S, AsD, HW = op_mats.shape
    A_split = AsD // D
    AD = S * AsD
    # sino_flat[(k*S+s)*D+d] = sum_p op_mats[s, k*D+d, p] * f[s, p]
    tmp = jnp.transpose(op_mats, (0, 2, 1)).reshape(S, HW, A_split, D)
    opT = jnp.zeros((S, HW, A_split, S, D), jnp.float32)
    for s in range(S):
        opT = opT.at[s, :, :, s, :].set(tmp[s])
    opT_big = opT.reshape(S * HW, AD).astype(jnp.float32)
    # adjoint[p] = 1/S * sum_s sum_{k,d} fbp_mats[s,p,k*D+d] * h[(k*S+s)*D+d]
    fbpT = (jnp.transpose(fbp_mats, (0, 2, 1))
            .reshape(S, A_split, D, HW)
            .transpose(1, 0, 2, 3)
            .reshape(AD, HW) / S).astype(jnp.float32)
    return opT_big, fbpT


def init_cnn(key, in_ch):
    """Params matching nn.Sequential(Conv2d/PReLU x4, Conv2d).  PReLU slopes get
    small nonzero values (the module trains them; init=0 would not exercise the
    negative branch)."""
    chans = [in_ch, 32, 32, 32, 32, 1]
    params = []
    for i in range(5):
        key, k1, k2, k3 = jax.random.split(key, 4)
        w = 0.05 * jax.random.normal(k1, (chans[i + 1], chans[i], 3, 3),
                                     jnp.float32)
        b = 0.05 * jax.random.normal(k2, (chans[i + 1],), jnp.float32)
        alpha = (0.1 * jax.random.normal(k3, (chans[i + 1],), jnp.float32)
                 if i < 4 else None)
        params.append((w, b, alpha))
    return params, key


# ----------------------------------------------------------------------------
# Pure-JAX reference (correctness checking only)
# ----------------------------------------------------------------------------
def _cnn_ref(x_chw, params):
    y = x_chw
    for (w, b, alpha) in params:
        y = lax.conv_general_dilated(
            y[None], w, window_strides=(1, 1), padding=((1, 1), (1, 1)),
            dimension_numbers=('NCHW', 'OIHW', 'NCHW'),
            precision=lax.Precision.HIGHEST)[0] + b[:, None, None]
        if alpha is not None:
            y = jnp.where(y >= 0, y, alpha[:, None, None] * y)
    return y


def lpd_step_ref(f, g, g_expand, h, op_mats, fbp_mats,
                 dual_params, primal_params):
    _, S, H, W = f.shape
    A_split, D = g.shape[2], g.shape[3]
    A_full = S * A_split
    hp = lax.Precision.HIGHEST
    f_flat = f[0].reshape(S, H * W)
    f_sino = jnp.einsum('sij,sj->si', op_mats, f_flat,
                        precision=hp).reshape(S, A_split, D)
    sino_reco = jnp.transpose(f_sino, (1, 0, 2)).reshape(A_full, D)
    u_dual = jnp.stack([h, sino_reco, g_expand], axis=0)
    h_new = h + _cnn_ref(u_dual, dual_params)[0]
    h_strided = jnp.transpose(h_new.reshape(A_split, S, D), (1, 0, 2))
    adj = jnp.einsum('sij,sj->si', fbp_mats,
                     h_strided.reshape(S, A_split * D),
                     precision=hp).reshape(S, H, W)
    adjoint_eval = jnp.mean(adj, axis=0)
    f_mean = jnp.mean(f, axis=1)[0]
    u_primal = jnp.stack([f_mean, adjoint_eval], axis=0)
    f0_new = f_mean + _cnn_ref(u_primal, primal_params)[0]
    return f0_new[None, None, :, :], h_new


if __name__ == "__main__":
    key = jax.random.PRNGKey(0)

    num_of_splits, averaged = 2, 1
    H = W = 16            # image size
    A_split, D = 8, 16    # per-split sinogram (angles, detectors)
    A_full = num_of_splits * A_split

    key, *ks = jax.random.split(key, 7)
    f = jax.random.normal(ks[0], (1, num_of_splits, H, W), jnp.float32)
    g = jax.random.normal(ks[1], (1, num_of_splits, A_split, D), jnp.float32)
    g_expand = jax.random.normal(ks[2], (A_full, D), jnp.float32)
    h = jax.random.normal(ks[3], (A_full, D), jnp.float32)
    # synthetic stand-ins for the ODL forward / FBP operators
    op_mats = 0.05 * jax.random.normal(
        ks[4], (num_of_splits, A_split * D, H * W), jnp.float32)
    fbp_mats = 0.05 * jax.random.normal(
        ks[5], (num_of_splits, H * W, A_split * D), jnp.float32)

    dual_params, key = init_cnn(key, 3)      # dual_step:   3 -> 32 x4 -> 1
    primal_params, key = init_cnn(key, 2)    # primal_step: 2 -> 32 x4 -> 1

    # one-time packing (outside the iterative hot path)
    opT_big, fbpT = prep_operators(op_mats, fbp_mats, D)
    dual_pack = prep_cnn_params(dual_params, A_full, D)
    primal_pack = prep_cnn_params(primal_params, H, W)

    step = jax.jit(lpd_step, static_argnums=(8, 9))
    f_out, h_out = step(f, g, g_expand, h, opT_big, fbpT,
                        dual_pack, primal_pack, num_of_splits, averaged)
    jax.block_until_ready((f_out, h_out))

    assert f_out.shape == (1, 1, H, W), f_out.shape
    assert h_out.shape == (A_full, D), h_out.shape
    assert bool(jnp.all(jnp.isfinite(f_out))) and bool(jnp.all(jnp.isfinite(h_out)))

    # correctness check against a pure-JAX f32 (HIGHEST) reference; conv stacks
    # use bf16 matmul inputs with f32 accumulation -> slightly loosened tol.
    f_ref, h_ref = lpd_step_ref(f, g, g_expand, h, op_mats, fbp_mats,
                                dual_params, primal_params)
    assert jnp.allclose(h_out, h_ref, rtol=2e-3, atol=2e-3), \
        float(jnp.max(jnp.abs(h_out - h_ref)))
    assert jnp.allclose(f_out, f_ref, rtol=2e-3, atol=2e-3), \
        float(jnp.max(jnp.abs(f_out - f_ref)))
    print("KERNEL_OK")
</pallas_src>

<mosaic_0001>
module attributes {stable_mosaic.version = 11 : i64} {
  func.func @_lpd_step_kernel(%arg0: memref<1x512xf32, #tpu.memory_space<vmem>>, %arg1: memref<1x256xf32, #tpu.memory_space<vmem>>, %arg2: memref<1x256xf32, #tpu.memory_space<vmem>>, %arg3: memref<512x256xf32, #tpu.memory_space<vmem>>, %arg4: memref<256x256xf32, #tpu.memory_space<vmem>>, %arg5: memref<32x144xbf16, #tpu.memory_space<vmem>>, %arg6: memref<3x32x288xbf16, #tpu.memory_space<vmem>>, %arg7: memref<8x288xbf16, #tpu.memory_space<vmem>>, %arg8: memref<5x32x1xf32, #tpu.memory_space<vmem>>, %arg9: memref<4x32x1xf32, #tpu.memory_space<vmem>>, %arg10: memref<1x256xf32, #tpu.memory_space<vmem>>, %arg11: memref<1x256xf32, #tpu.memory_space<vmem>>, %arg12: memref<32x144xbf16, #tpu.memory_space<vmem>>, %arg13: memref<3x32x288xbf16, #tpu.memory_space<vmem>>, %arg14: memref<8x288xbf16, #tpu.memory_space<vmem>>, %arg15: memref<5x32x1xf32, #tpu.memory_space<vmem>>, %arg16: memref<4x32x1xf32, #tpu.memory_space<vmem>>, %arg17: memref<1x256xf32, #tpu.memory_space<vmem>>, %arg18: memref<1x256xf32, #tpu.memory_space<vmem>>, %arg19: memref<1x256xf32, #tpu.memory_space<vmem>>, %arg20: memref<1x256xf32, #tpu.memory_space<vmem>>, %arg21: memref<32x512xf32, #tpu.memory_space<vmem>>, %arg22: memref<32x512xf32, #tpu.memory_space<vmem>>, %arg23: memref<288x256xbf16, #tpu.memory_space<vmem>>) attributes {dimension_semantics = [], scalar_prefetch = 0 : i64, scratch_operands = 3 : i64, tpu.core_type = #tpu.core_type<tc>} {
    %c0 = arith.constant 0 : index
    %c0_0 = arith.constant 0 : index
    %0 = vector.load %arg0[%c0, %c0_0] : memref<1x512xf32, #tpu.memory_space<vmem>>, vector<1x512xf32>
    %1 = vector.shape_cast %0 : vector<1x512xf32> to vector<1x512xf32>
    %2 = vector.broadcast %1 : vector<1x512xf32> to vector<8x512xf32>
    %c0_1 = arith.constant 0 : index
    %c0_2 = arith.constant 0 : index
    %3 = vector.load %arg3[%c0_1, %c0_2] : memref<512x256xf32, #tpu.memory_space<vmem>>, vector<512x256xf32>
    %cst = arith.constant dense<0.000000e+00> : vector<8x256xf32>
    %4 = tpu.matmul %2, %3, %cst {dimension_numbers = #tpu.dot_dimension_numbers<[1], [0], [0], [1], [0, 0, 1, 1], [], []>} : vector<8x512xf32>, vector<512x256xf32>, vector<8x256xf32> -> vector<8x256xf32>
    %5 = vector.extract_strided_slice %4 {offsets = [0, 0], sizes = [1, 256], strides = [1, 1]} : vector<8x256xf32> to vector<1x256xf32>
    %c0_3 = arith.constant 0 : index
    %c0_4 = arith.constant 0 : index
    %6 = vector.load %arg1[%c0_3, %c0_4] : memref<1x256xf32, #tpu.memory_space<vmem>>, vector<1x256xf32>
    %c0_5 = arith.constant 0 : index
    %c0_6 = arith.constant 0 : index
    %7 = vector.load %arg2[%c0_5, %c0_6] : memref<1x256xf32, #tpu.memory_space<vmem>>, vector<1x256xf32>
    %cst_7 = arith.constant 0.000000e+00 : f32
    %8 = vector.broadcast %cst_7 : f32 to vector<32x128xf32>
    %c0_8 = arith.constant 0 : index
    %c0_9 = arith.constant 0 : index
    %9 = vector.load %arg21[%c0_8, %c0_9] : memref<32x512xf32, #tpu.memory_space<vmem>>, vector<32x128xf32>
    tpu.vector_store %arg21[%c0_8, %c0_9], %8 {strides = array<i32>} : memref<32x512xf32, #tpu.memory_space<vmem>>, vector<32x128xf32>,
    %cst_10 = arith.constant 0.000000e+00 : f32
    %10 = vector.broadcast %cst_10 : f32 to vector<32x128xf32>
    %c0_11 = arith.constant 0 : index
    %c384 = arith.constant 384 : index
    %11 = vector.load %arg21[%c0_11, %c384] : memref<32x512xf32, #tpu.memory_space<vmem>>, vector<32x128xf32>
    tpu.vector_store %arg21[%c0_11, %c384], %10 {strides = array<i32>} : memref<32x512xf32, #tpu.memory_space<vmem>>, vector<32x128xf32>,
    %c0_12 = arith.constant 0 : index
    %c128 = arith.constant 128 : index
    %12 = vector.load %arg21[%c0_12, %c128] : memref<32x512xf32, #tpu.memory_space<vmem>>, vector<1x256xf32>
    tpu.vector_store %arg21[%c0_12, %c128], %6 {strides = array<i32>} : memref<32x512xf32, #tpu.memory_space<vmem>>, vector<1x256xf32>,
    %c1 = arith.constant 1 : index
    %c128_13 = arith.constant 128 : index
    %13 = vector.load %arg21[%c1, %c128_13] : memref<32x512xf32, #tpu.memory_space<vmem>>, vector<1x256xf32>
    tpu.vector_store %arg21[%c1, %c128_13], %5 {strides = array<i32>} : memref<32x512xf32, #tpu.memory_space<vmem>>, vector<1x256xf32>,
    %c2 = arith.constant 2 : index
    %c128_14 = arith.constant 128 : index
    %14 = vector.load %arg21[%c2, %c128_14] : memref<32x512xf32, #tpu.memory_space<vmem>>, vector<1x256xf32>
    tpu.vector_store %arg21[%c2, %c128_14], %7 {strides = array<i32>} : memref<32x512xf32, #tpu.memory_space<vmem>>, vector<1x256xf32>,
    %cst_15 = arith.constant 0.000000e+00 : f32
    %15 = vector.broadcast %cst_15 : f32 to vector<13x256xf32>
    %c3 = arith.constant 3 : index
    %c128_16 = arith.constant 128 : index
    %16 = vector.load %arg21[%c3, %c128_16] : memref<32x512xf32, #tpu.memory_space<vmem>>, vector<13x256xf32>
    tpu.vector_store %arg21[%c3, %c128_16], %15 {strides = array<i32>} : memref<32x512xf32, #tpu.memory_space<vmem>>, vector<13x256xf32>,
    %c0_17 = arith.constant 0 : index
    %c0_18 = arith.constant 0 : index
    %17 = vector.load %arg10[%c0_17, %c0_18] : memref<1x256xf32, #tpu.memory_space<vmem>>, vector<1x256xf32>
    %c0_19 = arith.constant 0 : index
    %c0_20 = arith.constant 0 : index
    %18 = vector.load %arg11[%c0_19, %c0_20] : memref<1x256xf32, #tpu.memory_space<vmem>>, vector<1x256xf32>
    %c0_21 = arith.constant 0 : index
    %c111 = arith.constant 111 : index
    %19 = vector.load %arg21[%c0_21, %c111] : memref<32x512xf32, #tpu.memory_space<vmem>>, vector<16x256xf32>
    %20 = vector.broadcast %17 : vector<1x256xf32> to vector<16x256xf32>
    %21 = arith.mulf %19, %20 : vector<16x256xf32>
    %22 = arith.truncf %21 : vector<16x256xf32> to vector<16x256xbf16>
    %c0_22 = arith.constant 0 : index
    %c0_23 = arith.constant 0 : index
    %23 = vector.load %arg23[%c0_22, %c0_23] : memref<288x256xbf16, #tpu.memory_space<vmem>>, vector<16x256xbf16>
    tpu.vector_store %arg23[%c0_22, %c0_23], %22 {strides = array<i32>} : memref<288x256xbf16, #tpu.memory_space<vmem>>, vector<16x256xbf16>,
    %c0_24 = arith.constant 0 : index
    %c112 = arith.constant 112 : index
    %24 = vector.load %arg21[%c0_24, %c112] : memref<32x512xf32, #tpu.memory_space<vmem>>, vector<16x256xf32>
    %25 = arith.truncf %24 : vector<16x256xf32> to vector<16x256xbf16>
    %c16 = arith.constant 16 : index
    %c0_25 = arith.constant 0 : index
    %26 = vector.load %arg23[%c16, %c0_25] : memref<288x256xbf16, #tpu.memory_space<vmem>>, vector<16x256xbf16>
    tpu.vector_store %arg23[%c16, %c0_25], %25 {strides = array<i32>} : memref<288x256xbf16, #tpu.memory_space<vmem>>, vector<16x256xbf16>,
    %c0_26 = arith.constant 0 : index
    %c113 = arith.constant 113 : index
    %27 = vector.load %arg21[%c0_26, %c113] : memref<32x512xf32, #tpu.memory_space<vmem>>, vector<16x256xf32>
    %28 = vector.broadcast %18 : vector<1x256xf32> to vector<16x256xf32>
    %29 = arith.mulf %27, %28 : vector<16x256xf32>
    %30 = arith.truncf %29 : vector<16x256xf32> to vector<16x256xbf16>
    %c32 = arith.constant 32 : index
    %c0_27 = arith.constant 0 : index
    %31 = vector.load %arg23[%c32, %c0_27] : memref<288x256xbf16, #tpu.memory_space<vmem>>, vector<16x256xbf16>
    tpu.vector_store %arg23[%c32, %c0_27], %30 {strides = array<i32>} : memref<288x256xbf16, #tpu.memory_space<vmem>>, vector<16x256xbf16>,
    %c0_28 = arith.constant 0 : index
    %c127 = arith.constant 127 : index
    %32 = vector.load %arg21[%c0_28, %c127] : memref<32x512xf32, #tpu.memory_space<vmem>>, vector<16x256xf32>
    %33 = vector.broadcast %17 : vector<1x256xf32> to vector<16x256xf32>
    %34 = arith.mulf %32, %33 : vector<16x256xf32>
    %35 = arith.truncf %34 : vector<16x256xf32> to vector<16x256xbf16>
    %c48 = arith.constant 48 : index
    %c0_29 = arith.constant 0 : index
    %36 = vector.load %arg23[%c48, %c0_29] : memref<288x256xbf16, #tpu.memory_space<vmem>>, vector<16x256xbf16>
    tpu.vector_store %arg23[%c48, %c0_29], %35 {strides = array<i32>} : memref<288x256xbf16, #tpu.memory_space<vmem>>, vector<16x256xbf16>,
    %c0_30 = arith.constant 0 : index
    %c128_31 = arith.constant 128 : index
    %37 = vector.load %arg21[%c0_30, %c128_31] : memref<32x512xf32, #tpu.memory_space<vmem>>, vector<16x256xf32>
    %38 = arith.truncf %37 : vector<16x256xf32> to vector<16x256xbf16>
    %c64 = arith.constant 64 : index
    %c0_32 = arith.constant 0 : index
    %39 = vector.load %arg23[%c64, %c0_32] : memref<288x256xbf16, #tpu.memory_space<vmem>>, vector<16x256xbf16>
    tpu.vector_store %arg23[%c64, %c0_32], %38 {strides = array<i32>} : memref<288x256xbf16, #tpu.memory_space<vmem>>, vector<16x256xbf16>,
    %c0_33 = arith.constant 0 : index
    %c129 = arith.constant 129 : index
    %40 = vector.load %arg21[%c0_33, %c129] : memref<32x512xf32, #tpu.memory_space<vmem>>, vector<16x256xf32>
    %41 = vector.broadcast %18 : vector<1x256xf32> to vector<16x256xf32>
    %42 = arith.mulf %40, %41 : vector<16x256xf32>
    %43 = arith.truncf %42 : vector<16x256xf32> to vector<16x256xbf16>
    %c80 = arith.constant 80 : index
    %c0_34 = arith.constant 0 : index
    %44 = vector.load %arg23[%c80, %c0_34] : memref<288x256xbf16, #tpu.memory_space<vmem>>, vector<16x256xbf16>
    tpu.vector_store %arg23[%c80, %c0_34], %43 {strides = array<i32>} : memref<288x256xbf16, #tpu.memory_space<vmem>>, vector<16x256xbf16>,
    %c0_35 = arith.constant 0 : index
    %c143 = arith.constant 143 : index
    %45 = vector.load %arg21[%c0_35, %c143] : memref<32x512xf32, #tpu.memory_space<vmem>>, vector<16x256xf32>
    %46 = vector.broadcast %17 : vector<1x256xf32> to vector<16x256xf32>
    %47 = arith.mulf %45, %46 : vector<16x256xf32>
    %48 = arith.truncf %47 : vector<16x256xf32> to vector<16x256xbf16>
    %c96 = arith.constant 96 : index
    %c0_36 = arith.constant 0 : index
    %49 = vector.load %arg23[%c96, %c0_36] : memref<288x256xbf16, #tpu.memory_space<vmem>>, vector<16x256xbf16>
    tpu.vector_store %arg23[%c96, %c0_36], %48 {strides = array<i32>} : memref<288x256xbf16, #tpu.memory_space<vmem>>, vector<16x256xbf16>,
    %c0_37 = arith.constant 0 : index
    %c144 = arith.constant 144 : index
    %50 = vector.load %arg21[%c0_37, %c144] : memref<32x512xf32, #tpu.memory_space<vmem>>, vector<16x256xf32>
    %51 = arith.truncf %50 : vector<16x256xf32> to vector<16x256xbf16>
    %c112_38 = arith.constant 112 : index
    %c0_39 = arith.constant 0 : index
    %52 = vector.load %arg23[%c112_38, %c0_39] : memref<288x256xbf16, #tpu.memory_space<vmem>>, vector<16x256xbf16>
    tpu.vector_store %arg23[%c112_38, %c0_39], %51 {strides = array<i32>} : memref<288x256xbf16, #tpu.memory_space<vmem>>, vector<16x256xbf16>,
    %c0_40 = arith.constant 0 : index
    %c145 = arith.constant 145 : index
    %53 = vector.load %arg21[%c0_40, %c145] : memref<32x512xf32, #tpu.memory_space<vmem>>, vector<16x256xf32>
    %54 = vector.broadcast %18 : vector<1x256xf32> to vector<16x256xf32>
    %55 = arith.mulf %53, %54 : vector<16x256xf32>
    %56 = arith.truncf %55 : vector<16x256xf32> to vector<16x256xbf16>
    %c128_41 = arith.constant 128 : index
    %c0_42 = arith.constant 0 : index
    %57 = vector.load %arg23[%c128_41, %c0_42] : memref<288x256xbf16, #tpu.memory_space<vmem>>, vector<16x256xbf16>
    tpu.vector_store %arg23[%c128_41, %c0_42], %56 {strides = array<i32>} : memref<288x256xbf16, #tpu.memory_space<vmem>>, vector<16x256xbf16>,
    %c0_43 = arith.constant 0 : index
    %c0_44 = arith.constant 0 : index
    %58 = vector.load %arg5[%c0_43, %c0_44] : memref<32x144xbf16, #tpu.memory_space<vmem>>, vector<32x144xbf16>
    %c0_45 = arith.constant 0 : index
    %c0_46 = arith.constant 0 : index
    %59 = vector.load %arg23[%c0_45, %c0_46] : memref<288x256xbf16, #tpu.memory_space<vmem>>, vector<144x256xbf16>
    %cst_47 = arith.constant dense<0.000000e+00> : vector<32x256xf32>
    %60 = tpu.matmul %58, %59, %cst_47 {dimension_numbers = #tpu.dot_dimension_numbers<[1], [0], [0], [1], [0, 0, 1, 1], [], []>} : vector<32x144xbf16>, vector<144x256xbf16>, vector<32x256xf32> -> vector<32x256xf32>
    %c0_48 = arith.constant 0 : index
    %c0_49 = arith.constant 0 : index
    %c0_50 = arith.constant 0 : index
    %61 = vector.load %arg8[%c0_48, %c0_49, %c0_50] : memref<5x32x1xf32, #tpu.memory_space<vmem>>, vector<1x32x1xf32>
    %62 = vector.shape_cast %61 : vector<1x32x1xf32> to vector<32x1xf32>
    %63 = vector.broadcast %62 : vector<32x1xf32> to vector<32x256xf32>
    %64 = arith.addf %60, %63 : vector<32x256xf32>
    %cst_51 = arith.constant 0.000000e+00 : f32
    %65 = vector.broadcast %cst_51 : f32 to vector<32x256xf32>
    %66 = arith.cmpf oge, %64, %65 : vector<32x256xf32>
    %c0_52 = arith.constant 0 : index
    %c0_53 = arith.constant 0 : index
    %c0_54 = arith.constant 0 : index
    %67 = vector.load %arg9[%c0_52, %c0_53, %c0_54] : memref<4x32x1xf32, #tpu.memory_space<vmem>>, vector<1x32x1xf32>
    %68 = vector.shape_cast %67 : vector<1x32x1xf32> to vector<32x1xf32>
    %69 = vector.broadcast %68 : vector<32x1xf32> to vector<32x256xf32>
    %70 = arith.mulf %69, %64 : vector<32x256xf32>
    %71 = arith.select %66, %64, %70 : vector<32x256xi1>, vector<32x256xf32>
    %c0_55 = arith.constant 0 : index
    %c128_56 = arith.constant 128 : index
    %72 = vector.load %arg21[%c0_55, %c128_56] : memref<32x512xf32, #tpu.memory_space<vmem>>, vector<32x256xf32>
    tpu.vector_store %arg21[%c0_55, %c128_56], %71 {strides = array<i32>} : memref<32x512xf32, #tpu.memory_space<vmem>>, vector<32x256xf32>,
    %c0_57 = arith.constant 0 : index
    %c111_58 = arith.constant 111 : index
    %73 = vector.load %arg21[%c0_57, %c111_58] : memref<32x512xf32, #tpu.memory_space<vmem>>, vector<32x256xf32>
    %74 = vector.broadcast %17 : vector<1x256xf32> to vector<32x256xf32>
    %75 = arith.mulf %73, %74 : vector<32x256xf32>
    %76 = arith.truncf %75 : vector<32x256xf32> to vector<32x256xbf16>
    %c0_59 = arith.constant 0 : index
    %c0_60 = arith.constant 0 : index
    %77 = vector.load %arg23[%c0_59, %c0_60] : memref<288x256xbf16, #tpu.memory_space<vmem>>, vector<32x256xbf16>
    tpu.vector_store %arg23[%c0_59, %c0_60], %76 {strides = array<i32>} : memref<288x256xbf16, #tpu.memory_space<vmem>>, vector<32x256xbf16>,
    %c0_61 = arith.constant 0 : index
    %c112_62 = arith.constant 112 : index
    %78 = vector.load %arg21[%c0_61, %c112_62] : memref<32x512xf32, #tpu.memory_space<vmem>>, vector<32x256xf32>
    %79 = arith.truncf %78 : vector<32x256xf32> to vector<32x256xbf16>
    %c32_63 = arith.constant 32 : index
    %c0_64 = arith.constant 0 : index
    %80 = vector.load %arg23[%c32_63, %c0_64] : memref<288x256xbf16, #tpu.memory_space<vmem>>, vector<32x256xbf16>
    tpu.vector_store %arg23[%c32_63, %c0_64], %79 {strides = array<i32>} : memref<288x256xbf16, #tpu.memory_space<vmem>>, vector<32x256xbf16>,
    %c0_65 = arith.constant 0 : index
    %c113_66 = arith.constant 113 : index
    %81 = vector.load %arg21[%c0_65, %c113_66] : memref<32x512xf32, #tpu.memory_space<vmem>>, vector<32x256xf32>
    %82 = vector.broadcast %18 : vector<1x256xf32> to vector<32x256xf32>
    %83 = arith.mulf %81, %82 : vector<32x256xf32>
    %84 = arith.truncf %83 : vector<32x256xf32> to vector<32x256xbf16>
    %c64_67 = arith.constant 64 : index
    %c0_68 = arith.constant 0 : index
    %85 = vector.load %arg23[%c64_67, %c0_68] : memref<288x256xbf16, #tpu.memory_space<vmem>>, vector<32x256xbf16>
    tpu.vector_store %arg23[%c64_67, %c0_68], %84 {strides = array<i32>} : memref<288x256xbf16, #tpu.memory_space<vmem>>, vector<32x256xbf16>,
    %c0_69 = arith.constant 0 : index
    %c127_70 = arith.constant 127 : index
    %86 = vector.load %arg21[%c0_69, %c127_70] : memref<32x512xf32, #tpu.memory_space<vmem>>, vector<32x256xf32>
    %87 = vector.broadcast %17 : vector<1x256xf32> to vector<32x256xf32>
    %88 = arith.mulf %86, %87 : vector<32x256xf32>
    %89 = arith.truncf %88 : vector<32x256xf32> to vector<32x256xbf16>
    %c96_71 = arith.constant 96 : index
    %c0_72 = arith.constant 0 : index
    %90 = vector.load %arg23[%c96_71, %c0_72] : memref<288x256xbf16, #tpu.memory_space<vmem>>, vector<32x256xbf16>
    tpu.vector_store %arg23[%c96_71, %c0_72], %89 {strides = array<i32>} : memref<288x256xbf16, #tpu.memory_space<vmem>>, vector<32x256xbf16>,
    %c0_73 = arith.constant 0 : index
    %c128_74 = arith.constant 128 : index
    %91 = vector.load %arg21[%c0_73, %c128_74] : memref<32x512xf32, #tpu.memory_space<vmem>>, vector<32x256xf32>
    %92 = arith.truncf %91 : vector<32x256xf32> to vector<32x256xbf16>
    %c128_75 = arith.constant 128 : index
    %c0_76 = arith.constant 0 : index
    %93 = vector.load %arg23[%c128_75, %c0_76] : memref<288x256xbf16, #tpu.memory_space<vmem>>, vector<32x256xbf16>
    tpu.vector_store %arg23[%c128_75, %c0_76], %92 {strides = array<i32>} : memref<288x256xbf16, #tpu.memory_space<vmem>>, vector<32x256xbf16>,
    %c0_77 = arith.constant 0 : index
    %c129_78 = arith.constant 129 : index
    %94 = vector.load %arg21[%c0_77, %c129_78] : memref<32x512xf32, #tpu.memory_space<vmem>>, vector<32x256xf32>
    %95 = vector.broadcast %18 : vector<1x256xf32> to vector<32x256xf32>
    %96 = arith.mulf %94, %95 : vector<32x256xf32>
    %97 = arith.truncf %96 : vector<32x256xf32> to vector<32x256xbf16>
    %c160 = arith.constant 160 : index
    %c0_79 = arith.constant 0 : index
    %98 = vector.load %arg23[%c160, %c0_79] : memref<288x256xbf16, #tpu.memory_space<vmem>>, vector<32x256xbf16>
    tpu.vector_store %arg23[%c160, %c0_79], %97 {strides = array<i32>} : memref<288x256xbf16, #tpu.memory_space<vmem>>, vector<32x256xbf16>,
    %c0_80 = arith.constant 0 : index
    %c143_81 = arith.constant 143 : index
    %99 = vector.load %arg21[%c0_80, %c143_81] : memref<32x512xf32, #tpu.memory_space<vmem>>, vector<32x256xf32>
    %100 = vector.broadcast %17 : vector<1x256xf32> to vector<32x256xf32>
    %101 = arith.mulf %99, %100 : vector<32x256xf32>
    %102 = arith.truncf %101 : vector<32x256xf32> to vector<32x256xbf16>
    %c192 = arith.constant 192 : index
    %c0_82 = arith.constant 0 : index
    %103 = vector.load %arg23[%c192, %c0_82] : memref<288x256xbf16, #tpu.memory_space<vmem>>, vector<32x256xbf16>
    tpu.vector_store %arg23[%c192, %c0_82], %102 {strides = array<i32>} : memref<288x256xbf16, #tpu.memory_space<vmem>>, vector<32x256xbf16>,
    %c0_83 = arith.constant 0 : index
    %c144_84 = arith.constant 144 : index
    %104 = vector.load %arg21[%c0_83, %c144_84] : memref<32x512xf32, #tpu.memory_space<vmem>>, vector<32x256xf32>
    %105 = arith.truncf %104 : vector<32x256xf32> to vector<32x256xbf16>
    %c224 = arith.constant 224 : index
    %c0_85 = arith.constant 0 : index
    %106 = vector.load %arg23[%c224, %c0_85] : memref<288x256xbf16, #tpu.memory_space<vmem>>, vector<32x256xbf16>
    tpu.vector_store %arg23[%c224, %c0_85], %105 {strides = array<i32>} : memref<288x256xbf16, #tpu.memory_space<vmem>>, vector<32x256xbf16>,
    %c0_86 = arith.constant 0 : index
    %c145_87 = arith.constant 145 : index
    %107 = vector.load %arg21[%c0_86, %c145_87] : memref<32x512xf32, #tpu.memory_space<vmem>>, vector<32x256xf32>
    %108 = vector.broadcast %18 : vector<1x256xf32> to vector<32x256xf32>
    %109 = arith.mulf %107, %108 : vector<32x256xf32>
    %110 = arith.truncf %109 : vector<32x256xf32> to vector<32x256xbf16>
    %c256 = arith.constant 256 : index
    %c0_88 = arith.constant 0 : index
    %111 = vector.load %arg23[%c256, %c0_88] : memref<288x256xbf16, #tpu.memory_space<vmem>>, vector<32x256xbf16>
    tpu.vector_store %arg23[%c256, %c0_88], %110 {strides = array<i32>} : memref<288x256xbf16, #tpu.memory_space<vmem>>, vector<32x256xbf16>,
    %c0_89 = arith.constant 0 : index
    %c0_90 = arith.constant 0 : index
    %c0_91 = arith.constant 0 : index
    %112 = vector.load %arg6[%c0_89, %c0_90, %c0_91] : memref<3x32x288xbf16, #tpu.memory_space<vmem>>, vector<1x32x288xbf16>
    %113 = vector.shape_cast %112 : vector<1x32x288xbf16> to vector<32x288xbf16>
    %c0_92 = arith.constant 0 : index
    %c0_93 = arith.constant 0 : index
    %114 = vector.load %arg23[%c0_92, %c0_93] : memref<288x256xbf16, #tpu.memory_space<vmem>>, vector<288x256xbf16>
    %cst_94 = arith.constant dense<0.000000e+00> : vector<32x256xf32>
    %115 = tpu.matmul %113, %114, %cst_94 {dimension_numbers = #tpu.dot_dimension_numbers<[1], [0], [0], [1], [0, 0, 1, 1], [], []>} : vector<32x288xbf16>, vector<288x256xbf16>, vector<32x256xf32> -> vector<32x256xf32>
    %c1_95 = arith.constant 1 : index
    %c0_96 = arith.constant 0 : index
    %c0_97 = arith.constant 0 : index
    %116 = vector.load %arg8[%c1_95, %c0_96, %c0_97] : memref<5x32x1xf32, #tpu.memory_space<vmem>>, vector<1x32x1xf32>
    %117 = vector.shape_cast %116 : vector<1x32x1xf32> to vector<32x1xf32>
    %118 = vector.broadcast %117 : vector<32x1xf32> to vector<32x256xf32>
    %119 = arith.addf %115, %118 : vector<32x256xf32>
    %cst_98 = arith.constant 0.000000e+00 : f32
    %120 = vector.broadcast %cst_98 : f32 to vector<32x256xf32>
    %121 = arith.cmpf oge, %119, %120 : vector<32x256xf32>
    %c1_99 = arith.constant 1 : index
    %c0_100 = arith.constant 0 : index
    %c0_101 = arith.constant 0 : index
    %122 = vector.load %arg9[%c1_99, %c0_100, %c0_101] : memref<4x32x1xf32, #tpu.memory_space<vmem>>, vector<1x32x1xf32>
    %123 = vector.shape_cast %122 : vector<1x32x1xf32> to vector<32x1xf32>
    %124 = vector.broadcast %123 : vector<32x1xf32> to vector<32x256xf32>
    %125 = arith.mulf %124, %119 : vector<32x256xf32>
    %126 = arith.select %121, %119, %125 : vector<32x256xi1>, vector<32x256xf32>
    %c0_102 = arith.constant 0 : index
    %c128_103 = arith.constant 128 : index
    %127 = vector.load %arg21[%c0_102, %c128_103] : memref<32x512xf32, #tpu.memory_space<vmem>>, vector<32x256xf32>
    tpu.vector_store %arg21[%c0_102, %c128_103], %126 {strides = array<i32>} : memref<32x512xf32, #tpu.memory_space<vmem>>, vector<32x256xf32>,
    %c0_104 = arith.constant 0 : index
    %c111_105 = arith.constant 111 : index
    %128 = vector.load %arg21[%c0_104, %c111_105] : memref<32x512xf32, #tpu.memory_space<vmem>>, vector<32x256xf32>
    %129 = vector.broadcast %17 : vector<1x256xf32> to vector<32x256xf32>
    %130 = arith.mulf %128, %129 : vector<32x256xf32>
    %131 = arith.truncf %130 : vector<32x256xf32> to vector<32x256xbf16>
    %c0_106 = arith.constant 0 : index
    %c0_107 = arith.constant 0 : index
    %132 = vector.load %arg23[%c0_106, %c0_107] : memref<288x256xbf16, #tpu.memory_space<vmem>>, vector<32x256xbf16>
    tpu.vector_store %arg23[%c0_106, %c0_107], %131 {strides = array<i32>} : memref<288x256xbf16, #tpu.memory_space<vmem>>, vector<32x256xbf16>,
    %c0_108 = arith.constant 0 : index
    %c112_109 = arith.constant 112 : index
    %133 = vector.load %arg21[%c0_108, %c112_109] : memref<32x512xf32, #tpu.memory_space<vmem>>, vector<32x256xf32>
    %134 = arith.truncf %133 : vector<32x256xf32> to vector<32x256xbf16>
    %c32_110 = arith.constant 32 : index
    %c0_111 = arith.constant 0 : index
    %135 = vector.load %arg23[%c32_110, %c0_111] : memref<288x256xbf16, #tpu.memory_space<vmem>>, vector<32x256xbf16>
    tpu.vector_store %arg23[%c32_110, %c0_111], %134 {strides = array<i32>} : memref<288x256xbf16, #tpu.memory_space<vmem>>, vector<32x256xbf16>,
    %c0_112 = arith.constant 0 : index
    %c113_113 = arith.constant 113 : index
    %136 = vector.load %arg21[%c0_112, %c113_113] : memref<32x512xf32, #tpu.memory_space<vmem>>, vector<32x256xf32>
    %137 = vector.broadcast %18 : vector<1x256xf32> to vector<32x256xf32>
    %138 = arith.mulf %136, %137 : vector<32x256xf32>
    %139 = arith.truncf %138 : vector<32x256xf32> to vector<32x256xbf16>
    %c64_114 = arith.constant 64 : index
    %c0_115 = arith.constant 0 : index
    %140 = vector.load %arg23[%c64_114, %c0_115] : memref<288x256xbf16, #tpu.memory_space<vmem>>, vector<32x256xbf16>
    tpu.vector_store %arg23[%c64_114, %c0_115], %139 {strides = array<i32>} : memref<288x256xbf16, #tpu.memory_space<vmem>>, vector<32x256xbf16>,
    %c0_116 = arith.constant 0 : index
    %c127_117 = arith.constant 127 : index
    %141 = vector.load %arg21[%c0_116, %c127_117] : memref<32x512xf32, #tpu.memory_space<vmem>>, vector<32x256xf32>
    %142 = vector.broadcast %17 : vector<1x256xf32> to vector<32x256xf32>
    %143 = arith.mulf %141, %142 : vector<32x256xf32>
    %144 = arith.truncf %143 : vector<32x256xf32> to vector<32x256xbf16>
    %c96_118 = arith.constant 96 : index
    %c0_119 = arith.constant 0 : index
    %145 = vector.load %arg23[%c96_118, %c0_119] : memref<288x256xbf16, #tpu.memory_space<vmem>>, vector<32x256xbf16>
    tpu.vector_store %arg23[%c96_118, %c0_119], %144 {strides = array<i32>} : memref<288x256xbf16, #tpu.memory_space<vmem>>, vector<32x256xbf16>,
    %c0_120 = arith.constant 0 : index
    %c128_121 = arith.constant 128 : index
    %146 = vector.load %arg21[%c0_120, %c128_121] : memref<32x512xf32, #tpu.memory_space<vmem>>, vector<32x256xf32>
    %147 = arith.truncf %146 : vector<32x256xf32> to vector<32x256xbf16>
    %c128_122 = arith.constant 128 : index
    %c0_123 = arith.constant 0 : index
    %148 = vector.load %arg23[%c128_122, %c0_123] : memref<288x256xbf16, #tpu.memory_space<vmem>>, vector<32x256xbf16>
    tpu.vector_store %arg23[%c128_122, %c0_123], %147 {strides = array<i32>} : memref<288x256xbf16, #tpu.memory_space<vmem>>, vector<32x256xbf16>,
    %c0_124 = arith.constant 0 : index
    %c129_125 = arith.constant 129 : index
    %149 = vector.load %arg21[%c0_124, %c129_125] : memref<32x512xf32, #tpu.memory_space<vmem>>, vector<32x256xf32>
    %150 = vector.broadcast %18 : vector<1x256xf32> to vector<32x256xf32>
    %151 = arith.mulf %149, %150 : vector<32x256xf32>
    %152 = arith.truncf %151 : vector<32x256xf32> to vector<32x256xbf16>
    %c160_126 = arith.constant 160 : index
    %c0_127 = arith.constant 0 : index
    %153 = vector.load %arg23[%c160_126, %c0_127] : memref<288x256xbf16, #tpu.memory_space<vmem>>, vector<32x256xbf16>
    tpu.vector_store %arg23[%c160_126, %c0_127], %152 {strides = array<i32>} : memref<288x256xbf16, #tpu.memory_space<vmem>>, vector<32x256xbf16>,
    %c0_128 = arith.constant 0 : index
    %c143_129 = arith.constant 143 : index
    %154 = vector.load %arg21[%c0_128, %c143_129] : memref<32x512xf32, #tpu.memory_space<vmem>>, vector<32x256xf32>
    %155 = vector.broadcast %17 : vector<1x256xf32> to vector<32x256xf32>
    %156 = arith.mulf %154, %155 : vector<32x256xf32>
    %157 = arith.truncf %156 : vector<32x256xf32> to vector<32x256xbf16>
    %c192_130 = arith.constant 192 : index
    %c0_131 = arith.constant 0 : index
    %158 = vector.load %arg23[%c192_130, %c0_131] : memref<288x256xbf16, #tpu.memory_space<vmem>>, vector<32x256xbf16>
    tpu.vector_store %arg23[%c192_130, %c0_131], %157 {strides = array<i32>} : memref<288x256xbf16, #tpu.memory_space<vmem>>, vector<32x256xbf16>,
    %c0_132 = arith.constant 0 : index
    %c144_133 = arith.constant 144 : index
    %159 = vector.load %arg21[%c0_132, %c144_133] : memref<32x512xf32, #tpu.memory_space<vmem>>, vector<32x256xf32>
    %160 = arith.truncf %159 : vector<32x256xf32> to vector<32x256xbf16>
    %c224_134 = arith.constant 224 : index
    %c0_135 = arith.constant 0 : index
    %161 = vector.load %arg23[%c224_134, %c0_135] : memref<288x256xbf16, #tpu.memory_space<vmem>>, vector<32x256xbf16>
    tpu.vector_store %arg23[%c224_134, %c0_135], %160 {strides = array<i32>} : memref<288x256xbf16, #tpu.memory_space<vmem>>, vector<32x256xbf16>,
    %c0_136 = arith.constant 0 : index
    %c145_137 = arith.constant 145 : index
    %162 = vector.load %arg21[%c0_136, %c145_137] : memref<32x512xf32, #tpu.memory_space<vmem>>, vector<32x256xf32>
    %163 = vector.broadcast %18 : vector<1x256xf32> to vector<32x256xf32>
    %164 = arith.mulf %162, %163 : vector<32x256xf32>
    %165 = arith.truncf %164 : vector<32x256xf32> to vector<32x256xbf16>
    %c256_138 = arith.constant 256 : index
    %c0_139 = arith.constant 0 : index
    %166 = vector.load %arg23[%c256_138, %c0_139] : memref<288x256xbf16, #tpu.memory_space<vmem>>, vector<32x256xbf16>
    tpu.vector_store %arg23[%c256_138, %c0_139], %165 {strides = array<i32>} : memref<288x256xbf16, #tpu.memory_space<vmem>>, vector<32x256xbf16>,
    %c1_140 = arith.constant 1 : index
    %c0_141 = arith.constant 0 : index
    %c0_142 = arith.constant 0 : index
    %167 = vector.load %arg6[%c1_140, %c0_141, %c0_142] : memref<3x32x288xbf16, #tpu.memory_space<vmem>>, vector<1x32x288xbf16>
    %168 = vector.shape_cast %167 : vector<1x32x288xbf16> to vector<32x288xbf16>
    %c0_143 = arith.constant 0 : index
    %c0_144 = arith.constant 0 : index
    %169 = vector.load %arg23[%c0_143, %c0_144] : memref<288x256xbf16, #tpu.memory_space<vmem>>, vector<288x256xbf16>
    %cst_145 = arith.constant dense<0.000000e+00> : vector<32x256xf32>
    %170 = tpu.matmul %168, %169, %cst_145 {dimension_numbers = #tpu.dot_dimension_numbers<[1], [0], [0], [1], [0, 0, 1, 1], [], []>} : vector<32x288xbf16>, vector<288x256xbf16>, vector<32x256xf32> -> vector<32x256xf32>
    %c2_146 = arith.constant 2 : index
    %c0_147 = arith.constant 0 : index
    %c0_148 = arith.constant 0 : index
    %171 = vector.load %arg8[%c2_146, %c0_147, %c0_148] : memref<5x32x1xf32, #tpu.memory_space<vmem>>, vector<1x32x1xf32>
    %172 = vector.shape_cast %171 : vector<1x32x1xf32> to vector<32x1xf32>
    %173 = vector.broadcast %172 : vector<32x1xf32> to vector<32x256xf32>
    %174 = arith.addf %170, %173 : vector<32x256xf32>
    %cst_149 = arith.constant 0.000000e+00 : f32
    %175 = vector.broadcast %cst_149 : f32 to vector<32x256xf32>
    %176 = arith.cmpf oge, %174, %175 : vector<32x256xf32>
    %c2_150 = arith.constant 2 : index
    %c0_151 = arith.constant 0 : index
    %c0_152 = arith.constant 0 : index
    %177 = vector.load %arg9[%c2_150, %c0_151, %c0_152] : memref<4x32x1xf32, #tpu.memory_space<vmem>>, vector<1x32x1xf32>
    %178 = vector.shape_cast %177 : vector<1x32x1xf32> to vector<32x1xf32>
    %179 = vector.broadcast %178 : vector<32x1xf32> to vector<32x256xf32>
    %180 = arith.mulf %179, %174 : vector<32x256xf32>
    %181 = arith.select %176, %174, %180 : vector<32x256xi1>, vector<32x256xf32>
    %c0_153 = arith.constant 0 : index
    %c128_154 = arith.constant 128 : index
    %182 = vector.load %arg21[%c0_153, %c128_154] : memref<32x512xf32, #tpu.memory_space<vmem>>, vector<32x256xf32>
    tpu.vector_store %arg21[%c0_153, %c128_154], %181 {strides = array<i32>} : memref<32x512xf32, #tpu.memory_space<vmem>>, vector<32x256xf32>,
    %c0_155 = arith.constant 0 : index
    %c111_156 = arith.constant 111 : index
    %183 = vector.load %arg21[%c0_155, %c111_156] : memref<32x512xf32, #tpu.memory_space<vmem>>, vector<32x256xf32>
    %184 = vector.broadcast %17 : vector<1x256xf32> to vector<32x256xf32>
    %185 = arith.mulf %183, %184 : vector<32x256xf32>
    %186 = arith.truncf %185 : vector<32x256xf32> to vector<32x256xbf16>
    %c0_157 = arith.constant 0 : index
    %c0_158 = arith.constant 0 : index
    %187 = vector.load %arg23[%c0_157, %c0_158] : memref<288x256xbf16, #tpu.memory_space<vmem>>, vector<32x256xbf16>
    tpu.vector_store %arg23[%c0_157, %c0_158], %186 {strides = array<i32>} : memref<288x256xbf16, #tpu.memory_space<vmem>>, vector<32x256xbf16>,
    %c0_159 = arith.constant 0 : index
    %c112_160 = arith.constant 112 : index
    %188 = vector.load %arg21[%c0_159, %c112_160] : memref<32x512xf32, #tpu.memory_space<vmem>>, vector<32x256xf32>
    %189 = arith.truncf %188 : vector<32x256xf32> to vector<32x256xbf16>
    %c32_161 = arith.constant 32 : index
    %c0_162 = arith.constant 0 : index
    %190 = vector.load %arg23[%c32_161, %c0_162] : memref<288x256xbf16, #tpu.memory_space<vmem>>, vector<32x256xbf16>
    tpu.vector_store %arg23[%c32_161, %c0_162], %189 {strides = array<i32>} : memref<288x256xbf16, #tpu.memory_space<vmem>>, vector<32x256xbf16>,
    %c0_163 = arith.constant 0 : index
    %c113_164 = arith.constant 113 : index
    %191 = vector.load %arg21[%c0_163, %c113_164] : memref<32x512xf32, #tpu.memory_space<vmem>>, vector<32x256xf32>
    %192 = vector.broadcast %18 : vector<1x256xf32> to vector<32x256xf32>
    %193 = arith.mulf %191, %192 : vector<32x256xf32>
    %194 = arith.truncf %193 : vector<32x256xf32> to vector<32x256xbf16>
    %c64_165 = arith.constant 64 : index
    %c0_166 = arith.constant 0 : index
    %195 = vector.load %arg23[%c64_165, %c0_166] : memref<288x256xbf16, #tpu.memory_space<vmem>>, vector<32x256xbf16>
    tpu.vector_store %arg23[%c64_165, %c0_166], %194 {strides = array<i32>} : memref<288x256xbf16, #tpu.memory_space<vmem>>, vector<32x256xbf16>,
    %c0_167 = arith.constant 0 : index
    %c127_168 = arith.constant 127 : index
    %196 = vector.load %arg21[%c0_167, %c127_168] : memref<32x512xf32, #tpu.memory_space<vmem>>, vector<32x256xf32>
    %197 = vector.broadcast %17 : vector<1x256xf32> to vector<32x256xf32>
    %198 = arith.mulf %196, %197 : vector<32x256xf32>
    %199 = arith.truncf %198 : vector<32x256xf32> to vector<32x256xbf16>
    %c96_169 = arith.constant 96 : index
    %c0_170 = arith.constant 0 : index
    %200 = vector.load %arg23[%c96_169, %c0_170] : memref<288x256xbf16, #tpu.memory_space<vmem>>, vector<32x256xbf16>
    tpu.vector_store %arg23[%c96_169, %c0_170], %199 {strides = array<i32>} : memref<288x256xbf16, #tpu.memory_space<vmem>>, vector<32x256xbf16>,
    %c0_171 = arith.constant 0 : index
    %c128_172 = arith.constant 128 : index
    %201 = vector.load %arg21[%c0_171, %c128_172] : memref<32x512xf32, #tpu.memory_space<vmem>>, vector<32x256xf32>
    %202 = arith.truncf %201 : vector<32x256xf32> to vector<32x256xbf16>
    %c128_173 = arith.constant 128 : index
    %c0_174 = arith.constant 0 : index
    %203 = vector.load %arg23[%c128_173, %c0_174] : memref<288x256xbf16, #tpu.memory_space<vmem>>, vector<32x256xbf16>
    tpu.vector_store %arg23[%c128_173, %c0_174], %202 {strides = array<i32>} : memref<288x256xbf16, #tpu.memory_space<vmem>>, vector<32x256xbf16>,
    %c0_175 = arith.constant 0 : index
    %c129_176 = arith.constant 129 : index
    %204 = vector.load %arg21[%c0_175, %c129_176] : memref<32x512xf32, #tpu.memory_space<vmem>>, vector<32x256xf32>
    %205 = vector.broadcast %18 : vector<1x256xf32> to vector<32x256xf32>
    %206 = arith.mulf %204, %205 : vector<32x256xf32>
    %207 = arith.truncf %206 : vector<32x256xf32> to vector<32x256xbf16>
    %c160_177 = arith.constant 160 : index
    %c0_178 = arith.constant 0 : index
    %208 = vector.load %arg23[%c160_177, %c0_178] : memref<288x256xbf16, #tpu.memory_space<vmem>>, vector<32x256xbf16>
    tpu.vector_store %arg23[%c160_177, %c0_178], %207 {strides = array<i32>} : memref<288x256xbf16, #tpu.memory_space<vmem>>, vector<32x256xbf16>,
    %c0_179 = arith.constant 0 : index
    %c143_180 = arith.constant 143 : index
    %209 = vector.load %arg21[%c0_179, %c143_180] : memref<32x512xf32, #tpu.memory_space<vmem>>, vector<32x256xf32>
    %210 = vector.broadcast %17 : vector<1x256xf32> to vector<32x256xf32>
    %211 = arith.mulf %209, %210 : vector<32x256xf32>
    %212 = arith.truncf %211 : vector<32x256xf32> to vector<32x256xbf16>
    %c192_181 = arith.constant 192 : index
    %c0_182 = arith.constant 0 : index
    %213 = vector.load %arg23[%c192_181, %c0_182] : memref<288x256xbf16, #tpu.memory_space<vmem>>, vector<32x256xbf16>
    tpu.vector_store %arg23[%c192_181, %c0_182], %212 {strides = array<i32>} : memref<288x256xbf16, #tpu.memory_space<vmem>>, vector<32x256xbf16>,
    %c0_183 = arith.constant 0 : index
    %c144_184 = arith.constant 144 : index
    %214 = vector.load %arg21[%c0_183, %c144_184] : memref<32x512xf32, #tpu.memory_space<vmem>>, vector<32x256xf32>
    %215 = arith.truncf %214 : vector<32x256xf32> to vector<32x256xbf16>
    %c224_185 = arith.constant 224 : index
    %c0_186 = arith.constant 0 : index
    %216 = vector.load %arg23[%c224_185, %c0_186] : memref<288x256xbf16, #tpu.memory_space<vmem>>, vector<32x256xbf16>
    tpu.vector_store %arg23[%c224_185, %c0_186], %215 {strides = array<i32>} : memref<288x256xbf16, #tpu.memory_space<vmem>>, vector<32x256xbf16>,
    %c0_187 = arith.constant 0 : index
    %c145_188 = arith.constant 145 : index
    %217 = vector.load %arg21[%c0_187, %c145_188] : memref<32x512xf32, #tpu.memory_space<vmem>>, vector<32x256xf32>
    %218 = vector.broadcast %18 : vector<1x256xf32> to vector<32x256xf32>
    %219 = arith.mulf %217, %218 : vector<32x256xf32>
    %220 = arith.truncf %219 : vector<32x256xf32> to vector<32x256xbf16>
    %c256_189 = arith.constant 256 : index
    %c0_190 = arith.constant 0 : index
    %221 = vector.load %arg23[%c256_189, %c0_190] : memref<288x256xbf16, #tpu.memory_space<vmem>>, vector<32x256xbf16>
    tpu.vector_store %arg23[%c256_189, %c0_190], %220 {strides = array<i32>} : memref<288x256xbf16, #tpu.memory_space<vmem>>, vector<32x256xbf16>,
    %c2_191 = arith.constant 2 : index
    %c0_192 = arith.constant 0 : index
    %c0_193 = arith.constant 0 : index
    %222 = vector.load %arg6[%c2_191, %c0_192, %c0_193] : memref<3x32x288xbf16, #tpu.memory_space<vmem>>, vector<1x32x288xbf16>
    %223 = vector.shape_cast %222 : vector<1x32x288xbf16> to vector<32x288xbf16>
    %c0_194 = arith.constant 0 : index
    %c0_195 = arith.constant 0 : index
    %224 = vector.load %arg23[%c0_194, %c0_195] : memref<288x256xbf16, #tpu.memory_space<vmem>>, vector<288x256xbf16>
    %cst_196 = arith.constant dense<0.000000e+00> : vector<32x256xf32>
    %225 = tpu.matmul %223, %224, %cst_196 {dimension_numbers = #tpu.dot_dimension_numbers<[1], [0], [0], [1], [0, 0, 1, 1], [], []>} : vector<32x288xbf16>, vector<288x256xbf16>, vector<32x256xf32> -> vector<32x256xf32>
    %c3_197 = arith.constant 3 : index
    %c0_198 = arith.constant 0 : index
    %c0_199 = arith.constant 0 : index
    %226 = vector.load %arg8[%c3_197, %c0_198, %c0_199] : memref<5x32x1xf32, #tpu.memory_space<vmem>>, vector<1x32x1xf32>
    %227 = vector.shape_cast %226 : vector<1x32x1xf32> to vector<32x1xf32>
    %228 = vector.broadcast %227 : vector<32x1xf32> to vector<32x256xf32>
    %229 = arith.addf %225, %228 : vector<32x256xf32>
    %cst_200 = arith.constant 0.000000e+00 : f32
    %230 = vector.broadcast %cst_200 : f32 to vector<32x256xf32>
    %231 = arith.cmpf oge, %229, %230 : vector<32x256xf32>
    %c3_201 = arith.constant 3 : index
    %c0_202 = arith.constant 0 : index
    %c0_203 = arith.constant 0 : index
    %232 = vector.load %arg9[%c3_201, %c0_202, %c0_203] : memref<4x32x1xf32, #tpu.memory_space<vmem>>, vector<1x32x1xf32>
    %233 = vector.shape_cast %232 : vector<1x32x1xf32> to vector<32x1xf32>
    %234 = vector.broadcast %233 : vector<32x1xf32> to vector<32x256xf32>
    %235 = arith.mulf %234, %229 : vector<32x256xf32>
    %236 = arith.select %231, %229, %235 : vector<32x256xi1>, vector<32x256xf32>
    %c0_204 = arith.constant 0 : index
    %c128_205 = arith.constant 128 : index
    %237 = vector.load %arg21[%c0_204, %c128_205] : memref<32x512xf32, #tpu.memory_space<vmem>>, vector<32x256xf32>
    tpu.vector_store %arg21[%c0_204, %c128_205], %236 {strides = array<i32>} : memref<32x512xf32, #tpu.memory_space<vmem>>, vector<32x256xf32>,
    %c0_206 = arith.constant 0 : index
    %c111_207 = arith.constant 111 : index
    %238 = vector.load %arg21[%c0_206, %c111_207] : memref<32x512xf32, #tpu.memory_space<vmem>>, vector<32x256xf32>
    %239 = vector.broadcast %17 : vector<1x256xf32> to vector<32x256xf32>
    %240 = arith.mulf %238, %239 : vector<32x256xf32>
    %241 = arith.truncf %240 : vector<32x256xf32> to vector<32x256xbf16>
    %c0_208 = arith.constant 0 : index
    %c0_209 = arith.constant 0 : index
    %242 = vector.load %arg23[%c0_208, %c0_209] : memref<288x256xbf16, #tpu.memory_space<vmem>>, vector<32x256xbf16>
    tpu.vector_store %arg23[%c0_208, %c0_209], %241 {strides = array<i32>} : memref<288x256xbf16, #tpu.memory_space<vmem>>, vector<32x256xbf16>,
    %c0_210 = arith.constant 0 : index
    %c112_211 = arith.constant 112 : index
    %243 = vector.load %arg21[%c0_210, %c112_211] : memref<32x512xf32, #tpu.memory_space<vmem>>, vector<32x256xf32>
    %244 = arith.truncf %243 : vector<32x256xf32> to vector<32x256xbf16>
    %c32_212 = arith.constant 32 : index
    %c0_213 = arith.constant 0 : index
    %245 = vector.load %arg23[%c32_212, %c0_213] : memref<288x256xbf16, #tpu.memory_space<vmem>>, vector<32x256xbf16>
    tpu.vector_store %arg23[%c32_212, %c0_213], %244 {strides = array<i32>} : memref<288x256xbf16, #tpu.memory_space<vmem>>, vector<32x256xbf16>,
    %c0_214 = arith.constant 0 : index
    %c113_215 = arith.constant 113 : index
    %246 = vector.load %arg21[%c0_214, %c113_215] : memref<32x512xf32, #tpu.memory_space<vmem>>, vector<32x256xf32>
    %247 = vector.broadcast %18 : vector<1x256xf32> to vector<32x256xf32>
    %248 = arith.mulf %246, %247 : vector<32x256xf32>
    %249 = arith.truncf %248 : vector<32x256xf32> to vector<32x256xbf16>
    %c64_216 = arith.constant 64 : index
    %c0_217 = arith.constant 0 : index
    %250 = vector.load %arg23[%c64_216, %c0_217] : memref<288x256xbf16, #tpu.memory_space<vmem>>, vector<32x256xbf16>
    tpu.vector_store %arg23[%c64_216, %c0_217], %249 {strides = array<i32>} : memref<288x256xbf16, #tpu.memory_space<vmem>>, vector<32x256xbf16>,
    %c0_218 = arith.constant 0 : index
    %c127_219 = arith.constant 127 : index
    %251 = vector.load %arg21[%c0_218, %c127_219] : memref<32x512xf32, #tpu.memory_space<vmem>>, vector<32x256xf32>
    %252 = vector.broadcast %17 : vector<1x256xf32> to vector<32x256xf32>
    %253 = arith.mulf %251, %252 : vector<32x256xf32>
    %254 = arith.truncf %253 : vector<32x256xf32> to vector<32x256xbf16>
    %c96_220 = arith.constant 96 : index
    %c0_221 = arith.constant 0 : index
    %255 = vector.load %arg23[%c96_220, %c0_221] : memref<288x256xbf16, #tpu.memory_space<vmem>>, vector<32x256xbf16>
    tpu.vector_store %arg23[%c96_220, %c0_221], %254 {strides = array<i32>} : memref<288x256xbf16, #tpu.memory_space<vmem>>, vector<32x256xbf16>,
    %c0_222 = arith.constant 0 : index
    %c128_223 = arith.constant 128 : index
    %256 = vector.load %arg21[%c0_222, %c128_223] : memref<32x512xf32, #tpu.memory_space<vmem>>, vector<32x256xf32>
    %257 = arith.truncf %256 : vector<32x256xf32> to vector<32x256xbf16>
    %c128_224 = arith.constant 128 : index
    %c0_225 = arith.constant 0 : index
    %258 = vector.load %arg23[%c128_224, %c0_225] : memref<288x256xbf16, #tpu.memory_space<vmem>>, vector<32x256xbf16>
    tpu.vector_store %arg23[%c128_224, %c0_225], %257 {strides = array<i32>} : memref<288x256xbf16, #tpu.memory_space<vmem>>, vector<32x256xbf16>,
    %c0_226 = arith.constant 0 : index
    %c129_227 = arith.constant 129 : index
    %259 = vector.load %arg21[%c0_226, %c129_227] : memref<32x512xf32, #tpu.memory_space<vmem>>, vector<32x256xf32>
    %260 = vector.broadcast %18 : vector<1x256xf32> to vector<32x256xf32>
    %261 = arith.mulf %259, %260 : vector<32x256xf32>
    %262 = arith.truncf %261 : vector<32x256xf32> to vector<32x256xbf16>
    %c160_228 = arith.constant 160 : index
    %c0_229 = arith.constant 0 : index
    %263 = vector.load %arg23[%c160_228, %c0_229] : memref<288x256xbf16, #tpu.memory_space<vmem>>, vector<32x256xbf16>
    tpu.vector_store %arg23[%c160_228, %c0_229], %262 {strides = array<i32>} : memref<288x256xbf16, #tpu.memory_space<vmem>>, vector<32x256xbf16>,
    %c0_230 = arith.constant 0 : index
    %c143_231 = arith.constant 143 : index
    %264 = vector.load %arg21[%c0_230, %c143_231] : memref<32x512xf32, #tpu.memory_space<vmem>>, vector<32x256xf32>
    %265 = vector.broadcast %17 : vector<1x256xf32> to vector<32x256xf32>
    %266 = arith.mulf %264, %265 : vector<32x256xf32>
    %267 = arith.truncf %266 : vector<32x256xf32> to vector<32x256xbf16>
    %c192_232 = arith.constant 192 : index
    %c0_233 = arith.constant 0 : index
    %268 = vector.load %arg23[%c192_232, %c0_233] : memref<288x256xbf16, #tpu.memory_space<vmem>>, vector<32x256xbf16>
    tpu.vector_store %arg23[%c192_232, %c0_233], %267 {strides = array<i32>} : memref<288x256xbf16, #tpu.memory_space<vmem>>, vector<32x256xbf16>,
    %c0_234 = arith.constant 0 : index
    %c144_235 = arith.constant 144 : index
    %269 = vector.load %arg21[%c0_234, %c144_235] : memref<32x512xf32, #tpu.memory_space<vmem>>, vector<32x256xf32>
    %270 = arith.truncf %269 : vector<32x256xf32> to vector<32x256xbf16>
    %c224_236 = arith.constant 224 : index
    %c0_237 = arith.constant 0 : index
    %271 = vector.load %arg23[%c224_236, %c0_237] : memref<288x256xbf16, #tpu.memory_space<vmem>>, vector<32x256xbf16>
    tpu.vector_store %arg23[%c224_236, %c0_237], %270 {strides = array<i32>} : memref<288x256xbf16, #tpu.memory_space<vmem>>, vector<32x256xbf16>,
    %c0_238 = arith.constant 0 : index
    %c145_239 = arith.constant 145 : index
    %272 = vector.load %arg21[%c0_238, %c145_239] : memref<32x512xf32, #tpu.memory_space<vmem>>, vector<32x256xf32>
    %273 = vector.broadcast %18 : vector<1x256xf32> to vector<32x256xf32>
    %274 = arith.mulf %272, %273 : vector<32x256xf32>
    %275 = arith.truncf %274 : vector<32x256xf32> to vector<32x256xbf16>
    %c256_240 = arith.constant 256 : index
    %c0_241 = arith.constant 0 : index
    %276 = vector.load %arg23[%c256_240, %c0_241] : memref<288x256xbf16, #tpu.memory_space<vmem>>, vector<32x256xbf16>
    tpu.vector_store %arg23[%c256_240, %c0_241], %275 {strides = array<i32>} : memref<288x256xbf16, #tpu.memory_space<vmem>>, vector<32x256xbf16>,
    %c0_242 = arith.constant 0 : index
    %c0_243 = arith.constant 0 : index
    %277 = vector.load %arg7[%c0_242, %c0_243] : memref<8x288xbf16, #tpu.memory_space<vmem>>, vector<8x288xbf16>
    %c0_244 = arith.constant 0 : index
    %c0_245 = arith.constant 0 : index
    %278 = vector.load %arg23[%c0_244, %c0_245] : memref<288x256xbf16, #tpu.memory_space<vmem>>, vector<288x256xbf16>
    %cst_246 = arith.constant dense<0.000000e+00> : vector<8x256xf32>
    %279 = tpu.matmul %277, %278, %cst_246 {dimension_numbers = #tpu.dot_dimension_numbers<[1], [0], [0], [1], [0, 0, 1, 1], [], []>} : vector<8x288xbf16>, vector<288x256xbf16>, vector<8x256xf32> -> vector<8x256xf32>
    %280 = vector.extract_strided_slice %279 {offsets = [0, 0], sizes = [1, 256], strides = [1, 1]} : vector<8x256xf32> to vector<1x256xf32>
    %c4 = arith.constant 4 : index
    %c0_247 = arith.constant 0 : index
    %c0_248 = arith.constant 0 : index
    %281 = vector.load %arg8[%c4, %c0_247, %c0_248] : memref<5x32x1xf32, #tpu.memory_space<vmem>>, vector<1x32x1xf32>
    %282 = vector.shape_cast %281 : vector<1x32x1xf32> to vector<32x1xf32>
    %283 = vector.extract_strided_slice %282 {offsets = [0, 0], sizes = [1, 1], strides = [1, 1]} : vector<32x1xf32> to vector<1x1xf32>
    %284 = vector.broadcast %283 : vector<1x1xf32> to vector<1x256xf32>
    %285 = arith.addf %280, %284 : vector<1x256xf32>
    %c0_249 = arith.constant 0 : index
    %c0_250 = arith.constant 0 : index
    %286 = vector.load %arg1[%c0_249, %c0_250] : memref<1x256xf32, #tpu.memory_space<vmem>>, vector<1x256xf32>
    %287 = arith.addf %286, %285 : vector<1x256xf32>
    %c0_251 = arith.constant 0 : index
    %c0_252 = arith.constant 0 : index
    %288 = vector.load %arg20[%c0_251, %c0_252] : memref<1x256xf32, #tpu.memory_space<vmem>>, vector<1x256xf32>
    tpu.vector_store %arg20[%c0_251, %c0_252], %287 {strides = array<i32>} : memref<1x256xf32, #tpu.memory_space<vmem>>, vector<1x256xf32>,
    %289 = vector.shape_cast %287 : vector<1x256xf32> to vector<1x256xf32>
    %290 = vector.broadcast %289 : vector<1x256xf32> to vector<8x256xf32>
    %c0_253 = arith.constant 0 : index
    %c0_254 = arith.constant 0 : index
    %291 = vector.load %arg4[%c0_253, %c0_254] : memref<256x256xf32, #tpu.memory_space<vmem>>, vector<256x256xf32>
    %cst_255 = arith.constant dense<0.000000e+00> : vector<8x256xf32>
    %292 = tpu.matmul %290, %291, %cst_255 {dimension_numbers = #tpu.dot_dimension_numbers<[1], [0], [0], [1], [0, 0, 1, 1], [], []>} : vector<8x256xf32>, vector<256x256xf32>, vector<8x256xf32> -> vector<8x256xf32>
    %293 = vector.extract_strided_slice %292 {offsets = [0, 0], sizes = [1, 256], strides = [1, 1]} : vector<8x256xf32> to vector<1x256xf32>
    %294 = vector.extract_strided_slice %0 {offsets = [0, 0], sizes = [1, 256], strides = [1, 1]} : vector<1x512xf32> to vector<1x256xf32>
    %295 = vector.extract_strided_slice %0 {offsets = [0, 256], sizes = [1, 256], strides = [1, 1]} : vector<1x512xf32> to vector<1x256xf32>
    %296 = arith.addf %294, %295 : vector<1x256xf32>
    %cst_256 = arith.constant 5.000000e-01 : f32
    %297 = vector.broadcast %cst_256 : f32 to vector<1x256xf32>
    %298 = arith.mulf %296, %297 : vector<1x256xf32>
    %cst_257 = arith.constant 0.000000e+00 : f32
    %299 = vector.broadcast %cst_257 : f32 to vector<32x128xf32>
    %c0_258 = arith.constant 0 : index
    %c0_259 = arith.constant 0 : index
    %300 = vector.load %arg22[%c0_258, %c0_259] : memref<32x512xf32, #tpu.memory_space<vmem>>, vector<32x128xf32>
    tpu.vector_store %arg22[%c0_258, %c0_259], %299 {strides = array<i32>} : memref<32x512xf32, #tpu.memory_space<vmem>>, vector<32x128xf32>,
    %cst_260 = arith.constant 0.000000e+00 : f32
    %301 = vector.broadcast %cst_260 : f32 to vector<32x128xf32>
    %c0_261 = arith.constant 0 : index
    %c384_262 = arith.constant 384 : index
    %302 = vector.load %arg22[%c0_261, %c384_262] : memref<32x512xf32, #tpu.memory_space<vmem>>, vector<32x128xf32>
    tpu.vector_store %arg22[%c0_261, %c384_262], %301 {strides = array<i32>} : memref<32x512xf32, #tpu.memory_space<vmem>>, vector<32x128xf32>,
    %c0_263 = arith.constant 0 : index
    %c128_264 = arith.constant 128 : index
    %303 = vector.load %arg22[%c0_263, %c128_264] : memref<32x512xf32, #tpu.memory_space<vmem>>, vector<1x256xf32>
    tpu.vector_store %arg22[%c0_263, %c128_264], %298 {strides = array<i32>} : memref<32x512xf32, #tpu.memory_space<vmem>>, vector<1x256xf32>,
    %c1_265 = arith.constant 1 : index
    %c128_266 = arith.constant 128 : index
    %304 = vector.load %arg22[%c1_265, %c128_266] : memref<32x512xf32, #tpu.memory_space<vmem>>, vector<1x256xf32>
    tpu.vector_store %arg22[%c1_265, %c128_266], %293 {strides = array<i32>} : memref<32x512xf32, #tpu.memory_space<vmem>>, vector<1x256xf32>,
    %cst_267 = arith.constant 0.000000e+00 : f32
    %305 = vector.broadcast %cst_267 : f32 to vector<14x256xf32>
    %c2_268 = arith.constant 2 : index
    %c128_269 = arith.constant 128 : index
    %306 = vector.load %arg22[%c2_268, %c128_269] : memref<32x512xf32, #tpu.memory_space<vmem>>, vector<14x256xf32>
    tpu.vector_store %arg22[%c2_268, %c128_269], %305 {strides = array<i32>} : memref<32x512xf32, #tpu.memory_space<vmem>>, vector<14x256xf32>,
    %c0_270 = arith.constant 0 : index
    %c0_271 = arith.constant 0 : index
    %307 = vector.load %arg17[%c0_270, %c0_271] : memref<1x256xf32, #tpu.memory_space<vmem>>, vector<1x256xf32>
    %c0_272 = arith.constant 0 : index
    %c0_273 = arith.constant 0 : index
    %308 = vector.load %arg18[%c0_272, %c0_273] : memref<1x256xf32, #tpu.memory_space<vmem>>, vector<1x256xf32>
    %c0_274 = arith.constant 0 : index
    %c111_275 = arith.constant 111 : index
    %309 = vector.load %arg22[%c0_274, %c111_275] : memref<32x512xf32, #tpu.memory_space<vmem>>, vector<16x256xf32>
    %310 = vector.broadcast %307 : vector<1x256xf32> to vector<16x256xf32>
    %311 = arith.mulf %309, %310 : vector<16x256xf32>
    %312 = arith.truncf %311 : vector<16x256xf32> to vector<16x256xbf16>
    %c0_276 = arith.constant 0 : index
    %c0_277 = arith.constant 0 : index
    %313 = vector.load %arg23[%c0_276, %c0_277] : memref<288x256xbf16, #tpu.memory_space<vmem>>, vector<16x256xbf16>
    tpu.vector_store %arg23[%c0_276, %c0_277], %312 {strides = array<i32>} : memref<288x256xbf16, #tpu.memory_space<vmem>>, vector<16x256xbf16>,
    %c0_278 = arith.constant 0 : index
    %c112_279 = arith.constant 112 : index
    %314 = vector.load %arg22[%c0_278, %c112_279] : memref<32x512xf32, #tpu.memory_space<vmem>>, vector<16x256xf32>
    %315 = arith.truncf %314 : vector<16x256xf32> to vector<16x256xbf16>
    %c16_280 = arith.constant 16 : index
    %c0_281 = arith.constant 0 : index
    %316 = vector.load %arg23[%c16_280, %c0_281] : memref<288x256xbf16, #tpu.memory_space<vmem>>, vector<16x256xbf16>
    tpu.vector_store %arg23[%c16_280, %c0_281], %315 {strides = array<i32>} : memref<288x256xbf16, #tpu.memory_space<vmem>>, vector<16x256xbf16>,
    %c0_282 = arith.constant 0 : index
    %c113_283 = arith.constant 113 : index
    %317 = vector.load %arg22[%c0_282, %c113_283] : memref<32x512xf32, #tpu.memory_space<vmem>>, vector<16x256xf32>
    %318 = vector.broadcast %308 : vector<1x256xf32> to vector<16x256xf32>
    %319 = arith.mulf %317, %318 : vector<16x256xf32>
    %320 = arith.truncf %319 : vector<16x256xf32> to vector<16x256xbf16>
    %c32_284 = arith.constant 32 : index
    %c0_285 = arith.constant 0 : index
    %321 = vector.load %arg23[%c32_284, %c0_285] : memref<288x256xbf16, #tpu.memory_space<vmem>>, vector<16x256xbf16>
    tpu.vector_store %arg23[%c32_284, %c0_285], %320 {strides = array<i32>} : memref<288x256xbf16, #tpu.memory_space<vmem>>, vector<16x256xbf16>,
    %c0_286 = arith.constant 0 : index
    %c127_287 = arith.constant 127 : index
    %322 = vector.load %arg22[%c0_286, %c127_287] : memref<32x512xf32, #tpu.memory_space<vmem>>, vector<16x256xf32>
    %323 = vector.broadcast %307 : vector<1x256xf32> to vector<16x256xf32>
    %324 = arith.mulf %322, %323 : vector<16x256xf32>
    %325 = arith.truncf %324 : vector<16x256xf32> to vector<16x256xbf16>
    %c48_288 = arith.constant 48 : index
    %c0_289 = arith.constant 0 : index
    %326 = vector.load %arg23[%c48_288, %c0_289] : memref<288x256xbf16, #tpu.memory_space<vmem>>, vector<16x256xbf16>
    tpu.vector_store %arg23[%c48_288, %c0_289], %325 {strides = array<i32>} : memref<288x256xbf16, #tpu.memory_space<vmem>>, vector<16x256xbf16>,
    %c0_290 = arith.constant 0 : index
    %c128_291 = arith.constant 128 : index
    %327 = vector.load %arg22[%c0_290, %c128_291] : memref<32x512xf32, #tpu.memory_space<vmem>>, vector<16x256xf32>
    %328 = arith.truncf %327 : vector<16x256xf32> to vector<16x256xbf16>
    %c64_292 = arith.constant 64 : index
    %c0_293 = arith.constant 0 : index
    %329 = vector.load %arg23[%c64_292, %c0_293] : memref<288x256xbf16, #tpu.memory_space<vmem>>, vector<16x256xbf16>
    tpu.vector_store %arg23[%c64_292, %c0_293], %328 {strides = array<i32>} : memref<288x256xbf16, #tpu.memory_space<vmem>>, vector<16x256xbf16>,
    %c0_294 = arith.constant 0 : index
    %c129_295 = arith.constant 129 : index
    %330 = vector.load %arg22[%c0_294, %c129_295] : memref<32x512xf32, #tpu.memory_space<vmem>>, vector<16x256xf32>
    %331 = vector.broadcast %308 : vector<1x256xf32> to vector<16x256xf32>
    %332 = arith.mulf %330, %331 : vector<16x256xf32>
    %333 = arith.truncf %332 : vector<16x256xf32> to vector<16x256xbf16>
    %c80_296 = arith.constant 80 : index
    %c0_297 = arith.constant 0 : index
    %334 = vector.load %arg23[%c80_296, %c0_297] : memref<288x256xbf16, #tpu.memory_space<vmem>>, vector<16x256xbf16>
    tpu.vector_store %arg23[%c80_296, %c0_297], %333 {strides = array<i32>} : memref<288x256xbf16, #tpu.memory_space<vmem>>, vector<16x256xbf16>,
    %c0_298 = arith.constant 0 : index
    %c143_299 = arith.constant 143 : index
    %335 = vector.load %arg22[%c0_298, %c143_299] : memref<32x512xf32, #tpu.memory_space<vmem>>, vector<16x256xf32>
    %336 = vector.broadcast %307 : vector<1x256xf32> to vector<16x256xf32>
    %337 = arith.mulf %335, %336 : vector<16x256xf32>
    %338 = arith.truncf %337 : vector<16x256xf32> to vector<16x256xbf16>
    %c96_300 = arith.constant 96 : index
    %c0_301 = arith.constant 0 : index
    %339 = vector.load %arg23[%c96_300, %c0_301] : memref<288x256xbf16, #tpu.memory_space<vmem>>, vector<16x256xbf16>
    tpu.vector_store %arg23[%c96_300, %c0_301], %338 {strides = array<i32>} : memref<288x256xbf16, #tpu.memory_space<vmem>>, vector<16x256xbf16>,
    %c0_302 = arith.constant 0 : index
    %c144_303 = arith.constant 144 : index
    %340 = vector.load %arg22[%c0_302, %c144_303] : memref<32x512xf32, #tpu.memory_space<vmem>>, vector<16x256xf32>
    %341 = arith.truncf %340 : vector<16x256xf32> to vector<16x256xbf16>
    %c112_304 = arith.constant 112 : index
    %c0_305 = arith.constant 0 : index
    %342 = vector.load %arg23[%c112_304, %c0_305] : memref<288x256xbf16, #tpu.memory_space<vmem>>, vector<16x256xbf16>
    tpu.vector_store %arg23[%c112_304, %c0_305], %341 {strides = array<i32>} : memref<288x256xbf16, #tpu.memory_space<vmem>>, vector<16x256xbf16>,
    %c0_306 = arith.constant 0 : index
    %c145_307 = arith.constant 145 : index
    %343 = vector.load %arg22[%c0_306, %c145_307] : memref<32x512xf32, #tpu.memory_space<vmem>>, vector<16x256xf32>
    %344 = vector.broadcast %308 : vector<1x256xf32> to vector<16x256xf32>
    %345 = arith.mulf %343, %344 : vector<16x256xf32>
    %346 = arith.truncf %345 : vector<16x256xf32> to vector<16x256xbf16>
    %c128_308 = arith.constant 128 : index
    %c0_309 = arith.constant 0 : index
    %347 = vector.load %arg23[%c128_308, %c0_309] : memref<288x256xbf16, #tpu.memory_space<vmem>>, vector<16x256xbf16>
    tpu.vector_store %arg23[%c128_308, %c0_309], %346 {strides = array<i32>} : memref<288x256xbf16, #tpu.memory_space<vmem>>, vector<16x256xbf16>,
    %c0_310 = arith.constant 0 : index
    %c0_311 = arith.constant 0 : index
    %348 = vector.load %arg12[%c0_310, %c0_311] : memref<32x144xbf16, #tpu.memory_space<vmem>>, vector<32x144xbf16>
    %c0_312 = arith.constant 0 : index
    %c0_313 = arith.constant 0 : index
    %349 = vector.load %arg23[%c0_312, %c0_313] : memref<288x256xbf16, #tpu.memory_space<vmem>>, vector<144x256xbf16>
    %cst_314 = arith.constant dense<0.000000e+00> : vector<32x256xf32>
    %350 = tpu.matmul %348, %349, %cst_314 {dimension_numbers = #tpu.dot_dimension_numbers<[1], [0], [0], [1], [0, 0, 1, 1], [], []>} : vector<32x144xbf16>, vector<144x256xbf16>, vector<32x256xf32> -> vector<32x256xf32>
    %c0_315 = arith.constant 0 : index
    %c0_316 = arith.constant 0 : index
    %c0_317 = arith.constant 0 : index
    %351 = vector.load %arg15[%c0_315, %c0_316, %c0_317] : memref<5x32x1xf32, #tpu.memory_space<vmem>>, vector<1x32x1xf32>
    %352 = vector.shape_cast %351 : vector<1x32x1xf32> to vector<32x1xf32>
    %353 = vector.broadcast %352 : vector<32x1xf32> to vector<32x256xf32>
    %354 = arith.addf %350, %353 : vector<32x256xf32>
    %cst_318 = arith.constant 0.000000e+00 : f32
    %355 = vector.broadcast %cst_318 : f32 to vector<32x256xf32>
    %356 = arith.cmpf oge, %354, %355 : vector<32x256xf32>
    %c0_319 = arith.constant 0 : index
    %c0_320 = arith.constant 0 : index
    %c0_321 = arith.constant 0 : index
    %357 = vector.load %arg16[%c0_319, %c0_320, %c0_321] : memref<4x32x1xf32, #tpu.memory_space<vmem>>, vector<1x32x1xf32>
    %358 = vector.shape_cast %357 : vector<1x32x1xf32> to vector<32x1xf32>
    %359 = vector.broadcast %358 : vector<32x1xf32> to vector<32x256xf32>
    %360 = arith.mulf %359, %354 : vector<32x256xf32>
    %361 = arith.select %356, %354, %360 : vector<32x256xi1>, vector<32x256xf32>
    %c0_322 = arith.constant 0 : index
    %c128_323 = arith.constant 128 : index
    %362 = vector.load %arg22[%c0_322, %c128_323] : memref<32x512xf32, #tpu.memory_space<vmem>>, vector<32x256xf32>
    tpu.vector_store %arg22[%c0_322, %c128_323], %361 {strides = array<i32>} : memref<32x512xf32, #tpu.memory_space<vmem>>, vector<32x256xf32>,
    %c0_324 = arith.constant 0 : index
    %c111_325 = arith.constant 111 : index
    %363 = vector.load %arg22[%c0_324, %c111_325] : memref<32x512xf32, #tpu.memory_space<vmem>>, vector<32x256xf32>
    %364 = vector.broadcast %307 : vector<1x256xf32> to vector<32x256xf32>
    %365 = arith.mulf %363, %364 : vector<32x256xf32>
    %366 = arith.truncf %365 : vector<32x256xf32> to vector<32x256xbf16>
    %c0_326 = arith.constant 0 : index
    %c0_327 = arith.constant 0 : index
    %367 = vector.load %arg23[%c0_326, %c0_327] : memref<288x256xbf16, #tpu.memory_space<vmem>>, vector<32x256xbf16>
    tpu.vector_store %arg23[%c0_326, %c0_327], %366 {strides = array<i32>} : memref<288x256xbf16, #tpu.memory_space<vmem>>, vector<32x256xbf16>,
    %c0_328 = arith.constant 0 : index
    %c112_329 = arith.constant 112 : index
    %368 = vector.load %arg22[%c0_328, %c112_329] : memref<32x512xf32, #tpu.memory_space<vmem>>, vector<32x256xf32>
    %369 = arith.truncf %368 : vector<32x256xf32> to vector<32x256xbf16>
    %c32_330 = arith.constant 32 : index
    %c0_331 = arith.constant 0 : index
    %370 = vector.load %arg23[%c32_330, %c0_331] : memref<288x256xbf16, #tpu.memory_space<vmem>>, vector<32x256xbf16>
    tpu.vector_store %arg23[%c32_330, %c0_331], %369 {strides = array<i32>} : memref<288x256xbf16, #tpu.memory_space<vmem>>, vector<32x256xbf16>,
    %c0_332 = arith.constant 0 : index
    %c113_333 = arith.constant 113 : index
    %371 = vector.load %arg22[%c0_332, %c113_333] : memref<32x512xf32, #tpu.memory_space<vmem>>, vector<32x256xf32>
    %372 = vector.broadcast %308 : vector<1x256xf32> to vector<32x256xf32>
    %373 = arith.mulf %371, %372 : vector<32x256xf32>
    %374 = arith.truncf %373 : vector<32x256xf32> to vector<32x256xbf16>
    %c64_334 = arith.constant 64 : index
    %c0_335 = arith.constant 0 : index
    %375 = vector.load %arg23[%c64_334, %c0_335] : memref<288x256xbf16, #tpu.memory_space<vmem>>, vector<32x256xbf16>
    tpu.vector_store %arg23[%c64_334, %c0_335], %374 {strides = array<i32>} : memref<288x256xbf16, #tpu.memory_space<vmem>>, vector<32x256xbf16>,
    %c0_336 = arith.constant 0 : index
    %c127_337 = arith.constant 127 : index
    %376 = vector.load %arg22[%c0_336, %c127_337] : memref<32x512xf32, #tpu.memory_space<vmem>>, vector<32x256xf32>
    %377 = vector.broadcast %307 : vector<1x256xf32> to vector<32x256xf32>
    %378 = arith.mulf %376, %377 : vector<32x256xf32>
    %379 = arith.truncf %378 : vector<32x256xf32> to vector<32x256xbf16>
    %c96_338 = arith.constant 96 : index
    %c0_339 = arith.constant 0 : index
    %380 = vector.load %arg23[%c96_338, %c0_339] : memref<288x256xbf16, #tpu.memory_space<vmem>>, vector<32x256xbf16>
    tpu.vector_store %arg23[%c96_338, %c0_339], %379 {strides = array<i32>} : memref<288x256xbf16, #tpu.memory_space<vmem>>, vector<32x256xbf16>,
    %c0_340 = arith.constant 0 : index
    %c128_341 = arith.constant 128 : index
    %381 = vector.load %arg22[%c0_340, %c128_341] : memref<32x512xf32, #tpu.memory_space<vmem>>, vector<32x256xf32>
    %382 = arith.truncf %381 : vector<32x256xf32> to vector<32x256xbf16>
    %c128_342 = arith.constant 128 : index
    %c0_343 = arith.constant 0 : index
    %383 = vector.load %arg23[%c128_342, %c0_343] : memref<288x256xbf16, #tpu.memory_space<vmem>>, vector<32x256xbf16>
    tpu.vector_store %arg23[%c128_342, %c0_343], %382 {strides = array<i32>} : memref<288x256xbf16, #tpu.memory_space<vmem>>, vector<32x256xbf16>,
    %c0_344 = arith.constant 0 : index
    %c129_345 = arith.constant 129 : index
    %384 = vector.load %arg22[%c0_344, %c129_345] : memref<32x512xf32, #tpu.memory_space<vmem>>, vector<32x256xf32>
    %385 = vector.broadcast %308 : vector<1x256xf32> to vector<32x256xf32>
    %386 = arith.mulf %384, %385 : vector<32x256xf32>
    %387 = arith.truncf %386 : vector<32x256xf32> to vector<32x256xbf16>
    %c160_346 = arith.constant 160 : index
    %c0_347 = arith.constant 0 : index
    %388 = vector.load %arg23[%c160_346, %c0_347] : memref<288x256xbf16, #tpu.memory_space<vmem>>, vector<32x256xbf16>
    tpu.vector_store %arg23[%c160_346, %c0_347], %387 {strides = array<i32>} : memref<288x256xbf16, #tpu.memory_space<vmem>>, vector<32x256xbf16>,
    %c0_348 = arith.constant 0 : index
    %c143_349 = arith.constant 143 : index
    %389 = vector.load %arg22[%c0_348, %c143_349] : memref<32x512xf32, #tpu.memory_space<vmem>>, vector<32x256xf32>
    %390 = vector.broadcast %307 : vector<1x256xf32> to vector<32x256xf32>
    %391 = arith.mulf %389, %390 : vector<32x256xf32>
    %392 = arith.truncf %391 : vector<32x256xf32> to vector<32x256xbf16>
    %c192_350 = arith.constant 192 : index
    %c0_351 = arith.constant 0 : index
    %393 = vector.load %arg23[%c192_350, %c0_351] : memref<288x256xbf16, #tpu.memory_space<vmem>>, vector<32x256xbf16>
    tpu.vector_store %arg23[%c192_350, %c0_351], %392 {strides = array<i32>} : memref<288x256xbf16, #tpu.memory_space<vmem>>, vector<32x256xbf16>,
    %c0_352 = arith.constant 0 : index
    %c144_353 = arith.constant 144 : index
    %394 = vector.load %arg22[%c0_352, %c144_353] : memref<32x512xf32, #tpu.memory_space<vmem>>, vector<32x256xf32>
    %395 = arith.truncf %394 : vector<32x256xf32> to vector<32x256xbf16>
    %c224_354 = arith.constant 224 : index
    %c0_355 = arith.constant 0 : index
    %396 = vector.load %arg23[%c224_354, %c0_355] : memref<288x256xbf16, #tpu.memory_space<vmem>>, vector<32x256xbf16>
    tpu.vector_store %arg23[%c224_354, %c0_355], %395 {strides = array<i32>} : memref<288x256xbf16, #tpu.memory_space<vmem>>, vector<32x256xbf16>,
    %c0_356 = arith.constant 0 : index
    %c145_357 = arith.constant 145 : index
    %397 = vector.load %arg22[%c0_356, %c145_357] : memref<32x512xf32, #tpu.memory_space<vmem>>, vector<32x256xf32>
    %398 = vector.broadcast %308 : vector<1x256xf32> to vector<32x256xf32>
    %399 = arith.mulf %397, %398 : vector<32x256xf32>
    %400 = arith.truncf %399 : vector<32x256xf32> to vector<32x256xbf16>
    %c256_358 = arith.constant 256 : index
    %c0_359 = arith.constant 0 : index
    %401 = vector.load %arg23[%c256_358, %c0_359] : memref<288x256xbf16, #tpu.memory_space<vmem>>, vector<32x256xbf16>
    tpu.vector_store %arg23[%c256_358, %c0_359], %400 {strides = array<i32>} : memref<288x256xbf16, #tpu.memory_space<vmem>>, vector<32x256xbf16>,
    %c0_360 = arith.constant 0 : index
    %c0_361 = arith.constant 0 : index
    %c0_362 = arith.constant 0 : index
    %402 = vector.load %arg13[%c0_360, %c0_361, %c0_362] : memref<3x32x288xbf16, #tpu.memory_space<vmem>>, vector<1x32x288xbf16>
    %403 = vector.shape_cast %402 : vector<1x32x288xbf16> to vector<32x288xbf16>
    %c0_363 = arith.constant 0 : index
    %c0_364 = arith.constant 0 : index
    %404 = vector.load %arg23[%c0_363, %c0_364] : memref<288x256xbf16, #tpu.memory_space<vmem>>, vector<288x256xbf16>
    %cst_365 = arith.constant dense<0.000000e+00> : vector<32x256xf32>
    %405 = tpu.matmul %403, %404, %cst_365 {dimension_numbers = #tpu.dot_dimension_numbers<[1], [0], [0], [1], [0, 0, 1, 1], [], []>} : vector<32x288xbf16>, vector<288x256xbf16>, vector<32x256xf32> -> vector<32x256xf32>
    %c1_366 = arith.constant 1 : index
    %c0_367 = arith.constant 0 : index
    %c0_368 = arith.constant 0 : index
    %406 = vector.load %arg15[%c1_366, %c0_367, %c0_368] : memref<5x32x1xf32, #tpu.memory_space<vmem>>, vector<1x32x1xf32>
    %407 = vector.shape_cast %406 : vector<1x32x1xf32> to vector<32x1xf32>
    %408 = vector.broadcast %407 : vector<32x1xf32> to vector<32x256xf32>
    %409 = arith.addf %405, %408 : vector<32x256xf32>
    %cst_369 = arith.constant 0.000000e+00 : f32
    %410 = vector.broadcast %cst_369 : f32 to vector<32x256xf32>
    %411 = arith.cmpf oge, %409, %410 : vector<32x256xf32>
    %c1_370 = arith.constant 1 : index
    %c0_371 = arith.constant 0 : index
    %c0_372 = arith.constant 0 : index
    %412 = vector.load %arg16[%c1_370, %c0_371, %c0_372] : memref<4x32x1xf32, #tpu.memory_space<vmem>>, vector<1x32x1xf32>
    %413 = vector.shape_cast %412 : vector<1x32x1xf32> to vector<32x1xf32>
    %414 = vector.broadcast %413 : vector<32x1xf32> to vector<32x256xf32>
    %415 = arith.mulf %414, %409 : vector<32x256xf32>
    %416 = arith.select %411, %409, %415 : vector<32x256xi1>, vector<32x256xf32>
    %c0_373 = arith.constant 0 : index
    %c128_374 = arith.constant 128 : index
    %417 = vector.load %arg22[%c0_373, %c128_374] : memref<32x512xf32, #tpu.memory_space<vmem>>, vector<32x256xf32>
    tpu.vector_store %arg22[%c0_373, %c128_374], %416 {strides = array<i32>} : memref<32x512xf32, #tpu.memory_space<vmem>>, vector<32x256xf32>,
    %c0_375 = arith.constant 0 : index
    %c111_376 = arith.constant 111 : index
    %418 = vector.load %arg22[%c0_375, %c111_376] : memref<32x512xf32, #tpu.memory_space<vmem>>, vector<32x256xf32>
    %419 = vector.broadcast %307 : vector<1x256xf32> to vector<32x256xf32>
    %420 = arith.mulf %418, %419 : vector<32x256xf32>
    %421 = arith.truncf %420 : vector<32x256xf32> to vector<32x256xbf16>
    %c0_377 = arith.constant 0 : index
    %c0_378 = arith.constant 0 : index
    %422 = vector.load %arg23[%c0_377, %c0_378] : memref<288x256xbf16, #tpu.memory_space<vmem>>, vector<32x256xbf16>
    tpu.vector_store %arg23[%c0_377, %c0_378], %421 {strides = array<i32>} : memref<288x256xbf16, #tpu.memory_space<vmem>>, vector<32x256xbf16>,
    %c0_379 = arith.constant 0 : index
    %c112_380 = arith.constant 112 : index
    %423 = vector.load %arg22[%c0_379, %c112_380] : memref<32x512xf32, #tpu.memory_space<vmem>>, vector<32x256xf32>
    %424 = arith.truncf %423 : vector<32x256xf32> to vector<32x256xbf16>
    %c32_381 = arith.constant 32 : index
    %c0_382 = arith.constant 0 : index
    %425 = vector.load %arg23[%c32_381, %c0_382] : memref<288x256xbf16, #tpu.memory_space<vmem>>, vector<32x256xbf16>
    tpu.vector_store %arg23[%c32_381, %c0_382], %424 {strides = array<i32>} : memref<288x256xbf16, #tpu.memory_space<vmem>>, vector<32x256xbf16>,
    %c0_383 = arith.constant 0 : index
    %c113_384 = arith.constant 113 : index
    %426 = vector.load %arg22[%c0_383, %c113_384] : memref<32x512xf32, #tpu.memory_space<vmem>>, vector<32x256xf32>
    %427 = vector.broadcast %308 : vector<1x256xf32> to vector<32x256xf32>
    %428 = arith.mulf %426, %427 : vector<32x256xf32>
    %429 = arith.truncf %428 : vector<32x256xf32> to vector<32x256xbf16>
    %c64_385 = arith.constant 64 : index
    %c0_386 = arith.constant 0 : index
    %430 = vector.load %arg23[%c64_385, %c0_386] : memref<288x256xbf16, #tpu.memory_space<vmem>>, vector<32x256xbf16>
    tpu.vector_store %arg23[%c64_385, %c0_386], %429 {strides = array<i32>} : memref<288x256xbf16, #tpu.memory_space<vmem>>, vector<32x256xbf16>,
    %c0_387 = arith.constant 0 : index
    %c127_388 = arith.constant 127 : index
    %431 = vector.load %arg22[%c0_387, %c127_388] : memref<32x512xf32, #tpu.memory_space<vmem>>, vector<32x256xf32>
    %432 = vector.broadcast %307 : vector<1x256xf32> to vector<32x256xf32>
    %433 = arith.mulf %431, %432 : vector<32x256xf32>
    %434 = arith.truncf %433 : vector<32x256xf32> to vector<32x256xbf16>
    %c96_389 = arith.constant 96 : index
    %c0_390 = arith.constant 0 : index
    %435 = vector.load %arg23[%c96_389, %c0_390] : memref<288x256xbf16, #tpu.memory_space<vmem>>, vector<32x256xbf16>
    tpu.vector_store %arg23[%c96_389, %c0_390], %434 {strides = array<i32>} : memref<288x256xbf16, #tpu.memory_space<vmem>>, vector<32x256xbf16>,
    %c0_391 = arith.constant 0 : index
    %c128_392 = arith.constant 128 : index
    %436 = vector.load %arg22[%c0_391, %c128_392] : memref<32x512xf32, #tpu.memory_space<vmem>>, vector<32x256xf32>
    %437 = arith.truncf %436 : vector<32x256xf32> to vector<32x256xbf16>
    %c128_393 = arith.constant 128 : index
    %c0_394 = arith.constant 0 : index
    %438 = vector.load %arg23[%c128_393, %c0_394] : memref<288x256xbf16, #tpu.memory_space<vmem>>, vector<32x256xbf16>
    tpu.vector_store %arg23[%c128_393, %c0_394], %437 {strides = array<i32>} : memref<288x256xbf16, #tpu.memory_space<vmem>>, vector<32x256xbf16>,
    %c0_395 = arith.constant 0 : index
    %c129_396 = arith.constant 129 : index
    %439 = vector.load %arg22[%c0_395, %c129_396] : memref<32x512xf32, #tpu.memory_space<vmem>>, vector<32x256xf32>
    %440 = vector.broadcast %308 : vector<1x256xf32> to vector<32x256xf32>
    %441 = arith.mulf %439, %440 : vector<32x256xf32>
    %442 = arith.truncf %441 : vector<32x256xf32> to vector<32x256xbf16>
    %c160_397 = arith.constant 160 : index
    %c0_398 = arith.constant 0 : index
    %443 = vector.load %arg23[%c160_397, %c0_398] : memref<288x256xbf16, #tpu.memory_space<vmem>>, vector<32x256xbf16>
    tpu.vector_store %arg23[%c160_397, %c0_398], %442 {strides = array<i32>} : memref<288x256xbf16, #tpu.memory_space<vmem>>, vector<32x256xbf16>,
    %c0_399 = arith.constant 0 : index
    %c143_400 = arith.constant 143 : index
    %444 = vector.load %arg22[%c0_399, %c143_400] : memref<32x512xf32, #tpu.memory_space<vmem>>, vector<32x256xf32>
    %445 = vector.broadcast %307 : vector<1x256xf32> to vector<32x256xf32>
    %446 = arith.mulf %444, %445 : vector<32x256xf32>
    %447 = arith.truncf %446 : vector<32x256xf32> to vector<32x256xbf16>
    %c192_401 = arith.constant 192 : index
    %c0_402 = arith.constant 0 : index
    %448 = vector.load %arg23[%c192_401, %c0_402] : memref<288x256xbf16, #tpu.memory_space<vmem>>, vector<32x256xbf16>
    tpu.vector_store %arg23[%c192_401, %c0_402], %447 {strides = array<i32>} : memref<288x256xbf16, #tpu.memory_space<vmem>>, vector<32x256xbf16>,
    %c0_403 = arith.constant 0 : index
    %c144_404 = arith.constant 144 : index
    %449 = vector.load %arg22[%c0_403, %c144_404] : memref<32x512xf32, #tpu.memory_space<vmem>>, vector<32x256xf32>
    %450 = arith.truncf %449 : vector<32x256xf32> to vector<32x256xbf16>
    %c224_405 = arith.constant 224 : index
    %c0_406 = arith.constant 0 : index
    %451 = vector.load %arg23[%c224_405, %c0_406] : memref<288x256xbf16, #tpu.memory_space<vmem>>, vector<32x256xbf16>
    tpu.vector_store %arg23[%c224_405, %c0_406], %450 {strides = array<i32>} : memref<288x256xbf16, #tpu.memory_space<vmem>>, vector<32x256xbf16>,
    %c0_407 = arith.constant 0 : index
    %c145_408 = arith.constant 145 : index
    %452 = vector.load %arg22[%c0_407, %c145_408] : memref<32x512xf32, #tpu.memory_space<vmem>>, vector<32x256xf32>
    %453 = vector.broadcast %308 : vector<1x256xf32> to vector<32x256xf32>
    %454 = arith.mulf %452, %453 : vector<32x256xf32>
    %455 = arith.truncf %454 : vector<32x256xf32> to vector<32x256xbf16>
    %c256_409 = arith.constant 256 : index
    %c0_410 = arith.constant 0 : index
    %456 = vector.load %arg23[%c256_409, %c0_410] : memref<288x256xbf16, #tpu.memory_space<vmem>>, vector<32x256xbf16>
    tpu.vector_store %arg23[%c256_409, %c0_410], %455 {strides = array<i32>} : memref<288x256xbf16, #tpu.memory_space<vmem>>, vector<32x256xbf16>,
    %c1_411 = arith.constant 1 : index
    %c0_412 = arith.constant 0 : index
    %c0_413 = arith.constant 0 : index
    %457 = vector.load %arg13[%c1_411, %c0_412, %c0_413] : memref<3x32x288xbf16, #tpu.memory_space<vmem>>, vector<1x32x288xbf16>
    %458 = vector.shape_cast %457 : vector<1x32x288xbf16> to vector<32x288xbf16>
    %c0_414 = arith.constant 0 : index
    %c0_415 = arith.constant 0 : index
    %459 = vector.load %arg23[%c0_414, %c0_415] : memref<288x256xbf16, #tpu.memory_space<vmem>>, vector<288x256xbf16>
    %cst_416 = arith.constant dense<0.000000e+00> : vector<32x256xf32>
    %460 = tpu.matmul %458, %459, %cst_416 {dimension_numbers = #tpu.dot_dimension_numbers<[1], [0], [0], [1], [0, 0, 1, 1], [], []>} : vector<32x288xbf16>, vector<288x256xbf16>, vector<32x256xf32> -> vector<32x256xf32>
    %c2_417 = arith.constant 2 : index
    %c0_418 = arith.constant 0 : index
    %c0_419 = arith.constant 0 : index
    %461 = vector.load %arg15[%c2_417, %c0_418, %c0_419] : memref<5x32x1xf32, #tpu.memory_space<vmem>>, vector<1x32x1xf32>
    %462 = vector.shape_cast %461 : vector<1x32x1xf32> to vector<32x1xf32>
    %463 = vector.broadcast %462 : vector<32x1xf32> to vector<32x256xf32>
    %464 = arith.addf %460, %463 : vector<32x256xf32>
    %cst_420 = arith.constant 0.000000e+00 : f32
    %465 = vector.broadcast %cst_420 : f32 to vector<32x256xf32>
    %466 = arith.cmpf oge, %464, %465 : vector<32x256xf32>
    %c2_421 = arith.constant 2 : index
    %c0_422 = arith.constant 0 : index
    %c0_423 = arith.constant 0 : index
    %467 = vector.load %arg16[%c2_421, %c0_422, %c0_423] : memref<4x32x1xf32, #tpu.memory_space<vmem>>, vector<1x32x1xf32>
    %468 = vector.shape_cast %467 : vector<1x32x1xf32> to vector<32x1xf32>
    %469 = vector.broadcast %468 : vector<32x1xf32> to vector<32x256xf32>
    %470 = arith.mulf %469, %464 : vector<32x256xf32>
    %471 = arith.select %466, %464, %470 : vector<32x256xi1>, vector<32x256xf32>
    %c0_424 = arith.constant 0 : index
    %c128_425 = arith.constant 128 : index
    %472 = vector.load %arg22[%c0_424, %c128_425] : memref<32x512xf32, #tpu.memory_space<vmem>>, vector<32x256xf32>
    tpu.vector_store %arg22[%c0_424, %c128_425], %471 {strides = array<i32>} : memref<32x512xf32, #tpu.memory_space<vmem>>, vector<32x256xf32>,
    %c0_426 = arith.constant 0 : index
    %c111_427 = arith.constant 111 : index
    %473 = vector.load %arg22[%c0_426, %c111_427] : memref<32x512xf32, #tpu.memory_space<vmem>>, vector<32x256xf32>
    %474 = vector.broadcast %307 : vector<1x256xf32> to vector<32x256xf32>
    %475 = arith.mulf %473, %474 : vector<32x256xf32>
    %476 = arith.truncf %475 : vector<32x256xf32> to vector<32x256xbf16>
    %c0_428 = arith.constant 0 : index
    %c0_429 = arith.constant 0 : index
    %477 = vector.load %arg23[%c0_428, %c0_429] : memref<288x256xbf16, #tpu.memory_space<vmem>>, vector<32x256xbf16>
    tpu.vector_store %arg23[%c0_428, %c0_429], %476 {strides = array<i32>} : memref<288x256xbf16, #tpu.memory_space<vmem>>, vector<32x256xbf16>,
    %c0_430 = arith.constant 0 : index
    %c112_431 = arith.constant 112 : index
    %478 = vector.load %arg22[%c0_430, %c112_431] : memref<32x512xf32, #tpu.memory_space<vmem>>, vector<32x256xf32>
    %479 = arith.truncf %478 : vector<32x256xf32> to vector<32x256xbf16>
    %c32_432 = arith.constant 32 : index
    %c0_433 = arith.constant 0 : index
    %480 = vector.load %arg23[%c32_432, %c0_433] : memref<288x256xbf16, #tpu.memory_space<vmem>>, vector<32x256xbf16>
    tpu.vector_store %arg23[%c32_432, %c0_433], %479 {strides = array<i32>} : memref<288x256xbf16, #tpu.memory_space<vmem>>, vector<32x256xbf16>,
    %c0_434 = arith.constant 0 : index
    %c113_435 = arith.constant 113 : index
    %481 = vector.load %arg22[%c0_434, %c113_435] : memref<32x512xf32, #tpu.memory_space<vmem>>, vector<32x256xf32>
    %482 = vector.broadcast %308 : vector<1x256xf32> to vector<32x256xf32>
    %483 = arith.mulf %481, %482 : vector<32x256xf32>
    %484 = arith.truncf %483 : vector<32x256xf32> to vector<32x256xbf16>
    %c64_436 = arith.constant 64 : index
    %c0_437 = arith.constant 0 : index
    %485 = vector.load %arg23[%c64_436, %c0_437] : memref<288x256xbf16, #tpu.memory_space<vmem>>, vector<32x256xbf16>
    tpu.vector_store %arg23[%c64_436, %c0_437], %484 {strides = array<i32>} : memref<288x256xbf16, #tpu.memory_space<vmem>>, vector<32x256xbf16>,
    %c0_438 = arith.constant 0 : index
    %c127_439 = arith.constant 127 : index
    %486 = vector.load %arg22[%c0_438, %c127_439] : memref<32x512xf32, #tpu.memory_space<vmem>>, vector<32x256xf32>
    %487 = vector.broadcast %307 : vector<1x256xf32> to vector<32x256xf32>
    %488 = arith.mulf %486, %487 : vector<32x256xf32>
    %489 = arith.truncf %488 : vector<32x256xf32> to vector<32x256xbf16>
    %c96_440 = arith.constant 96 : index
    %c0_441 = arith.constant 0 : index
    %490 = vector.load %arg23[%c96_440, %c0_441] : memref<288x256xbf16, #tpu.memory_space<vmem>>, vector<32x256xbf16>
    tpu.vector_store %arg23[%c96_440, %c0_441], %489 {strides = array<i32>} : memref<288x256xbf16, #tpu.memory_space<vmem>>, vector<32x256xbf16>,
    %c0_442 = arith.constant 0 : index
    %c128_443 = arith.constant 128 : index
    %491 = vector.load %arg22[%c0_442, %c128_443] : memref<32x512xf32, #tpu.memory_space<vmem>>, vector<32x256xf32>
    %492 = arith.truncf %491 : vector<32x256xf32> to vector<32x256xbf16>
    %c128_444 = arith.constant 128 : index
    %c0_445 = arith.constant 0 : index
    %493 = vector.load %arg23[%c128_444, %c0_445] : memref<288x256xbf16, #tpu.memory_space<vmem>>, vector<32x256xbf16>
    tpu.vector_store %arg23[%c128_444, %c0_445], %492 {strides = array<i32>} : memref<288x256xbf16, #tpu.memory_space<vmem>>, vector<32x256xbf16>,
    %c0_446 = arith.constant 0 : index
    %c129_447 = arith.constant 129 : index
    %494 = vector.load %arg22[%c0_446, %c129_447] : memref<32x512xf32, #tpu.memory_space<vmem>>, vector<32x256xf32>
    %495 = vector.broadcast %308 : vector<1x256xf32> to vector<32x256xf32>
    %496 = arith.mulf %494, %495 : vector<32x256xf32>
    %497 = arith.truncf %496 : vector<32x256xf32> to vector<32x256xbf16>
    %c160_448 = arith.constant 160 : index
    %c0_449 = arith.constant 0 : index
    %498 = vector.load %arg23[%c160_448, %c0_449] : memref<288x256xbf16, #tpu.memory_space<vmem>>, vector<32x256xbf16>
    tpu.vector_store %arg23[%c160_448, %c0_449], %497 {strides = array<i32>} : memref<288x256xbf16, #tpu.memory_space<vmem>>, vector<32x256xbf16>,
    %c0_450 = arith.constant 0 : index
    %c143_451 = arith.constant 143 : index
    %499 = vector.load %arg22[%c0_450, %c143_451] : memref<32x512xf32, #tpu.memory_space<vmem>>, vector<32x256xf32>
    %500 = vector.broadcast %307 : vector<1x256xf32> to vector<32x256xf32>
    %501 = arith.mulf %499, %500 : vector<32x256xf32>
    %502 = arith.truncf %501 : vector<32x256xf32> to vector<32x256xbf16>
    %c192_452 = arith.constant 192 : index
    %c0_453 = arith.constant 0 : index
    %503 = vector.load %arg23[%c192_452, %c0_453] : memref<288x256xbf16, #tpu.memory_space<vmem>>, vector<32x256xbf16>
    tpu.vector_store %arg23[%c192_452, %c0_453], %502 {strides = array<i32>} : memref<288x256xbf16, #tpu.memory_space<vmem>>, vector<32x256xbf16>,
    %c0_454 = arith.constant 0 : index
    %c144_455 = arith.constant 144 : index
    %504 = vector.load %arg22[%c0_454, %c144_455] : memref<32x512xf32, #tpu.memory_space<vmem>>, vector<32x256xf32>
    %505 = arith.truncf %504 : vector<32x256xf32> to vector<32x256xbf16>
    %c224_456 = arith.constant 224 : index
    %c0_457 = arith.constant 0 : index
    %506 = vector.load %arg23[%c224_456, %c0_457] : memref<288x256xbf16, #tpu.memory_space<vmem>>, vector<32x256xbf16>
    tpu.vector_store %arg23[%c224_456, %c0_457], %505 {strides = array<i32>} : memref<288x256xbf16, #tpu.memory_space<vmem>>, vector<32x256xbf16>,
    %c0_458 = arith.constant 0 : index
    %c145_459 = arith.constant 145 : index
    %507 = vector.load %arg22[%c0_458, %c145_459] : memref<32x512xf32, #tpu.memory_space<vmem>>, vector<32x256xf32>
    %508 = vector.broadcast %308 : vector<1x256xf32> to vector<32x256xf32>
    %509 = arith.mulf %507, %508 : vector<32x256xf32>
    %510 = arith.truncf %509 : vector<32x256xf32> to vector<32x256xbf16>
    %c256_460 = arith.constant 256 : index
    %c0_461 = arith.constant 0 : index
    %511 = vector.load %arg23[%c256_460, %c0_461] : memref<288x256xbf16, #tpu.memory_space<vmem>>, vector<32x256xbf16>
    tpu.vector_store %arg23[%c256_460, %c0_461], %510 {strides = array<i32>} : memref<288x256xbf16, #tpu.memory_space<vmem>>, vector<32x256xbf16>,
    %c2_462 = arith.constant 2 : index
    %c0_463 = arith.constant 0 : index
    %c0_464 = arith.constant 0 : index
    %512 = vector.load %arg13[%c2_462, %c0_463, %c0_464] : memref<3x32x288xbf16, #tpu.memory_space<vmem>>, vector<1x32x288xbf16>
    %513 = vector.shape_cast %512 : vector<1x32x288xbf16> to vector<32x288xbf16>
    %c0_465 = arith.constant 0 : index
    %c0_466 = arith.constant 0 : index
    %514 = vector.load %arg23[%c0_465, %c0_466] : memref<288x256xbf16, #tpu.memory_space<vmem>>, vector<288x256xbf16>
    %cst_467 = arith.constant dense<0.000000e+00> : vector<32x256xf32>
    %515 = tpu.matmul %513, %514, %cst_467 {dimension_numbers = #tpu.dot_dimension_numbers<[1], [0], [0], [1], [0, 0, 1, 1], [], []>} : vector<32x288xbf16>, vector<288x256xbf16>, vector<32x256xf32> -> vector<32x256xf32>
    %c3_468 = arith.constant 3 : index
    %c0_469 = arith.constant 0 : index
    %c0_470 = arith.constant 0 : index
    %516 = vector.load %arg15[%c3_468, %c0_469, %c0_470] : memref<5x32x1xf32, #tpu.memory_space<vmem>>, vector<1x32x1xf32>
    %517 = vector.shape_cast %516 : vector<1x32x1xf32> to vector<32x1xf32>
    %518 = vector.broadcast %517 : vector<32x1xf32> to vector<32x256xf32>
    %519 = arith.addf %515, %518 : vector<32x256xf32>
    %cst_471 = arith.constant 0.000000e+00 : f32
    %520 = vector.broadcast %cst_471 : f32 to vector<32x256xf32>
    %521 = arith.cmpf oge, %519, %520 : vector<32x256xf32>
    %c3_472 = arith.constant 3 : index
    %c0_473 = arith.constant 0 : index
    %c0_474 = arith.constant 0 : index
    %522 = vector.load %arg16[%c3_472, %c0_473, %c0_474] : memref<4x32x1xf32, #tpu.memory_space<vmem>>, vector<1x32x1xf32>
    %523 = vector.shape_cast %522 : vector<1x32x1xf32> to vector<32x1xf32>
    %524 = vector.broadcast %523 : vector<32x1xf32> to vector<32x256xf32>
    %525 = arith.mulf %524, %519 : vector<32x256xf32>
    %526 = arith.select %521, %519, %525 : vector<32x256xi1>, vector<32x256xf32>
    %c0_475 = arith.constant 0 : index
    %c128_476 = arith.constant 128 : index
    %527 = vector.load %arg22[%c0_475, %c128_476] : memref<32x512xf32, #tpu.memory_space<vmem>>, vector<32x256xf32>
    tpu.vector_store %arg22[%c0_475, %c128_476], %526 {strides = array<i32>} : memref<32x512xf32, #tpu.memory_space<vmem>>, vector<32x256xf32>,
    %c0_477 = arith.constant 0 : index
    %c111_478 = arith.constant 111 : index
    %528 = vector.load %arg22[%c0_477, %c111_478] : memref<32x512xf32, #tpu.memory_space<vmem>>, vector<32x256xf32>
    %529 = vector.broadcast %307 : vector<1x256xf32> to vector<32x256xf32>
    %530 = arith.mulf %528, %529 : vector<32x256xf32>
    %531 = arith.truncf %530 : vector<32x256xf32> to vector<32x256xbf16>
    %c0_479 = arith.constant 0 : index
    %c0_480 = arith.constant 0 : index
    %532 = vector.load %arg23[%c0_479, %c0_480] : memref<288x256xbf16, #tpu.memory_space<vmem>>, vector<32x256xbf16>
    tpu.vector_store %arg23[%c0_479, %c0_480], %531 {strides = array<i32>} : memref<288x256xbf16, #tpu.memory_space<vmem>>, vector<32x256xbf16>,
    %c0_481 = arith.constant 0 : index
    %c112_482 = arith.constant 112 : index
    %533 = vector.load %arg22[%c0_481, %c112_482] : memref<32x512xf32, #tpu.memory_space<vmem>>, vector<32x256xf32>
    %534 = arith.truncf %533 : vector<32x256xf32> to vector<32x256xbf16>
    %c32_483 = arith.constant 32 : index
    %c0_484 = arith.constant 0 : index
    %535 = vector.load %arg23[%c32_483, %c0_484] : memref<288x256xbf16, #tpu.memory_space<vmem>>, vector<32x256xbf16>
    tpu.vector_store %arg23[%c32_483, %c0_484], %534 {strides = array<i32>} : memref<288x256xbf16, #tpu.memory_space<vmem>>, vector<32x256xbf16>,
    %c0_485 = arith.constant 0 : index
    %c113_486 = arith.constant 113 : index
    %536 = vector.load %arg22[%c0_485, %c113_486] : memref<32x512xf32, #tpu.memory_space<vmem>>, vector<32x256xf32>
    %537 = vector.broadcast %308 : vector<1x256xf32> to vector<32x256xf32>
    %538 = arith.mulf %536, %537 : vector<32x256xf32>
    %539 = arith.truncf %538 : vector<32x256xf32> to vector<32x256xbf16>
    %c64_487 = arith.constant 64 : index
    %c0_488 = arith.constant 0 : index
    %540 = vector.load %arg23[%c64_487, %c0_488] : memref<288x256xbf16, #tpu.memory_space<vmem>>, vector<32x256xbf16>
    tpu.vector_store %arg23[%c64_487, %c0_488], %539 {strides = array<i32>} : memref<288x256xbf16, #tpu.memory_space<vmem>>, vector<32x256xbf16>,
    %c0_489 = arith.constant 0 : index
    %c127_490 = arith.constant 127 : index
    %541 = vector.load %arg22[%c0_489, %c127_490] : memref<32x512xf32, #tpu.memory_space<vmem>>, vector<32x256xf32>
    %542 = vector.broadcast %307 : vector<1x256xf32> to vector<32x256xf32>
    %543 = arith.mulf %541, %542 : vector<32x256xf32>
    %544 = arith.truncf %543 : vector<32x256xf32> to vector<32x256xbf16>
    %c96_491 = arith.constant 96 : index
    %c0_492 = arith.constant 0 : index
    %545 = vector.load %arg23[%c96_491, %c0_492] : memref<288x256xbf16, #tpu.memory_space<vmem>>, vector<32x256xbf16>
    tpu.vector_store %arg23[%c96_491, %c0_492], %544 {strides = array<i32>} : memref<288x256xbf16, #tpu.memory_space<vmem>>, vector<32x256xbf16>,
    %c0_493 = arith.constant 0 : index
    %c128_494 = arith.constant 128 : index
    %546 = vector.load %arg22[%c0_493, %c128_494] : memref<32x512xf32, #tpu.memory_space<vmem>>, vector<32x256xf32>
    %547 = arith.truncf %546 : vector<32x256xf32> to vector<32x256xbf16>
    %c128_495 = arith.constant 128 : index
    %c0_496 = arith.constant 0 : index
    %548 = vector.load %arg23[%c128_495, %c0_496] : memref<288x256xbf16, #tpu.memory_space<vmem>>, vector<32x256xbf16>
    tpu.vector_store %arg23[%c128_495, %c0_496], %547 {strides = array<i32>} : memref<288x256xbf16, #tpu.memory_space<vmem>>, vector<32x256xbf16>,
    %c0_497 = arith.constant 0 : index
    %c129_498 = arith.constant 129 : index
    %549 = vector.load %arg22[%c0_497, %c129_498] : memref<32x512xf32, #tpu.memory_space<vmem>>, vector<32x256xf32>
    %550 = vector.broadcast %308 : vector<1x256xf32> to vector<32x256xf32>
    %551 = arith.mulf %549, %550 : vector<32x256xf32>
    %552 = arith.truncf %551 : vector<32x256xf32> to vector<32x256xbf16>
    %c160_499 = arith.constant 160 : index
    %c0_500 = arith.constant 0 : index
    %553 = vector.load %arg23[%c160_499, %c0_500] : memref<288x256xbf16, #tpu.memory_space<vmem>>, vector<32x256xbf16>
    tpu.vector_store %arg23[%c160_499, %c0_500], %552 {strides = array<i32>} : memref<288x256xbf16, #tpu.memory_space<vmem>>, vector<32x256xbf16>,
    %c0_501 = arith.constant 0 : index
    %c143_502 = arith.constant 143 : index
    %554 = vector.load %arg22[%c0_501, %c143_502] : memref<32x512xf32, #tpu.memory_space<vmem>>, vector<32x256xf32>
    %555 = vector.broadcast %307 : vector<1x256xf32> to vector<32x256xf32>
    %556 = arith.mulf %554, %555 : vector<32x256xf32>
    %557 = arith.truncf %556 : vector<32x256xf32> to vector<32x256xbf16>
    %c192_503 = arith.constant 192 : index
    %c0_504 = arith.constant 0 : index
    %558 = vector.load %arg23[%c192_503, %c0_504] : memref<288x256xbf16, #tpu.memory_space<vmem>>, vector<32x256xbf16>
    tpu.vector_store %arg23[%c192_503, %c0_504], %557 {strides = array<i32>} : memref<288x256xbf16, #tpu.memory_space<vmem>>, vector<32x256xbf16>,
    %c0_505 = arith.constant 0 : index
    %c144_506 = arith.constant 144 : index
    %559 = vector.load %arg22[%c0_505, %c144_506] : memref<32x512xf32, #tpu.memory_space<vmem>>, vector<32x256xf32>
    %560 = arith.truncf %559 : vector<32x256xf32> to vector<32x256xbf16>
    %c224_507 = arith.constant 224 : index
    %c0_508 = arith.constant 0 : index
    %561 = vector.load %arg23[%c224_507, %c0_508] : memref<288x256xbf16, #tpu.memory_space<vmem>>, vector<32x256xbf16>
    tpu.vector_store %arg23[%c224_507, %c0_508], %560 {strides = array<i32>} : memref<288x256xbf16, #tpu.memory_space<vmem>>, vector<32x256xbf16>,
    %c0_509 = arith.constant 0 : index
    %c145_510 = arith.constant 145 : index
    %562 = vector.load %arg22[%c0_509, %c145_510] : memref<32x512xf32, #tpu.memory_space<vmem>>, vector<32x256xf32>
    %563 = vector.broadcast %308 : vector<1x256xf32> to vector<32x256xf32>
    %564 = arith.mulf %562, %563 : vector<32x256xf32>
    %565 = arith.truncf %564 : vector<32x256xf32> to vector<32x256xbf16>
    %c256_511 = arith.constant 256 : index
    %c0_512 = arith.constant 0 : index
    %566 = vector.load %arg23[%c256_511, %c0_512] : memref<288x256xbf16, #tpu.memory_space<vmem>>, vector<32x256xbf16>
    tpu.vector_store %arg23[%c256_511, %c0_512], %565 {strides = array<i32>} : memref<288x256xbf16, #tpu.memory_space<vmem>>, vector<32x256xbf16>,
    %c0_513 = arith.constant 0 : index
    %c0_514 = arith.constant 0 : index
    %567 = vector.load %arg14[%c0_513, %c0_514] : memref<8x288xbf16, #tpu.memory_space<vmem>>, vector<8x288xbf16>
    %c0_515 = arith.constant 0 : index
    %c0_516 = arith.constant 0 : index
    %568 = vector.load %arg23[%c0_515, %c0_516] : memref<288x256xbf16, #tpu.memory_space<vmem>>, vector<288x256xbf16>
    %cst_517 = arith.constant dense<0.000000e+00> : vector<8x256xf32>
    %569 = tpu.matmul %567, %568, %cst_517 {dimension_numbers = #tpu.dot_dimension_numbers<[1], [0], [0], [1], [0, 0, 1, 1], [], []>} : vector<8x288xbf16>, vector<288x256xbf16>, vector<8x256xf32> -> vector<8x256xf32>
    %570 = vector.extract_strided_slice %569 {offsets = [0, 0], sizes = [1, 256], strides = [1, 1]} : vector<8x256xf32> to vector<1x256xf32>
    %c4_518 = arith.constant 4 : index
    %c0_519 = arith.constant 0 : index
    %c0_520 = arith.constant 0 : index
    %571 = vector.load %arg15[%c4_518, %c0_519, %c0_520] : memref<5x32x1xf32, #tpu.memory_space<vmem>>, vector<1x32x1xf32>
    %572 = vector.shape_cast %571 : vector<1x32x1xf32> to vector<32x1xf32>
    %573 = vector.extract_strided_slice %572 {offsets = [0, 0], sizes = [1, 1], strides = [1, 1]} : vector<32x1xf32> to vector<1x1xf32>
    %574 = vector.broadcast %573 : vector<1x1xf32> to vector<1x256xf32>
    %575 = arith.addf %570, %574 : vector<1x256xf32>
    %576 = arith.addf %298, %575 : vector<1x256xf32>
    %c0_521 = arith.constant 0 : index
    %c0_522 = arith.constant 0 : index
    %577 = vector.load %arg19[%c0_521, %c0_522] : memref<1x256xf32, #tpu.memory_space<vmem>>, vector<1x256xf32>
    tpu.vector_store %arg19[%c0_521, %c0_522], %576 {strides = array<i32>} : memref<1x256xf32, #tpu.memory_space<vmem>>, vector<1x256xf32>,
    return
  }
}

</mosaic_0001>

<bundles_post_ra>
// kernel: squeeze.1
= control target key start
LH: loop header
LB: loop body
LE: loop exit
PB: predicated region body
PF: predicated region fallthrough
CT: control target
= control target key end

     0   :  { %2 = vsyncpa [#allocation1], 0  ;;  %s121_s6 = smov [#allocation0]   ;;  %s154_s0 = inlined_call_operand.hbm [shape: f32[1,2,16,16], index: 0, kind: input, shape index: {}]   ;;  %s155_s1 = inlined_call_operand.vmem [shape: f32[1,512], index: 1, kind: output, shape index: {}]  }
   0x1   :  { %s7_s7 = sshll.u32 %s121_s6, 4  ;;  %s8_s7 = int_to_ptr.vmem [resolvable:$true] %s7_s7 }
   0x2   :  { %s107_s8 = scalar_lea.vmem %s8_s7, 512  ;;  %p112_p1 = scmp.lt.s32.totalorder %s8_s7, %s8_s7 }
   0x3   :  { %p108_p0 = scmp.ne.s32.totalorder %s8_s7, %s107_s8  ;;  %p113_p2 = scmp.lt.s32.totalorder %s107_s8, %s107_s8 }
   0x5   :  { %p114_p3 = por %p113_p2, %p112_p1 }
   0x7   :  { %p115_p4 = pnand %p114_p3, %p108_p0 }
   0x9   :  { %118 = shalt.err (!%p115_p4)
}
   0xa   :  { %10 = dma.hbm_to_vmem [thread:$0]  %s154_s0, 512, %s8_s7, [#allocation1]  }
   0xb   :  { %119 = dma.done.wait [#allocation1], 512  }
   0xc   :  { %120 = vsyncadd [#allocation1], 4294966784  ;;  %v16_v0 = vld [vmem:[#allocation0 + $0x7] ss:$8 sm:$0xf]   ;;  %s122_s0 = smov 112  }
   0xd   :  { %v28_v1 = vld [vmem:[#allocation0 + $0x5] ss:$8 sm:$0xf]   ;;  %17 = vrot.lane.b32.xlu0 %v16_v0, %s122_s0  ;;  %s123_s11 = smov 80   ;;  %vm13_vm0 = vcmask 130048   ;;  %s124_s12 = smov 96  }
   0xe   :  { %29 = vrot.lane.b32.xlu1 %v28_v1, %s123_s11  ;;  %v22_v2 = vld [vmem:[#allocation0 + $0x6] ss:$8 sm:$0xf]   ;;  %v34_v3 = vld [vmem:[#allocation0 + $0x4] ss:$8 sm:$0xf]  }
   0xf   :  { %v12_v4 = vld [vmem:[#allocation0] ss:$8 sm:$0xf]   ;;  %s125_s13 = smov 64   ;;  %s126_s14 = smov 48   ;;  %vm19_vm1 = vcmask 1048448  }
  0x10   :  { %14 = vst.msk [vmem:[#allocation2] ss:$8 sm:$0xf] %vm13_vm0, %v12_v4   ;;  %v40_v5 = vld [vmem:[#allocation0 + $0x3] ss:$8 sm:$0xf]  }
  0x11   :  { %23 = vrot.lane.b32.xlu0 %v22_v2, %s124_s12  ;;  %v46_v6 = vld [vmem:[#allocation0 + $0x2] ss:$8 sm:$0xf]   ;;  %s127_s15 = smov 32   ;;  %s128_s16 = smov 16   ;;  %vm25_vm2 = vcmask 917248  }
  0x12   :  { %35 = vrot.lane.b32.xlu1 %v34_v3, %s125_s13  ;;  %v52_v7 = vld [vmem:[#allocation0 + $0x1] ss:$8 sm:$0xf]   ;;  %vm31_vm3 = vcmask 786048   ;;  %vm37_vm4 = vcmask 654848   ;;  %vm43_vm5 = vcmask 523648  }
  0x13   :  { %vm49_vm6 = vcmask 392448   ;;  %vm55_vm7 = vcmask 261248  }
  0x15   :  { %41 = vrot.lane.b32.xlu0 %v40_v5, %s126_s14 }
  0x16   :  { %47 = vrot.lane.b32.xlu1 %v46_v6, %s127_s15 }
  0x19   :  { %53 = vrot.lane.b32.xlu0 %v52_v7, %s128_s16 }
  0x7f   :  { %v18_v8 = vpop.permute.xlu0 %17  }
  0x80   :  { %v30_v9 = vpop.permute.xlu1 %29   ;;  %20 = vst.msk [vmem:[#allocation2] ss:$8 sm:$0xf] %vm19_vm1, %v18_v8  }
  0x83   :  { %v24_v10 = vpop.permute.xlu0 %23  }
  0x84   :  { %v36_v11 = vpop.permute.xlu1 %35   ;;  %26 = vst.msk [vmem:[#allocation2] ss:$8 sm:$0xf] %vm25_vm2, %v24_v10  }
  0x85   :  { %32 = vst.msk [vmem:[#allocation2] ss:$8 sm:$0xf] %vm31_vm3, %v30_v9  }
  0x86   :  { %38 = vst.msk [vmem:[#allocation2] ss:$8 sm:$0xf] %vm37_vm4, %v36_v11  }
  0x87   :  { %v42_v12 = vpop.permute.xlu0 %41  }
  0x88   :  { %v48_v13 = vpop.permute.xlu1 %47   ;;  %44 = vst.msk [vmem:[#allocation2] ss:$8 sm:$0xf] %vm43_vm5, %v42_v12  }
  0x89   :  { %50 = vst.msk [vmem:[#allocation2] ss:$8 sm:$0xf] %vm49_vm6, %v48_v13  }
  0x8b   :  { %v54_v14 = vpop.permute.xlu0 %53  }
  0x8c   :  { %56 = vst.msk [vmem:[#allocation2] ss:$8 sm:$0xf] %vm55_vm7, %v54_v14  }
  0x93   :  { %v61_v15 = vld [vmem:[#allocation2] sm:$0x1]  ;;  %v66_v16 = vld [vmem:[#allocation2 + $0x8] sm:$0x1]  ;;  %v72_v17 = vld [vmem:[#allocation2 + $0x10] sm:$0x1] }
  0x94   :  { %64 = vst [vmem:[%s155_s1] sm:$0x1] %v61_v15  ;;  %88 = vst [vmem:[%s155_s1 + $0x1] sm:$0x1] %v66_v16  ;;  %v79_v18 = vld [vmem:[#allocation2 + $0x18] sm:$0x1] }
  0x95   :  { %89 = vst [vmem:[%s155_s1 + $0x2] sm:$0x1] %v72_v17  ;;  %90 = vst [vmem:[%s155_s1 + $0x3] sm:$0x1] %v79_v18 }
  0x96   :  { %85 = vsyncpa [#allocation1], 1 }

// kernel: lpd_step.1
= control target key start
LH: loop header
LB: loop body
LE: loop exit
PB: predicated region body
PF: predicated region fallthrough
CT: control target
= control target key end

     0   :  { %s19418_s0 = inlined_call_operand.vmem [shape: f32[1,512], index: 0, kind: input, shape index: {}]   ;;  %s19419_s1 = inlined_call_operand.vmem [shape: f32[1,256], index: 1, kind: input, shape index: {}]   ;;  %s19420_s2 = inlined_call_operand.vmem [shape: f32[1,256], index: 2, kind: input, shape index: {}]   ;;  %s19421_s3 = inlined_call_operand.hbm [shape: f32[512,256], index: 3, kind: input, shape index: {}]   ;;  %s19422_s4 = inlined_call_operand.vmem [shape: f32[256,256], index: 4, kind: input, shape index: {}]   ;;  %s19423_s5 = inlined_call_operand.hbm [shape: bf16[32,144], index: 5, kind: input, shape index: {}]   ;;  %s19424_s6 = inlined_call_operand.vmem [shape: bf16[3,32,288], index: 6, kind: input, shape index: {}]   ;;  %s19425_s7 = inlined_call_operand.hbm [shape: bf16[8,288], index: 7, kind: input, shape index: {}]   ;;  %s19426_s8 = inlined_call_operand.vmem [shape: f32[5,32,1], index: 8, kind: input, shape index: {}]   ;;  %s19427_s9 = inlined_call_operand.vmem [shape: f32[4,32,1], index: 9, kind: input, shape index: {}]   ;;  %s19428_s10 = inlined_call_operand.hbm [shape: f32[1,256], index: 10, kind: input, shape index: {}]   ;;  %s19429_s11 = inlined_call_operand.hbm [shape: f32[1,256], index: 11, kind: input, shape index: {}]   ;;  %s19430_s12 = inlined_call_operand.hbm [shape: bf16[32,144], index: 12, kind: input, shape index: {}]   ;;  %s19431_s13 = inlined_call_operand.hbm [shape: bf16[3,32,288], index: 13, kind: input, shape index: {}]   ;;  %s19432_s14 = inlined_call_operand.hbm [shape: bf16[8,288], index: 14, kind: input, shape index: {}]   ;;  %s19433_s15 = inlined_call_operand.vmem [shape: f32[5,32,1], index: 15, kind: input, shape index: {}]   ;;  %s19434_s16 = inlined_call_operand.vmem [shape: f32[4,32,1], index: 16, kind: input, shape index: {}]   ;;  %s19435_s17 = inlined_call_operand.hbm [shape: f32[1,256], index: 17, kind: input, shape index: {}]   ;;  %s19436_s18 = inlined_call_operand.hbm [shape: f32[1,256], index: 18, kind: input, shape index: {}]   ;;  %s19437_s19 = inlined_call_operand.vmem [shape: f32[1,256], index: 19, kind: output, shape index: {0}]   ;;  %s19438_s20 = inlined_call_operand.vmem [shape: f32[1,256], index: 20, kind: output, shape index: {1}]  }
   0x1   :  { %19481 = sst [smem:[#allocation37_spill]] %s19418_s0 }
   0x2   :  { %19482 = sst [smem:[#allocation38_spill]] %s19419_s1 }
   0x3   :  { %19483 = sst [smem:[#allocation39_spill]] %s19420_s2 }
   0x4   :  { %19484 = sst [smem:[#allocation40_spill]] %s19421_s3 }
   0x5   :  { %19485 = sst [smem:[#allocation41_spill]] %s19422_s4 }
   0x6   :  { %26 = vsyncpa [#allocation6], 0 }
   0x7   :  { %27 = vsyncpa [#allocation8], 0 }
   0x8   :  { %28 = vsyncpa [#allocation11], 0 }
   0x9   :  { %29 = vsyncpa [#allocation14], 0 }
   0xa   :  { %30 = vsyncpa [#allocation17], 0 }
   0xb   :  { %31 = vsyncpa [#allocation20], 0  ;;  %s13846_s1 = smov [#allocation7]  }
   0xc   :  { %s57_s22 = sshll.u32 %s13846_s1, 4  ;;  %s58_s22 = int_to_ptr.vmem [resolvable:$true] %s57_s22 }
   0xd   :  { %s13642_s23 = scalar_lea.vmem %s58_s22, 512  ;;  %p13647_p1 = scmp.lt.s32.totalorder %s58_s22, %s58_s22 }
   0xe   :  { %p13643_p0 = scmp.ne.s32.totalorder %s58_s22, %s13642_s23  ;;  %p13648_p2 = scmp.lt.s32.totalorder %s13642_s23, %s13642_s23 }
  0x10   :  { %p13649_p3 = por %p13648_p2, %p13647_p1 }
  0x12   :  { %p13650_p4 = pnand %p13649_p3, %p13643_p0 }
  0x14   :  { %13653 = shalt.err (!%p13650_p4)
}
  0x15   :  { %s13847_s24 = smov 128   ;;  %s13848_s2 = smov 8  }
  0x16   :  { %63 = dma.hbm_to_vmem [thread:$0]  %s19423_s5, 512, %s58_s22, [#allocation8], %s13847_s24, %s13847_s24, %s13848_s2  }
  0x17   :  { %s13849_s26 = smov [#allocation10]   ;;  %s13850_s28 = smov [#allocation13]  }
  0x18   :  { %s86_s27 = sshll.u32 %s13849_s26, 4  ;;  %s105_s4 = sshll.u32 %s13850_s28, 4  ;;  %s87_s27 = int_to_ptr.vmem [resolvable:$true] %s86_s27  ;;  %s106_s4 = int_to_ptr.vmem [resolvable:$true] %s105_s4 }
  0x19   :  { %s13662_s29 = scalar_lea.vmem %s87_s27, 32  ;;  %p13667_p6 = scmp.lt.s32.totalorder %s87_s27, %s87_s27 }
  0x1a   :  { %p13663_p5 = scmp.ne.s32.totalorder %s87_s27, %s13662_s29  ;;  %p13668_p7 = scmp.lt.s32.totalorder %s13662_s29, %s13662_s29 }
  0x1c   :  { %p13669_p8 = por %p13668_p7, %p13667_p6 }
  0x1e   :  { %p13670_p9 = pnand %p13669_p8, %p13663_p5 }
  0x20   :  { %13673 = shalt.err (!%p13670_p9)
}
  0x21   :  { %89 = dma.hbm_to_vmem [thread:$0]  %s19428_s10, 32, %s87_s27, [#allocation11]  }
  0x22   :  { %s13682_s21 = scalar_lea.vmem %s106_s4, 512  ;;  %p13687_p11 = scmp.lt.s32.totalorder %s106_s4, %s106_s4 }
  0x23   :  { %p13683_p10 = scmp.ne.s32.totalorder %s106_s4, %s13682_s21  ;;  %p13688_p12 = scmp.lt.s32.totalorder %s13682_s21, %s13682_s21 }
  0x25   :  { %p13689_p13 = por %p13688_p12, %p13687_p11 }
  0x27   :  { %p13690_p0 = pnand %p13689_p13, %p13683_p10 }
  0x29   :  { %13693 = shalt.err (!%p13690_p0)
}
  0x2a   :  { %111 = dma.hbm_to_vmem [thread:$0]  %s19430_s12, 512, %s106_s4, [#allocation14], %s13847_s24, %s13847_s24, %s13848_s2  }
  0x2b   :  { %s13851_s22 = smov [#allocation16]   ;;  %s13852_s25 = smov [#allocation5]  }
  0x2c   :  { %s130_s23 = sshll.u32 %s13851_s22, 4  ;;  %s43_s3 = sshll.u32 %s13852_s25, 4  ;;  %s131_s23 = int_to_ptr.vmem [resolvable:$true] %s130_s23  ;;  %s44_s3 = int_to_ptr.vmem [resolvable:$true] %s43_s3 }
  0x2d   :  { %s13702_s26 = scalar_lea.vmem %s131_s23, 192  ;;  %p13707_p2 = scmp.lt.s32.totalorder %s131_s23, %s131_s23 }
  0x2e   :  { %p13703_p1 = scmp.ne.s32.totalorder %s131_s23, %s13702_s26  ;;  %p13708_p3 = scmp.lt.s32.totalorder %s13702_s26, %s13702_s26 }
  0x30   :  { %p13709_p4 = por %p13708_p3, %p13707_p2 }
  0x32   :  { %p13710_p5 = pnand %p13709_p4, %p13703_p1 }
  0x34   :  { %13713 = shalt.err (!%p13710_p5)
}
  0x35   :  { %133 = dma.hbm_to_vmem [thread:$0]  %s19432_s14, 192, %s131_s23, [#allocation17]  }
  0x36   :  { %s13722_s28 = scalar_lea.vmem %s44_s3, 16384  ;;  %p13727_p7 = scmp.lt.s32.totalorder %s44_s3, %s44_s3 }
  0x37   :  { %p13723_p6 = scmp.ne.s32.totalorder %s44_s3, %s13722_s28  ;;  %p13728_p8 = scmp.lt.s32.totalorder %s13722_s28, %s13722_s28 }
  0x39   :  { %p13729_p9 = por %p13728_p8, %p13727_p7 }
  0x3b   :  { %p13730_p10 = pnand %p13729_p9, %p13723_p6 }
  0x3d   :  { %13733 = shalt.err (!%p13730_p10)
}
  0x3e   :  { %s13853_s12 = smov 256   ;;  %s13854_s24 = smov 16  }
  0x3f   :  { %s19486_s29 = sld [smem:[#allocation40_spill]]  ;;  %s13855_s30 = smov [#allocation9]  }
  0x40   :  { %s72_s0 = sshll.u32 %s13855_s30, 4  ;;  %s13856_s21 = smov [#allocation12]   ;;  %s73_s0 = int_to_ptr.vmem [resolvable:$true] %s72_s0 }
  0x41   :  { %s96_s14 = sshll.u32 %s13856_s21, 4  ;;  %s13742_s5 = scalar_lea.vmem %s73_s0, 192  ;;  %s97_s14 = int_to_ptr.vmem [resolvable:$true] %s96_s14 }
  0x42   :  { %p13743_p11 = scmp.ne.s32.totalorder %s73_s0, %s13742_s5  ;;  %p13747_p12 = scmp.lt.s32.totalorder %s73_s0, %s73_s0 }
  0x43   :  { %p13748_p13 = scmp.lt.s32.totalorder %s13742_s5, %s13742_s5 }
  0x45   :  { %49 = dma.hbm_to_vmem [thread:$0]  %s19486_s29, 16384, %s44_s3, [#allocation6], %s13853_s12, %s13853_s12, %s13854_s24  }
  0x46   :  { %p13749_p0 = por %p13748_p13, %p13747_p12 }
  0x48   :  { %p13750_p1 = pnand %p13749_p0, %p13743_p11 }
  0x4a   :  { %13753 = shalt.err (!%p13750_p1)
}
  0x4b   :  { %75 = dma.hbm_to_vmem [thread:$0]  %s19425_s7, 192, %s73_s0, [#allocation8]  }
  0x4c   :  { %s13762_s23 = scalar_lea.vmem %s97_s14, 32  ;;  %p13767_p3 = scmp.lt.s32.totalorder %s97_s14, %s97_s14 }
  0x4d   :  { %p13763_p2 = scmp.ne.s32.totalorder %s97_s14, %s13762_s23  ;;  %p13768_p4 = scmp.lt.s32.totalorder %s13762_s23, %s13762_s23 }
  0x4f   :  { %p13769_p5 = por %p13768_p4, %p13767_p3 }
  0x51   :  { %p13770_p6 = pnand %p13769_p5, %p13763_p2 }
  0x53   :  { %13773 = shalt.err (!%p13770_p6)
}
  0x54   :  { %99 = dma.hbm_to_vmem [thread:$0]  %s19429_s11, 32, %s97_s14, [#allocation11]  }
  0x55   :  { %s13857_s26 = smov [#allocation15]  }
  0x56   :  { %s117_s10 = sshll.u32 %s13857_s26, 4  ;;  %s118_s10 = int_to_ptr.vmem [resolvable:$true] %s117_s10 }
  0x57   :  { %s13782_s27 = scalar_lea.vmem %s118_s10, 2304  ;;  %p13787_p8 = scmp.lt.s32.totalorder %s118_s10, %s118_s10 }
  0x58   :  { %p13783_p7 = scmp.ne.s32.totalorder %s118_s10, %s13782_s27  ;;  %p13788_p9 = scmp.lt.s32.totalorder %s13782_s27, %s13782_s27 }
  0x5a   :  { %p13789_p10 = por %p13788_p9, %p13787_p8 }
  0x5c   :  { %p13790_p11 = pnand %p13789_p10, %p13783_p7 }
  0x5e   :  { %13793 = shalt.err (!%p13790_p11)
}
  0x5f   :  { %s13858_s7 = smov 192   ;;  %s13859_s28 = smov 12  }
  0x60   :  { %123 = dma.hbm_to_vmem [thread:$0]  %s19431_s13, 2304, %s118_s10, [#allocation14], %s13858_s7, %s13858_s7, %s13859_s28  }
  0x61   :  { %s13860_s4 = smov [#allocation18]   ;;  %s13861_s30 = smov [#allocation19]  }
  0x62   :  { %s144_s29 = sshll.u32 %s13860_s4, 4  ;;  %s154_s11 = sshll.u32 %s13861_s30, 4  ;;  %s145_s29 = int_to_ptr.vmem [resolvable:$true] %s144_s29  ;;  %s155_s11 = int_to_ptr.vmem [resolvable:$true] %s154_s11 }
  0x63   :  { %s13802_s0 = scalar_lea.vmem %s145_s29, 32  ;;  %p13807_p13 = scmp.lt.s32.totalorder %s145_s29, %s145_s29 }
  0x64   :  { %p13803_p12 = scmp.ne.s32.totalorder %s145_s29, %s13802_s0  ;;  %p13808_p0 = scmp.lt.s32.totalorder %s13802_s0, %s13802_s0 }
  0x66   :  { %p13809_p1 = por %p13808_p0, %p13807_p13 }
  0x68   :  { %p13810_p2 = pnand %p13809_p1, %p13803_p12 }
  0x6a   :  { %13813 = shalt.err (!%p13810_p2)
}
  0x6b   :  { %147 = dma.hbm_to_vmem [thread:$0]  %s19435_s17, 32, %s145_s29, [#allocation17]  }
  0x6c   :  { %s13822_s5 = scalar_lea.vmem %s155_s11, 32  ;;  %p13827_p4 = scmp.lt.s32.totalorder %s155_s11, %s155_s11 }
  0x6d   :  { %p13823_p3 = scmp.ne.s32.totalorder %s155_s11, %s13822_s5  ;;  %p13828_p5 = scmp.lt.s32.totalorder %s13822_s5, %s13822_s5 }
  0x6f   :  { %p13829_p6 = por %p13828_p5, %p13827_p4 }
  0x71   :  { %p13830_p7 = pnand %p13829_p6, %p13823_p3 }
  0x73   :  { %13833 = shalt.err (!%p13830_p7)
}
  0x74   :  { %157 = dma.hbm_to_vmem [thread:$0]  %s19436_s18, 32, %s155_s11, [#allocation20]  }
  0x75   :  { %13834 = dma.done.wait [#allocation6], 16384  }
  0x76   :  { %13835 = vsyncadd [#allocation6], 4294950912 }
  0x77   :  { %13836 = dma.done.wait [#allocation8], 704  }
  0x78   :  { %13837 = vsyncadd [#allocation8], 4294966592 }
  0x79   :  { %13838 = dma.done.wait [#allocation11], 64  }
  0x7a   :  { %13839 = vsyncadd [#allocation11], 4294967232 }
  0x7b   :  { %13840 = dma.done.wait [#allocation14], 2816  }
  0x7c   :  { %13841 = vsyncadd [#allocation14], 4294964480 }
  0x7d   :  { %13842 = dma.done.wait [#allocation17], 224  }
  0x7e   :  { %13843 = vsyncadd [#allocation17], 4294967072 }
  0x7f   :  { %13844 = dma.done.wait [#allocation20], 32  }
  0x80   :  { %13845 = vsyncadd [#allocation20], 4294967264  ;;  %v13862_v0 = vmov 0.0   ;;  %v242_v1 = vld [vmem:[#allocation5 + $0xf8] sm:$0xff]  ;;  %v241_v3 = vld [vmem:[#allocation5 + $0xf0] sm:$0xff]  ;;  %s19487_s22 = sld [smem:[#allocation37_spill]] }
  0x81   :  { %487 = vst [vmem:[#allocation2 + $0x18] sm:$0xff] %v13862_v0  ;;  %522 = vst [vmem:[#allocation2 + $0x8] sm:$0xf8] %v13862_v0  ;;  %v306_v2 = vld [vmem:[#allocation5 + $0x2f8] sm:$0xff]  ;;  %339 = vmatprep.subr.mxu0 %v242_v1  ;;  %v305_v4 = vld [vmem:[#allocation5 + $0x2f0] sm:$0xff]  ;;  %s13863_s23 = smov 15  }
  0x82   :  { %523 = vst [vmem:[#allocation2 + $0x10] sm:$0xf8] %v13862_v0  ;;  %6261 = vst [vmem:[#allocation3 + $0x8] sm:$0xfc] %v13862_v0  ;;  %410 = vmatprep.subr.mxu1 %v306_v2  ;;  %v240_v5 = vld [vmem:[#allocation5 + $0xe8] sm:$0xff]  ;;  %340 = vmatpush1.msra.mxu0 %v241_v3  ;;  %v239_v7 = vld [vmem:[#allocation5 + $0xe0] sm:$0xff] }
  0x83   :  { %6262 = vst [vmem:[#allocation3 + $0x10] sm:$0xfc] %v13862_v0  ;;  %v304_v6 = vld [vmem:[#allocation5 + $0x2e8] sm:$0xff]  ;;  %411 = vmatpush1.msra.mxu1 %v305_v4  ;;  %v303_v8 = vld [vmem:[#allocation5 + $0x2e0] sm:$0xff]  ;;  %v238_v9 = vld [vmem:[#allocation5 + $0xd8] sm:$0xff]  ;;  %341 = vmatprep.subr.mxu0 %v240_v5  ;;  %s13864_s25 = smov 1  }
  0x84   :  { %412 = vmatprep.subr.mxu1 %v304_v6  ;;  %v302_v10 = vld [vmem:[#allocation5 + $0x2d8] sm:$0xff]  ;;  %v237_v11 = vld [vmem:[#allocation5 + $0xd0] sm:$0xff]  ;;  %342 = vmatpush1.msra.mxu0 %v239_v7  ;;  %v236_v13 = vld [vmem:[#allocation5 + $0xc8] sm:$0xff]  ;;  %s13865_s3 = smov 127   ;;  %s13866_s26 = smov 113   ;;  %vm698_vm1 = vcmask 121856  }
  0x85   :  { %v301_v12 = vld [vmem:[#allocation5 + $0x2d0] sm:$0xff]  ;;  %413 = vmatpush1.msra.mxu1 %v303_v8  ;;  %v300_v14 = vld [vmem:[#allocation5 + $0x2c8] sm:$0xff]  ;;  %343 = vmatprep.subr.mxu0 %v238_v9  ;;  %v235_v15 = vld [vmem:[#allocation5 + $0xc0] sm:$0xff]  ;;  %s13867_s10 = smov 111   ;;  %s13868_s27 = smov 17   ;;  %vm756_vm2 = vcmask 7168  }
  0x86   :  { %414 = vmatprep.subr.mxu1 %v302_v10  ;;  %v299_v16 = vld [vmem:[#allocation5 + $0x2c0] sm:$0xff]  ;;  %344 = vmatpush1.msra.mxu0 %v237_v11  ;;  %v234_v17 = vld [vmem:[#allocation5 + $0xb8] sm:$0xff]  ;;  %v233_v19 = vld [vmem:[#allocation5 + $0xb0] sm:$0xff]  ;;  %s13870_s7 = smov 112   ;;  %s19494_s2 = sld [smem:[#allocation38_spill]]  ;;  %vm716_vm3 = vcmask 1039360  }
  0x87   :  { %415 = vmatpush1.msra.mxu1 %v301_v12  ;;  %v298_v18 = vld [vmem:[#allocation5 + $0x2b8] sm:$0xff]  ;;  %345 = vmatprep.subr.mxu0 %v236_v13  ;;  %v297_v20 = vld [vmem:[#allocation5 + $0x2b0] sm:$0xff]  ;;  %v232_v21 = vld [vmem:[#allocation5 + $0xa8] sm:$0xff]  ;;  %s19495_s30 = sld [smem:[#allocation39_spill]]  ;;  %vm658_vm4 = vcmask 924672   ;;  %vm547_vm5 = vcmask 908288  }
  0x88   :  { %416 = vmatprep.subr.mxu1 %v300_v14  ;;  %346 = vmatpush1.msra.mxu0 %v235_v15  ;;  %v296_v22 = vld [vmem:[#allocation5 + $0x2a8] sm:$0xff]  ;;  %v231_v23 = vld [vmem:[#allocation5 + $0xa0] sm:$0xff]  ;;  %v230_v25 = vld [vmem:[#allocation5 + $0x98] sm:$0xff]  ;;  %vm588_vm6 = vcmask 138240   ;;  %vm631_vm7 = vcmask 130048   ;;  %vm586_vm8 = vcmask 1043456  }
  0x89   :  { %417 = vmatpush1.msra.mxu1 %v299_v16  ;;  %347 = vmatprep.subr.mxu0 %v234_v17  ;;  %v295_v24 = vld [vmem:[#allocation5 + $0x2a0] sm:$0xff]  ;;  %v294_v26 = vld [vmem:[#allocation5 + $0x298] sm:$0xff]  ;;  %v229_v27 = vld [vmem:[#allocation5 + $0x90] sm:$0xff]  ;;  %vm933_vm9 = vcmask 916480   ;;  %s19548_s12 = sld [smem:[#allocation41_spill]] }
  0x8a   :  { %418 = vmatprep.subr.mxu1 %v298_v18  ;;  %348 = vmatpush1.msra.mxu0 %v233_v19  ;;  %v293_v28 = vld [vmem:[#allocation5 + $0x290] sm:$0xff]  ;;  %v228_v29 = vld [vmem:[#allocation5 + $0x88] sm:$0xff]  ;;  %v227_v31 = vld [vmem:[#allocation5 + $0x80] sm:$0xff] }
  0x8b   :  { %419 = vmatpush1.msra.mxu1 %v297_v20  ;;  %349 = vmatprep.subr.mxu0 %v232_v21  ;;  %v292_v30 = vld [vmem:[#allocation5 + $0x288] sm:$0xff]  ;;  %v291_v32 = vld [vmem:[#allocation5 + $0x280] sm:$0xff]  ;;  %v226_v33 = vld [vmem:[#allocation5 + $0x78] sm:$0xff] }
  0x8c   :  { %420 = vmatprep.subr.mxu1 %v296_v22  ;;  %350 = vmatpush1.msra.mxu0 %v231_v23  ;;  %v290_v34 = vld [vmem:[#allocation5 + $0x278] sm:$0xff]  ;;  %v225_v35 = vld [vmem:[#allocation5 + $0x70] sm:$0xff]  ;;  %v224_v37 = vld [vmem:[#allocation5 + $0x68] sm:$0xff] }
  0x8d   :  { %421 = vmatpush1.msra.mxu1 %v295_v24  ;;  %351 = vmatprep.subr.mxu0 %v230_v25  ;;  %v289_v36 = vld [vmem:[#allocation5 + $0x270] sm:$0xff]  ;;  %v288_v38 = vld [vmem:[#allocation5 + $0x268] sm:$0xff]  ;;  %v223_v39 = vld [vmem:[#allocation5 + $0x60] sm:$0xff] }
  0x8e   :  { %422 = vmatprep.subr.mxu1 %v294_v26  ;;  %352 = vmatpush1.msra.mxu0 %v229_v27  ;;  %v287_v40 = vld [vmem:[#allocation5 + $0x260] sm:$0xff]  ;;  %v222_v41 = vld [vmem:[#allocation5 + $0x58] sm:$0xff]  ;;  %v221_v43 = vld [vmem:[#allocation5 + $0x50] sm:$0xff] }
  0x8f   :  { %423 = vmatpush1.msra.mxu1 %v293_v28  ;;  %353 = vmatprep.subr.mxu0 %v228_v29  ;;  %v286_v42 = vld [vmem:[#allocation5 + $0x258] sm:$0xff]  ;;  %v285_v44 = vld [vmem:[#allocation5 + $0x250] sm:$0xff]  ;;  %v220_v45 = vld [vmem:[#allocation5 + $0x48] sm:$0xff] }
  0x90   :  { %424 = vmatprep.subr.mxu1 %v292_v30  ;;  %354 = vmatpush1.msra.mxu0 %v227_v31  ;;  %v284_v46 = vld [vmem:[#allocation5 + $0x248] sm:$0xff]  ;;  %v219_v47 = vld [vmem:[#allocation5 + $0x40] sm:$0xff]  ;;  %v218_v49 = vld [vmem:[#allocation5 + $0x38] sm:$0xff] }
  0x91   :  { %425 = vmatpush1.msra.mxu1 %v291_v32  ;;  %355 = vmatprep.subr.mxu0 %v226_v33  ;;  %v283_v48 = vld [vmem:[#allocation5 + $0x240] sm:$0xff]  ;;  %v282_v50 = vld [vmem:[#allocation5 + $0x238] sm:$0xff]  ;;  %v217_v51 = vld [vmem:[#allocation5 + $0x30] sm:$0xff] }
  0x92   :  { %426 = vmatprep.subr.mxu1 %v290_v34  ;;  %356 = vmatpush1.msra.mxu0 %v225_v35  ;;  %v281_v52 = vld [vmem:[#allocation5 + $0x230] sm:$0xff]  ;;  %v216_v53 = vld [vmem:[#allocation5 + $0x28] sm:$0xff]  ;;  %v215_v55 = vld [vmem:[#allocation5 + $0x20] sm:$0xff] }
  0x93   :  { %427 = vmatpush1.msra.mxu1 %v289_v36  ;;  %357 = vmatprep.subr.mxu0 %v224_v37  ;;  %v280_v54 = vld [vmem:[#allocation5 + $0x228] sm:$0xff]  ;;  %v279_v56 = vld [vmem:[#allocation5 + $0x220] sm:$0xff]  ;;  %v214_v57 = vld [vmem:[#allocation5 + $0x18] sm:$0xff] }
  0x94   :  { %428 = vmatprep.subr.mxu1 %v288_v38  ;;  %358 = vmatpush1.msra.mxu0 %v223_v39  ;;  %v278_v58 = vld [vmem:[#allocation5 + $0x218] sm:$0xff]  ;;  %v213_v59 = vld [vmem:[#allocation5 + $0x10] sm:$0xff]  ;;  %v212_v61 = vld [vmem:[#allocation5 + $0x8] sm:$0xff] }
  0x95   :  { %429 = vmatpush1.msra.mxu1 %v287_v40  ;;  %359 = vmatprep.subr.mxu0 %v222_v41  ;;  %v277_v60 = vld [vmem:[#allocation5 + $0x210] sm:$0xff]  ;;  %v276_v62 = vld [vmem:[#allocation5 + $0x208] sm:$0xff]  ;;  %v211_v63 = vld [vmem:[#allocation5] sm:$0xff] }
  0x96   :  { %430 = vmatprep.subr.mxu1 %v286_v42  ;;  %360 = vmatpush1.msra.mxu0 %v221_v43  ;;  %v275_v1 = vld [vmem:[#allocation5 + $0x200] sm:$0xff]  ;;  %v274_v2 = vld [vmem:[#allocation5 + $0x1f8] sm:$0xff]  ;;  %v273_v4 = vld [vmem:[#allocation5 + $0x1f0] sm:$0xff]  ;;  %v191_v43 = vlaneseq }
  0x97   :  { %431 = vmatpush1.msra.mxu1 %v285_v44  ;;  %361 = vmatprep.subr.mxu0 %v220_v45  ;;  %v338_v3 = vld [vmem:[#allocation5 + $0x3f8] sm:$0xff]  ;;  %v337_v5 = vld [vmem:[#allocation5 + $0x3f0] sm:$0xff]  ;;  %v272_v6 = vld [vmem:[#allocation5 + $0x1e8] sm:$0xff] }
  0x98   :  { %432 = vmatprep.subr.mxu1 %v284_v46  ;;  %362 = vmatpush1.msra.mxu0 %v219_v47  ;;  %v336_v7 = vld [vmem:[#allocation5 + $0x3e8] sm:$0xff]  ;;  %v271_v8 = vld [vmem:[#allocation5 + $0x1e0] sm:$0xff]  ;;  %v270_v10 = vld [vmem:[#allocation5 + $0x1d8] sm:$0xff]  ;;  %vm14023_vm0 = vcmp.lt.s32.totalorder %v191_v43, 256 }
  0x99   :  { %433 = vmatpush1.msra.mxu1 %v283_v48  ;;  %363 = vmatprep.subr.mxu0 %v218_v49  ;;  %v335_v9 = vld [vmem:[#allocation5 + $0x3e0] sm:$0xff]  ;;  %v334_v11 = vld [vmem:[#allocation5 + $0x3d8] sm:$0xff]  ;;  %v269_v12 = vld [vmem:[#allocation5 + $0x1d0] sm:$0xff]  ;;  %v19489_v49 = vmov 0 }
  0x9a   :  { %434 = vmatprep.subr.mxu1 %v282_v50  ;;  %364 = vmatpush1.msra.mxu0 %v217_v51  ;;  %v333_v13 = vld [vmem:[#allocation5 + $0x3d0] sm:$0xff]  ;;  %v268_v14 = vld [vmem:[#allocation5 + $0x1c8] sm:$0xff]  ;;  %v267_v16 = vld [vmem:[#allocation5 + $0x1c0] sm:$0xff]  ;;  %v19490_v49 = vsel %vm14023_vm0, 4294967295, %v19489_v49 }
  0x9b   :  { %435 = vmatpush1.msra.mxu1 %v281_v52  ;;  %365 = vmatprep.subr.mxu0 %v216_v53  ;;  %v332_v15 = vld [vmem:[#allocation5 + $0x3c8] sm:$0xff]  ;;  %v331_v17 = vld [vmem:[#allocation5 + $0x3c0] sm:$0xff]  ;;  %v266_v18 = vld [vmem:[#allocation5 + $0x1b8] sm:$0xff]  ;;  %19491 = vst [vmem:[#allocation28_spill] sm:$0xff] %v19490_v49 }
  0x9c   :  { %436 = vmatprep.subr.mxu1 %v280_v54  ;;  %366 = vmatpush1.msra.mxu0 %v215_v55  ;;  %v330_v19 = vld [vmem:[#allocation5 + $0x3b8] sm:$0xff]  ;;  %v265_v20 = vld [vmem:[#allocation5 + $0x1b0] sm:$0xff]  ;;  %v264_v22 = vld [vmem:[#allocation5 + $0x1a8] sm:$0xff] }
  0x9d   :  { %437 = vmatpush1.msra.mxu1 %v279_v56  ;;  %367 = vmatprep.subr.mxu0 %v214_v57  ;;  %v329_v21 = vld [vmem:[#allocation5 + $0x3b0] sm:$0xff]  ;;  %v328_v23 = vld [vmem:[#allocation5 + $0x3a8] sm:$0xff]  ;;  %v263_v24 = vld [vmem:[#allocation5 + $0x1a0] sm:$0xff] }
  0x9e   :  { %438 = vmatprep.subr.mxu1 %v278_v58  ;;  %368 = vmatpush1.msra.mxu0 %v213_v59  ;;  %v327_v25 = vld [vmem:[#allocation5 + $0x3a0] sm:$0xff]  ;;  %v262_v26 = vld [vmem:[#allocation5 + $0x198] sm:$0xff]  ;;  %v261_v28 = vld [vmem:[#allocation5 + $0x190] sm:$0xff]  ;;  %v14030_v58 = vshrl.u32 %v191_v43, 7 }
  0x9f   :  { %439 = vmatpush1.msra.mxu1 %v277_v60  ;;  %369 = vmatprep.subr.mxu0 %v212_v61  ;;  %v326_v27 = vld [vmem:[#allocation5 + $0x398] sm:$0xff]  ;;  %v325_v29 = vld [vmem:[#allocation5 + $0x390] sm:$0xff]  ;;  %v260_v30 = vld [vmem:[#allocation5 + $0x188] sm:$0xff] }
  0xa0   :  { %440 = vmatprep.subr.mxu1 %v276_v62  ;;  %370 = vmatpush1.msra.mxu0 %v211_v63  ;;  %v324_v31 = vld [vmem:[#allocation5 + $0x388] sm:$0xff]  ;;  %v14017_v32 = vld [vmem:[%s19487_s22] sm:$0xf]  ;;  %v258_v36 = vld [vmem:[#allocation5 + $0x178] sm:$0xff] }
  0xa1   :  { %441 = vmatpush1.msra.mxu1 %v275_v1  ;;  %371 = vmatprep.subr.mxu0 %v274_v2  ;;  %v259_v33 = vld [vmem:[#allocation5 + $0x180] sm:$0xff]  ;;  %v6225_v35 = vrot.slane %v14017_v32, 2  ;;  %v322_v37 = vld [vmem:[#allocation5 + $0x378] sm:$0xff]  ;;  %v257_v38 = vld [vmem:[#allocation5 + $0x170] sm:$0xff] }
  0xa2   :  { %442 = vmatprep.subr.mxu1 %v338_v3  ;;  %372 = vmatpush2.msra.mxu0 %v273_v4  ;;  %v323_v34 = vld [vmem:[#allocation5 + $0x380] sm:$0xff]  ;;  %v321_v39 = vld [vmem:[#allocation5 + $0x370] sm:$0xff]  ;;  %v256_v41 = vld [vmem:[#allocation5 + $0x168] sm:$0xff]  ;;  %v14033_v4 = vsub.s32 1, %v14030_v58 }
  0xa3   :  { %443 = vmatpush2.msra.mxu1 %v337_v5  ;;  %373 = vmatprep.subr.mxu0 %v272_v6  ;;  %v6227_v40 = vadd.f32 %v6225_v35, %v14017_v32  ;;  %v320_v42 = vld [vmem:[#allocation5 + $0x368] sm:$0xff]  ;;  %v255_v44 = vld [vmem:[#allocation5 + $0x160] sm:$0xff]  ;;  %v254_v47 = vld [vmem:[#allocation5 + $0x158] sm:$0xff] }
  0xa4   :  { %444 = vmatprep.subr.mxu1 %v336_v7  ;;  %374 = vmatpush2.msra.mxu0 %v271_v8  ;;  %v319_v45 = vld [vmem:[#allocation5 + $0x360] sm:$0xff]  ;;  %v318_v48 = vld [vmem:[#allocation5 + $0x358] sm:$0xff]  ;;  %v253_v50 = vld [vmem:[#allocation5 + $0x150] sm:$0xff]  ;;  %19492 = vst [vmem:[#allocation29_spill] sm:$0xff] %v14033_v4  ;;  %v205_v7 = vsub.s32 3, %v14030_v58  ;;  %v14037_v8 = vsub.s32 0, %v14030_v58 }
  0xa5   :  { %445 = vmatpush2.msra.mxu1 %v335_v9  ;;  %375 = vmatprep.subr.mxu0 %v270_v10  ;;  %v14021_v46 = vmul.f32 0.5, %v6227_v40  ;;  %v317_v51 = vld [vmem:[#allocation5 + $0x350] sm:$0xff]  ;;  %v252_v52 = vld [vmem:[#allocation5 + $0x148] sm:$0xff]  ;;  %v251_v54 = vld [vmem:[#allocation5 + $0x140] sm:$0xff] }
  0xa6   :  { %446 = vmatprep.subr.mxu1 %v334_v11  ;;  %376 = vmatpush2.msra.mxu0 %v269_v12  ;;  %v316_v53 = vld [vmem:[#allocation5 + $0x348] sm:$0xff]  ;;  %v315_v55 = vld [vmem:[#allocation5 + $0x340] sm:$0xff]  ;;  %v250_v56 = vld [vmem:[#allocation5 + $0x138] sm:$0xff]  ;;  %19493 = vst [vmem:[#allocation30_spill] sm:$0xff] %v14037_v8  ;;  %v201_v11 = vsub.s32 2, %v14030_v58 }
  0xa7   :  { %447 = vmatpush2.msra.mxu1 %v333_v13  ;;  %377 = vmatprep.subr.mxu0 %v268_v14  ;;  %19488 = vst [vmem:[#allocation27_spill] sm:$0xff] %v14021_v46  ;;  %6238 = vst.msk [vmem:[#allocation3 + $0x8] ss:$8 sm:$0x3] %vm14023_vm0, %v14021_v46  ;;  %v314_v57 = vld [vmem:[#allocation5 + $0x338] sm:$0xff]  ;;  %v249_v59 = vld [vmem:[#allocation5 + $0x130] sm:$0xff] }
  0xa8   :  { %448 = vmatprep.subr.mxu1 %v332_v15  ;;  %378 = vmatpush2.msra.mxu0 %v267_v16  ;;  %v313_v60 = vld [vmem:[#allocation5 + $0x330] sm:$0xff]  ;;  %v248_v61 = vld [vmem:[#allocation5 + $0x128] sm:$0xff]  ;;  %v247_v63 = vld [vmem:[#allocation5 + $0x120] sm:$0xff]  ;;  %v198_v15 = vrot.slane %v14017_v32, %v14033_v4 }
  0xa9   :  { %449 = vmatpush2.msra.mxu1 %v331_v17  ;;  %379 = vmatprep.subr.mxu0 %v266_v18  ;;  %v312_v62 = vld [vmem:[#allocation5 + $0x328] sm:$0xff]  ;;  %v311_v1 = vld [vmem:[#allocation5 + $0x320] sm:$0xff]  ;;  %v246_v2 = vld [vmem:[#allocation5 + $0x118] sm:$0xff]  ;;  %v206_v17 = vrot.slane %v14017_v32, %v205_v7  ;;  %v194_v18 = vrot.slane %v14017_v32, %v14037_v8 }
  0xaa   :  { %450 = vmatprep.subr.mxu1 %v330_v19  ;;  %380 = vmatpush2.msra.mxu0 %v265_v20  ;;  %v310_v3 = vld [vmem:[#allocation5 + $0x318] sm:$0xff]  ;;  %v245_v5 = vld [vmem:[#allocation5 + $0x110] sm:$0xff]  ;;  %v244_v9 = vld [vmem:[#allocation5 + $0x108] sm:$0xff]  ;;  %v202_v19 = vrot.slane %v14017_v32, %v201_v11 }
  0xab   :  { %451 = vmatpush2.msra.mxu1 %v329_v21  ;;  %381 = vmatprep.subr.mxu0 %v264_v22  ;;  %v309_v6 = vld [vmem:[#allocation5 + $0x310] sm:$0xff]  ;;  %v308_v10 = vld [vmem:[#allocation5 + $0x308] sm:$0xff]  ;;  %v243_v14 = vld [vmem:[#allocation5 + $0x100] sm:$0xff] }
  0xac   :  { %452 = vmatprep.subr.mxu1 %v328_v23  ;;  %382 = vmatpush2.msra.mxu0 %v263_v24  ;;  %v526_v12 = vld [vmem:[#allocation10] sm:$0x3]  ;;  %v527_v13 = vld [vmem:[#allocation12] sm:$0x3]  ;;  %v307_v16 = vld [vmem:[#allocation5 + $0x300] sm:$0xff]  ;;  %v13869_v24 = vmov 0.0|0.0  }
  0xad   :  { %453 = vmatpush2.msra.mxu1 %v327_v25  ;;  %383 = vmatprep.subr.mxu0 %v262_v26  ;;  %v538_v20 = vrot.slane %v526_v12, %v14037_v8  ;;  %v649_v21 = vrot.slane %v527_v13, %v14037_v8  ;;  %v542_v22 = vrot.slane %v526_v12, %v14033_v4  ;;  %v481_v25 = vld [vmem:[%s19494_s2] sm:$0x3] }
  0xae   :  { %454 = vmatprep.subr.mxu1 %v326_v27  ;;  %384 = vmatpush2.msra.mxu0 %v261_v28  ;;  %v653_v23 = vrot.slane %v527_v13, %v14033_v4  ;;  %v482_v26 = vld [vmem:[%s19495_s30] sm:$0x3]  ;;  %496 = vst.msk [vmem:[#allocation2 + $0x8] ss:$8 sm:$0x3] %vm14023_vm0, %v481_v25 }
  0xaf   :  { %455 = vmatpush2.msra.mxu1 %v325_v29  ;;  %385 = vmatprep.subr.mxu0 %v260_v30  ;;  %520 = vst.msk [vmem:[#allocation2 + $0xa] ss:$8 sm:$0x3] %vm14023_vm0, %v482_v26 }
  0xb0   :  { %456 = vmatprep.subr.mxu1 %v324_v31  ;;  %386 = vmatpush2.msra.mxu0 %v259_v33 }
  0xb1   :  { %457 = vmatpush2.msra.mxu1 %v323_v34  ;;  %387 = vmatprep.subr.mxu0 %v258_v36 }
  0xb2   :  { %458 = vmatprep.subr.mxu1 %v322_v37  ;;  %388 = vmatpush2.msra.mxu0 %v257_v38 }
  0xb3   :  { %459 = vmatpush2.msra.mxu1 %v321_v39  ;;  %389 = vmatprep.subr.mxu0 %v256_v41 }
  0xb4   :  { %460 = vmatprep.subr.mxu1 %v320_v42  ;;  %390 = vmatpush2.msra.mxu0 %v255_v44 }
  0xb5   :  { %461 = vmatpush2.msra.mxu1 %v319_v45  ;;  %391 = vmatprep.subr.mxu0 %v254_v47 }
  0xb6   :  { %462 = vmatprep.subr.mxu1 %v318_v48  ;;  %392 = vmatpush2.msra.mxu0 %v253_v50 }
  0xb7   :  { %463 = vmatpush2.msra.mxu1 %v317_v51  ;;  %393 = vmatprep.subr.mxu0 %v252_v52 }
  0xb8   :  { %464 = vmatprep.subr.mxu1 %v316_v53  ;;  %394 = vmatpush2.msra.mxu0 %v251_v54 }
  0xb9   :  { %465 = vmatpush2.msra.mxu1 %v315_v55  ;;  %395 = vmatprep.subr.mxu0 %v250_v56 }
  0xba   :  { %466 = vmatprep.subr.mxu1 %v314_v57  ;;  %396 = vmatpush2.msra.mxu0 %v249_v59 }
  0xbb   :  { %467 = vmatpush2.msra.mxu1 %v313_v60  ;;  %397 = vmatprep.subr.mxu0 %v248_v61 }
  0xbc   :  { %468 = vmatprep.subr.mxu1 %v312_v62  ;;  %398 = vmatpush2.msra.mxu0 %v247_v63  ;;  %v13871_v62 = vmov 1966171168  }
  0xbd   :  { %469 = vmatpush2.msra.mxu1 %v311_v1  ;;  %399 = vmatprep.subr.mxu0 %v246_v2  ;;  %v502_v63 = vunpack.c.l.s4 %v13871_v62 }
  0xbe   :  { %470 = vmatprep.subr.mxu1 %v310_v3  ;;  %400 = vmatpush2.msra.mxu0 %v245_v5 }
  0xbf   :  { %471 = vmatpush2.msra.mxu1 %v309_v6  ;;  %401 = vmatprep.subr.mxu0 %v244_v9  ;;  %v503_v1 = vunpack.c.0.s8 %v502_v63 }
  0xc0   :  { %472 = vmatprep.subr.mxu1 %v308_v10  ;;  %402 = vmatpush2.msra.mxu0 %v243_v14 }
  0xc1   :  { %403 = vmatprep.mubr.f32.mxu0 %v198_v15  ;;  %473 = vmatpush2.msra.mxu1 %v307_v16  ;;  %v14147_v10 = vsub.s32 %v503_v1, %v14030_v58 }
  0xc2   :  { %474 = vmatprep.mubr.f32.mxu1 %v206_v17  ;;  %404 = vmatmul.mubr.f32.vlgmr.msra.gmra.mxu0 %v194_v18 }
  0xc3   :  { %475 = vmatmul.mubr.f32.vlgmr.msra.gmra.mxu1 %v202_v19  ;;  %846 = vrot.lane.b32.xlu0 %v538_v20, %s13863_s23  ;;  %19498 = vst [vmem:[#allocation33_spill] sm:$0xff] %v14147_v10 }
  0xc4   :  { %788 = vrot.lane.b32.xlu1 %v649_v21, %s13864_s25 }
  0xc7   :  { %848 = vrot.lane.b32.xlu0 %v542_v22, %s13863_s23 }
  0xc8   :  { %790 = vrot.lane.b32.xlu1 %v653_v23, %s13864_s25 }
  0xcb   :  { %712 = vrot.lane.b32.xlu0 %v538_v20, %s13865_s3 }
  0xcc   :  { %714 = vrot.lane.b32.xlu1 %v542_v22, %s13865_s3 }
  0xcf   :  { %654 = vrot.lane.b32.xlu0 %v649_v21, %s13866_s26 }
  0xd0   :  { %656 = vrot.lane.b32.xlu1 %v653_v23, %s13866_s26 }
  0xd3   :  { %543 = vrot.lane.b32.xlu0 %v538_v20, %s13867_s10 }
  0xd4   :  { %545 = vrot.lane.b32.xlu1 %v542_v22, %s13867_s10 }
  0xd7   :  { %947 = vrot.lane.b32.xlu0 %v649_v21, %s13868_s27 }
  0xd8   :  { %949 = vrot.lane.b32.xlu1 %v653_v23, %s13868_s27 }
  0xdb   :  { %924 = vrot.lane.b32.xlu0 %v13869_v24, %s13870_s7 }
  0xdc   :  { %922 = vrot.lane.b32.xlu1 %v13869_v24, %s13870_s7 }
  0xdf   :  { %622 = vrot.lane.b32.xlu0 %v13869_v24, %s13854_s24 }
  0xe0   :  { %926 = vrot.lane.b32.xlu1 %v13869_v24, %s13870_s7 }
  0xe4   :  { %624 = vrot.lane.b32.xlu1 %v13869_v24, %s13854_s24 }
 0x135   :  { %v14082_v27 = vpop.permute.xlu0 %846 }
 0x136   :  { %v14084_v28 = vpop.permute.xlu1 %788  ;;  %v858_v31 = vmul.f32 0.0, %v14082_v27 }
 0x137   :  { %v800_v36 = vmul.f32 0.0, %v14084_v28 }
 0x139   :  { %v14086_v29 = vpop.permute.xlu0 %848 }
 0x13a   :  { %19496 = vst [vmem:[#allocation31_spill] sm:$0xff] %v14086_v29  ;;  %v14088_v30 = vpop.permute.xlu1 %790  ;;  %v857_v32 = vmul.f32 0.0, %v14086_v29  ;;  %v14095_v33 = vsel %vm698_vm1, %v14082_v27, %v14086_v29 }
 0x13b   :  { %19497 = vst [vmem:[#allocation32_spill] sm:$0xff] %v14088_v30  ;;  %v14100_v34 = vsel %vm756_vm2, %v14084_v28, %v14088_v30  ;;  %v859_v35 = vmul.f32 0.0, %v14095_v33  ;;  %v799_v42 = vmul.f32 0.0, %v14088_v30 }
 0x13c   :  { %v801_v37 = vmul.f32 0.0, %v14100_v34  ;;  %v12907_v38 = vpack.c.bf16 %v857_v32, %v857_v32 }
 0x13d   :  { %v12908_v39 = vpack.c.bf16 %v859_v35, %v858_v31  ;;  %v14107_v41 = vpop.permute.xlu0 %712  ;;  %v12903_v51 = vpack.c.bf16 %v799_v42, %v799_v42 }
 0x13e   :  { %v14105_v40 = vpop.permute.xlu1 %714  ;;  %879 = vrot.lane.b32.xlu1 %v12907_v38, %s13866_s26  ;;  %v12904_v44 = vpack.c.bf16 %v801_v37, %v800_v36  ;;  %v14118_v45 = vmul.f32 0.0, %v14107_v41 }
 0x13f   :  { %v14114_v43 = vsel %vm716_vm3, %v14107_v41, %v14105_v40  ;;  %881 = vrot.lane.b32.xlu0 %v12908_v39, %s13866_s26  ;;  %v726_v56 = vmul.f32 0.0, %v14105_v40 }
 0x140   :  { %v725_v47 = vmul.f32 0.0, %v14114_v43 }
 0x141   :  { %v14123_v50 = vpop.permute.xlu0 %654  ;;  %v12899_v59 = vpack.c.bf16 %v726_v56, %v726_v56 }
 0x142   :  { %v14121_v48 = vpop.permute.xlu1 %656  ;;  %883 = vrot.lane.b32.xlu1 %v12907_v38, %s13866_s26  ;;  %v12898_v53 = vpack.c.bf16 %v725_v47, %v14118_v45  ;;  %v14134_v54 = vmul.f32 0.0, %v14123_v50 }
 0x143   :  { %v14129_v52 = vsel %vm658_vm4, %v14123_v50, %v14121_v48  ;;  %823 = vrot.lane.b32.xlu0 %v12904_v44, %s13865_s3  ;;  %v668_v60 = vmul.f32 0.0, %v14121_v48 }
 0x144   :  { %v667_v55 = vmul.f32 0.0, %v14129_v52 }
 0x145   :  { %v12895_v61 = vpack.c.bf16 %v668_v60, %v668_v60  ;;  %v14178_v26 = vpop.permute.xlu0 %543 }
 0x146   :  { %821 = vrot.lane.b32.xlu1 %v12903_v51, %s13865_s3  ;;  %v12894_v57 = vpack.c.bf16 %v667_v55, %v14134_v54  ;;  %v14153_v14 = vpop.permute.xlu1 %545  ;;  %v555_v47 = vmul.f32 0.0, %v14178_v26 }
 0x147   :  { %747 = vrot.lane.b32.xlu0 %v12898_v53, %s13864_s25  ;;  %v557_v15 = vmul.f32 0.0, %v14153_v14  ;;  %v14189_v37 = vsel %vm547_vm5, %v14178_v26, %v14153_v14 }
 0x148   :  { %v556_v39 = vmul.f32 0.0, %v14189_v37 }
 0x149   :  { %v12887_v19 = vpack.c.bf16 %v557_v15, %v557_v15  ;;  %v1223_v15 = vld [vmem:[%s19427_s9 + $0x10] sm:$0xff] }
 0x14a   :  { %825 = vrot.lane.b32.xlu1 %v12903_v51, %s13865_s3  ;;  %v14184_v36 = vpop.permute.xlu1 %949  ;;  %v12886_v53 = vpack.c.bf16 %v556_v39, %v555_v47 }
 0x14b   :  { %689 = vrot.lane.b32.xlu0 %v12894_v57, %s13863_s23  ;;  %19499 = vst [vmem:[#allocation34_spill] sm:$0xff] %v14184_v36  ;;  %v958_v38 = vmul.f32 0.0, %v14184_v36 }
 0x14d   :  { %v12915_v51 = vpack.c.bf16 %v958_v38, %v958_v38 }
 0x14e   :  { %749 = vrot.lane.b32.xlu1 %v12899_v59, %s13864_s25 }
 0x152   :  { %691 = vrot.lane.b32.xlu1 %v12895_v61, %s13863_s23  ;;  %v14207_v61 = vpop.permute.xlu0 %947 }
 0x153   :  { %19500 = vst [vmem:[#allocation35_spill] sm:$0xff] %v14207_v61 }
 0x182   :  { %v405_v2 = vpop.f32.mrf.mxu0 }
 0x183   :  { %v476_v3 = vpop.f32.mrf.mxu1 }
 0x184   :  { %v407_v5 = vpop.f32.mrf.mxu0  ;;  %v477_v7 = vadd.f32 %v476_v3, %v405_v2 }
 0x185   :  { %v478_v6 = vpop.f32.mrf.mxu1 }
 0x186   :  { %v479_v9 = vadd.f32 %v478_v6, %v407_v5  ;;  %v959_v5 = vmul.f32 0.0, %v14207_v61 }
 0x188   :  { %v500_v11 = vcombine.low %v477_v7, %v479_v9  ;;  %v13560_v7 = vld [vmem:[#allocation7 + $0x4] ss:$8 sps:$4 sm:$0xff]  }
 0x189   :  { %11870 = vmatprep.mubr.msk.bf16.mxu0 %vm631_vm7, %v13560_v7 }
 0x18a   :  { %v507_v12 = vrot.slane %v500_v11, %v14147_v10  ;;  %v1024_v11 = vld [vmem:[%s19426_s8 + $0x18] sm:$0xff] }
 0x18c   :  { %v514_v13 = vrot.slane %v507_v12, %v14147_v10  ;;  %v19441_v12 = vmov 0  }
 0x18d   :  { %13559 = vset.pattern.permute.xlu1 %v19441_v12  ;;  %13558 = vset.pattern.permute.xlu0 %v19441_v12 }
 0x18e   :  { %517 = vst.msk [vmem:[#allocation2 + $0x9] ss:$8 sm:$0x3] %vm14023_vm0, %v514_v13  ;;  %v1023_v13 = vld [vmem:[%s19426_s8 + $0x10] sm:$0xff] }
 0x195   :  { %v14156_v16 = vld [vmem:[#allocation2 + $0x8] sm:$0xff]  ;;  %v14158_v17 = vld [vmem:[#allocation2 + $0x10] sm:$0xff] }
 0x196   :  { %v12910_v58 = vpack.c.bf16 %v14158_v17, %v14156_v16  ;;  %v12889_v18 = vpack.c.bf16 %v14158_v17, %v14158_v17  ;;  %v12888_v20 = vpack.c.bf16 %v14156_v16, %v13862_v0  ;;  %v723_v21 = vmul.f32 %v14158_v17, %v14105_v40 }
 0x197   :  { %v855_v22 = vmul.f32 %v14156_v16, %v14082_v27  ;;  %v856_v23 = vmul.f32 %v14158_v17, %v14095_v33  ;;  %v665_v25 = vmul.f32 %v14158_v17, %v14121_v48  ;;  %v797_v32 = vmul.f32 %v14156_v16, %v14084_v28 }
 0x198   :  { %920 = vrot.lane.b32.xlu0 %v12910_v58, %s13870_s7  ;;  %620 = vrot.lane.b32.xlu1 %v12889_v18, %s13854_s24  ;;  %v12897_v0 = vpack.c.bf16 %v723_v21, %v723_v21  ;;  %v798_v35 = vmul.f32 %v14158_v17, %v14100_v34  ;;  %v722_v55 = vmul.f32 %v14156_v16, %v14114_v43  ;;  %v1224_v58 = vld [vmem:[%s19427_s9 + $0x18] sm:$0xff]  ;;  %v1021_v18 = vld [vmem:[%s19426_s8] sm:$0xff] }
 0x199   :  { %v12906_v31 = vpack.c.bf16 %v856_v23, %v855_v22  ;;  %v12893_v42 = vpack.c.bf16 %v665_v25, %v665_v25  ;;  %v554_v56 = vmul.f32 %v14158_v17, %v14153_v14  ;;  %v664_v60 = vmul.f32 %v14156_v16, %v14129_v52  ;;  %v1222_v21 = vld [vmem:[%s19427_s9 + $0x8] sm:$0xff]  ;;  %v923_v22 = vpop.permute.xlu1 %922 }
 0x19a   :  { %v12902_v44 = vpack.c.bf16 %v798_v35, %v797_v32  ;;  %v12896_v57 = vpack.c.bf16 %v722_v55, %v14118_v45  ;;  %v553_v63 = vmul.f32 %v14156_v16, %v14189_v37  ;;  %v14217_v45 = vsel %vm588_vm6, %v14207_v61, %v14184_v36 }
 0x19b   :  { %v12885_v59 = vpack.c.bf16 %v554_v56, %v554_v56  ;;  %v12892_v62 = vpack.c.bf16 %v664_v60, %v14134_v54  ;;  %19501 = vst [vmem:[#allocation36_spill] sm:$0xff] %v14217_v45  ;;  %v956_v2 = vmul.f32 %v14207_v61, %v14156_v16  ;;  %v957_v3 = vmul.f32 %v14217_v45, %v14158_v17 }
 0x19c   :  { %580 = vrot.lane.b32.xlu1 %v12887_v19, %s13868_s27  ;;  %618 = vrot.lane.b32.xlu0 %v12888_v20, %s13854_s24  ;;  %v12884_v1 = vpack.c.bf16 %v553_v63, %v555_v47  ;;  %v960_v6 = vmul.f32 0.0, %v14217_v45  ;;  %v1022_v19 = vld [vmem:[%s19426_s8 + $0x8] sm:$0xff]  ;;  %v1221_v20 = vld [vmem:[%s19427_s9] sm:$0xff]  ;;  %v929_v60 = vrot.slane %v923_v22, 4 }
 0x19d   :  { %v12914_v54 = vpack.c.bf16 %v957_v3, %v956_v2  ;;  %v927_v23 = vpop.permute.xlu1 %926 }
 0x19e   :  { %v12916_v9 = vpack.c.bf16 %v960_v6, %v959_v5 }
 0x1a0   :  { %745 = vrot.lane.b32.xlu1 %v12897_v0, %s13864_s25  ;;  %877 = vrot.lane.b32.xlu0 %v12906_v31, %s13866_s26  ;;  %v925_v0 = vpop.permute.xlu0 %924 }
 0x1a1   :  { %v14261_v25 = vpop.permute.xlu1 %624  ;;  %v930_v56 = vrot.slane %v925_v0, 4 }
 0x1a4   :  { %687 = vrot.lane.b32.xlu1 %v12893_v42, %s13863_s23  ;;  %819 = vrot.lane.b32.xlu0 %v12902_v44, %s13865_s3  ;;  %v14263_v35 = vpop.permute.xlu0 %622 }
 0x1a8   :  { %980 = vrot.lane.b32.xlu1 %v12915_v51, %s13867_s10  ;;  %578 = vrot.lane.b32.xlu0 %v12886_v53, %s13868_s27 }
 0x1ac   :  { %743 = vrot.lane.b32.xlu0 %v12896_v57, %s13864_s25  ;;  %576 = vrot.lane.b32.xlu1 %v12885_v59, %s13868_s27 }
 0x1b0   :  { %685 = vrot.lane.b32.xlu0 %v12892_v62, %s13863_s23  ;;  %984 = vrot.lane.b32.xlu1 %v12915_v51, %s13867_s10  ;;  %v880_v31 = vpop.permute.xlu1 %879 }
 0x1b1   :  { %v882_v39 = vpop.permute.xlu0 %881 }
 0x1b2   :  { %v887_v7 = vrot.slane %v882_v39, 4 }
 0x1b4   :  { %574 = vrot.lane.b32.xlu0 %v12884_v1, %s13868_s27  ;;  %1042 = vperm.xlu1 %13559, %v1024_v11   ;;  %v884_v32 = vpop.permute.xlu1 %883 }
 0x1b5   :  { %v824_v44 = vpop.permute.xlu0 %823  ;;  %v888_v6 = vrot.slane %v884_v32, 4 }
 0x1b8   :  { %978 = vrot.lane.b32.xlu0 %v12914_v54, %s13867_s10  ;;  %1237 = vperm.xlu1 %13559, %v1223_v15   ;;  %v822_v38 = vpop.permute.xlu1 %821 }
 0x1b9   :  { %v14265_v51 = vpop.permute.xlu0 %747 }
 0x1bc   :  { %982 = vrot.lane.b32.xlu0 %v12916_v9, %s13867_s10  ;;  %1027 = vperm.xlu1 %13559, %v1021_v18   ;;  %v826_v42 = vpop.permute.xlu1 %825  ;;  %v892_v18 = vsel %vm586_vm8, %v887_v7, %v888_v6  ;;  %v14290_v7 = vld [vmem:[#allocation2 + $0x18] sm:$0xff] }
 0x1bd   :  { %v14269_v55 = vpop.permute.xlu0 %689 }
 0x1c0   :  { %1037 = vperm.xlu0 %13558, %v1023_v13   ;;  %1227 = vperm.xlu1 %13559, %v1221_v20   ;;  %v750_v47 = vpop.permute.xlu1 %749  ;;  %v886_v13 = vrot.slane %v880_v31, 4  ;;  %v829_v20 = vrot.slane %v824_v44, 4 }
 0x1c4   :  { %1242 = vperm.xlu0 %13558, %v1224_v58   ;;  %v14267_v53 = vpop.permute.xlu1 %691 }
 0x1c8   :  { %1032 = vperm.xlu0 %13558, %v1022_v19   ;;  %v830_v19 = vrot.slane %v826_v42, 4 }
 0x1cc   :  { %1232 = vperm.xlu0 %13558, %v1222_v21  }
 0x1d0   :  { %1923 = vrot.lane.b32.xlu0 %v13869_v24, %s13870_s7 }
 0x1d4   :  { %1927 = vrot.lane.b32.xlu0 %v13869_v24, %s13870_s7  ;;  %v931_v24 = vrot.slane %v927_v23, 4  ;;  %v828_v23 = vrot.slane %v822_v38, 4 }
 0x1d6   :  { %v935_v62 = vsel %vm586_vm8, %v930_v56, %v931_v24  ;;  %v834_v56 = vsel %vm586_vm8, %v829_v20, %v830_v19 }
 0x1d7   :  { %v936_v2 = vsel %vm933_vm9, %v925_v0, %v935_v62  ;;  %v893_v0 = vsel %vm658_vm4, %v882_v39, %v892_v18  ;;  %v835_v42 = vsel %vm716_vm3, %v824_v44, %v834_v56  ;;  %v753_v39 = vrot.slane %v14265_v51, 4 }
 0x20a   :  { %v921_v57 = vpop.permute.xlu0 %920  ;;  %v14271_v59 = vpop.permute.xlu1 %620 }
 0x20b   :  { %v928_v63 = vrot.slane %v921_v57, 4 }
 0x20d   :  { %v932_v1 = vsel %vm586_vm8, %v928_v63, %v929_v60 }
 0x20e   :  { %v934_v3 = vsel %vm933_vm9, %v921_v57, %v932_v1  ;;  %v14277_v54 = vpop.permute.xlu1 %580  ;;  %v14279_v5 = vpop.permute.xlu0 %618 }
 0x20f   :  { %v11866_v9 = vcombine.low %v934_v3, %v936_v2  ;;  %v11867_v11 = vcombine.high %v934_v3, %v936_v2  ;;  %v754_v2 = vrot.slane %v750_v47, 4  ;;  %v626_v44 = vrot.slane %v14279_v5, 4 }
 0x211   :  { %1160 = vmatprep.subr.bf16.mxu0 %v11867_v11  ;;  %v696_v11 = vrot.slane %v14267_v53, 4  ;;  %v758_v47 = vsel %vm586_vm8, %v753_v39, %v754_v2  ;;  %v628_v53 = vrot.slane %v14263_v35, 4 }
 0x212   :  { %1161 = vmatpush1.bf16.msra.mxu0 %v11866_v9  ;;  %v746_v15 = vpop.permute.xlu1 %745  ;;  %v878_v58 = vpop.permute.xlu0 %877  ;;  %v13497_v9 = vpack.c.bf16 %v14290_v7, %v14158_v17  ;;  %v629_v17 = vrot.slane %v14261_v25, 4 }
 0x213   :  { %v885_v21 = vrot.slane %v878_v58, 4  ;;  %v752_v19 = vrot.slane %v746_v15, 4 }
 0x215   :  { %v889_v22 = vsel %vm586_vm8, %v885_v21, %v886_v13  ;;  %v695_v13 = vrot.slane %v14269_v55, 4  ;;  %v627_v21 = vrot.slane %v14271_v59, 4 }
 0x216   :  { %v891_v32 = vsel %vm658_vm4, %v878_v58, %v889_v22  ;;  %v820_v24 = vpop.permute.xlu0 %819  ;;  %v688_v62 = vpop.permute.xlu1 %687  ;;  %v13496_v22 = vpack.c.bf16 %v14290_v7, %v14156_v16 }
 0x217   :  { %v11864_v57 = vcombine.low %v891_v32, %v893_v0  ;;  %v827_v31 = vrot.slane %v820_v24, 4  ;;  %v11865_v60 = vcombine.high %v891_v32, %v893_v0  ;;  %v759_v0 = vsel %vm756_vm2, %v14265_v51, %v758_v47 }
 0x218   :  { %v700_v32 = vsel %vm586_vm8, %v695_v13, %v696_v11  ;;  %v630_v15 = vsel %vm586_vm8, %v626_v44, %v627_v21  ;;  %v694_v56 = vrot.slane %v688_v62, 4 }
 0x219   :  { %v831_v63 = vsel %vm586_vm8, %v827_v31, %v828_v23  ;;  %1162 = vmatprep.subr.bf16.mxu0 %v11865_v60  ;;  %v633_v60 = vsel %vm586_vm8, %v628_v53, %v629_v17  ;;  %v632_v2 = vsel %vm631_vm7, %v14279_v5, %v630_v15 }
 0x21a   :  { %v833_v1 = vsel %vm716_vm3, %v820_v24, %v831_v63  ;;  %1163 = vmatpush1.bf16.msra.mxu0 %v11864_v57  ;;  %v579_v38 = vpop.permute.xlu0 %578  ;;  %v981_v58 = vpop.permute.xlu1 %980  ;;  %v585_v63 = vrot.slane %v14277_v54, 4  ;;  %v634_v54 = vsel %vm631_vm7, %v14263_v35, %v633_v60 }
 0x21b   :  { %v11862_v3 = vcombine.low %v833_v1, %v835_v42  ;;  %v11863_v6 = vcombine.high %v833_v1, %v835_v42  ;;  %v584_v42 = vrot.slane %v579_v38, 4  ;;  %v701_v1 = vsel %vm698_vm1, %v14269_v55, %v700_v32 }
 0x21c   :  { %v11855_v55 = vcombine.high %v632_v2, %v634_v54 }
 0x21d   :  { %1164 = vmatprep.subr.bf16.mxu0 %v11863_v6  ;;  %v590_v13 = vsel %vm586_vm8, %v584_v42, %v585_v63 }
 0x21e   :  { %1165 = vmatpush1.bf16.msra.mxu0 %v11862_v3  ;;  %v744_v18 = vpop.permute.xlu0 %743  ;;  %v577_v25 = vpop.permute.xlu1 %576 }
 0x21f   :  { %v751_v20 = vrot.slane %v744_v18, 4  ;;  %1166 = vmatprep.subr.bf16.mxu0 %v13497_v9  ;;  %v583_v3 = vrot.slane %v577_v25, 4 }
 0x221   :  { %v755_v23 = vsel %vm586_vm8, %v751_v20, %v752_v19  ;;  %v11854_v19 = vcombine.low %v632_v2, %v634_v54  ;;  %v591_v20 = vsel %vm588_vm6, %v579_v38, %v590_v13 }
 0x222   :  { %v757_v24 = vsel %vm756_vm2, %v744_v18, %v755_v23  ;;  %1167 = vmatpush1.bf16.msra.mxu0 %v13496_v22  ;;  %v686_v59 = vpop.permute.xlu0 %685  ;;  %v985_v21 = vpop.permute.xlu1 %984  ;;  %v987_v22 = vrot.slane %v981_v58, 4  ;;  %v13562_v58 = vld [vmem:[#allocation7] ss:$8 sps:$4 sm:$0xff]  }
 0x223   :  { %v11858_v57 = vcombine.low %v757_v24, %v759_v0  ;;  %v693_v16 = vrot.slane %v686_v59, 4  ;;  %v11859_v31 = vcombine.high %v757_v24, %v759_v0  ;;  %v989_v53 = vrot.slane %v985_v21, 4 }
 0x225   :  { %v697_v51 = vsel %vm586_vm8, %v693_v16, %v694_v56  ;;  %1168 = vmatprep.subr.bf16.mxu0 %v11859_v31  ;;  %v13565_v16 = vld [vmem:[#allocation7 + $0x10] ss:$8 sps:$4 sm:$0xff]  }
 0x226   :  { %v699_v62 = vsel %vm698_vm1, %v686_v59, %v697_v51  ;;  %1169 = vmatpush1.bf16.msra.mxu0 %v11858_v57  ;;  %v575_v39 = vpop.permute.xlu0 %574  ;;  %v13563_v57 = vld [vmem:[#allocation7 + $0x14] ss:$8 sps:$4 sm:$0xff]  }
 0x227   :  { %v11856_v6 = vcombine.low %v699_v62, %v701_v1  ;;  %v582_v9 = vrot.slane %v575_v39, 4  ;;  %v11857_v11 = vcombine.high %v699_v62, %v701_v1 }
 0x229   :  { %v587_v44 = vsel %vm586_vm8, %v582_v9, %v583_v3  ;;  %1170 = vmatprep.subr.bf16.mxu0 %v11857_v11 }
 0x22a   :  { %v589_v18 = vsel %vm588_vm6, %v575_v39, %v587_v44  ;;  %1171 = vmatpush1.bf16.msra.mxu0 %v11856_v6  ;;  %v979_v5 = vpop.permute.xlu0 %978 }
 0x22b   :  { %v986_v47 = vrot.slane %v979_v5, 4  ;;  %1172 = vmatprep.subr.bf16.mxu0 %v11855_v55  ;;  %v11853_v17 = vcombine.high %v589_v18, %v591_v20  ;;  %v11852_v32 = vcombine.low %v589_v18, %v591_v20 }
 0x22d   :  { %v990_v23 = vsel %vm586_vm8, %v986_v47, %v987_v22 }
 0x22e   :  { %1173 = vmatpush1.bf16.msra.mxu0 %v11854_v19  ;;  %v983_v35 = vpop.permute.xlu0 %982  ;;  %v992_v24 = vsel %vm547_vm5, %v979_v5, %v990_v23 }
 0x22f   :  { %v988_v0 = vrot.slane %v983_v35, 4  ;;  %1174 = vmatprep.subr.bf16.mxu0 %v11853_v17  ;;  %v14329_v31 = vpop.permute.xlu1 %1042  ;;  %v14348_v17 = vmul.f32 %v14290_v7, %v14107_v41 }
 0x231   :  { %v993_v15 = vsel %vm586_vm8, %v988_v0, %v989_v53 }
 0x232   :  { %v994_v59 = vsel %vm547_vm5, %v983_v35, %v993_v15  ;;  %1175 = vmatpush1.bf16.msra.mxu0 %v11852_v32 }
 0x233   :  { %v11868_v56 = vcombine.low %v992_v24, %v994_v59  ;;  %v11869_v38 = vcombine.high %v992_v24, %v994_v59  ;;  %v1238_v60 = vpop.permute.xlu1 %1237 }
 0x235   :  { %1190 = vmatprep.subr.bf16.mxu0 %v11869_v38 }
 0x236   :  { %1191 = vmatpush2.bf16.msra.mxu0 %v11868_v56 }
 0x237   :  { %v1028_v42 = vpop.permute.xlu1 %1027 }
 0x239   :  { %1193 = vmatmul.mubr.bf16.vlgmr.msra.gmra.mxu0 %v13562_v58 }
 0x23a   :  { %11871 = vmatprep.mubr.msk.bf16.mxu0 %vm631_vm7, %v13563_v57 }
 0x23b   :  { %v1038_v25 = vpop.permute.xlu0 %1037  ;;  %v1228_v62 = vpop.permute.xlu1 %1227 }
 0x23f   :  { %v14331_v63 = vpop.permute.xlu0 %1242 }
 0x241   :  { %1203 = vmatmul.mubr.bf16.gmra.mxu0 %v13565_v16  ;;  %v14365_v16 = vmul.f32 %v14290_v7, %v14123_v50 }
 0x242   :  { %2420 = vmatprep.mubr.bf16.mxu0 %v19441_v12 }
 0x243   :  { %v1033_v51 = vpop.permute.xlu0 %1032 }
 0x247   :  { %v1233_v11 = vpop.permute.xlu0 %1232 }
 0x2f9   :  { %v1194_v1 = vpop.f32.mrf.mxu0 }
 0x2fa   :  { %v1195_v2 = vadd.f32 %v1194_v1, %v1028_v42 }
 0x2fb   :  { %v1196_v39 = vpop.f32.mrf.mxu0 }
 0x2fc   :  { %vm1213_vm10 = vcmp.ge.f32.partialorder %v1195_v2, 0.0  ;;  %v1245_v3 = vmul.f32 %v1228_v62, %v1195_v2  ;;  %v1197_v6 = vadd.f32 %v1196_v39, %v1028_v42 }
 0x2fd   :  { %v1198_v9 = vpop.f32.mrf.mxu0 }
 0x2fe   :  { %v14333_v54 = vsel %vm1213_vm10, %v1195_v2, %v1245_v3  ;;  %vm1214_vm11 = vcmp.ge.f32.partialorder %v1197_v6, 0.0  ;;  %v1246_v13 = vmul.f32 %v1228_v62, %v1197_v6  ;;  %v1199_v44 = vadd.f32 %v1198_v9, %v1033_v51 }
 0x2ff   :  { %1261 = vst [vmem:[#allocation2 + $0x8] sm:$0xff] %v14333_v54  ;;  %v1200_v55 = vpop.f32.mrf.mxu0  ;;  %v12926_v18 = vpack.c.bf16 %v14333_v54, %v14290_v7  ;;  %v1558_v5 = vmul.f32 %v14333_v54, %v14114_v43  ;;  %v1462_v24 = vmul.f32 %v14333_v54, %v14129_v52  ;;  %v1282_v39 = vmul.f32 %v14333_v54, %v14189_v37 }
 0x300   :  { %v14340_v47 = vsel %vm1214_vm11, %v1197_v6, %v1246_v13  ;;  %vm1215_vm12 = vcmp.ge.f32.partialorder %v1199_v44, 0.0  ;;  %v1201_v19 = vadd.f32 %v1200_v55, %v1033_v51  ;;  %v1247_v20 = vmul.f32 %v1233_v11, %v1199_v44 }
 0x301   :  { %1262 = vst [vmem:[#allocation2 + $0x10] sm:$0xff] %v14340_v47  ;;  %v1204_v21 = vpop.f32.mrf.mxu0  ;;  %1409 = vrot.lane.b32.xlu1 %v12926_v18, %s13854_s24  ;;  %v12927_v22 = vpack.c.bf16 %v14340_v47, %v14340_v47  ;;  %v1559_v35 = vmul.f32 %v14340_v47, %v14105_v40  ;;  %v12942_v15 = vpack.c.bf16 %v1558_v5, %v14348_v17 }
 0x302   :  { %vm1216_vm13 = vcmp.ge.f32.partialorder %v1201_v19, 0.0  ;;  %v1248_v53 = vmul.f32 %v1233_v11, %v1201_v19  ;;  %v14352_v23 = vsel %vm1215_vm12, %v1199_v44, %v1247_v20  ;;  %v1205_v0 = vadd.f32 %v1204_v21, %v1038_v25 }
 0x303   :  { %1263 = vst [vmem:[#allocation2 + $0x28] sm:$0xff] %v14352_v23  ;;  %v1206_v32 = vpop.f32.mrf.mxu0  ;;  %1411 = vrot.lane.b32.xlu0 %v12927_v22, %s13854_s24  ;;  %v12943_v57 = vpack.c.bf16 %v1559_v35, %v1559_v35  ;;  %v1463_v42 = vmul.f32 %v14340_v47, %v14121_v48  ;;  %v12934_v62 = vpack.c.bf16 %v1462_v24, %v14365_v16  ;;  %vm2328_vm12 = vcmask 261120  }
 0x304   :  { %v14359_v59 = vsel %vm1216_vm13, %v1201_v19, %v1248_v53  ;;  %vm1217_vm14 = vcmp.ge.f32.partialorder %v1205_v0, 0.0  ;;  %v1249_v56 = vmul.f32 %v1238_v60, %v1205_v0  ;;  %v1207_v38 = vadd.f32 %v1206_v32, %v1038_v25 }
 0x305   :  { %1264 = vst [vmem:[#allocation2 + $0x30] sm:$0xff] %v14359_v59  ;;  %v1208_v58 = vpop.f32.mrf.mxu0  ;;  %1601 = vrot.lane.b32.xlu1 %v12942_v15, %s13864_s25  ;;  %v14385_v11 = vmul.f32 %v14290_v7, %v14178_v26  ;;  %v1283_v13 = vmul.f32 %v14340_v47, %v14153_v14  ;;  %v1562_v19 = vmul.f32 %v14359_v59, %v14105_v40 }
 0x306   :  { %v14369_v51 = vsel %vm1217_vm14, %v1205_v0, %v1249_v56  ;;  %vm1218_vm15 = vcmp.ge.f32.partialorder %v1207_v38, 0.0  ;;  %v1250_v1 = vmul.f32 %v1238_v60, %v1207_v38  ;;  %v1209_v2 = vadd.f32 %v1208_v58, %v14329_v31 }
 0x307   :  { %1265 = vst [vmem:[#allocation2 + $0x48] sm:$0xff] %v14369_v51  ;;  %v1210_v25 = vpop.f32.mrf.mxu0  ;;  %1603 = vrot.lane.b32.xlu0 %v12943_v57, %s13864_s25  ;;  %v12935_v60 = vpack.c.bf16 %v1463_v42, %v1463_v42  ;;  %v12919_v5 = vpack.c.bf16 %v1283_v13, %v1283_v13  ;;  %v1561_v20 = vmul.f32 %v14352_v23, %v14114_v43 }
 0x308   :  { %v14377_v3 = vsel %vm1218_vm15, %v1207_v38, %v1250_v1  ;;  %vm1219_vm10 = vcmp.ge.f32.partialorder %v1209_v2, 0.0  ;;  %v1251_v6 = vmul.f32 %v14331_v63, %v1209_v2  ;;  %v1211_v9 = vadd.f32 %v1210_v25, %v14329_v31 }
 0x309   :  { %1266 = vst [vmem:[#allocation2 + $0x50] sm:$0xff] %v14377_v3  ;;  %1505 = vrot.lane.b32.xlu1 %v12934_v62, %s13863_s23  ;;  %v12918_v31 = vpack.c.bf16 %v1282_v39, %v14385_v11  ;;  %v1466_v21 = vmul.f32 %v14359_v59, %v14121_v48  ;;  %v1465_v22 = vmul.f32 %v14352_v23, %v14129_v52 }
 0x30a   :  { %v14389_v44 = vsel %vm1219_vm10, %v1209_v2, %v1251_v6  ;;  %vm1220_vm11 = vcmp.ge.f32.partialorder %v1211_v9, 0.0  ;;  %v1252_v55 = vmul.f32 %v14331_v63, %v1211_v9  ;;  %v12970_v63 = vpack.c.bf16 %v14340_v47, %v14333_v54 }
 0x30b   :  { %1267 = vst [vmem:[#allocation2 + $0x68] sm:$0xff] %v14389_v44  ;;  %1507 = vrot.lane.b32.xlu0 %v12935_v60, %s13863_s23  ;;  %v12929_v35 = vpack.c.bf16 %v14359_v59, %v14359_v59  ;;  %v12928_v53 = vpack.c.bf16 %v14352_v23, %v14290_v7  ;;  %v12945_v0 = vpack.c.bf16 %v1562_v19, %v1562_v19 }
 0x30c   :  { %v14395_v18 = vsel %vm1220_vm11, %v1211_v9, %v1252_v55  ;;  %v12944_v15 = vpack.c.bf16 %v1561_v20, %v14348_v17  ;;  %v12937_v24 = vpack.c.bf16 %v1466_v21, %v1466_v21  ;;  %v12936_v56 = vpack.c.bf16 %v1465_v22, %v14365_v16 }
 0x30d   :  { %1268 = vst [vmem:[#allocation2 + $0x70] sm:$0xff] %v14395_v18  ;;  %1325 = vrot.lane.b32.xlu1 %v12918_v31, %s13868_s27  ;;  %v1286_v38 = vmul.f32 %v14359_v59, %v14153_v14  ;;  %v14424_v58 = vmul.f32 %v14369_v51, %v14082_v27  ;;  %v14428_v57 = vmul.f32 %v14377_v3, %v14095_v33 }
 0x30e   :  { %v14432_v42 = vmul.f32 %v14333_v54, %v14082_v27  ;;  %v14436_v1 = vmul.f32 %v14340_v47, %v14095_v33  ;;  %v14441_v2 = vmul.f32 %v14352_v23, %v14082_v27  ;;  %v14445_v25 = vmul.f32 %v14359_v59, %v14095_v33 }
 0x30f   :  { %1327 = vrot.lane.b32.xlu0 %v12919_v5, %s13868_s27  ;;  %v14449_v62 = vmul.f32 %v14369_v51, %v14084_v28  ;;  %v14453_v39 = vmul.f32 %v14377_v3, %v14100_v34  ;;  %v14461_v60 = vmul.f32 %v14333_v54, %v14084_v28  ;;  %v14465_v13 = vmul.f32 %v14340_v47, %v14100_v34 }
 0x310   :  { %v14474_v5 = vmul.f32 %v14389_v44, %v14082_v27  ;;  %v14478_v19 = vmul.f32 %v14395_v18, %v14095_v33  ;;  %v14484_v20 = vmul.f32 %v14352_v23, %v14084_v28  ;;  %v14488_v21 = vmul.f32 %v14359_v59, %v14100_v34 }
 0x311   :  { %1913 = vrot.lane.b32.xlu1 %v12970_v63, %s13870_s7  ;;  %v14492_v22 = vmul.f32 %v14389_v44, %v14084_v28  ;;  %v14507_v12 = vmul.f32 %v14377_v3, %v14217_v45  ;;  %v1285_v63 = vmul.f32 %v14352_v23, %v14189_v37  ;;  %v14519_v31 = vmul.f32 %v14340_v47, %v14217_v45 }
 0x312   :  { %v14528_v6 = vmul.f32 %v14389_v44, %v14207_v61  ;;  %v14542_v55 = vmul.f32 %v14359_v59, %v14217_v45  ;;  %v12921_v9 = vpack.c.bf16 %v1286_v38, %v1286_v38  ;;  %v12931_v46 = vpack.c.bf16 %v14377_v3, %v14377_v3 }
 0x313   :  { %1415 = vrot.lane.b32.xlu0 %v12929_v35, %s13854_s24  ;;  %v14515_v35 = vmul.f32 %v14333_v54, %v14207_v61  ;;  %v14532_v54 = vmul.f32 %v14395_v18, %v14217_v45  ;;  %v12920_v47 = vpack.c.bf16 %v1285_v63, %v14385_v11  ;;  %v1565_v49 = vmul.f32 %v14377_v3, %v14105_v40 }
 0x314   :  { %v1564_v38 = vmul.f32 %v14369_v51, %v14114_v43  ;;  %v1469_v63 = vmul.f32 %v14377_v3, %v14121_v48  ;;  %v1468_v32 = vmul.f32 %v14369_v51, %v14129_v52 }
 0x315   :  { %1413 = vrot.lane.b32.xlu1 %v12928_v53, %s13854_s24  ;;  %v14499_v53 = vmul.f32 %v14395_v18, %v14100_v34 }
 0x317   :  { %1607 = vrot.lane.b32.xlu0 %v12945_v0, %s13864_s25  ;;  %v14503_v0 = vmul.f32 %v14369_v51, %v14207_v61 }
 0x319   :  { %1605 = vrot.lane.b32.xlu1 %v12944_v15, %s13864_s25  ;;  %v1289_v15 = vmul.f32 %v14377_v3, %v14153_v14 }
 0x31b   :  { %1511 = vrot.lane.b32.xlu0 %v12937_v24, %s13863_s23  ;;  %v14538_v24 = vmul.f32 %v14352_v23, %v14207_v61 }
 0x31d   :  { %1509 = vrot.lane.b32.xlu1 %v12936_v56, %s13863_s23  ;;  %v12930_v56 = vpack.c.bf16 %v14369_v51, %v14290_v7 }
 0x31f   :  { %1331 = vrot.lane.b32.xlu0 %v12921_v9, %s13868_s27  ;;  %v12947_v9 = vpack.c.bf16 %v1565_v49, %v1565_v49  ;;  %v12938_v49 = vpack.c.bf16 %v1468_v32, %v14365_v16  ;;  %v12974_v32 = vpack.c.bf16 %v14377_v3, %v14369_v51  ;;  %v1471_v3 = vmul.f32 %v14389_v44, %v14129_v52 }
 0x321   :  { %1329 = vrot.lane.b32.xlu1 %v12920_v47, %s13868_s27  ;;  %v12946_v47 = vpack.c.bf16 %v1564_v38, %v14348_v17 }
 0x323   :  { %1419 = vrot.lane.b32.xlu0 %v12931_v46, %s13854_s24  ;;  %v12939_v46 = vpack.c.bf16 %v1469_v63, %v1469_v63  ;;  %v12933_v63 = vpack.c.bf16 %v14395_v18, %v14395_v18 }
 0x325   :  { %1417 = vrot.lane.b32.xlu1 %v12930_v56, %s13854_s24  ;;  %v1288_v56 = vmul.f32 %v14369_v51, %v14189_v37 }
 0x327   :  { %1611 = vrot.lane.b32.xlu0 %v12947_v9, %s13864_s25  ;;  %v12923_v9 = vpack.c.bf16 %v1289_v15, %v1289_v15  ;;  %v12922_v38 = vpack.c.bf16 %v1288_v56, %v14385_v11  ;;  %v1567_v56 = vmul.f32 %v14389_v44, %v14114_v43 }
 0x329   :  { %1609 = vrot.lane.b32.xlu1 %v12946_v47, %s13864_s25  ;;  %v1568_v47 = vmul.f32 %v14395_v18, %v14105_v40  ;;  %v12948_v51 = vpack.c.bf16 %v1567_v56, %v14348_v17  ;;  %v19503_v56 = vpack.c.bf16 %v14428_v57, %v14424_v58  ;;  %v19506_v58 = vpack.c.bf16 %v14453_v39, %v14449_v62  ;;  %v14662_v62 = vpop.permute.xlu0 %1923 }
 0x32a   :  { %v19507_v57 = vpack.c.bf16 %v14465_v13, %v14461_v60  ;;  %v19510_v39 = vpack.c.bf16 %v14499_v53, %v14492_v22  ;;  %v19511_v60 = vpack.c.bf16 %v14507_v12, %v14503_v0  ;;  %v11943_v12 = vld [vmem:[%s19426_s8 + $0x38] sm:$0xff]  ;;  %v19513_v22 = vpack.c.bf16 %v14532_v54, %v14528_v6  ;;  %v11942_v6 = vld [vmem:[%s19426_s8 + $0x30] sm:$0xff] }
 0x32b   :  { %1515 = vrot.lane.b32.xlu0 %v12939_v46, %s13863_s23  ;;  %v12949_v15 = vpack.c.bf16 %v1568_v47, %v1568_v47  ;;  %v12932_v46 = vpack.c.bf16 %v14389_v44, %v14290_v7  ;;  %v1291_v47 = vmul.f32 %v14389_v44, %v14189_v37 }
 0x32d   :  { %1513 = vrot.lane.b32.xlu1 %v12938_v49, %s13863_s23  ;;  %v12971_v49 = vpack.c.bf16 %v14290_v7, %v14290_v7  ;;  %v12924_v17 = vpack.c.bf16 %v1291_v47, %v14385_v11  ;;  %v11990_v47 = vld [vmem:[%s19427_s9 + $0x30] sm:$0xff] }
 0x32f   :  { %1335 = vrot.lane.b32.xlu0 %v12923_v9, %s13868_s27  ;;  %v1472_v9 = vmul.f32 %v14395_v18, %v14121_v48 }
 0x331   :  { %1333 = vrot.lane.b32.xlu1 %v12922_v38, %s13868_s27  ;;  %v12941_v38 = vpack.c.bf16 %v1472_v9, %v1472_v9 }
 0x333   :  { %1423 = vrot.lane.b32.xlu0 %v12933_v63, %s13854_s24  ;;  %v12940_v63 = vpack.c.bf16 %v1471_v3, %v14365_v16  ;;  %v12976_v16 = vpack.c.bf16 %v14395_v18, %v14389_v44  ;;  %v19504_v44 = vpack.c.bf16 %v14436_v1, %v14432_v42  ;;  %v19508_v42 = vpack.c.bf16 %v14478_v19, %v14474_v5  ;;  %v13568_v5 = vld [vmem:[%s19424_s6 + $0x4] ss:$12 sps:$4 sm:$0xff]  }
 0x334   :  { %v1973_v1 = vmul.f32 %v14290_v7, %v14184_v36  ;;  %v19512_v19 = vpack.c.bf16 %v14519_v31, %v14515_v35  ;;  %2367 = vmatprep.mubr.bf16.mxu1 %v13568_v5  ;;  %v11941_v31 = vld [vmem:[%s19426_s8 + $0x28] sm:$0xff]  ;;  %v19514_v35 = vpack.c.bf16 %v14542_v55, %v14538_v24  ;;  %v11940_v55 = vld [vmem:[%s19426_s8 + $0x20] sm:$0xff] }
 0x335   :  { %1921 = vrot.lane.b32.xlu1 %v12974_v32, %s13870_s7  ;;  %v1793_v32 = vmul.f32 %v14290_v7, %v14086_v29 }
 0x337   :  { %1615 = vrot.lane.b32.xlu0 %v12949_v15, %s13864_s25  ;;  %v12967_v15 = vpack.c.bf16 %v1793_v32, %v1793_v32 }
 0x339   :  { %1421 = vrot.lane.b32.xlu1 %v12932_v46, %s13854_s24  ;;  %v1292_v46 = vmul.f32 %v14395_v18, %v14153_v14  ;;  %v1697_v18 = vmul.f32 %v14290_v7, %v14088_v30  ;;  %v14670_v7 = vpop.permute.xlu0 %1927 }
 0x33b   :  { %1915 = vrot.lane.b32.xlu0 %v12971_v49, %s13870_s7  ;;  %v12925_v11 = vpack.c.bf16 %v1292_v46, %v1292_v46 }
 0x33d   :  { %1613 = vrot.lane.b32.xlu1 %v12948_v51, %s13864_s25  ;;  %v11991_v51 = vld [vmem:[%s19427_s9 + $0x38] sm:$0xff] }
 0x33f   :  { %1519 = vrot.lane.b32.xlu0 %v12941_v38, %s13863_s23  ;;  %v11989_v38 = vld [vmem:[%s19427_s9 + $0x28] sm:$0xff] }
 0x341   :  { %1517 = vrot.lane.b32.xlu1 %v12940_v63, %s13863_s23 }
 0x343   :  { %1919 = vrot.lane.b32.xlu0 %v12971_v49, %s13870_s7  ;;  %v19502_v49 = vpack.c.bf16 %v14359_v59, %v14352_v23  ;;  %v19505_v23 = vpack.c.bf16 %v14445_v25, %v14441_v2  ;;  %v12959_v59 = vpack.c.bf16 %v1697_v18, %v1697_v18  ;;  %v19509_v2 = vpack.c.bf16 %v14488_v21, %v14484_v20 }
 0x344   :  { %v12983_v25 = vpack.c.bf16 %v1973_v1, %v1973_v1 }
 0x345   :  { %1337 = vrot.lane.b32.xlu1 %v12924_v17, %s13868_s27 }
 0x347   :  { %1839 = vrot.lane.b32.xlu0 %v12967_v15, %s13866_s26 }
 0x349   :  { %1925 = vrot.lane.b32.xlu1 %v12976_v16, %s13870_s7 }
 0x34b   :  { %1843 = vrot.lane.b32.xlu0 %v12967_v15, %s13866_s26 }
 0x34d   :  { %1917 = vrot.lane.b32.xlu1 %v19502_v49, %s13870_s7 }
 0x34f   :  { %1339 = vrot.lane.b32.xlu0 %v12925_v11, %s13868_s27 }
 0x351   :  { %1837 = vrot.lane.b32.xlu1 %v19503_v56, %s13866_s26 }
 0x353   :  { %1831 = vrot.lane.b32.xlu0 %v12967_v15, %s13866_s26 }
 0x355   :  { %1829 = vrot.lane.b32.xlu1 %v19504_v44, %s13866_s26 }
 0x357   :  { %1835 = vrot.lane.b32.xlu0 %v12967_v15, %s13866_s26  ;;  %v11988_v15 = vld [vmem:[%s19427_s9 + $0x20] sm:$0xff] }
 0x359   :  { %1833 = vrot.lane.b32.xlu1 %v19505_v23, %s13866_s26 }
 0x35b   :  { %1743 = vrot.lane.b32.xlu0 %v12959_v59, %s13865_s3 }
 0x35d   :  { %1741 = vrot.lane.b32.xlu1 %v19506_v58, %s13865_s3 }
 0x35f   :  { %1747 = vrot.lane.b32.xlu0 %v12959_v59, %s13865_s3 }
 0x361   :  { %1733 = vrot.lane.b32.xlu1 %v19507_v57, %s13865_s3 }
 0x363   :  { %1735 = vrot.lane.b32.xlu0 %v12959_v59, %s13865_s3 }
 0x365   :  { %1841 = vrot.lane.b32.xlu1 %v19508_v42, %s13866_s26 }
 0x367   :  { %1739 = vrot.lane.b32.xlu0 %v12959_v59, %s13865_s3 }
 0x369   :  { %1737 = vrot.lane.b32.xlu1 %v19509_v2, %s13865_s3 }
 0x36b   :  { %2019 = vrot.lane.b32.xlu0 %v12983_v25, %s13867_s10 }
 0x36d   :  { %1745 = vrot.lane.b32.xlu1 %v19510_v39, %s13865_s3 }
 0x36f   :  { %2023 = vrot.lane.b32.xlu0 %v12983_v25, %s13867_s10 }
 0x371   :  { %2017 = vrot.lane.b32.xlu1 %v19511_v60, %s13867_s10 }
 0x373   :  { %v14676_v13 = vpop.permute.xlu1 %1409  ;;  %2011 = vrot.lane.b32.xlu0 %v12983_v25, %s13867_s10 }
 0x375   :  { %2009 = vrot.lane.b32.xlu1 %v19512_v19, %s13867_s10  ;;  %v14686_v20 = vpop.permute.xlu0 %1411 }
 0x377   :  { %v14688_v21 = vpop.permute.xlu1 %1601  ;;  %2015 = vrot.lane.b32.xlu0 %v12983_v25, %s13867_s10 }
 0x379   :  { %2021 = vrot.lane.b32.xlu1 %v19513_v22, %s13867_s10  ;;  %v1604_v53 = vpop.permute.xlu0 %1603 }
 0x37b   :  { %v14698_v0 = vpop.permute.xlu1 %1505  ;;  %2115 = vperm.xlu0 %13558, %v11943_v12  }
 0x37d   :  { %2013 = vrot.lane.b32.xlu1 %v19514_v35, %s13867_s10  ;;  %v14707_v9 = vpop.permute.xlu0 %1507 }
 0x37e   :  { %v1522_v45 = vrot.slane %v14707_v9, 4 }
 0x37f   :  { %v14712_v54 = vpop.permute.xlu1 %1325  ;;  %2105 = vperm.xlu0 %13558, %v11941_v31   ;;  %v1618_v31 = vrot.slane %v1604_v53, 4 }
 0x381   :  { %2110 = vperm.xlu1 %13559, %v11942_v6   ;;  %v14717_v3 = vpop.permute.xlu0 %1327 }
 0x383   :  { %v14722_v24 = vpop.permute.xlu1 %1913  ;;  %2471 = vperm.xlu0 %13558, %v11991_v51  }
 0x385   :  { %2100 = vperm.xlu1 %13559, %v11940_v55   ;;  %v14727_v63 = vpop.permute.xlu0 %1415  ;;  %v1617_v55 = vrot.slane %v14688_v21, 4 }
 0x387   :  { %2461 = vperm.xlu0 %13558, %v11989_v38   ;;  %v14732_v32 = vpop.permute.xlu1 %1413  ;;  %v1625_v8 = vsel %vm586_vm8, %v1617_v55, %v1618_v31 }
 0x389   :  { %2466 = vperm.xlu1 %13559, %v11990_v47   ;;  %v1608_v17 = vpop.permute.xlu0 %1607 }
 0x38a   :  { %v1620_v12 = vrot.slane %v1608_v17, 4 }
 0x38b   :  { %v1606_v16 = vpop.permute.xlu1 %1605 }
 0x38c   :  { %v1619_v60 = vrot.slane %v1606_v16, 4 }
 0x38d   :  { %2456 = vperm.xlu1 %13559, %v11988_v15   ;;  %v1512_v46 = vpop.permute.xlu0 %1511 }
 0x38e   :  { %v1627_v6 = vsel %vm586_vm8, %v1619_v60, %v1620_v12 }
 0x38f   :  { %v14737_v49 = vpop.permute.xlu1 %1509  ;;  %v1628_v4 = vsel %vm756_vm2, %v1606_v16, %v1627_v6  ;;  %v1626_v16 = vsel %vm756_vm2, %v14688_v21, %v1625_v8  ;;  %v1524_v6 = vrot.slane %v1512_v46, 4 }
 0x390   :  { %v1523_v53 = vrot.slane %v14737_v49, 4  ;;  %v11962_v8 = vcombine.low %v1626_v16, %v1628_v4 }
 0x391   :  { %v14739_v11 = vpop.permute.xlu0 %1331 }
 0x392   :  { %v1531_v9 = vsel %vm586_vm8, %v1523_v53, %v1524_v6  ;;  %v1427_v53 = vrot.slane %v14732_v32, 4 }
 0x393   :  { %v14741_v56 = vpop.permute.xlu1 %1329 }
 0x395   :  { %v14743_v44 = vpop.permute.xlu0 %1419 }
 0x397   :  { %v14745_v18 = vpop.permute.xlu1 %1417 }
 0x399   :  { %v1612_v23 = vpop.permute.xlu0 %1611 }
 0x39a   :  { %v1622_v35 = vrot.slane %v1612_v23, 4 }
 0x39b   :  { %v1610_v59 = vpop.permute.xlu1 %1609 }
 0x39c   :  { %v1621_v19 = vrot.slane %v1610_v59, 4 }
 0x39d   :  { %v1516_v58 = vpop.permute.xlu0 %1515 }
 0x39e   :  { %v1629_v38 = vsel %vm586_vm8, %v1621_v19, %v1622_v35  ;;  %v1526_v60 = vrot.slane %v1516_v58, 4  ;;  %v11963_v58 = vcombine.high %v1626_v16, %v1628_v4  ;;  %v1430_v4 = vrot.slane %v14743_v44, 4 }
 0x39f   :  { %v1514_v57 = vpop.permute.xlu1 %1513  ;;  %v1630_v23 = vsel %vm756_vm2, %v1610_v59, %v1629_v38 }
 0x3a0   :  { %v1525_v36 = vrot.slane %v1514_v57, 4 }
 0x3a1   :  { %v14747_v42 = vpop.permute.xlu0 %1335 }
 0x3a2   :  { %v1533_v55 = vsel %vm586_vm8, %v1525_v36, %v1526_v60  ;;  %v1426_v60 = vrot.slane %v14686_v20, 4 }
 0x3a3   :  { %v14749_v1 = vpop.permute.xlu1 %1333  ;;  %v1534_v21 = vsel %vm698_vm1, %v1514_v57, %v1533_v55 }
 0x3a5   :  { %v1424_v2 = vpop.permute.xlu0 %1423 }
 0x3a7   :  { %v14751_v25 = vpop.permute.xlu1 %1921 }
 0x3a9   :  { %v1616_v39 = vpop.permute.xlu0 %1615 }
 0x3aa   :  { %v1624_v47 = vrot.slane %v1616_v39, 4 }
 0x3ab   :  { %v14753_v5 = vpop.permute.xlu1 %1421 }
 0x3ad   :  { %v14755_v22 = vpop.permute.xlu0 %1915 }
 0x3af   :  { %v1614_v51 = vpop.permute.xlu1 %1613 }
 0x3b0   :  { %v1623_v15 = vrot.slane %v1614_v51, 4 }
 0x3b1   :  { %v1520_v10 = vpop.permute.xlu0 %1519 }
 0x3b2   :  { %v1631_v17 = vsel %vm586_vm8, %v1623_v15, %v1624_v47  ;;  %v1528_v19 = vrot.slane %v1520_v10, 4  ;;  %v1521_v10 = vrot.slane %v14698_v0, 4  ;;  %v1431_v47 = vrot.slane %v14753_v5, 4 }
 0x3b3   :  { %v1632_v12 = vsel %vm756_vm2, %v1614_v51, %v1631_v17  ;;  %v1518_v30 = vpop.permute.xlu1 %1517  ;;  %v1429_v15 = vrot.slane %v14745_v18, 4  ;;  %v1432_v17 = vrot.slane %v1424_v2, 4 }
 0x3b4   :  { %v11964_v29 = vcombine.low %v1630_v23, %v1632_v12  ;;  %v1527_v39 = vrot.slane %v1518_v30, 4  ;;  %v11965_v35 = vcombine.high %v1630_v23, %v1632_v12  ;;  %v1529_v36 = vsel %vm586_vm8, %v1521_v10, %v1522_v45 }
 0x3b5   :  { %v14769_v31 = vpop.permute.xlu0 %1919  ;;  %v1439_v57 = vsel %vm586_vm8, %v1431_v47, %v1432_v17  ;;  %v1530_v45 = vsel %vm698_vm1, %v14698_v0, %v1529_v36  ;;  %v1343_v47 = vrot.slane %v14741_v56, 4  ;;  %v1342_v17 = vrot.slane %v14717_v3, 4 }
 0x3b6   :  { %v1535_v59 = vsel %vm586_vm8, %v1527_v39, %v1528_v19  ;;  %2335 = vmatprep.subr.bf16.mxu1 %v11965_v35  ;;  %v1437_v19 = vsel %vm586_vm8, %v1429_v15, %v1430_v4  ;;  %v1425_v35 = vrot.slane %v14676_v13, 4  ;;  %v1440_v44 = vsel %vm631_vm7, %v14753_v5, %v1439_v57 }
 0x3b7   :  { %v1536_v51 = vsel %vm698_vm1, %v1518_v30, %v1535_v59  ;;  %v1338_v38 = vpop.permute.xlu1 %1337  ;;  %2336 = vmatpush1.bf16.msra.mxu1 %v11964_v29  ;;  %v1532_v29 = vsel %vm698_vm1, %v14737_v49, %v1531_v9  ;;  %v1428_v49 = vrot.slane %v14727_v63, 4  ;;  %v1438_v63 = vsel %vm631_vm7, %v14745_v18, %v1437_v19 }
 0x3b8   :  { %2337 = vmatprep.subr.bf16.mxu1 %v11963_v58  ;;  %v11961_v30 = vcombine.high %v1534_v21, %v1536_v51  ;;  %v11960_v2 = vcombine.low %v1534_v21, %v1536_v51  ;;  %v11959_v39 = vcombine.high %v1530_v45, %v1532_v29  ;;  %v1433_v0 = vsel %vm586_vm8, %v1425_v35, %v1426_v60 }
 0x3b9   :  { %v14778_v46 = vpop.permute.xlu0 %1839  ;;  %v1435_v20 = vsel %vm586_vm8, %v1427_v53, %v1428_v49  ;;  %v11958_v6 = vcombine.low %v1530_v45, %v1532_v29  ;;  %v1345_v59 = vrot.slane %v14749_v1, 4  ;;  %v1347_v58 = vrot.slane %v1338_v38, 4 }
 0x3ba   :  { %v11957_v10 = vcombine.high %v1438_v63, %v1440_v44  ;;  %v1436_v5 = vsel %vm631_vm7, %v14732_v32, %v1435_v20  ;;  %v1434_v18 = vsel %vm631_vm7, %v14676_v13, %v1433_v0  ;;  %v11956_v36 = vcombine.low %v1438_v63, %v1440_v44 }
 0x3bb   :  { %v14784_v23 = vpop.permute.xlu1 %1925  ;;  %2338 = vmatpush1.bf16.msra.mxu1 %v11962_v8  ;;  %v1346_v8 = vrot.slane %v14747_v42, 4  ;;  %v1344_v32 = vrot.slane %v14739_v11, 4  ;;  %v11955_v29 = vcombine.high %v1434_v18, %v1436_v5  ;;  %v1341_v4 = vrot.slane %v14712_v54, 4 }
 0x3bc   :  { %2339 = vmatprep.subr.bf16.mxu1 %v11961_v30  ;;  %v1935_v13 = vrot.slane %v14784_v23, 4  ;;  %v11954_v60 = vcombine.low %v1434_v18, %v1436_v5  ;;  %v1936_v45 = vrot.slane %v14670_v7, 4  ;;  %v1933_v49 = vrot.slane %v14751_v25, 4 }
 0x3bd   :  { %v14792_v12 = vpop.permute.xlu0 %1843  ;;  %v1353_v30 = vsel %vm586_vm8, %v1345_v59, %v1346_v8  ;;  %v1351_v57 = vsel %vm586_vm8, %v1343_v47, %v1344_v32  ;;  %v1934_v35 = vrot.slane %v14662_v62, 4  ;;  %v1930_v63 = vrot.slane %v14755_v22, 4 }
 0x3be   :  { %v1354_v3 = vsel %vm588_vm6, %v14749_v1, %v1353_v30  ;;  %v1943_v44 = vsel %vm586_vm8, %v1935_v13, %v1936_v45 }
 0x3bf   :  { %v14799_v16 = vpop.permute.xlu1 %1917  ;;  %2340 = vmatpush1.bf16.msra.mxu1 %v11960_v2  ;;  %v1349_v2 = vsel %vm586_vm8, %v1341_v4, %v1342_v17  ;;  %v1944_v62 = vsel %vm933_vm9, %v14784_v23, %v1943_v44 }
 0x3c0   :  { %2341 = vmatprep.subr.bf16.mxu1 %v11959_v39  ;;  %v1931_v20 = vrot.slane %v14799_v16, 4  ;;  %v1350_v7 = vsel %vm588_vm6, %v14712_v54, %v1349_v2 }
 0x3c1   :  { %v1340_v55 = vpop.permute.xlu0 %1339 }
 0x3c2   :  { %v1348_v51 = vrot.slane %v1340_v55, 4 }
 0x3c3   :  { %v14808_v9 = vpop.permute.xlu1 %1837  ;;  %2342 = vmatpush1.bf16.msra.mxu1 %v11958_v6  ;;  %v1941_v6 = vsel %vm586_vm8, %v1933_v49, %v1934_v35 }
 0x3c4   :  { %v1355_v21 = vsel %vm586_vm8, %v1347_v58, %v1348_v51  ;;  %2343 = vmatprep.subr.bf16.mxu1 %v11957_v10  ;;  %v1929_v58 = vrot.slane %v14722_v24, 4  ;;  %v1942_v10 = vsel %vm933_vm9, %v14751_v25, %v1941_v6  ;;  %v1849_v8 = vrot.slane %v14808_v9, 4 }
 0x3c5   :  { %v14815_v15 = vpop.permute.xlu0 %1831  ;;  %v1356_v42 = vsel %vm588_vm6, %v1338_v38, %v1355_v21  ;;  %v1352_v38 = vsel %vm588_vm6, %v14741_v56, %v1351_v57  ;;  %v1932_v56 = vrot.slane %v14769_v31, 4  ;;  %v11981_v31 = vcombine.high %v1942_v10, %v1944_v62 }
 0x3c6   :  { %v11953_v19 = vcombine.high %v1354_v3, %v1356_v42  ;;  %v11952_v1 = vcombine.low %v1354_v3, %v1356_v42  ;;  %v11951_v55 = vcombine.high %v1350_v7, %v1352_v38  ;;  %v11950_v54 = vcombine.low %v1350_v7, %v1352_v38 }
 0x3c7   :  { %v14820_v53 = vpop.permute.xlu1 %1829  ;;  %2344 = vmatpush1.bf16.msra.mxu1 %v11956_v36  ;;  %v1939_v51 = vsel %vm586_vm8, %v1931_v20, %v1932_v56  ;;  %v1937_v22 = vsel %vm586_vm8, %v1929_v58, %v1930_v63  ;;  %v11980_v18 = vcombine.low %v1942_v10, %v1944_v62  ;;  %v1850_v25 = vrot.slane %v14778_v46, 4 }
 0x3c8   :  { %2345 = vmatprep.subr.bf16.mxu1 %v11955_v29  ;;  %v1940_v47 = vsel %vm933_vm9, %v14799_v16, %v1939_v51  ;;  %v1938_v36 = vsel %vm933_vm9, %v14722_v24, %v1937_v22  ;;  %v1845_v32 = vrot.slane %v14820_v53, 4  ;;  %v1852_v42 = vrot.slane %v14792_v12, 4 }
 0x3c9   :  { %v1836_v11 = vpop.permute.xlu0 %1835  ;;  %v11979_v29 = vcombine.high %v1938_v36, %v1940_v47  ;;  %v1857_v4 = vsel %vm586_vm8, %v1849_v8, %v1850_v25  ;;  %v1846_v57 = vrot.slane %v14815_v15, 4  ;;  %v11978_v24 = vcombine.low %v1938_v36, %v1940_v47  ;;  %v1648_v25 = vld [vmem:[#allocation2 + $0x70] sm:$0xff] }
 0x3ca   :  { %v1848_v30 = vrot.slane %v1836_v11, 4  ;;  %v1858_v11 = vsel %vm658_vm4, %v14808_v9, %v1857_v4 }
 0x3cb   :  { %v1834_v39 = vpop.permute.xlu1 %1833  ;;  %2346 = vmatpush1.bf16.msra.mxu1 %v11954_v60  ;;  %v1853_v46 = vsel %vm586_vm8, %v1845_v32, %v1846_v57 }
 0x3cc   :  { %2347 = vmatprep.subr.bf16.mxu1 %v11953_v19  ;;  %v1847_v21 = vrot.slane %v1834_v39, 4  ;;  %v1854_v44 = vsel %vm658_vm4, %v14820_v53, %v1853_v46 }
 0x3cd   :  { %v1744_v0 = vpop.permute.xlu0 %1743 }
 0x3ce   :  { %v1855_v13 = vsel %vm586_vm8, %v1847_v21, %v1848_v30  ;;  %v1754_v20 = vrot.slane %v1744_v0, 4 }
 0x3cf   :  { %v14843_v59 = vpop.permute.xlu1 %1741  ;;  %2348 = vmatpush1.bf16.msra.mxu1 %v11952_v1  ;;  %v1856_v12 = vsel %vm658_vm4, %v1834_v39, %v1855_v13  ;;  %v1644_v13 = vld [vmem:[#allocation2 + $0x30] sm:$0xff] }
 0x3d0   :  { %2349 = vmatprep.subr.bf16.mxu1 %v11951_v55  ;;  %v1753_v2 = vrot.slane %v14843_v59, 4  ;;  %v11975_v9 = vcombine.high %v1854_v44, %v1856_v12  ;;  %v11974_v51 = vcombine.low %v1854_v44, %v1856_v12  ;;  %v1642_v12 = vld [vmem:[#allocation2 + $0x10] sm:$0xff] }
 0x3d1   :  { %v1748_v5 = vpop.permute.xlu0 %1747 }
 0x3d2   :  { %v1761_v39 = vsel %vm586_vm8, %v1753_v2, %v1754_v20  ;;  %v1756_v56 = vrot.slane %v1748_v5, 4 }
 0x3d3   :  { %v1734_v23 = vpop.permute.xlu1 %1733  ;;  %2350 = vmatpush1.bf16.msra.mxu1 %v11950_v54  ;;  %v1762_v10 = vsel %vm716_vm3, %v14843_v59, %v1761_v39  ;;  %v1646_v59 = vld [vmem:[#allocation2 + $0x50] sm:$0xff] }
 0x3d4   :  { %2351 = vmatprep.subr.bf16.mxu1 %v11981_v31  ;;  %v1749_v55 = vrot.slane %v1734_v23, 4 }
 0x3d5   :  { %v1736_v17 = vpop.permute.xlu0 %1735 }
 0x3d6   :  { %v1750_v1 = vrot.slane %v1736_v17, 4 }
 0x3d7   :  { %v1842_v16 = vpop.permute.xlu1 %1841  ;;  %2352 = vmatpush2.bf16.msra.mxu1 %v11980_v18 }
 0x3d8   :  { %v1851_v60 = vrot.slane %v1842_v16, 4  ;;  %2353 = vmatprep.subr.bf16.mxu1 %v11979_v29  ;;  %v1757_v53 = vsel %vm586_vm8, %v1749_v55, %v1750_v1 }
 0x3d9   :  { %v1740_v3 = vpop.permute.xlu0 %1739  ;;  %v1758_v21 = vsel %vm716_vm3, %v1734_v23, %v1757_v53  ;;  %v13569_v53 = vld [vmem:[%s19424_s6 + $0x8] ss:$12 sps:$4 sm:$0xff]  }
 0x3da   :  { %v1859_v45 = vsel %vm586_vm8, %v1851_v60, %v1852_v42  ;;  %v1752_v6 = vrot.slane %v1740_v3, 4  ;;  %v13501_v42 = vpack.c.bf16 %v1648_v25, %v1646_v59  ;;  %v1645_v3 = vld [vmem:[#allocation2 + $0x48] sm:$0xff] }
 0x3db   :  { %v1860_v49 = vsel %vm658_vm4, %v1842_v16, %v1859_v45  ;;  %v1738_v15 = vpop.permute.xlu1 %1737  ;;  %2354 = vmatpush2.bf16.msra.mxu1 %v11978_v24  ;;  %v1647_v16 = vld [vmem:[#allocation2 + $0x68] sm:$0xff] }
 0x3dc   :  { %v11976_v19 = vcombine.low %v1858_v11, %v1860_v49  ;;  %v1751_v38 = vrot.slane %v1738_v15, 4  ;;  %v11977_v35 = vcombine.high %v1858_v11, %v1860_v49  ;;  %v13500_v11 = vpack.c.bf16 %v1647_v16, %v1645_v3 }
 0x3dd   :  { %v2020_v7 = vpop.permute.xlu0 %2019  ;;  %v13499_v49 = vpack.c.bf16 %v1644_v13, %v1642_v12 }
 0x3de   :  { %2355 = vmatprep.subr.bf16.mxu1 %v11977_v35  ;;  %v1759_v62 = vsel %vm586_vm8, %v1751_v38, %v1752_v6  ;;  %v2030_v29 = vrot.slane %v2020_v7, 4 }
 0x3df   :  { %v1746_v63 = vpop.permute.xlu1 %1745  ;;  %2356 = vmatpush2.bf16.msra.mxu1 %v11976_v19  ;;  %v1760_v22 = vsel %vm716_vm3, %v1738_v15, %v1759_v62  ;;  %v1643_v15 = vld [vmem:[#allocation2 + $0x28] sm:$0xff] }
 0x3e0   :  { %v1755_v58 = vrot.slane %v1746_v63, 4  ;;  %2357 = vmatprep.subr.bf16.mxu1 %v11975_v9  ;;  %v11971_v18 = vcombine.high %v1758_v21, %v1760_v22  ;;  %v11970_v30 = vcombine.low %v1758_v21, %v1760_v22  ;;  %v1641_v9 = vld [vmem:[#allocation2 + $0x8] sm:$0xff] }
 0x3e1   :  { %v2024_v54 = vpop.permute.xlu0 %2023  ;;  %v13498_v39 = vpack.c.bf16 %v1643_v15, %v1641_v9  ;;  %v13573_v22 = vld [vmem:[%s19424_s6 + $0x20] ss:$12 sps:$4 sm:$0xff]  }
 0x3e2   :  { %v1763_v0 = vsel %vm586_vm8, %v1755_v58, %v1756_v56  ;;  %v2032_v60 = vrot.slane %v2024_v54, 4  ;;  %v13566_v56 = vld [vmem:[%s19424_s6] ss:$12 sps:$4 sm:$0xff]   ;;  %v13570_v58 = vld [vmem:[%s19424_s6 + $0x1c] ss:$12 sps:$4 sm:$0xff]  }
 0x3e3   :  { %v1764_v31 = vsel %vm716_vm3, %v1746_v63, %v1763_v0  ;;  %v2018_v47 = vpop.permute.xlu1 %2017  ;;  %2358 = vmatpush2.bf16.msra.mxu1 %v11974_v51  ;;  %v13572_v0 = vld [vmem:[%s19424_s6 + $0x18] ss:$12 sps:$4 sm:$0xff]  }
 0x3e4   :  { %v11972_v5 = vcombine.low %v1762_v10, %v1764_v31  ;;  %v11973_v8 = vcombine.high %v1762_v10, %v1764_v31  ;;  %v2029_v32 = vrot.slane %v2018_v47, 4  ;;  %v19515_v10 = vmov 0   ;;  %v14906_v31 = vld [vmem:[#allocation2 + $0x18] sm:$0xff] }
 0x3e5   :  { %v2012_v36 = vpop.permute.xlu0 %2011 }
 0x3e6   :  { %2359 = vmatprep.subr.bf16.mxu1 %v11973_v8  ;;  %v2037_v23 = vsel %vm586_vm8, %v2029_v32, %v2030_v29  ;;  %v2026_v46 = vrot.slane %v2012_v36, 4 }
 0x3e7   :  { %v2010_v17 = vpop.permute.xlu1 %2009  ;;  %2360 = vmatpush2.bf16.msra.mxu1 %v11972_v5  ;;  %v2038_v19 = vsel %vm547_vm5, %v2018_v47, %v2037_v23  ;;  %v14910_v47 = vpack.c.bf16 %v14906_v31, %v14906_v31 }
 0x3e8   :  { %2361 = vmatprep.subr.bf16.mxu1 %v11971_v18  ;;  %v2025_v4 = vrot.slane %v2010_v17, 4 }
 0x3e9   :  { %v2016_v45 = vpop.permute.xlu0 %2015  ;;  %3152 = vrot.lane.b32.xlu0 %v14910_v47, %s13870_s7 }
 0x3ea   :  { %v2033_v38 = vsel %vm586_vm8, %v2025_v4, %v2026_v46  ;;  %v2028_v20 = vrot.slane %v2016_v45, 4 }
 0x3eb   :  { %v2022_v57 = vpop.permute.xlu1 %2021  ;;  %2362 = vmatpush2.bf16.msra.mxu1 %v11970_v30  ;;  %v2034_v55 = vsel %vm547_vm5, %v2010_v17, %v2033_v38 }
 0x3ec   :  { %v2031_v24 = vrot.slane %v2022_v57, 4  ;;  %2363 = vmatprep.subr.bf16.mxu1 %v13501_v42 }
 0x3ed   :  { %3156 = vrot.lane.b32.xlu0 %v14910_v47, %s13870_s7 }
 0x3ee   :  { %v2039_v2 = vsel %vm586_vm8, %v2031_v24, %v2032_v60 }
 0x3ef   :  { %v2040_v35 = vsel %vm547_vm5, %v2022_v57, %v2039_v2  ;;  %v2014_v44 = vpop.permute.xlu1 %2013  ;;  %2364 = vmatpush2.bf16.msra.mxu1 %v13500_v11 }
 0x3f0   :  { %v11984_v7 = vcombine.low %v2038_v19, %v2040_v35  ;;  %v2027_v1 = vrot.slane %v2014_v44, 4  ;;  %2365 = vmatprep.subr.bf16.mxu1 %v13499_v49  ;;  %v11985_v6 = vcombine.high %v2038_v19, %v2040_v35 }
 0x3f2   :  { %v2035_v63 = vsel %vm586_vm8, %v2027_v1, %v2028_v20  ;;  %2400 = vmatprep.subr.bf16.mxu0 %v11985_v6 }
 0x3f3   :  { %v2036_v62 = vsel %vm547_vm5, %v2014_v44, %v2035_v63  ;;  %2366 = vmatpush2.bf16.msra.mxu1 %v13498_v39  ;;  %2401 = vmatpush1.bf16.msra.mxu0 %v11984_v7  ;;  %v14937_v63 = vmul.f32 %v14906_v31, %v14107_v41 }
 0x3f4   :  { %v11982_v51 = vcombine.low %v2034_v55, %v2036_v62  ;;  %v11983_v54 = vcombine.high %v2034_v55, %v2036_v62 }
 0x3f6   :  { %2368 = vmatmul.mubr.bf16.vlgmr.msra.gmra.mxu1 %v13566_v56  ;;  %2402 = vmatprep.subr.bf16.mxu0 %v11983_v54  ;;  %v14916_v8 = vpop.permute.xlu0 %2115 }
 0x3f7   :  { %2403 = vmatpush1.bf16.msra.mxu0 %v11982_v51  ;;  %2377 = vmatprep.mubr.bf16.mxu1 %v13570_v58 }
 0x3fa   :  { %11986 = vmatmul.mubr.msk.bf16.vlgmr.msra.gmra.mxu0 %vm2328_vm12, %v13569_v53  ;;  %v2106_v18 = vpop.permute.xlu0 %2105 }
 0x3fb   :  { %2430 = vmatprep.mubr.bf16.mxu0 %v19515_v10 }
 0x3fc   :  { %v2111_v5 = vpop.permute.xlu1 %2110 }
 0x3fe   :  { %2378 = vmatmul.mubr.bf16.gmra.mxu1 %v13572_v0  ;;  %v14920_v29 = vpop.permute.xlu0 %2471 }
 0x3ff   :  { %3649 = vmatprep.mubr.bf16.mxu1 %v19515_v10 }
 0x400   :  { %v2101_v21 = vpop.permute.xlu1 %2100 }
 0x402   :  { %11987 = vmatmul.mubr.msk.bf16.gmra.mxu0 %vm2328_vm12, %v13573_v22  ;;  %v2462_v35 = vpop.permute.xlu0 %2461 }
 0x404   :  { %v14918_v36 = vpop.permute.xlu1 %2466 }
 0x408   :  { %v2457_v42 = vpop.permute.xlu1 %2456 }
 0x4b6   :  { %v2369_v17 = vpop.f32.mrf.mxu1 }
 0x4b7   :  { %v2370_v32 = vadd.f32 %v2369_v17, %v2101_v21 }
 0x4b8   :  { %v2371_v25 = vpop.f32.mrf.mxu1 }
 0x4b9   :  { %v2372_v16 = vadd.f32 %v2371_v25, %v2101_v21 }
 0x4ba   :  { %v2373_v30 = vpop.f32.mrf.mxu1  ;;  %v2422_v59 = vpop.f32.mrf.mxu0 }
 0x4bb   :  { %v2423_v4 = vadd.f32 %v2422_v59, %v2370_v32  ;;  %v2374_v24 = vadd.f32 %v2373_v30, %v2106_v18  ;;  %v14956_v30 = vmul.f32 %v14906_v31, %v14123_v50 }
 0x4bc   :  { %v2375_v57 = vpop.f32.mrf.mxu1  ;;  %v2424_v13 = vpop.f32.mrf.mxu0 }
 0x4bd   :  { %vm2441_vm13 = vcmp.ge.f32.partialorder %v2423_v4, 0.0  ;;  %v2474_v60 = vmul.f32 %v2457_v42, %v2423_v4  ;;  %v2425_v23 = vadd.f32 %v2424_v13, %v2372_v16  ;;  %v2376_v11 = vadd.f32 %v2375_v57, %v2106_v18 }
 0x4be   :  { %v2379_v3 = vpop.f32.mrf.mxu1  ;;  %v2426_v46 = vpop.f32.mrf.mxu0 }
 0x4bf   :  { %v14922_v45 = vsel %vm2441_vm13, %v2423_v4, %v2474_v60  ;;  %vm2442_vm14 = vcmp.ge.f32.partialorder %v2425_v23, 0.0  ;;  %v2475_v12 = vmul.f32 %v2457_v42, %v2425_v23  ;;  %v2427_v2 = vadd.f32 %v2426_v46, %v2374_v24 }
 0x4c0   :  { %2490 = vst [vmem:[#allocation2 + $0x8] sm:$0xff] %v14922_v45  ;;  %v2381_v49 = vpop.f32.mrf.mxu1  ;;  %v2428_v15 = vpop.f32.mrf.mxu0  ;;  %v12994_v19 = vpack.c.bf16 %v14922_v45, %v14906_v31  ;;  %v2787_v38 = vmul.f32 %v14922_v45, %v14114_v43  ;;  %v2380_v20 = vadd.f32 %v2379_v3, %v2111_v5  ;;  %v2691_v62 = vmul.f32 %v14922_v45, %v14129_v52 }
 0x4c1   :  { %v14929_v44 = vsel %vm2442_vm14, %v2425_v23, %v2475_v12  ;;  %v2429_v7 = vadd.f32 %v2428_v15, %v2376_v11  ;;  %vm2443_vm15 = vcmp.ge.f32.partialorder %v2427_v2, 0.0  ;;  %v2476_v1 = vmul.f32 %v2462_v35, %v2427_v2 }
 0x4c2   :  { %2491 = vst [vmem:[#allocation2 + $0x10] sm:$0xff] %v14929_v44  ;;  %v2383_v6 = vpop.f32.mrf.mxu1  ;;  %v2432_v9 = vpop.f32.mrf.mxu0  ;;  %2638 = vrot.lane.b32.xlu1 %v12994_v19, %s13854_s24  ;;  %v12995_v39 = vpack.c.bf16 %v14929_v44, %v14929_v44  ;;  %v2382_v51 = vadd.f32 %v2381_v49, %v2111_v5  ;;  %v13010_v0 = vpack.c.bf16 %v2787_v38, %v14937_v63 }
 0x4c3   :  { %vm2444_vm10 = vcmp.ge.f32.partialorder %v2429_v7, 0.0  ;;  %v2477_v56 = vmul.f32 %v2462_v35, %v2429_v7  ;;  %v2433_v55 = vadd.f32 %v2432_v9, %v2380_v20  ;;  %v14941_v58 = vsel %vm2443_vm15, %v2427_v2, %v2476_v1 }
 0x4c4   :  { %v2385_v54 = vpop.f32.mrf.mxu1  ;;  %v2434_v53 = vpop.f32.mrf.mxu0  ;;  %2640 = vrot.lane.b32.xlu0 %v12995_v39, %s13854_s24  ;;  %v2788_v22 = vmul.f32 %v14929_v44, %v14105_v40  ;;  %2492 = vst [vmem:[#allocation2 + $0x28] sm:$0xff] %v14941_v58  ;;  %v2384_v18 = vadd.f32 %v2383_v6, %v14916_v8  ;;  %v2692_v59 = vmul.f32 %v14929_v44, %v14121_v48 }
 0x4c5   :  { %v14948_v21 = vsel %vm2444_vm10, %v2429_v7, %v2477_v56  ;;  %vm2445_vm11 = vcmp.ge.f32.partialorder %v2433_v55, 0.0  ;;  %v2478_v17 = vmul.f32 %v14918_v36, %v2433_v55  ;;  %v2435_v5 = vadd.f32 %v2434_v53, %v2382_v51 }
 0x4c6   :  { %2493 = vst [vmem:[#allocation2 + $0x30] sm:$0xff] %v14948_v21  ;;  %v2436_v25 = vpop.f32.mrf.mxu0  ;;  %2830 = vrot.lane.b32.xlu1 %v13010_v0, %s13864_s25  ;;  %v13011_v32 = vpack.c.bf16 %v2788_v22, %v2788_v22  ;;  %v2386_v16 = vadd.f32 %v2385_v54, %v14916_v8  ;;  %v13002_v60 = vpack.c.bf16 %v2691_v62, %v14956_v30 }
 0x4c7   :  { %v14960_v42 = vsel %vm2445_vm11, %v2433_v55, %v2478_v17  ;;  %v2437_v4 = vadd.f32 %v2436_v25, %v2384_v18  ;;  %vm2446_vm13 = vcmp.ge.f32.partialorder %v2435_v5, 0.0  ;;  %v2479_v57 = vmul.f32 %v14918_v36, %v2435_v5 }
 0x4c8   :  { %2494 = vst [vmem:[#allocation2 + $0x48] sm:$0xff] %v14960_v42  ;;  %v2438_v13 = vpop.f32.mrf.mxu0  ;;  %2832 = vrot.lane.b32.xlu0 %v13011_v32, %s13864_s25  ;;  %v2511_v23 = vmul.f32 %v14922_v45, %v14189_v37  ;;  %v13003_v8 = vpack.c.bf16 %v2692_v59, %v2692_v59  ;;  %v14975_v36 = vmul.f32 %v14906_v31, %v14178_v26 }
 0x4c9   :  { %vm2447_vm14 = vcmp.ge.f32.partialorder %v2437_v4, 0.0  ;;  %v2480_v24 = vmul.f32 %v14920_v29, %v2437_v4  ;;  %v2439_v3 = vadd.f32 %v2438_v13, %v2386_v16  ;;  %v14970_v46 = vsel %vm2446_vm13, %v2435_v5, %v2479_v57 }
 0x4ca   :  { %2734 = vrot.lane.b32.xlu1 %v13002_v60, %s13863_s23  ;;  %v2512_v11 = vmul.f32 %v14929_v44, %v14153_v14  ;;  %2495 = vst [vmem:[#allocation2 + $0x50] sm:$0xff] %v14970_v46  ;;  %v12986_v49 = vpack.c.bf16 %v2511_v23, %v14975_v36  ;;  %v13038_v38 = vpack.c.bf16 %v14929_v44, %v14922_v45 }
 0x4cb   :  { %v14980_v12 = vsel %vm2447_vm14, %v2437_v4, %v2480_v24  ;;  %vm2448_vm15 = vcmp.ge.f32.partialorder %v2439_v3, 0.0  ;;  %v2481_v2 = vmul.f32 %v14920_v29, %v2439_v3  ;;  %v2791_v29 = vmul.f32 %v14948_v21, %v14105_v40 }
 0x4cc   :  { %2496 = vst [vmem:[#allocation2 + $0x68] sm:$0xff] %v14980_v12  ;;  %2736 = vrot.lane.b32.xlu0 %v13003_v8, %s13863_s23  ;;  %v12987_v19 = vpack.c.bf16 %v2512_v11, %v2512_v11  ;;  %v2790_v35 = vmul.f32 %v14941_v58, %v14114_v43  ;;  %v2695_v20 = vmul.f32 %v14948_v21, %v14121_v48 }
 0x4cd   :  { %v14986_v15 = vsel %vm2448_vm15, %v2439_v3, %v2481_v2  ;;  %v2694_v7 = vmul.f32 %v14941_v58, %v14129_v52  ;;  %v12997_v1 = vpack.c.bf16 %v14948_v21, %v14948_v21  ;;  %v12996_v6 = vpack.c.bf16 %v14941_v58, %v14906_v31 }
 0x4ce   :  { %2497 = vst [vmem:[#allocation2 + $0x70] sm:$0xff] %v14986_v15  ;;  %2554 = vrot.lane.b32.xlu1 %v12986_v49, %s13868_s27  ;;  %v13013_v9 = vpack.c.bf16 %v2791_v29, %v2791_v29  ;;  %v13040_v39 = vpack.c.bf16 %v14948_v21, %v14941_v58  ;;  %v13012_v56 = vpack.c.bf16 %v2790_v35, %v14937_v63 }
 0x4cf   :  { %v13005_v55 = vpack.c.bf16 %v2695_v20, %v2695_v20  ;;  %v13004_v62 = vpack.c.bf16 %v2694_v7, %v14956_v30  ;;  %v2515_v51 = vmul.f32 %v14948_v21, %v14153_v14  ;;  %v15016_v54 = vmul.f32 %v14960_v42, %v14082_v27 }
 0x4d0   :  { %2556 = vrot.lane.b32.xlu0 %v12987_v19, %s13868_s27  ;;  %v15020_v53 = vmul.f32 %v14970_v46, %v14095_v33  ;;  %v15024_v0 = vmul.f32 %v14922_v45, %v14082_v27  ;;  %v15028_v22 = vmul.f32 %v14929_v44, %v14095_v33  ;;  %v15032_v18 = vmul.f32 %v14941_v58, %v14082_v27 }
 0x4d1   :  { %v15036_v17 = vmul.f32 %v14948_v21, %v14095_v33  ;;  %v15040_v5 = vmul.f32 %v14960_v42, %v14084_v28  ;;  %v15044_v25 = vmul.f32 %v14970_v46, %v14100_v34  ;;  %v15053_v16 = vmul.f32 %v14922_v45, %v14084_v28 }
 0x4d2   :  { %3142 = vrot.lane.b32.xlu1 %v13038_v38, %s13870_s7  ;;  %v13034_v32 = vpack.c.bf16 %v15020_v53, %v15016_v54  ;;  %v13030_v59 = vpack.c.bf16 %v15028_v22, %v15024_v0  ;;  %v15057_v4 = vmul.f32 %v14929_v44, %v14100_v34  ;;  %v15065_v60 = vmul.f32 %v14980_v12, %v14082_v27  ;;  %v19516_v38 = vld [vmem:[#allocation36_spill] sm:$0xff]  ;;  %v19522_v54 = vld [vmem:[#allocation34_spill] sm:$0xff] }
 0x4d3   :  { %v13032_v57 = vpack.c.bf16 %v15036_v17, %v15032_v18  ;;  %v15069_v23 = vmul.f32 %v14986_v15, %v14095_v33  ;;  %v15076_v3 = vmul.f32 %v14941_v58, %v14084_v28  ;;  %v15080_v8 = vmul.f32 %v14948_v21, %v14100_v34  ;;  %v15253_v18 = vpop.permute.xlu0 %3152 }
 0x4d4   :  { %2644 = vrot.lane.b32.xlu0 %v12997_v1, %s13854_s24  ;;  %v15084_v11 = vmul.f32 %v14980_v12, %v14084_v28  ;;  %v15090_v49 = vmul.f32 %v14986_v15, %v14100_v34  ;;  %v15094_v19 = vmul.f32 %v14960_v42, %v14207_v61  ;;  %v15098_v29 = vmul.f32 %v14970_v46, %v19516_v38 }
 0x4d5   :  { %v2514_v35 = vmul.f32 %v14941_v58, %v14189_v37  ;;  %v15107_v7 = vmul.f32 %v14922_v45, %v14207_v61  ;;  %v15111_v1 = vmul.f32 %v14929_v44, %v19516_v38  ;;  %v12989_v45 = vpack.c.bf16 %v2515_v51, %v2515_v51 }
 0x4d6   :  { %2642 = vrot.lane.b32.xlu1 %v12996_v6, %s13854_s24  ;;  %v15130_v6 = vmul.f32 %v14941_v58, %v14207_v61  ;;  %v12999_v51 = vpack.c.bf16 %v14970_v46, %v14970_v46  ;;  %v2794_v44 = vmul.f32 %v14970_v46, %v14105_v40  ;;  %v12998_v20 = vpack.c.bf16 %v14960_v42, %v14906_v31 }
 0x4d7   :  { %v12988_v2 = vpack.c.bf16 %v2514_v35, %v14975_v36  ;;  %v2697_v24 = vmul.f32 %v14960_v42, %v14129_v52  ;;  %v2518_v13 = vmul.f32 %v14970_v46, %v14153_v14  ;;  %v3202_v53 = vmul.f32 %v14906_v31, %v19522_v54 }
 0x4d8   :  { %2836 = vrot.lane.b32.xlu0 %v13013_v9, %s13864_s25  ;;  %v15134_v9 = vmul.f32 %v14948_v21, %v19516_v38  ;;  %v13015_v35 = vpack.c.bf16 %v2794_v44, %v2794_v44  ;;  %v2517_v44 = vmul.f32 %v14960_v42, %v14189_v37  ;;  %v19519_v21 = vpack.c.bf16 %v15044_v25, %v15040_v5 }
 0x4d9   :  { %v19523_v0 = vpack.c.bf16 %v15080_v8, %v15076_v3  ;;  %v13051_v22 = vpack.c.bf16 %v3202_v53, %v3202_v53  ;;  %v19524_v17 = vpack.c.bf16 %v15090_v49, %v15084_v11  ;;  %v19525_v5 = vpack.c.bf16 %v15098_v29, %v15094_v19  ;;  %v12069_v8 = vld [vmem:[%s19426_s8 + $0x48] sm:$0xff]  ;;  %v12070_v19 = vld [vmem:[%s19426_s8 + $0x50] sm:$0xff] }
 0x4da   :  { %2834 = vrot.lane.b32.xlu1 %v13012_v56, %s13864_s25  ;;  %v15119_v56 = vmul.f32 %v14980_v12, %v14207_v61  ;;  %v19528_v11 = vpack.c.bf16 %v15134_v9, %v15130_v6  ;;  %v12068_v6 = vld [vmem:[%s19426_s8 + $0x40] sm:$0xff] }
 0x4dc   :  { %2740 = vrot.lane.b32.xlu0 %v13005_v55, %s13863_s23  ;;  %v15123_v55 = vmul.f32 %v14986_v15, %v19516_v38 }
 0x4de   :  { %2738 = vrot.lane.b32.xlu1 %v13004_v62, %s13863_s23 }
 0x4e0   :  { %2560 = vrot.lane.b32.xlu0 %v12989_v45, %s13868_s27  ;;  %v2793_v45 = vmul.f32 %v14960_v42, %v14114_v43 }
 0x4e2   :  { %2558 = vrot.lane.b32.xlu1 %v12988_v2, %s13868_s27  ;;  %v2698_v2 = vmul.f32 %v14970_v46, %v14121_v48  ;;  %v13014_v62 = vpack.c.bf16 %v2793_v45, %v14937_v63  ;;  %v12990_v45 = vpack.c.bf16 %v2517_v44, %v14975_v36  ;;  %v2701_v44 = vmul.f32 %v14986_v15, %v14121_v48 }
 0x4e4   :  { %2648 = vrot.lane.b32.xlu0 %v12999_v51, %s13854_s24  ;;  %v13007_v51 = vpack.c.bf16 %v2698_v2, %v2698_v2  ;;  %v2797_v2 = vmul.f32 %v14986_v15, %v14105_v40 }
 0x4e6   :  { %2646 = vrot.lane.b32.xlu1 %v12998_v20, %s13854_s24  ;;  %v13006_v20 = vpack.c.bf16 %v2697_v24, %v14956_v30  ;;  %v13042_v24 = vpack.c.bf16 %v14970_v46, %v14960_v42  ;;  %v2700_v46 = vmul.f32 %v14980_v12, %v14129_v52 }
 0x4e8   :  { %2840 = vrot.lane.b32.xlu0 %v13015_v35, %s13864_s25  ;;  %v12991_v35 = vpack.c.bf16 %v2518_v13, %v2518_v13  ;;  %v13017_v13 = vpack.c.bf16 %v2797_v2, %v2797_v2  ;;  %v19517_v2 = vld [vmem:[#allocation31_spill] sm:$0xff] }
 0x4ea   :  { %2838 = vrot.lane.b32.xlu1 %v13014_v62, %s13864_s25  ;;  %v13001_v62 = vpack.c.bf16 %v14986_v15, %v14986_v15 }
 0x4ec   :  { %2744 = vrot.lane.b32.xlu0 %v13007_v51, %s13863_s23  ;;  %v13000_v51 = vpack.c.bf16 %v14980_v12, %v14906_v31 }
 0x4ee   :  { %2742 = vrot.lane.b32.xlu1 %v13006_v20, %s13863_s23  ;;  %v2796_v20 = vmul.f32 %v14980_v12, %v14114_v43 }
 0x4f0   :  { %2564 = vrot.lane.b32.xlu0 %v12991_v35, %s13868_s27  ;;  %v13016_v42 = vpack.c.bf16 %v2796_v20, %v14937_v63  ;;  %v13009_v35 = vpack.c.bf16 %v2701_v44, %v2701_v44  ;;  %v12118_v20 = vld [vmem:[%s19427_s9 + $0x50] sm:$0xff] }
 0x4f2   :  { %2562 = vrot.lane.b32.xlu1 %v12990_v45, %s13868_s27  ;;  %v13008_v45 = vpack.c.bf16 %v2700_v46, %v14956_v30  ;;  %v13044_v30 = vpack.c.bf16 %v14986_v15, %v14980_v12  ;;  %v12116_v46 = vld [vmem:[%s19427_s9 + $0x40] sm:$0xff] }
 0x4f4   :  { %2652 = vrot.lane.b32.xlu0 %v13001_v62, %s13854_s24  ;;  %v2520_v62 = vmul.f32 %v14980_v12, %v14189_v37 }
 0x4f6   :  { %3150 = vrot.lane.b32.xlu1 %v13042_v24, %s13870_s7  ;;  %v3022_v24 = vmul.f32 %v14906_v31, %v19517_v2  ;;  %v12992_v63 = vpack.c.bf16 %v2520_v62, %v14975_v36  ;;  %v19518_v36 = vld [vmem:[#allocation32_spill] sm:$0xff] }
 0x4f7   :  { %v2926_v12 = vmul.f32 %v14906_v31, %v19518_v36  ;;  %v15261_v31 = vpop.permute.xlu0 %3156 }
 0x4f8   :  { %2844 = vrot.lane.b32.xlu0 %v13017_v13, %s13864_s25  ;;  %v13035_v13 = vpack.c.bf16 %v3022_v24, %v3022_v24 }
 0x4f9   :  { %v13027_v58 = vpack.c.bf16 %v2926_v12, %v2926_v12 }
 0x4fa   :  { %2650 = vrot.lane.b32.xlu1 %v13000_v51, %s13854_s24  ;;  %v2521_v51 = vmul.f32 %v14986_v15, %v14153_v14  ;;  %v19520_v15 = vpack.c.bf16 %v15057_v4, %v15053_v16 }
 0x4fc   :  { %3144 = vrot.lane.b32.xlu0 %v14910_v47, %s13870_s7 }
 0x4fe   :  { %2842 = vrot.lane.b32.xlu1 %v13016_v42, %s13864_s25 }
 0x500   :  { %2748 = vrot.lane.b32.xlu0 %v13009_v35, %s13863_s23 }
 0x502   :  { %2746 = vrot.lane.b32.xlu1 %v13008_v45, %s13863_s23 }
 0x504   :  { %3148 = vrot.lane.b32.xlu0 %v14910_v47, %s13870_s7  ;;  %v12993_v47 = vpack.c.bf16 %v2521_v51, %v2521_v51 }
 0x506   :  { %2566 = vrot.lane.b32.xlu1 %v12992_v63, %s13868_s27 }
 0x508   :  { %3068 = vrot.lane.b32.xlu0 %v13035_v13, %s13866_s26 }
 0x50a   :  { %3154 = vrot.lane.b32.xlu1 %v13044_v30, %s13870_s7 }
 0x50c   :  { %3072 = vrot.lane.b32.xlu0 %v13035_v13, %s13866_s26 }
 0x50e   :  { %3146 = vrot.lane.b32.xlu1 %v13040_v39, %s13870_s7  ;;  %v19521_v39 = vpack.c.bf16 %v15069_v23, %v15065_v60  ;;  %v19527_v60 = vpack.c.bf16 %v15123_v55, %v15119_v56  ;;  %v12117_v56 = vld [vmem:[%s19427_s9 + $0x48] sm:$0xff] }
 0x510   :  { %2568 = vrot.lane.b32.xlu0 %v12993_v47, %s13868_s27 }
 0x512   :  { %3066 = vrot.lane.b32.xlu1 %v13034_v32, %s13866_s26  ;;  %v13576_v32 = vld [vmem:[%s19424_s6 + $0x34] ss:$12 sps:$4 sm:$0xff]  }
 0x513   :  { %3596 = vmatprep.mubr.bf16.mxu0 %v13576_v32 }
 0x514   :  { %3060 = vrot.lane.b32.xlu0 %v13035_v13, %s13866_s26 }
 0x516   :  { %3058 = vrot.lane.b32.xlu1 %v13030_v59, %s13866_s26  ;;  %v19526_v59 = vpack.c.bf16 %v15111_v1, %v15107_v7  ;;  %v12119_v7 = vld [vmem:[%s19427_s9 + $0x58] sm:$0xff] }
 0x518   :  { %3064 = vrot.lane.b32.xlu0 %v13035_v13, %s13866_s26 }
 0x51a   :  { %3062 = vrot.lane.b32.xlu1 %v13032_v57, %s13866_s26  ;;  %v12071_v57 = vld [vmem:[%s19426_s8 + $0x58] sm:$0xff] }
 0x51c   :  { %2972 = vrot.lane.b32.xlu0 %v13027_v58, %s13865_s3 }
 0x51e   :  { %2970 = vrot.lane.b32.xlu1 %v19519_v21, %s13865_s3 }
 0x520   :  { %2976 = vrot.lane.b32.xlu0 %v13027_v58, %s13865_s3 }
 0x522   :  { %2962 = vrot.lane.b32.xlu1 %v19520_v15, %s13865_s3 }
 0x524   :  { %2964 = vrot.lane.b32.xlu0 %v13027_v58, %s13865_s3 }
 0x526   :  { %3070 = vrot.lane.b32.xlu1 %v19521_v39, %s13866_s26 }
 0x528   :  { %2968 = vrot.lane.b32.xlu0 %v13027_v58, %s13865_s3 }
 0x52a   :  { %2966 = vrot.lane.b32.xlu1 %v19523_v0, %s13865_s3 }
 0x52c   :  { %3248 = vrot.lane.b32.xlu0 %v13051_v22, %s13867_s10 }
 0x52e   :  { %2974 = vrot.lane.b32.xlu1 %v19524_v17, %s13865_s3 }
 0x530   :  { %3252 = vrot.lane.b32.xlu0 %v13051_v22, %s13867_s10 }
 0x532   :  { %3246 = vrot.lane.b32.xlu1 %v19525_v5, %s13867_s10 }
 0x534   :  { %v15267_v25 = vpop.permute.xlu1 %2638  ;;  %3240 = vrot.lane.b32.xlu0 %v13051_v22, %s13867_s10 }
 0x536   :  { %3238 = vrot.lane.b32.xlu1 %v19526_v59, %s13867_s10  ;;  %v15277_v16 = vpop.permute.xlu0 %2640 }
 0x538   :  { %v15279_v4 = vpop.permute.xlu1 %2830  ;;  %3244 = vrot.lane.b32.xlu0 %v13051_v22, %s13867_s10 }
 0x53a   :  { %3250 = vrot.lane.b32.xlu1 %v19527_v60, %s13867_s10  ;;  %v2833_v23 = vpop.permute.xlu0 %2832 }
 0x53c   :  { %v15289_v3 = vpop.permute.xlu1 %2734  ;;  %3345 = vperm.xlu0 %13558, %v12071_v57   ;;  %v2847_v57 = vrot.slane %v2833_v23, 4 }
 0x53e   :  { %3242 = vrot.lane.b32.xlu1 %v19528_v11, %s13867_s10  ;;  %v15298_v49 = vpop.permute.xlu0 %2736 }
 0x53f   :  { %v2751_v61 = vrot.slane %v15298_v49, 4 }
 0x540   :  { %v15303_v29 = vpop.permute.xlu1 %2554  ;;  %3335 = vperm.xlu0 %13558, %v12069_v8  }
 0x542   :  { %3340 = vperm.xlu1 %13559, %v12070_v19   ;;  %v15308_v1 = vpop.permute.xlu0 %2556  ;;  %v2846_v19 = vrot.slane %v15279_v4, 4 }
 0x544   :  { %v15313_v9 = vpop.permute.xlu1 %3142  ;;  %3700 = vperm.xlu0 %13558, %v12119_v7  }
 0x546   :  { %3330 = vperm.xlu1 %13559, %v12068_v6   ;;  %v15318_v55 = vpop.permute.xlu0 %2644 }
 0x548   :  { %3690 = vperm.xlu0 %13558, %v12117_v56   ;;  %v15323_v44 = vpop.permute.xlu1 %2642 }
 0x54a   :  { %3695 = vperm.xlu1 %13559, %v12118_v20   ;;  %v2837_v42 = vpop.permute.xlu0 %2836 }
 0x54b   :  { %v2849_v32 = vrot.slane %v2837_v42, 4 }
 0x54c   :  { %v2835_v35 = vpop.permute.xlu1 %2834 }
 0x54d   :  { %v2848_v22 = vrot.slane %v2835_v35, 4 }
 0x54e   :  { %3685 = vperm.xlu1 %13559, %v12116_v46   ;;  %v2741_v45 = vpop.permute.xlu0 %2740  ;;  %v2854_v46 = vsel %vm586_vm8, %v2846_v19, %v2847_v57 }
 0x54f   :  { %v2856_v8 = vsel %vm586_vm8, %v2848_v22, %v2849_v32 }
 0x550   :  { %v15328_v62 = vpop.permute.xlu1 %2738  ;;  %v2857_v54 = vsel %vm756_vm2, %v2835_v35, %v2856_v8  ;;  %v2855_v35 = vsel %vm756_vm2, %v15279_v4, %v2854_v46  ;;  %v2753_v8 = vrot.slane %v2741_v45, 4 }
 0x551   :  { %v2752_v23 = vrot.slane %v15328_v62, 4  ;;  %v12090_v4 = vcombine.low %v2855_v35, %v2857_v54 }
 0x552   :  { %v15330_v24 = vpop.permute.xlu0 %2560 }
 0x553   :  { %v2760_v49 = vsel %vm586_vm8, %v2752_v23, %v2753_v8  ;;  %v2656_v23 = vrot.slane %v15323_v44, 4 }
 0x554   :  { %v15332_v63 = vpop.permute.xlu1 %2558 }
 0x556   :  { %v15334_v13 = vpop.permute.xlu0 %2648 }
 0x558   :  { %v15336_v30 = vpop.permute.xlu1 %2646 }
 0x559   :  { %v2658_v46 = vrot.slane %v15336_v30, 4 }
 0x55a   :  { %v2841_v51 = vpop.permute.xlu0 %2840 }
 0x55b   :  { %v2851_v60 = vrot.slane %v2841_v51, 4 }
 0x55c   :  { %v2839_v47 = vpop.permute.xlu1 %2838 }
 0x55d   :  { %v2850_v5 = vrot.slane %v2839_v47, 4 }
 0x55e   :  { %v2745_v12 = vpop.permute.xlu0 %2744 }
 0x55f   :  { %v2858_v7 = vsel %vm586_vm8, %v2850_v5, %v2851_v60  ;;  %v2755_v22 = vrot.slane %v2745_v12, 4  ;;  %v12091_v12 = vcombine.high %v2855_v35, %v2857_v54  ;;  %v2659_v54 = vrot.slane %v15334_v13, 4 }
 0x560   :  { %v2743_v58 = vpop.permute.xlu1 %2742  ;;  %v2859_v51 = vsel %vm756_vm2, %v2839_v47, %v2858_v7 }
 0x561   :  { %v2754_v36 = vrot.slane %v2743_v58, 4 }
 0x562   :  { %v15338_v21 = vpop.permute.xlu0 %2564 }
 0x563   :  { %v2762_v19 = vsel %vm586_vm8, %v2754_v36, %v2755_v22  ;;  %v2655_v22 = vrot.slane %v15277_v16, 4 }
 0x564   :  { %v15340_v15 = vpop.permute.xlu1 %2562  ;;  %v2763_v45 = vsel %vm698_vm1, %v2743_v58, %v2762_v19 }
 0x566   :  { %v2653_v39 = vpop.permute.xlu0 %2652 }
 0x568   :  { %v15342_v53 = vpop.permute.xlu1 %3150 }
 0x56a   :  { %v2845_v0 = vpop.permute.xlu0 %2844 }
 0x56b   :  { %v2853_v6 = vrot.slane %v2845_v0, 4 }
 0x56c   :  { %v15344_v17 = vpop.permute.xlu1 %2650 }
 0x56e   :  { %v15346_v59 = vpop.permute.xlu0 %3144 }
 0x570   :  { %v2843_v11 = vpop.permute.xlu1 %2842 }
 0x571   :  { %v2852_v56 = vrot.slane %v2843_v11, 4 }
 0x572   :  { %v2749_v20 = vpop.permute.xlu0 %2748 }
 0x573   :  { %v2860_v42 = vsel %vm586_vm8, %v2852_v56, %v2853_v6  ;;  %v2757_v5 = vrot.slane %v2749_v20, 4  ;;  %v2750_v6 = vrot.slane %v15289_v3, 4  ;;  %v2660_v56 = vrot.slane %v15344_v17, 4 }
 0x574   :  { %v2861_v32 = vsel %vm756_vm2, %v2843_v11, %v2860_v42  ;;  %v2747_v2 = vpop.permute.xlu1 %2746  ;;  %v2661_v42 = vrot.slane %v2653_v39, 4 }
 0x575   :  { %v12092_v38 = vcombine.low %v2859_v51, %v2861_v32  ;;  %v2756_v0 = vrot.slane %v2747_v2, 4  ;;  %v12093_v60 = vcombine.high %v2859_v51, %v2861_v32  ;;  %v2758_v36 = vsel %vm586_vm8, %v2750_v6, %v2751_v61 }
 0x576   :  { %v15360_v57 = vpop.permute.xlu0 %3148  ;;  %v2668_v58 = vsel %vm586_vm8, %v2660_v56, %v2661_v42  ;;  %v2759_v61 = vsel %vm698_vm1, %v15289_v3, %v2758_v36  ;;  %v2572_v56 = vrot.slane %v15332_v63, 4  ;;  %v2571_v42 = vrot.slane %v15308_v1, 4 }
 0x577   :  { %v2764_v47 = vsel %vm586_vm8, %v2756_v0, %v2757_v5  ;;  %3564 = vmatprep.subr.bf16.mxu0 %v12093_v60  ;;  %v2666_v5 = vsel %vm586_vm8, %v2658_v46, %v2659_v54  ;;  %v2654_v60 = vrot.slane %v15267_v25, 4  ;;  %v2669_v13 = vsel %vm631_vm7, %v15344_v17, %v2668_v58 }
 0x578   :  { %v2765_v11 = vsel %vm698_vm1, %v2747_v2, %v2764_v47  ;;  %v2567_v7 = vpop.permute.xlu1 %2566  ;;  %3565 = vmatpush1.bf16.msra.mxu0 %v12092_v38  ;;  %v2761_v38 = vsel %vm698_vm1, %v15328_v62, %v2760_v49  ;;  %v2657_v62 = vrot.slane %v15318_v55, 4  ;;  %v2667_v55 = vsel %vm631_vm7, %v15336_v30, %v2666_v5 }
 0x579   :  { %3566 = vmatprep.subr.bf16.mxu0 %v12091_v12  ;;  %v12089_v2 = vcombine.high %v2763_v45, %v2765_v11  ;;  %v12088_v39 = vcombine.low %v2763_v45, %v2765_v11  ;;  %v12087_v0 = vcombine.high %v2759_v61, %v2761_v38  ;;  %v2662_v3 = vsel %vm586_vm8, %v2654_v60, %v2655_v22 }
 0x57a   :  { %v15369_v20 = vpop.permute.xlu0 %3068  ;;  %v2664_v16 = vsel %vm586_vm8, %v2656_v23, %v2657_v62  ;;  %v12086_v8 = vcombine.low %v2759_v61, %v2761_v38  ;;  %v2574_v47 = vrot.slane %v15340_v15, 4  ;;  %v2576_v12 = vrot.slane %v2567_v7, 4 }
 0x57b   :  { %v12085_v6 = vcombine.high %v2667_v55, %v2669_v13  ;;  %v2665_v17 = vsel %vm631_vm7, %v15323_v44, %v2664_v16  ;;  %v2663_v30 = vsel %vm631_vm7, %v15267_v25, %v2662_v3  ;;  %v12084_v36 = vcombine.low %v2667_v55, %v2669_v13 }
 0x57c   :  { %v15375_v51 = vpop.permute.xlu1 %3154  ;;  %3567 = vmatpush1.bf16.msra.mxu0 %v12090_v4  ;;  %v2575_v4 = vrot.slane %v15338_v21, 4  ;;  %v2573_v44 = vrot.slane %v15330_v24, 4  ;;  %v12083_v38 = vcombine.high %v2663_v30, %v2665_v17  ;;  %v2570_v54 = vrot.slane %v15303_v29, 4 }
 0x57d   :  { %3568 = vmatprep.subr.bf16.mxu0 %v12089_v2  ;;  %v3164_v25 = vrot.slane %v15375_v51, 4  ;;  %v12082_v22 = vcombine.low %v2663_v30, %v2665_v17  ;;  %v3165_v61 = vrot.slane %v15261_v31, 4  ;;  %v3162_v62 = vrot.slane %v15342_v53, 4 }
 0x57e   :  { %v15383_v32 = vpop.permute.xlu0 %3072  ;;  %v2582_v2 = vsel %vm586_vm8, %v2574_v47, %v2575_v4  ;;  %v2580_v58 = vsel %vm586_vm8, %v2572_v56, %v2573_v44  ;;  %v3163_v60 = vrot.slane %v15253_v18, 4  ;;  %v3159_v55 = vrot.slane %v15346_v59, 4 }
 0x57f   :  { %v2583_v1 = vsel %vm588_vm6, %v15340_v15, %v2582_v2  ;;  %v3172_v13 = vsel %vm586_vm8, %v3164_v25, %v3165_v61 }
 0x580   :  { %v15390_v35 = vpop.permute.xlu1 %3146  ;;  %3569 = vmatpush1.bf16.msra.mxu0 %v12088_v39  ;;  %v2578_v39 = vsel %vm586_vm8, %v2570_v54, %v2571_v42  ;;  %v3173_v18 = vsel %vm933_vm9, %v15375_v51, %v3172_v13 }
 0x581   :  { %3570 = vmatprep.subr.bf16.mxu0 %v12087_v0  ;;  %v3160_v16 = vrot.slane %v15390_v35, 4  ;;  %v2579_v31 = vsel %vm588_vm6, %v15303_v29, %v2578_v39 }
 0x582   :  { %v2569_v19 = vpop.permute.xlu0 %2568 }
 0x583   :  { %v2577_v11 = vrot.slane %v2569_v19, 4 }
 0x584   :  { %v15399_v49 = vpop.permute.xlu1 %3066  ;;  %3571 = vmatpush1.bf16.msra.mxu0 %v12086_v8  ;;  %v3170_v8 = vsel %vm586_vm8, %v3162_v62, %v3163_v60 }
 0x585   :  { %v2584_v45 = vsel %vm586_vm8, %v2576_v12, %v2577_v11  ;;  %3572 = vmatprep.subr.bf16.mxu0 %v12085_v6  ;;  %v3158_v12 = vrot.slane %v15313_v9, 4  ;;  %v3171_v6 = vsel %vm933_vm9, %v15342_v53, %v3170_v8  ;;  %v3078_v4 = vrot.slane %v15399_v49, 4 }
 0x586   :  { %v15406_v46 = vpop.permute.xlu0 %3060  ;;  %v2585_v21 = vsel %vm588_vm6, %v2567_v7, %v2584_v45  ;;  %v2581_v7 = vsel %vm588_vm6, %v15332_v63, %v2580_v58  ;;  %v3161_v63 = vrot.slane %v15360_v57, 4  ;;  %v12109_v57 = vcombine.high %v3171_v6, %v3173_v18 }
 0x587   :  { %v12081_v5 = vcombine.high %v2583_v1, %v2585_v21  ;;  %v12080_v15 = vcombine.low %v2583_v1, %v2585_v21  ;;  %v12079_v19 = vcombine.high %v2579_v31, %v2581_v7  ;;  %v12078_v29 = vcombine.low %v2579_v31, %v2581_v7 }
 0x588   :  { %v15411_v23 = vpop.permute.xlu1 %3058  ;;  %3573 = vmatpush1.bf16.msra.mxu0 %v12084_v36  ;;  %v3168_v11 = vsel %vm586_vm8, %v3160_v16, %v3161_v63  ;;  %v3166_v59 = vsel %vm586_vm8, %v3158_v12, %v3159_v55  ;;  %v12108_v30 = vcombine.low %v3171_v6, %v3173_v18  ;;  %v3079_v53 = vrot.slane %v15369_v20, 4 }
 0x589   :  { %3574 = vmatprep.subr.bf16.mxu0 %v12083_v38  ;;  %v3169_v56 = vsel %vm933_vm9, %v15390_v35, %v3168_v11  ;;  %v3167_v36 = vsel %vm933_vm9, %v15313_v9, %v3166_v59  ;;  %v3074_v44 = vrot.slane %v15411_v23, 4  ;;  %v3081_v21 = vrot.slane %v15383_v32, 4 }
 0x58a   :  { %v3065_v24 = vpop.permute.xlu0 %3064  ;;  %v12107_v38 = vcombine.high %v3167_v36, %v3169_v56  ;;  %v3086_v54 = vsel %vm586_vm8, %v3078_v4, %v3079_v53  ;;  %v3075_v58 = vrot.slane %v15406_v46, 4  ;;  %v12106_v9 = vcombine.low %v3167_v36, %v3169_v56  ;;  %v2877_v53 = vld [vmem:[#allocation2 + $0x70] sm:$0xff] }
 0x58b   :  { %v3077_v2 = vrot.slane %v3065_v24, 4  ;;  %v3087_v24 = vsel %vm658_vm4, %v15399_v49, %v3086_v54 }
 0x58c   :  { %v3063_v0 = vpop.permute.xlu1 %3062  ;;  %3575 = vmatpush1.bf16.msra.mxu0 %v12082_v22  ;;  %v3082_v20 = vsel %vm586_vm8, %v3074_v44, %v3075_v58 }
 0x58d   :  { %3576 = vmatprep.subr.bf16.mxu0 %v12081_v5  ;;  %v3076_v45 = vrot.slane %v3063_v0, 4  ;;  %v3083_v13 = vsel %vm658_vm4, %v15411_v23, %v3082_v20 }
 0x58e   :  { %v2973_v3 = vpop.permute.xlu0 %2972 }
 0x58f   :  { %v3084_v25 = vsel %vm586_vm8, %v3076_v45, %v3077_v2  ;;  %v2983_v16 = vrot.slane %v2973_v3, 4 }
 0x590   :  { %v15434_v47 = vpop.permute.xlu1 %2970  ;;  %3577 = vmatpush1.bf16.msra.mxu0 %v12080_v15  ;;  %v3085_v32 = vsel %vm658_vm4, %v3063_v0, %v3084_v25  ;;  %v2873_v25 = vld [vmem:[#allocation2 + $0x30] sm:$0xff] }
 0x591   :  { %3578 = vmatprep.subr.bf16.mxu0 %v12079_v19  ;;  %v2982_v39 = vrot.slane %v15434_v47, 4  ;;  %v12103_v49 = vcombine.high %v3083_v13, %v3085_v32  ;;  %v12102_v11 = vcombine.low %v3083_v13, %v3085_v32  ;;  %v2871_v32 = vld [vmem:[#allocation2 + $0x10] sm:$0xff] }
 0x592   :  { %v2977_v17 = vpop.permute.xlu0 %2976 }
 0x593   :  { %v2990_v0 = vsel %vm586_vm8, %v2982_v39, %v2983_v16  ;;  %v2985_v63 = vrot.slane %v2977_v17, 4 }
 0x594   :  { %v2963_v51 = vpop.permute.xlu1 %2962  ;;  %3579 = vmatpush1.bf16.msra.mxu0 %v12078_v29  ;;  %v2991_v6 = vsel %vm716_vm3, %v15434_v47, %v2990_v0  ;;  %v2875_v47 = vld [vmem:[#allocation2 + $0x50] sm:$0xff] }
 0x595   :  { %3580 = vmatprep.subr.bf16.mxu0 %v12109_v57  ;;  %v2978_v19 = vrot.slane %v2963_v51, 4 }
 0x596   :  { %v2965_v42 = vpop.permute.xlu0 %2964 }
 0x597   :  { %v2979_v15 = vrot.slane %v2965_v42, 4 }
 0x598   :  { %v3071_v35 = vpop.permute.xlu1 %3070  ;;  %3581 = vmatpush2.bf16.msra.mxu0 %v12108_v30 }
 0x599   :  { %v3080_v22 = vrot.slane %v3071_v35, 4  ;;  %3582 = vmatprep.subr.bf16.mxu0 %v12107_v38  ;;  %v2986_v23 = vsel %vm586_vm8, %v2978_v19, %v2979_v15 }
 0x59a   :  { %v2969_v1 = vpop.permute.xlu0 %2968  ;;  %v2987_v45 = vsel %vm716_vm3, %v2963_v51, %v2986_v23  ;;  %v13577_v23 = vld [vmem:[%s19424_s6 + $0x38] ss:$12 sps:$4 sm:$0xff]  }
 0x59b   :  { %v3088_v61 = vsel %vm586_vm8, %v3080_v22, %v3081_v21  ;;  %v2981_v8 = vrot.slane %v2969_v1, 4  ;;  %v13505_v21 = vpack.c.bf16 %v2877_v53, %v2875_v47  ;;  %v2874_v1 = vld [vmem:[#allocation2 + $0x48] sm:$0xff] }
 0x59c   :  { %v3089_v62 = vsel %vm658_vm4, %v3071_v35, %v3088_v61  ;;  %v2967_v46 = vpop.permute.xlu1 %2966  ;;  %3583 = vmatpush2.bf16.msra.mxu0 %v12106_v9  ;;  %v2876_v35 = vld [vmem:[#allocation2 + $0x68] sm:$0xff] }
 0x59d   :  { %v12104_v5 = vcombine.low %v3087_v24, %v3089_v62  ;;  %v2980_v7 = vrot.slane %v2967_v46, 4  ;;  %v12105_v60 = vcombine.high %v3087_v24, %v3089_v62  ;;  %v13504_v24 = vpack.c.bf16 %v2876_v35, %v2874_v1 }
 0x59e   :  { %v3249_v31 = vpop.permute.xlu0 %3248  ;;  %v13503_v62 = vpack.c.bf16 %v2873_v25, %v2871_v32 }
 0x59f   :  { %3584 = vmatprep.subr.bf16.mxu0 %v12105_v60  ;;  %v2988_v18 = vsel %vm586_vm8, %v2980_v7, %v2981_v8  ;;  %v3259_v38 = vrot.slane %v3249_v31, 4 }
 0x5a0   :  { %v2975_v55 = vpop.permute.xlu1 %2974  ;;  %3585 = vmatpush2.bf16.msra.mxu0 %v12104_v5  ;;  %v2989_v59 = vsel %vm716_vm3, %v2967_v46, %v2988_v18  ;;  %v2872_v46 = vld [vmem:[#allocation2 + $0x28] sm:$0xff] }
 0x5a1   :  { %v2984_v12 = vrot.slane %v2975_v55, 4  ;;  %3586 = vmatprep.subr.bf16.mxu0 %v12103_v49  ;;  %v12099_v30 = vcombine.high %v2987_v45, %v2989_v59  ;;  %v12098_v2 = vcombine.low %v2987_v45, %v2989_v59  ;;  %v2870_v49 = vld [vmem:[#allocation2 + $0x8] sm:$0xff]  ;;  %v15497_v59 = vld [vmem:[#allocation2 + $0x18] sm:$0xff] }
 0x5a2   :  { %v3253_v29 = vpop.permute.xlu0 %3252  ;;  %v13502_v0 = vpack.c.bf16 %v2872_v46, %v2870_v49 }
 0x5a3   :  { %v2992_v3 = vsel %vm586_vm8, %v2984_v12, %v2985_v63  ;;  %v3261_v22 = vrot.slane %v3253_v29, 4  ;;  %v13574_v63 = vld [vmem:[%s19424_s6 + $0x30] ss:$12 sps:$4 sm:$0xff]   ;;  %v13578_v12 = vld [vmem:[%s19424_s6 + $0x4c] ss:$12 sps:$4 sm:$0xff]  }
 0x5a4   :  { %v2993_v57 = vsel %vm716_vm3, %v2975_v55, %v2992_v3  ;;  %v3247_v56 = vpop.permute.xlu1 %3246  ;;  %3587 = vmatpush2.bf16.msra.mxu0 %v12102_v11  ;;  %v13580_v3 = vld [vmem:[%s19424_s6 + $0x48] ss:$12 sps:$4 sm:$0xff]  }
 0x5a5   :  { %v12100_v17 = vcombine.low %v2991_v6, %v2993_v57  ;;  %v12101_v4 = vcombine.high %v2991_v6, %v2993_v57  ;;  %v3258_v44 = vrot.slane %v3247_v56, 4  ;;  %v13581_v6 = vld [vmem:[%s19424_s6 + $0x50] ss:$12 sps:$4 sm:$0xff]   ;;  %v15501_v57 = vpack.c.bf16 %v15497_v59, %v15497_v59 }
 0x5a6   :  { %v3241_v36 = vpop.permute.xlu0 %3240 }
 0x5a7   :  { %3588 = vmatprep.subr.bf16.mxu0 %v12101_v4  ;;  %v3266_v51 = vsel %vm586_vm8, %v3258_v44, %v3259_v38  ;;  %v3255_v20 = vrot.slane %v3241_v36, 4  ;;  %4381 = vrot.lane.b32.xlu0 %v15501_v57, %s13870_s7 }
 0x5a8   :  { %v3239_v42 = vpop.permute.xlu1 %3238  ;;  %3589 = vmatpush2.bf16.msra.mxu0 %v12100_v17  ;;  %v3267_v5 = vsel %vm547_vm5, %v3247_v56, %v3266_v51 }
 0x5a9   :  { %3590 = vmatprep.subr.bf16.mxu0 %v12099_v30  ;;  %v3254_v54 = vrot.slane %v3239_v42, 4 }
 0x5aa   :  { %v3245_v61 = vpop.permute.xlu0 %3244 }
 0x5ab   :  { %v3262_v7 = vsel %vm586_vm8, %v3254_v54, %v3255_v20  ;;  %v3257_v16 = vrot.slane %v3245_v61, 4  ;;  %4385 = vrot.lane.b32.xlu0 %v15501_v57, %s13870_s7 }
 0x5ac   :  { %v3251_v58 = vpop.permute.xlu1 %3250  ;;  %3591 = vmatpush2.bf16.msra.mxu0 %v12098_v2  ;;  %v3263_v19 = vsel %vm547_vm5, %v3239_v42, %v3262_v7 }
 0x5ad   :  { %v3260_v9 = vrot.slane %v3251_v58, 4  ;;  %3592 = vmatprep.subr.bf16.mxu0 %v13505_v21 }
 0x5af   :  { %v3268_v39 = vsel %vm586_vm8, %v3260_v9, %v3261_v22 }
 0x5b0   :  { %v3269_v60 = vsel %vm547_vm5, %v3251_v58, %v3268_v39  ;;  %v3243_v13 = vpop.permute.xlu1 %3242  ;;  %3593 = vmatpush2.bf16.msra.mxu0 %v13504_v24 }
 0x5b1   :  { %v12112_v31 = vcombine.low %v3267_v5, %v3269_v60  ;;  %v3256_v15 = vrot.slane %v3243_v13, 4  ;;  %3594 = vmatprep.subr.bf16.mxu0 %v13503_v62  ;;  %v12113_v8 = vcombine.high %v3267_v5, %v3269_v60 }
 0x5b3   :  { %v3264_v55 = vsel %vm586_vm8, %v3256_v15, %v3257_v16  ;;  %3629 = vmatprep.subr.bf16.mxu1 %v12113_v8 }
 0x5b4   :  { %v3265_v18 = vsel %vm547_vm5, %v3243_v13, %v3264_v55  ;;  %3595 = vmatpush2.bf16.msra.mxu0 %v13502_v0  ;;  %3630 = vmatpush1.bf16.msra.mxu1 %v12112_v31  ;;  %v15528_v0 = vmul.f32 %v15497_v59, %v14107_v41 }
 0x5b5   :  { %v12110_v11 = vcombine.low %v3263_v19, %v3265_v18  ;;  %v12111_v29 = vcombine.high %v3263_v19, %v3265_v18 }
 0x5b7   :  { %3597 = vmatmul.mubr.bf16.vlgmr.msra.gmra.mxu0 %v13574_v63  ;;  %3631 = vmatprep.subr.bf16.mxu1 %v12111_v29  ;;  %v15507_v17 = vpop.permute.xlu0 %3345 }
 0x5b8   :  { %3632 = vmatpush1.bf16.msra.mxu1 %v12110_v11  ;;  %3606 = vmatprep.mubr.bf16.mxu0 %v13578_v12 }
 0x5bb   :  { %12114 = vmatmul.mubr.msk.bf16.vlgmr.msra.gmra.mxu1 %vm2328_vm12, %v13577_v23  ;;  %v3336_v45 = vpop.permute.xlu0 %3335 }
 0x5bc   :  { %3659 = vmatprep.mubr.bf16.mxu1 %v19515_v10 }
 0x5bd   :  { %v3341_v56 = vpop.permute.xlu1 %3340 }
 0x5bf   :  { %3607 = vmatmul.mubr.bf16.gmra.mxu0 %v13580_v3  ;;  %v15511_v47 = vpop.permute.xlu0 %3700 }
 0x5c0   :  { %4878 = vmatprep.mubr.bf16.mxu0 %v19515_v10 }
 0x5c1   :  { %v3331_v4 = vpop.permute.xlu1 %3330 }
 0x5c3   :  { %12115 = vmatmul.mubr.msk.bf16.gmra.mxu1 %vm2328_vm12, %v13581_v6  ;;  %v3691_v7 = vpop.permute.xlu0 %3690 }
 0x5c5   :  { %v15509_v30 = vpop.permute.xlu1 %3695 }
 0x5c9   :  { %v3686_v38 = vpop.permute.xlu1 %3685 }
 0x677   :  { %v3598_v36 = vpop.f32.mrf.mxu0 }
 0x678   :  { %v3599_v53 = vadd.f32 %v3598_v36, %v3331_v4 }
 0x679   :  { %v3600_v42 = vpop.f32.mrf.mxu0 }
 0x67a   :  { %v3601_v21 = vadd.f32 %v3600_v42, %v3331_v4 }
 0x67b   :  { %v3602_v44 = vpop.f32.mrf.mxu0  ;;  %v3651_v2 = vpop.f32.mrf.mxu1 }
 0x67c   :  { %v3652_v35 = vadd.f32 %v3651_v2, %v3599_v53  ;;  %v3603_v51 = vadd.f32 %v3602_v44, %v3336_v45  ;;  %v15547_v53 = vmul.f32 %v15497_v59, %v14123_v50 }
 0x67d   :  { %v3604_v54 = vpop.f32.mrf.mxu0  ;;  %v3653_v58 = vpop.f32.mrf.mxu1 }
 0x67e   :  { %vm3670_vm10 = vcmp.ge.f32.partialorder %v3652_v35, 0.0  ;;  %v3703_v25 = vmul.f32 %v3686_v38, %v3652_v35  ;;  %v3654_v22 = vadd.f32 %v3653_v58, %v3601_v21  ;;  %v3605_v61 = vadd.f32 %v3604_v54, %v3336_v45 }
 0x67f   :  { %v3608_v9 = vpop.f32.mrf.mxu0  ;;  %v3655_v1 = vpop.f32.mrf.mxu1 }
 0x680   :  { %v15513_v20 = vsel %vm3670_vm10, %v3652_v35, %v3703_v25  ;;  %vm3671_vm11 = vcmp.ge.f32.partialorder %v3654_v22, 0.0  ;;  %v3704_v24 = vmul.f32 %v3686_v38, %v3654_v22  ;;  %v3656_v32 = vadd.f32 %v3655_v1, %v3603_v51 }
 0x681   :  { %3719 = vst [vmem:[#allocation2 + $0x8] sm:$0xff] %v15513_v20  ;;  %v3610_v39 = vpop.f32.mrf.mxu0  ;;  %v3657_v62 = vpop.f32.mrf.mxu1  ;;  %v13062_v46 = vpack.c.bf16 %v15513_v20, %v15497_v59  ;;  %v4016_v5 = vmul.f32 %v15513_v20, %v14114_v43  ;;  %v3609_v13 = vadd.f32 %v3608_v9, %v3341_v56  ;;  %v3920_v19 = vmul.f32 %v15513_v20, %v14129_v52 }
 0x682   :  { %v15520_v60 = vsel %vm3671_vm11, %v3654_v22, %v3704_v24  ;;  %v3658_v16 = vadd.f32 %v3657_v62, %v3605_v61  ;;  %vm3672_vm13 = vcmp.ge.f32.partialorder %v3656_v32, 0.0  ;;  %v3705_v31 = vmul.f32 %v3691_v7, %v3656_v32 }
 0x683   :  { %3720 = vst [vmem:[#allocation2 + $0x10] sm:$0xff] %v15520_v60  ;;  %v3612_v15 = vpop.f32.mrf.mxu0  ;;  %v3661_v8 = vpop.f32.mrf.mxu1  ;;  %3867 = vrot.lane.b32.xlu1 %v13062_v46, %s13854_s24  ;;  %v13063_v49 = vpack.c.bf16 %v15520_v60, %v15520_v60  ;;  %v3611_v12 = vadd.f32 %v3610_v39, %v3341_v56  ;;  %v13078_v23 = vpack.c.bf16 %v4016_v5, %v15528_v0 }
 0x684   :  { %vm3673_vm14 = vcmp.ge.f32.partialorder %v3658_v16, 0.0  ;;  %v3706_v55 = vmul.f32 %v3691_v7, %v3658_v16  ;;  %v3662_v63 = vadd.f32 %v3661_v8, %v3609_v13  ;;  %v15532_v18 = vsel %vm3672_vm13, %v3656_v32, %v3705_v31 }
 0x685   :  { %v3614_v11 = vpop.f32.mrf.mxu0  ;;  %v3663_v29 = vpop.f32.mrf.mxu1  ;;  %3869 = vrot.lane.b32.xlu0 %v13063_v49, %s13854_s24  ;;  %v4017_v3 = vmul.f32 %v15520_v60, %v14105_v40  ;;  %3721 = vst [vmem:[#allocation2 + $0x28] sm:$0xff] %v15532_v18  ;;  %v3613_v4 = vadd.f32 %v3612_v15, %v15507_v17  ;;  %v3921_v44 = vmul.f32 %v15520_v60, %v14121_v48 }
 0x686   :  { %v15539_v6 = vsel %vm3673_vm14, %v3658_v16, %v3706_v55  ;;  %vm3674_vm15 = vcmp.ge.f32.partialorder %v3662_v63, 0.0  ;;  %v3707_v45 = vmul.f32 %v15509_v30, %v3662_v63  ;;  %v3664_v56 = vadd.f32 %v3663_v29, %v3611_v12 }
 0x687   :  { %3722 = vst [vmem:[#allocation2 + $0x30] sm:$0xff] %v15539_v6  ;;  %v3665_v36 = vpop.f32.mrf.mxu1  ;;  %4059 = vrot.lane.b32.xlu1 %v13078_v23, %s13864_s25  ;;  %v13079_v42 = vpack.c.bf16 %v4017_v3, %v4017_v3  ;;  %v3615_v38 = vadd.f32 %v3614_v11, %v15507_v17  ;;  %v13070_v58 = vpack.c.bf16 %v3920_v19, %v15547_v53 }
 0x688   :  { %v15551_v2 = vsel %vm3674_vm15, %v3662_v63, %v3707_v45  ;;  %v3666_v21 = vadd.f32 %v3665_v36, %v3613_v4  ;;  %vm3675_vm10 = vcmp.ge.f32.partialorder %v3664_v56, 0.0  ;;  %v3708_v35 = vmul.f32 %v15509_v30, %v3664_v56 }
 0x689   :  { %3723 = vst [vmem:[#allocation2 + $0x48] sm:$0xff] %v15551_v2  ;;  %v3667_v54 = vpop.f32.mrf.mxu1  ;;  %4061 = vrot.lane.b32.xlu0 %v13079_v42, %s13864_s25  ;;  %v3740_v25 = vmul.f32 %v15513_v20, %v14189_v37  ;;  %v13071_v17 = vpack.c.bf16 %v3921_v44, %v3921_v44  ;;  %v15566_v30 = vmul.f32 %v15497_v59, %v14178_v26 }
 0x68a   :  { %vm3676_vm11 = vcmp.ge.f32.partialorder %v3666_v21, 0.0  ;;  %v3709_v22 = vmul.f32 %v15511_v47, %v3666_v21  ;;  %v3668_v51 = vadd.f32 %v3667_v54, %v3615_v38  ;;  %v15561_v9 = vsel %vm3675_vm10, %v3664_v56, %v3708_v35 }
 0x68b   :  { %3963 = vrot.lane.b32.xlu1 %v13070_v58, %s13863_s23  ;;  %v3741_v1 = vmul.f32 %v15520_v60, %v14153_v14  ;;  %3724 = vst [vmem:[#allocation2 + $0x50] sm:$0xff] %v15561_v9  ;;  %v13054_v32 = vpack.c.bf16 %v3740_v25, %v15566_v30  ;;  %v13106_v46 = vpack.c.bf16 %v15520_v60, %v15513_v20 }
 0x68c   :  { %v15571_v61 = vsel %vm3676_vm11, %v3666_v21, %v3709_v22  ;;  %vm3677_vm13 = vcmp.ge.f32.partialorder %v3668_v51, 0.0  ;;  %v3710_v24 = vmul.f32 %v15511_v47, %v3668_v51  ;;  %v4020_v47 = vmul.f32 %v15539_v6, %v14105_v40 }
 0x68d   :  { %3725 = vst [vmem:[#allocation2 + $0x68] sm:$0xff] %v15571_v61  ;;  %3965 = vrot.lane.b32.xlu0 %v13071_v17, %s13863_s23  ;;  %v13055_v62 = vpack.c.bf16 %v3741_v1, %v3741_v1  ;;  %v4019_v5 = vmul.f32 %v15532_v18, %v14114_v43  ;;  %v3924_v7 = vmul.f32 %v15539_v6, %v14121_v48 }
 0x68e   :  { %v15577_v39 = vsel %vm3677_vm13, %v3668_v51, %v3710_v24  ;;  %v3923_v13 = vmul.f32 %v15532_v18, %v14129_v52  ;;  %v13065_v16 = vpack.c.bf16 %v15539_v6, %v15539_v6  ;;  %v13064_v31 = vpack.c.bf16 %v15532_v18, %v15497_v59 }
 0x68f   :  { %3726 = vst [vmem:[#allocation2 + $0x70] sm:$0xff] %v15577_v39  ;;  %3783 = vrot.lane.b32.xlu1 %v13054_v32, %s13868_s27  ;;  %v13081_v15 = vpack.c.bf16 %v4020_v47, %v4020_v47  ;;  %v13108_v8 = vpack.c.bf16 %v15539_v6, %v15532_v18  ;;  %v13080_v49 = vpack.c.bf16 %v4019_v5, %v15528_v0  ;;  %v19529_v32 = vld [vmem:[#allocation35_spill] sm:$0xff] }
 0x690   :  { %v13073_v55 = vpack.c.bf16 %v3924_v7, %v3924_v7  ;;  %v13072_v63 = vpack.c.bf16 %v3923_v13, %v15547_v53  ;;  %v3744_v19 = vmul.f32 %v15539_v6, %v14153_v14  ;;  %v15607_v12 = vmul.f32 %v15551_v2, %v14082_v27 }
 0x691   :  { %3785 = vrot.lane.b32.xlu0 %v13055_v62, %s13868_s27  ;;  %v15611_v11 = vmul.f32 %v15561_v9, %v14095_v33  ;;  %v15615_v29 = vmul.f32 %v15513_v20, %v14082_v27  ;;  %v15619_v23 = vmul.f32 %v15520_v60, %v14095_v33  ;;  %v15623_v3 = vmul.f32 %v15532_v18, %v14082_v27 }
 0x692   :  { %v15627_v4 = vmul.f32 %v15539_v6, %v14095_v33  ;;  %v15631_v45 = vmul.f32 %v15551_v2, %v14084_v28  ;;  %v15635_v56 = vmul.f32 %v15561_v9, %v14100_v34  ;;  %v15644_v44 = vmul.f32 %v15513_v20, %v14084_v28 }
 0x693   :  { %4371 = vrot.lane.b32.xlu1 %v13106_v46, %s13870_s7  ;;  %v13102_v36 = vpack.c.bf16 %v15611_v11, %v15607_v12  ;;  %v13098_v42 = vpack.c.bf16 %v15619_v23, %v15615_v29  ;;  %v15648_v38 = vmul.f32 %v15520_v60, %v14100_v34  ;;  %v15656_v54 = vmul.f32 %v15571_v61, %v14082_v27  ;;  %v19530_v46 = vld [vmem:[#allocation36_spill] sm:$0xff]  ;;  %v19536_v12 = vld [vmem:[#allocation34_spill] sm:$0xff] }
 0x694   :  { %v13100_v21 = vpack.c.bf16 %v15627_v4, %v15623_v3  ;;  %v15660_v58 = vmul.f32 %v15577_v39, %v14095_v33  ;;  %v15667_v22 = vmul.f32 %v15532_v18, %v14084_v28  ;;  %v15671_v51 = vmul.f32 %v15539_v6, %v14100_v34  ;;  %v15844_v3 = vpop.permute.xlu0 %4381 }
 0x695   :  { %3873 = vrot.lane.b32.xlu0 %v13065_v16, %s13854_s24  ;;  %v15675_v17 = vmul.f32 %v15571_v61, %v14084_v28  ;;  %v15681_v24 = vmul.f32 %v15577_v39, %v14100_v34  ;;  %v15685_v62 = vmul.f32 %v15551_v2, %v19529_v32  ;;  %v15689_v47 = vmul.f32 %v15561_v9, %v19530_v46 }
 0x696   :  { %v3743_v5 = vmul.f32 %v15532_v18, %v14189_v37  ;;  %v15698_v13 = vmul.f32 %v15513_v20, %v19529_v32  ;;  %v15702_v16 = vmul.f32 %v15520_v60, %v19530_v46  ;;  %v13057_v20 = vpack.c.bf16 %v3744_v19, %v3744_v19 }
 0x697   :  { %3871 = vrot.lane.b32.xlu1 %v13064_v31, %s13854_s24  ;;  %v15721_v31 = vmul.f32 %v15532_v18, %v19529_v32  ;;  %v13067_v19 = vpack.c.bf16 %v15561_v9, %v15561_v9  ;;  %v4023_v60 = vmul.f32 %v15561_v9, %v14105_v40  ;;  %v13066_v7 = vpack.c.bf16 %v15551_v2, %v15497_v59 }
 0x698   :  { %v13056_v1 = vpack.c.bf16 %v3743_v5, %v15566_v30  ;;  %v3926_v25 = vmul.f32 %v15551_v2, %v14129_v52  ;;  %v3747_v35 = vmul.f32 %v15561_v9, %v14153_v14  ;;  %v4431_v11 = vmul.f32 %v15497_v59, %v19536_v12 }
 0x699   :  { %4065 = vrot.lane.b32.xlu0 %v13081_v15, %s13864_s25  ;;  %v15725_v15 = vmul.f32 %v15539_v6, %v19530_v46  ;;  %v13083_v5 = vpack.c.bf16 %v4023_v60, %v4023_v60  ;;  %v3746_v60 = vmul.f32 %v15551_v2, %v14189_v37  ;;  %v19533_v6 = vpack.c.bf16 %v15635_v56, %v15631_v45 }
 0x69a   :  { %v19537_v29 = vpack.c.bf16 %v15671_v51, %v15667_v22  ;;  %v13119_v23 = vpack.c.bf16 %v4431_v11, %v4431_v11  ;;  %v19538_v4 = vpack.c.bf16 %v15681_v24, %v15675_v17  ;;  %v19539_v45 = vpack.c.bf16 %v15689_v47, %v15685_v62  ;;  %v12197_v51 = vld [vmem:[%s19426_s8 + $0x68] sm:$0xff]  ;;  %v12198_v62 = vld [vmem:[%s19426_s8 + $0x70] sm:$0xff] }
 0x69b   :  { %4063 = vrot.lane.b32.xlu1 %v13080_v49, %s13864_s25  ;;  %v15710_v49 = vmul.f32 %v15571_v61, %v19529_v32  ;;  %v19542_v17 = vpack.c.bf16 %v15725_v15, %v15721_v31  ;;  %v12196_v31 = vld [vmem:[%s19426_s8 + $0x60] sm:$0xff] }
 0x69d   :  { %3969 = vrot.lane.b32.xlu0 %v13073_v55, %s13863_s23  ;;  %v15714_v55 = vmul.f32 %v15577_v39, %v19530_v46 }
 0x69f   :  { %3967 = vrot.lane.b32.xlu1 %v13072_v63, %s13863_s23 }
 0x6a1   :  { %3789 = vrot.lane.b32.xlu0 %v13057_v20, %s13868_s27  ;;  %v4022_v20 = vmul.f32 %v15551_v2, %v14114_v43 }
 0x6a3   :  { %3787 = vrot.lane.b32.xlu1 %v13056_v1, %s13868_s27  ;;  %v3927_v1 = vmul.f32 %v15561_v9, %v14121_v48  ;;  %v13082_v63 = vpack.c.bf16 %v4022_v20, %v15528_v0  ;;  %v13058_v20 = vpack.c.bf16 %v3746_v60, %v15566_v30  ;;  %v3930_v60 = vmul.f32 %v15577_v39, %v14121_v48 }
 0x6a5   :  { %3877 = vrot.lane.b32.xlu0 %v13067_v19, %s13854_s24  ;;  %v13075_v19 = vpack.c.bf16 %v3927_v1, %v3927_v1  ;;  %v4026_v1 = vmul.f32 %v15577_v39, %v14105_v40 }
 0x6a7   :  { %3875 = vrot.lane.b32.xlu1 %v13066_v7, %s13854_s24  ;;  %v13074_v7 = vpack.c.bf16 %v3926_v25, %v15547_v53  ;;  %v13110_v25 = vpack.c.bf16 %v15561_v9, %v15551_v2  ;;  %v3929_v9 = vmul.f32 %v15571_v61, %v14129_v52 }
 0x6a9   :  { %4069 = vrot.lane.b32.xlu0 %v13083_v5, %s13864_s25  ;;  %v13059_v5 = vpack.c.bf16 %v3747_v35, %v3747_v35  ;;  %v13085_v35 = vpack.c.bf16 %v4026_v1, %v4026_v1  ;;  %v19531_v1 = vld [vmem:[#allocation31_spill] sm:$0xff] }
 0x6ab   :  { %4067 = vrot.lane.b32.xlu1 %v13082_v63, %s13864_s25  ;;  %v13069_v63 = vpack.c.bf16 %v15577_v39, %v15577_v39 }
 0x6ad   :  { %3973 = vrot.lane.b32.xlu0 %v13075_v19, %s13863_s23  ;;  %v13068_v19 = vpack.c.bf16 %v15571_v61, %v15497_v59 }
 0x6af   :  { %3971 = vrot.lane.b32.xlu1 %v13074_v7, %s13863_s23  ;;  %v4025_v7 = vmul.f32 %v15571_v61, %v14114_v43 }
 0x6b1   :  { %3793 = vrot.lane.b32.xlu0 %v13059_v5, %s13868_s27  ;;  %v13084_v2 = vpack.c.bf16 %v4025_v7, %v15528_v0  ;;  %v13077_v5 = vpack.c.bf16 %v3930_v60, %v3930_v60  ;;  %v12246_v7 = vld [vmem:[%s19427_s9 + $0x70] sm:$0xff] }
 0x6b3   :  { %3791 = vrot.lane.b32.xlu1 %v13058_v20, %s13868_s27  ;;  %v13076_v20 = vpack.c.bf16 %v3929_v9, %v15547_v53  ;;  %v13112_v53 = vpack.c.bf16 %v15577_v39, %v15571_v61  ;;  %v12244_v9 = vld [vmem:[%s19427_s9 + $0x60] sm:$0xff] }
 0x6b5   :  { %3881 = vrot.lane.b32.xlu0 %v13069_v63, %s13854_s24  ;;  %v3749_v63 = vmul.f32 %v15571_v61, %v14189_v37 }
 0x6b7   :  { %4379 = vrot.lane.b32.xlu1 %v13110_v25, %s13870_s7  ;;  %v4251_v25 = vmul.f32 %v15497_v59, %v19531_v1  ;;  %v13060_v0 = vpack.c.bf16 %v3749_v63, %v15566_v30  ;;  %v19532_v30 = vld [vmem:[#allocation32_spill] sm:$0xff] }
 0x6b8   :  { %v4155_v61 = vmul.f32 %v15497_v59, %v19532_v30  ;;  %v15852_v59 = vpop.permute.xlu0 %4385 }
 0x6b9   :  { %4073 = vrot.lane.b32.xlu0 %v13085_v35, %s13864_s25  ;;  %v13103_v35 = vpack.c.bf16 %v4251_v25, %v4251_v25 }
 0x6ba   :  { %v13095_v18 = vpack.c.bf16 %v4155_v61, %v4155_v61 }
 0x6bb   :  { %3879 = vrot.lane.b32.xlu1 %v13068_v19, %s13854_s24  ;;  %v3750_v19 = vmul.f32 %v15577_v39, %v14153_v14  ;;  %v19534_v39 = vpack.c.bf16 %v15648_v38, %v15644_v44 }
 0x6bd   :  { %4373 = vrot.lane.b32.xlu0 %v15501_v57, %s13870_s7 }
 0x6bf   :  { %4071 = vrot.lane.b32.xlu1 %v13084_v2, %s13864_s25 }
 0x6c1   :  { %3977 = vrot.lane.b32.xlu0 %v13077_v5, %s13863_s23 }
 0x6c3   :  { %3975 = vrot.lane.b32.xlu1 %v13076_v20, %s13863_s23 }
 0x6c5   :  { %4377 = vrot.lane.b32.xlu0 %v15501_v57, %s13870_s7  ;;  %v13061_v57 = vpack.c.bf16 %v3750_v19, %v3750_v19 }
 0x6c7   :  { %3795 = vrot.lane.b32.xlu1 %v13060_v0, %s13868_s27 }
 0x6c9   :  { %4297 = vrot.lane.b32.xlu0 %v13103_v35, %s13866_s26 }
 0x6cb   :  { %4383 = vrot.lane.b32.xlu1 %v13112_v53, %s13870_s7 }
 0x6cd   :  { %4301 = vrot.lane.b32.xlu0 %v13103_v35, %s13866_s26 }
 0x6cf   :  { %4375 = vrot.lane.b32.xlu1 %v13108_v8, %s13870_s7  ;;  %v19535_v8 = vpack.c.bf16 %v15660_v58, %v15656_v54  ;;  %v19541_v54 = vpack.c.bf16 %v15714_v55, %v15710_v49  ;;  %v12245_v49 = vld [vmem:[%s19427_s9 + $0x68] sm:$0xff] }
 0x6d1   :  { %3797 = vrot.lane.b32.xlu0 %v13061_v57, %s13868_s27 }
 0x6d3   :  { %4295 = vrot.lane.b32.xlu1 %v13102_v36, %s13866_s26  ;;  %v13584_v36 = vld [vmem:[%s19424_s6 + $0x64] ss:$12 sps:$4 sm:$0xff]  }
 0x6d4   :  { %4825 = vmatprep.mubr.bf16.mxu1 %v13584_v36 }
 0x6d5   :  { %4289 = vrot.lane.b32.xlu0 %v13103_v35, %s13866_s26 }
 0x6d7   :  { %4287 = vrot.lane.b32.xlu1 %v13098_v42, %s13866_s26  ;;  %v19540_v42 = vpack.c.bf16 %v15702_v16, %v15698_v13  ;;  %v12247_v13 = vld [vmem:[%s19427_s9 + $0x78] sm:$0xff] }
 0x6d9   :  { %4293 = vrot.lane.b32.xlu0 %v13103_v35, %s13866_s26 }
 0x6db   :  { %4291 = vrot.lane.b32.xlu1 %v13100_v21, %s13866_s26  ;;  %v12199_v21 = vld [vmem:[%s19426_s8 + $0x78] sm:$0xff] }
 0x6dd   :  { %4201 = vrot.lane.b32.xlu0 %v13095_v18, %s13865_s3 }
 0x6df   :  { %4199 = vrot.lane.b32.xlu1 %v19533_v6, %s13865_s3 }
 0x6e1   :  { %4205 = vrot.lane.b32.xlu0 %v13095_v18, %s13865_s3 }
 0x6e3   :  { %4191 = vrot.lane.b32.xlu1 %v19534_v39, %s13865_s3 }
 0x6e5   :  { %4193 = vrot.lane.b32.xlu0 %v13095_v18, %s13865_s3 }
 0x6e7   :  { %4299 = vrot.lane.b32.xlu1 %v19535_v8, %s13866_s26 }
 0x6e9   :  { %4197 = vrot.lane.b32.xlu0 %v13095_v18, %s13865_s3 }
 0x6eb   :  { %4195 = vrot.lane.b32.xlu1 %v19537_v29, %s13865_s3 }
 0x6ed   :  { %4477 = vrot.lane.b32.xlu0 %v13119_v23, %s13867_s10 }
 0x6ef   :  { %4203 = vrot.lane.b32.xlu1 %v19538_v4, %s13865_s3 }
 0x6f1   :  { %4481 = vrot.lane.b32.xlu0 %v13119_v23, %s13867_s10 }
 0x6f3   :  { %4475 = vrot.lane.b32.xlu1 %v19539_v45, %s13867_s10 }
 0x6f5   :  { %v15858_v56 = vpop.permute.xlu1 %3867  ;;  %4469 = vrot.lane.b32.xlu0 %v13119_v23, %s13867_s10 }
 0x6f7   :  { %4467 = vrot.lane.b32.xlu1 %v19540_v42, %s13867_s10  ;;  %v15868_v44 = vpop.permute.xlu0 %3869 }
 0x6f9   :  { %v15870_v38 = vpop.permute.xlu1 %4059  ;;  %4473 = vrot.lane.b32.xlu0 %v13119_v23, %s13867_s10 }
 0x6fb   :  { %4479 = vrot.lane.b32.xlu1 %v19541_v54, %s13867_s10  ;;  %v4062_v58 = vpop.permute.xlu0 %4061 }
 0x6fd   :  { %v15880_v22 = vpop.permute.xlu1 %3963  ;;  %4574 = vperm.xlu0 %13558, %v12199_v21   ;;  %v4076_v21 = vrot.slane %v4062_v58, 4 }
 0x6ff   :  { %4471 = vrot.lane.b32.xlu1 %v19542_v17, %s13867_s10  ;;  %v15889_v24 = vpop.permute.xlu0 %3965 }
 0x700   :  { %v3980_v32 = vrot.slane %v15889_v24, 4 }
 0x701   :  { %v15894_v47 = vpop.permute.xlu1 %3783  ;;  %4564 = vperm.xlu0 %13558, %v12197_v51  }
 0x703   :  { %4569 = vperm.xlu1 %13559, %v12198_v62   ;;  %v15899_v16 = vpop.permute.xlu0 %3785  ;;  %v4075_v62 = vrot.slane %v15870_v38, 4 }
 0x705   :  { %v15904_v15 = vpop.permute.xlu1 %4371  ;;  %4929 = vperm.xlu0 %13558, %v12247_v13  }
 0x707   :  { %4559 = vperm.xlu1 %13559, %v12196_v31   ;;  %v15909_v55 = vpop.permute.xlu0 %3873 }
 0x709   :  { %4919 = vperm.xlu0 %13558, %v12245_v49   ;;  %v15914_v60 = vpop.permute.xlu1 %3871 }
 0x70b   :  { %4924 = vperm.xlu1 %13559, %v12246_v7   ;;  %v4066_v2 = vpop.permute.xlu0 %4065 }
 0x70c   :  { %v4078_v36 = vrot.slane %v4066_v2, 4 }
 0x70d   :  { %v4064_v5 = vpop.permute.xlu1 %4063 }
 0x70e   :  { %v4077_v23 = vrot.slane %v4064_v5, 4 }
 0x70f   :  { %4914 = vperm.xlu1 %13559, %v12244_v9   ;;  %v3970_v20 = vpop.permute.xlu0 %3969  ;;  %v4083_v9 = vsel %vm586_vm8, %v4075_v62, %v4076_v21 }
 0x710   :  { %v4085_v51 = vsel %vm586_vm8, %v4077_v23, %v4078_v36 }
 0x711   :  { %v15919_v63 = vpop.permute.xlu1 %3967  ;;  %v4086_v12 = vsel %vm756_vm2, %v4064_v5, %v4085_v51  ;;  %v4084_v5 = vsel %vm756_vm2, %v15870_v38, %v4083_v9  ;;  %v3982_v51 = vrot.slane %v3970_v20, 4 }
 0x712   :  { %v3981_v58 = vrot.slane %v15919_v63, 4  ;;  %v12218_v38 = vcombine.low %v4084_v5, %v4086_v12 }
 0x713   :  { %v15921_v25 = vpop.permute.xlu0 %3789 }
 0x714   :  { %v3989_v24 = vsel %vm586_vm8, %v3981_v58, %v3982_v51  ;;  %v3885_v58 = vrot.slane %v15914_v60, 4 }
 0x715   :  { %v15923_v0 = vpop.permute.xlu1 %3787 }
 0x717   :  { %v15925_v35 = vpop.permute.xlu0 %3877 }
 0x719   :  { %v15927_v53 = vpop.permute.xlu1 %3875 }
 0x71a   :  { %v3887_v9 = vrot.slane %v15927_v53, 4 }
 0x71b   :  { %v4070_v19 = vpop.permute.xlu0 %4069 }
 0x71c   :  { %v4080_v54 = vrot.slane %v4070_v19, 4 }
 0x71d   :  { %v4068_v57 = vpop.permute.xlu1 %4067 }
 0x71e   :  { %v4079_v45 = vrot.slane %v4068_v57, 4 }
 0x71f   :  { %v3974_v61 = vpop.permute.xlu0 %3973 }
 0x720   :  { %v4087_v13 = vsel %vm586_vm8, %v4079_v45, %v4080_v54  ;;  %v3984_v23 = vrot.slane %v3974_v61, 4  ;;  %v12219_v61 = vcombine.high %v4084_v5, %v4086_v12  ;;  %v3888_v12 = vrot.slane %v15925_v35, 4 }
 0x721   :  { %v3972_v18 = vpop.permute.xlu1 %3971  ;;  %v4088_v19 = vsel %vm756_vm2, %v4068_v57, %v4087_v13 }
 0x722   :  { %v3983_v30 = vrot.slane %v3972_v18, 4 }
 0x723   :  { %v15929_v6 = vpop.permute.xlu0 %3793 }
 0x724   :  { %v3991_v62 = vsel %vm586_vm8, %v3983_v30, %v3984_v23  ;;  %v3884_v23 = vrot.slane %v15868_v44, 4 }
 0x725   :  { %v15931_v39 = vpop.permute.xlu1 %3791  ;;  %v3992_v20 = vsel %vm698_vm1, %v3972_v18, %v3991_v62 }
 0x727   :  { %v3882_v8 = vpop.permute.xlu0 %3881 }
 0x729   :  { %v15933_v11 = vpop.permute.xlu1 %4379 }
 0x72b   :  { %v4074_v29 = vpop.permute.xlu0 %4073 }
 0x72c   :  { %v4082_v31 = vrot.slane %v4074_v29, 4 }
 0x72d   :  { %v15935_v4 = vpop.permute.xlu1 %3879 }
 0x72f   :  { %v15937_v42 = vpop.permute.xlu0 %4373 }
 0x731   :  { %v4072_v17 = vpop.permute.xlu1 %4071 }
 0x732   :  { %v4081_v49 = vrot.slane %v4072_v17, 4 }
 0x733   :  { %v3978_v7 = vpop.permute.xlu0 %3977 }
 0x734   :  { %v4089_v2 = vsel %vm586_vm8, %v4081_v49, %v4082_v31  ;;  %v3986_v45 = vrot.slane %v3978_v7, 4  ;;  %v3979_v31 = vrot.slane %v15880_v22, 4  ;;  %v3889_v49 = vrot.slane %v15935_v4, 4 }
 0x735   :  { %v4090_v36 = vsel %vm756_vm2, %v4072_v17, %v4089_v2  ;;  %v3976_v1 = vpop.permute.xlu1 %3975  ;;  %v3890_v2 = vrot.slane %v3882_v8, 4 }
 0x736   :  { %v12220_v46 = vcombine.low %v4088_v19, %v4090_v36  ;;  %v3985_v29 = vrot.slane %v3976_v1, 4  ;;  %v12221_v54 = vcombine.high %v4088_v19, %v4090_v36  ;;  %v3987_v30 = vsel %vm586_vm8, %v3979_v31, %v3980_v32 }
 0x737   :  { %v15951_v21 = vpop.permute.xlu0 %4377  ;;  %v3897_v18 = vsel %vm586_vm8, %v3889_v49, %v3890_v2  ;;  %v3988_v32 = vsel %vm698_vm1, %v15880_v22, %v3987_v30  ;;  %v3801_v49 = vrot.slane %v15923_v0, 4  ;;  %v3800_v2 = vrot.slane %v15899_v16, 4 }
 0x738   :  { %v3993_v57 = vsel %vm586_vm8, %v3985_v29, %v3986_v45  ;;  %4793 = vmatprep.subr.bf16.mxu1 %v12221_v54  ;;  %v3895_v45 = vsel %vm586_vm8, %v3887_v9, %v3888_v12  ;;  %v3883_v54 = vrot.slane %v15858_v56, 4  ;;  %v3898_v35 = vsel %vm631_vm7, %v15935_v4, %v3897_v18 }
 0x739   :  { %v3994_v17 = vsel %vm698_vm1, %v3976_v1, %v3993_v57  ;;  %v3796_v13 = vpop.permute.xlu1 %3795  ;;  %4794 = vmatpush1.bf16.msra.mxu1 %v12220_v46  ;;  %v3990_v46 = vsel %vm698_vm1, %v15919_v63, %v3989_v24  ;;  %v3886_v63 = vrot.slane %v15909_v55, 4  ;;  %v3896_v55 = vsel %vm631_vm7, %v15927_v53, %v3895_v45 }
 0x73a   :  { %4795 = vmatprep.subr.bf16.mxu1 %v12219_v61  ;;  %v12217_v1 = vcombine.high %v3992_v20, %v3994_v17  ;;  %v12216_v8 = vcombine.low %v3992_v20, %v3994_v17  ;;  %v12215_v29 = vcombine.high %v3988_v32, %v3990_v46  ;;  %v3891_v22 = vsel %vm586_vm8, %v3883_v54, %v3884_v23 }
 0x73b   :  { %v15960_v7 = vpop.permute.xlu0 %4297  ;;  %v3893_v44 = vsel %vm586_vm8, %v3885_v58, %v3886_v63  ;;  %v12214_v51 = vcombine.low %v3988_v32, %v3990_v46  ;;  %v3803_v57 = vrot.slane %v15931_v39, 4  ;;  %v3805_v61 = vrot.slane %v3796_v13, 4 }
 0x73c   :  { %v12213_v31 = vcombine.high %v3896_v55, %v3898_v35  ;;  %v3894_v4 = vsel %vm631_vm7, %v15914_v60, %v3893_v44  ;;  %v3892_v53 = vsel %vm631_vm7, %v15858_v56, %v3891_v22  ;;  %v12212_v30 = vcombine.low %v3896_v55, %v3898_v35 }
 0x73d   :  { %v15966_v19 = vpop.permute.xlu1 %4383  ;;  %4796 = vmatpush1.bf16.msra.mxu1 %v12218_v38  ;;  %v3804_v38 = vrot.slane %v15929_v6, 4  ;;  %v3802_v60 = vrot.slane %v15921_v25, 4  ;;  %v12211_v46 = vcombine.high %v3892_v53, %v3894_v4  ;;  %v3799_v12 = vrot.slane %v15894_v47, 4 }
 0x73e   :  { %4797 = vmatprep.subr.bf16.mxu1 %v12217_v1  ;;  %v4393_v56 = vrot.slane %v15966_v19, 4  ;;  %v12210_v23 = vcombine.low %v3892_v53, %v3894_v4  ;;  %v4394_v32 = vrot.slane %v15852_v59, 4  ;;  %v4391_v63 = vrot.slane %v15933_v11, 4 }
 0x73f   :  { %v15974_v36 = vpop.permute.xlu0 %4301  ;;  %v3811_v1 = vsel %vm586_vm8, %v3803_v57, %v3804_v38  ;;  %v3809_v18 = vsel %vm586_vm8, %v3801_v49, %v3802_v60  ;;  %v4392_v54 = vrot.slane %v15844_v3, 4  ;;  %v4388_v55 = vrot.slane %v15937_v42, 4 }
 0x740   :  { %v3812_v16 = vsel %vm588_vm6, %v15931_v39, %v3811_v1  ;;  %v4401_v35 = vsel %vm586_vm8, %v4393_v56, %v4394_v32 }
 0x741   :  { %v15981_v5 = vpop.permute.xlu1 %4375  ;;  %4798 = vmatpush1.bf16.msra.mxu1 %v12216_v8  ;;  %v3807_v8 = vsel %vm586_vm8, %v3799_v12, %v3800_v2  ;;  %v4402_v3 = vsel %vm933_vm9, %v15966_v19, %v4401_v35 }
 0x742   :  { %4799 = vmatprep.subr.bf16.mxu1 %v12215_v29  ;;  %v4389_v44 = vrot.slane %v15981_v5, 4  ;;  %v3808_v59 = vsel %vm588_vm6, %v15894_v47, %v3807_v8 }
 0x743   :  { %v3798_v62 = vpop.permute.xlu0 %3797 }
 0x744   :  { %v3806_v17 = vrot.slane %v3798_v62, 4 }
 0x745   :  { %v15990_v24 = vpop.permute.xlu1 %4295  ;;  %4800 = vmatpush1.bf16.msra.mxu1 %v12214_v51  ;;  %v4399_v51 = vsel %vm586_vm8, %v4391_v63, %v4392_v54 }
 0x746   :  { %v3813_v20 = vsel %vm586_vm8, %v3805_v61, %v3806_v17  ;;  %4801 = vmatprep.subr.bf16.mxu1 %v12213_v31  ;;  %v4387_v61 = vrot.slane %v15904_v15, 4  ;;  %v4400_v31 = vsel %vm933_vm9, %v15933_v11, %v4399_v51  ;;  %v4307_v38 = vrot.slane %v15990_v24, 4 }
 0x747   :  { %v15997_v9 = vpop.permute.xlu0 %4289  ;;  %v3814_v6 = vsel %vm588_vm6, %v3796_v13, %v3813_v20  ;;  %v3810_v13 = vsel %vm588_vm6, %v15923_v0, %v3809_v18  ;;  %v4390_v0 = vrot.slane %v15951_v21, 4  ;;  %v12237_v21 = vcombine.high %v4400_v31, %v4402_v3 }
 0x748   :  { %v12209_v45 = vcombine.high %v3812_v16, %v3814_v6  ;;  %v12208_v39 = vcombine.low %v3812_v16, %v3814_v6  ;;  %v12207_v62 = vcombine.high %v3808_v59, %v3810_v13  ;;  %v12206_v47 = vcombine.low %v3808_v59, %v3810_v13 }
 0x749   :  { %v16002_v58 = vpop.permute.xlu1 %4287  ;;  %4802 = vmatpush1.bf16.msra.mxu1 %v12212_v30  ;;  %v4397_v17 = vsel %vm586_vm8, %v4389_v44, %v4390_v0  ;;  %v4395_v42 = vsel %vm586_vm8, %v4387_v61, %v4388_v55  ;;  %v12236_v53 = vcombine.low %v4400_v31, %v4402_v3  ;;  %v4308_v11 = vrot.slane %v15960_v7, 4 }
 0x74a   :  { %4803 = vmatprep.subr.bf16.mxu1 %v12211_v46  ;;  %v4398_v49 = vsel %vm933_vm9, %v15981_v5, %v4397_v17  ;;  %v4396_v30 = vsel %vm933_vm9, %v15904_v15, %v4395_v42  ;;  %v4303_v60 = vrot.slane %v16002_v58, 4  ;;  %v4310_v6 = vrot.slane %v15974_v36, 4 }
 0x74b   :  { %v4294_v25 = vpop.permute.xlu0 %4293  ;;  %v12235_v46 = vcombine.high %v4396_v30, %v4398_v49  ;;  %v4315_v12 = vsel %vm586_vm8, %v4307_v38, %v4308_v11  ;;  %v4304_v18 = vrot.slane %v15997_v9, 4  ;;  %v12234_v15 = vcombine.low %v4396_v30, %v4398_v49  ;;  %v4106_v11 = vld [vmem:[#allocation2 + $0x70] sm:$0xff] }
 0x74c   :  { %v4306_v1 = vrot.slane %v4294_v25, 4  ;;  %v4316_v25 = vsel %vm658_vm4, %v15990_v24, %v4315_v12 }
 0x74d   :  { %v4292_v29 = vpop.permute.xlu1 %4291  ;;  %4804 = vmatpush1.bf16.msra.mxu1 %v12210_v23  ;;  %v4311_v7 = vsel %vm586_vm8, %v4303_v60, %v4304_v18 }
 0x74e   :  { %4805 = vmatprep.subr.bf16.mxu1 %v12209_v45  ;;  %v4305_v20 = vrot.slane %v4292_v29, 4  ;;  %v4312_v35 = vsel %vm658_vm4, %v16002_v58, %v4311_v7 }
 0x74f   :  { %v4202_v22 = vpop.permute.xlu0 %4201 }
 0x750   :  { %v4313_v56 = vsel %vm586_vm8, %v4305_v20, %v4306_v1  ;;  %v4212_v44 = vrot.slane %v4202_v22, 4 }
 0x751   :  { %v16025_v57 = vpop.permute.xlu1 %4199  ;;  %4806 = vmatpush1.bf16.msra.mxu1 %v12208_v39  ;;  %v4314_v36 = vsel %vm658_vm4, %v4292_v29, %v4313_v56  ;;  %v4102_v56 = vld [vmem:[#allocation2 + $0x30] sm:$0xff] }
 0x752   :  { %4807 = vmatprep.subr.bf16.mxu1 %v12207_v62  ;;  %v4211_v8 = vrot.slane %v16025_v57, 4  ;;  %v12231_v24 = vcombine.high %v4312_v35, %v4314_v36  ;;  %v12230_v17 = vcombine.low %v4312_v35, %v4314_v36  ;;  %v4100_v36 = vld [vmem:[#allocation2 + $0x10] sm:$0xff] }
 0x753   :  { %v4206_v4 = vpop.permute.xlu0 %4205 }
 0x754   :  { %v4219_v29 = vsel %vm586_vm8, %v4211_v8, %v4212_v44  ;;  %v4214_v0 = vrot.slane %v4206_v4, 4 }
 0x755   :  { %v4192_v19 = vpop.permute.xlu1 %4191  ;;  %4808 = vmatpush1.bf16.msra.mxu1 %v12206_v47  ;;  %v4220_v31 = vsel %vm716_vm3, %v16025_v57, %v4219_v29  ;;  %v4104_v57 = vld [vmem:[#allocation2 + $0x50] sm:$0xff] }
 0x756   :  { %4809 = vmatprep.subr.bf16.mxu1 %v12237_v21  ;;  %v4207_v62 = vrot.slane %v4192_v19, 4 }
 0x757   :  { %v4194_v2 = vpop.permute.xlu0 %4193 }
 0x758   :  { %v4208_v39 = vrot.slane %v4194_v2, 4 }
 0x759   :  { %v4300_v5 = vpop.permute.xlu1 %4299  ;;  %4810 = vmatpush2.bf16.msra.mxu1 %v12236_v53 }
 0x75a   :  { %v4309_v23 = vrot.slane %v4300_v5, 4  ;;  %4811 = vmatprep.subr.bf16.mxu1 %v12235_v46  ;;  %v4215_v58 = vsel %vm586_vm8, %v4207_v62, %v4208_v39 }
 0x75b   :  { %v4198_v16 = vpop.permute.xlu0 %4197  ;;  %v4216_v20 = vsel %vm716_vm3, %v4192_v19, %v4215_v58  ;;  %v13585_v58 = vld [vmem:[%s19424_s6 + $0x68] ss:$12 sps:$4 sm:$0xff]  }
 0x75c   :  { %v4317_v32 = vsel %vm586_vm8, %v4309_v23, %v4310_v6  ;;  %v4210_v51 = vrot.slane %v4198_v16, 4  ;;  %v13509_v6 = vpack.c.bf16 %v4106_v11, %v4104_v57  ;;  %v4103_v16 = vld [vmem:[#allocation2 + $0x48] sm:$0xff] }
 0x75d   :  { %v4318_v63 = vsel %vm658_vm4, %v4300_v5, %v4317_v32  ;;  %v4196_v9 = vpop.permute.xlu1 %4195  ;;  %4812 = vmatpush2.bf16.msra.mxu1 %v12234_v15  ;;  %v4105_v5 = vld [vmem:[#allocation2 + $0x68] sm:$0xff] }
 0x75e   :  { %v12232_v45 = vcombine.low %v4316_v25, %v4318_v63  ;;  %v4209_v13 = vrot.slane %v4196_v9, 4  ;;  %v12233_v54 = vcombine.high %v4316_v25, %v4318_v63  ;;  %v13508_v25 = vpack.c.bf16 %v4105_v5, %v4103_v16 }
 0x75f   :  { %v4478_v59 = vpop.permute.xlu0 %4477  ;;  %v13507_v63 = vpack.c.bf16 %v4102_v56, %v4100_v36 }
 0x760   :  { %4813 = vmatprep.subr.bf16.mxu1 %v12233_v54  ;;  %v4217_v3 = vsel %vm586_vm8, %v4209_v13, %v4210_v51  ;;  %v4488_v46 = vrot.slane %v4478_v59, 4 }
 0x761   :  { %v4204_v55 = vpop.permute.xlu1 %4203  ;;  %4814 = vmatpush2.bf16.msra.mxu1 %v12232_v45  ;;  %v4218_v42 = vsel %vm716_vm3, %v4196_v9, %v4217_v3  ;;  %v4101_v9 = vld [vmem:[#allocation2 + $0x28] sm:$0xff] }
 0x762   :  { %v4213_v61 = vrot.slane %v4204_v55, 4  ;;  %4815 = vmatprep.subr.bf16.mxu1 %v12231_v24  ;;  %v12227_v53 = vcombine.high %v4216_v20, %v4218_v42  ;;  %v12226_v1 = vcombine.low %v4216_v20, %v4218_v42  ;;  %v4099_v24 = vld [vmem:[#allocation2 + $0x8] sm:$0xff]  ;;  %v16088_v42 = vld [vmem:[#allocation2 + $0x18] sm:$0xff] }
 0x763   :  { %v4482_v47 = vpop.permute.xlu0 %4481  ;;  %v13506_v29 = vpack.c.bf16 %v4101_v9, %v4099_v24 }
 0x764   :  { %v4221_v22 = vsel %vm586_vm8, %v4213_v61, %v4214_v0  ;;  %v4490_v23 = vrot.slane %v4482_v47, 4  ;;  %v13582_v0 = vld [vmem:[%s19424_s6 + $0x60] ss:$12 sps:$4 sm:$0xff]   ;;  %v13586_v61 = vld [vmem:[%s19424_s6 + $0x7c] ss:$12 sps:$4 sm:$0xff]  }
 0x765   :  { %v4222_v21 = vsel %vm716_vm3, %v4204_v55, %v4221_v22  ;;  %v4476_v49 = vpop.permute.xlu1 %4475  ;;  %4816 = vmatpush2.bf16.msra.mxu1 %v12230_v17  ;;  %v13588_v22 = vld [vmem:[%s19424_s6 + $0x78] ss:$12 sps:$4 sm:$0xff]  }
 0x766   :  { %v12228_v4 = vcombine.low %v4220_v31, %v4222_v21  ;;  %v12229_v38 = vcombine.high %v4220_v31, %v4222_v21  ;;  %v4487_v60 = vrot.slane %v4476_v49, 4  ;;  %v13589_v31 = vld [vmem:[%s19424_s6 + $0x80] ss:$12 sps:$4 sm:$0xff]   ;;  %v16092_v21 = vpack.c.bf16 %v16088_v42, %v16088_v42 }
 0x767   :  { %v4470_v30 = vpop.permute.xlu0 %4469 }
 0x768   :  { %4817 = vmatprep.subr.bf16.mxu1 %v12229_v38  ;;  %v4495_v19 = vsel %vm586_vm8, %v4487_v60, %v4488_v46  ;;  %v4484_v7 = vrot.slane %v4470_v30, 4  ;;  %5610 = vrot.lane.b32.xlu0 %v16092_v21, %s13870_s7 }
 0x769   :  { %v4468_v2 = vpop.permute.xlu1 %4467  ;;  %4818 = vmatpush2.bf16.msra.mxu1 %v12228_v4  ;;  %v4496_v45 = vsel %vm547_vm5, %v4476_v49, %v4495_v19 }
 0x76a   :  { %4819 = vmatprep.subr.bf16.mxu1 %v12227_v53  ;;  %v4483_v12 = vrot.slane %v4468_v2, 4 }
 0x76b   :  { %v4474_v32 = vpop.permute.xlu0 %4473 }
 0x76c   :  { %v4491_v13 = vsel %vm586_vm8, %v4483_v12, %v4484_v7  ;;  %v4486_v44 = vrot.slane %v4474_v32, 4  ;;  %5614 = vrot.lane.b32.xlu0 %v16092_v21, %s13870_s7 }
 0x76d   :  { %v4480_v18 = vpop.permute.xlu1 %4479  ;;  %4820 = vmatpush2.bf16.msra.mxu1 %v12226_v1  ;;  %v4492_v62 = vsel %vm547_vm5, %v4468_v2, %v4491_v13 }
 0x76e   :  { %v4489_v15 = vrot.slane %v4480_v18, 4  ;;  %4821 = vmatprep.subr.bf16.mxu1 %v13509_v6 }
 0x770   :  { %v4497_v8 = vsel %vm586_vm8, %v4489_v15, %v4490_v23  ;;  %5602 = vrot.lane.b32.xlu0 %v16092_v21, %s13870_s7 }
 0x771   :  { %v4498_v54 = vsel %vm547_vm5, %v4480_v18, %v4497_v8  ;;  %v4472_v35 = vpop.permute.xlu1 %4471  ;;  %4822 = vmatpush2.bf16.msra.mxu1 %v13508_v25 }
 0x772   :  { %v12240_v59 = vcombine.low %v4496_v45, %v4498_v54  ;;  %v4485_v39 = vrot.slane %v4472_v35, 4  ;;  %4823 = vmatprep.subr.bf16.mxu1 %v13507_v63  ;;  %v12241_v51 = vcombine.high %v4496_v45, %v4498_v54 }
 0x774   :  { %v4493_v55 = vsel %vm586_vm8, %v4485_v39, %v4486_v44  ;;  %4858 = vmatprep.subr.bf16.mxu0 %v12241_v51 }
 0x775   :  { %v4494_v3 = vsel %vm547_vm5, %v4472_v35, %v4493_v55  ;;  %4824 = vmatpush2.bf16.msra.mxu1 %v13506_v29  ;;  %4859 = vmatpush1.bf16.msra.mxu0 %v12240_v59  ;;  %v16121_v29 = vmul.f32 %v16088_v42, %v14107_v41 }
 0x776   :  { %v12238_v17 = vcombine.low %v4492_v62, %v4494_v3  ;;  %v12239_v47 = vcombine.high %v4492_v62, %v4494_v3 }
 0x778   :  { %4826 = vmatmul.mubr.bf16.vlgmr.msra.gmra.mxu1 %v13582_v0  ;;  %4860 = vmatprep.subr.bf16.mxu0 %v12239_v47  ;;  %v16100_v4 = vpop.permute.xlu0 %4574 }
 0x779   :  { %4861 = vmatpush1.bf16.msra.mxu0 %v12238_v17  ;;  %4835 = vmatprep.mubr.bf16.mxu1 %v13586_v61 }
 0x77c   :  { %12242 = vmatmul.mubr.msk.bf16.vlgmr.msra.gmra.mxu0 %vm2328_vm12, %v13585_v58  ;;  %v4565_v20 = vpop.permute.xlu0 %4564 }
 0x77d   :  { %4888 = vmatprep.mubr.bf16.mxu0 %v19515_v10 }
 0x77e   :  { %v4570_v49 = vpop.permute.xlu1 %4569 }
 0x780   :  { %4836 = vmatmul.mubr.bf16.gmra.mxu1 %v13588_v22  ;;  %v16104_v57 = vpop.permute.xlu0 %4929 }
 0x781   :  { %6040 = vmatprep.mubr.bf16.mxu1 %v19515_v10 }
 0x782   :  { %v4560_v38 = vpop.permute.xlu1 %4559 }
 0x784   :  { %12243 = vmatmul.mubr.msk.bf16.gmra.mxu0 %vm2328_vm12, %v13589_v31  ;;  %v4920_v13 = vpop.permute.xlu0 %4919 }
 0x786   :  { %v16102_v53 = vpop.permute.xlu1 %4924 }
 0x78a   :  { %v4915_v46 = vpop.permute.xlu1 %4914 }
 0x838   :  { %v4827_v30 = vpop.f32.mrf.mxu1 }
 0x839   :  { %v4828_v11 = vadd.f32 %v4827_v30, %v4560_v38 }
 0x83a   :  { %v4829_v2 = vpop.f32.mrf.mxu1 }
 0x83b   :  { %v4830_v6 = vadd.f32 %v4829_v2, %v4560_v38  ;;  %v16140_v2 = vmul.f32 %v16088_v42, %v14123_v50 }
 0x83c   :  { %v4831_v60 = vpop.f32.mrf.mxu1  ;;  %v4880_v1 = vpop.f32.mrf.mxu0 }
 0x83d   :  { %v4881_v5 = vadd.f32 %v4880_v1, %v4828_v11  ;;  %v4832_v19 = vadd.f32 %v4831_v60, %v4565_v20 }
 0x83e   :  { %v4833_v12 = vpop.f32.mrf.mxu1  ;;  %v4882_v18 = vpop.f32.mrf.mxu0 }
 0x83f   :  { %vm4899_vm14 = vcmp.ge.f32.partialorder %v4881_v5, 0.0  ;;  %v4932_v56 = vmul.f32 %v4915_v46, %v4881_v5  ;;  %v4883_v23 = vadd.f32 %v4882_v18, %v4830_v6  ;;  %v4834_v32 = vadd.f32 %v4833_v12, %v4565_v20 }
 0x840   :  { %v4837_v15 = vpop.f32.mrf.mxu1  ;;  %v4884_v16 = vpop.f32.mrf.mxu0 }
 0x841   :  { %v16106_v7 = vsel %vm4899_vm14, %v4881_v5, %v4932_v56  ;;  %vm4900_vm15 = vcmp.ge.f32.partialorder %v4883_v23, 0.0  ;;  %v4933_v25 = vmul.f32 %v4915_v46, %v4883_v23  ;;  %v4885_v36 = vadd.f32 %v4884_v16, %v4832_v19 }
 0x842   :  { %4948 = vst [vmem:[#allocation2 + $0x8] sm:$0xff] %v16106_v7  ;;  %v4839_v8 = vpop.f32.mrf.mxu1  ;;  %v4886_v63 = vpop.f32.mrf.mxu0  ;;  %v13130_v9 = vpack.c.bf16 %v16106_v7, %v16088_v42  ;;  %v5245_v45 = vmul.f32 %v16106_v7, %v14114_v43  ;;  %v4838_v35 = vadd.f32 %v4837_v15, %v4570_v49  ;;  %v5149_v62 = vmul.f32 %v16106_v7, %v14129_v52 }
 0x843   :  { %v16113_v54 = vsel %vm4900_vm15, %v4883_v23, %v4933_v25  ;;  %v4887_v44 = vadd.f32 %v4886_v63, %v4834_v32  ;;  %vm4901_vm10 = vcmp.ge.f32.partialorder %v4885_v36, 0.0  ;;  %v4934_v59 = vmul.f32 %v4920_v13, %v4885_v36 }
 0x844   :  { %4949 = vst [vmem:[#allocation2 + $0x10] sm:$0xff] %v16113_v54  ;;  %v4841_v39 = vpop.f32.mrf.mxu1  ;;  %v4890_v51 = vpop.f32.mrf.mxu0  ;;  %5096 = vrot.lane.b32.xlu1 %v13130_v9, %s13854_s24  ;;  %v13131_v24 = vpack.c.bf16 %v16113_v54, %v16113_v54  ;;  %v4840_v61 = vadd.f32 %v4839_v8, %v4570_v49  ;;  %v13146_v58 = vpack.c.bf16 %v5245_v45, %v16121_v29 }
 0x845   :  { %vm4902_vm11 = vcmp.ge.f32.partialorder %v4887_v44, 0.0  ;;  %v4935_v55 = vmul.f32 %v4920_v13, %v4887_v44  ;;  %v4891_v0 = vadd.f32 %v4890_v51, %v4838_v35  ;;  %v16125_v3 = vsel %vm4901_vm10, %v4885_v36, %v4934_v59 }
 0x846   :  { %v4843_v17 = vpop.f32.mrf.mxu1  ;;  %v4892_v47 = vpop.f32.mrf.mxu0  ;;  %5098 = vrot.lane.b32.xlu0 %v13131_v24, %s13854_s24  ;;  %v5246_v22 = vmul.f32 %v16113_v54, %v14105_v40  ;;  %4950 = vst [vmem:[#allocation2 + $0x28] sm:$0xff] %v16125_v3  ;;  %v4842_v31 = vadd.f32 %v4841_v39, %v16100_v4  ;;  %v5150_v11 = vmul.f32 %v16113_v54, %v14121_v48 }
 0x847   :  { %v16132_v41 = vsel %vm4902_vm11, %v4887_v44, %v4935_v55  ;;  %vm4903_vm13 = vcmp.ge.f32.partialorder %v4891_v0, 0.0  ;;  %v4936_v38 = vmul.f32 %v16102_v53, %v4891_v0  ;;  %v4893_v49 = vadd.f32 %v4892_v47, %v4840_v61 }
 0x848   :  { %4951 = vst [vmem:[#allocation2 + $0x30] sm:$0xff] %v16132_v41  ;;  %v4894_v20 = vpop.f32.mrf.mxu0  ;;  %5288 = vrot.lane.b32.xlu1 %v13146_v58, %s13864_s25  ;;  %v13147_v30 = vpack.c.bf16 %v5246_v22, %v5246_v22  ;;  %v4844_v1 = vadd.f32 %v4843_v17, %v16100_v4  ;;  %v13138_v12 = vpack.c.bf16 %v5149_v62, %v16140_v2 }
 0x849   :  { %v16144_v60 = vsel %vm4903_vm13, %v4891_v0, %v4936_v38  ;;  %v4895_v46 = vadd.f32 %v4894_v20, %v4842_v31  ;;  %vm4904_vm14 = vcmp.ge.f32.partialorder %v4893_v49, 0.0  ;;  %v4937_v6 = vmul.f32 %v16102_v53, %v4893_v49 }
 0x84a   :  { %4952 = vst [vmem:[#allocation2 + $0x48] sm:$0xff] %v16144_v60  ;;  %v4896_v5 = vpop.f32.mrf.mxu0  ;;  %5290 = vrot.lane.b32.xlu0 %v13147_v30, %s13864_s25  ;;  %v4969_v50 = vmul.f32 %v16106_v7, %v14189_v37  ;;  %v13139_v4 = vpack.c.bf16 %v5150_v11, %v5150_v11  ;;  %v16159_v53 = vmul.f32 %v16088_v42, %v14178_v26 }
 0x84b   :  { %vm4905_vm15 = vcmp.ge.f32.partialorder %v4895_v46, 0.0  ;;  %v4938_v18 = vmul.f32 %v16104_v57, %v4895_v46  ;;  %v4897_v56 = vadd.f32 %v4896_v5, %v4844_v1  ;;  %v16154_v23 = vsel %vm4904_vm14, %v4893_v49, %v4937_v6 }
 0x84c   :  { %5192 = vrot.lane.b32.xlu1 %v13138_v12, %s13863_s23  ;;  %v4970_v19 = vmul.f32 %v16113_v54, %v14153_v14  ;;  %4953 = vst [vmem:[#allocation2 + $0x50] sm:$0xff] %v16154_v23  ;;  %v13122_v32 = vpack.c.bf16 %v4969_v50, %v16159_v53  ;;  %v13174_v36 = vpack.c.bf16 %v16113_v54, %v16106_v7  ;;  %v19543_v12 = vld [vmem:[#allocation35_spill] sm:$0xff] }
 0x84d   :  { %v16164_v15 = vsel %vm4905_vm15, %v4895_v46, %v4938_v18  ;;  %vm4906_vm10 = vcmp.ge.f32.partialorder %v4897_v56, 0.0  ;;  %v4939_v16 = vmul.f32 %v16104_v57, %v4897_v56  ;;  %v5249_v57 = vmul.f32 %v16132_v41, %v14105_v40  ;;  %v19544_v18 = vld [vmem:[#allocation36_spill] sm:$0xff] }
 0x84e   :  { %4954 = vst [vmem:[#allocation2 + $0x68] sm:$0xff] %v16164_v15  ;;  %5194 = vrot.lane.b32.xlu0 %v13139_v4, %s13863_s23  ;;  %v13123_v26 = vpack.c.bf16 %v4970_v19, %v4970_v19  ;;  %v5248_v8 = vmul.f32 %v16125_v3, %v14114_v43  ;;  %v5153_v63 = vmul.f32 %v16132_v41, %v14121_v48 }
 0x84f   :  { %v16170_v25 = vsel %vm4906_vm10, %v4897_v56, %v4939_v16  ;;  %v13133_v9 = vpack.c.bf16 %v16132_v41, %v16132_v41  ;;  %v5152_v45 = vmul.f32 %v16125_v3, %v14129_v52  ;;  %v13132_v13 = vpack.c.bf16 %v16125_v3, %v16088_v42 }
 0x850   :  { %4955 = vst [vmem:[#allocation2 + $0x70] sm:$0xff] %v16170_v25  ;;  %5012 = vrot.lane.b32.xlu1 %v13122_v32, %s13868_s27  ;;  %v13149_v35 = vpack.c.bf16 %v5249_v57, %v5249_v57  ;;  %v13148_v44 = vpack.c.bf16 %v5248_v8, %v16121_v29  ;;  %v13141_v59 = vpack.c.bf16 %v5153_v63, %v5153_v63 }
 0x851   :  { %v16194_v39 = vmul.f32 %v16144_v60, %v14082_v27  ;;  %v16198_v51 = vmul.f32 %v16154_v23, %v14095_v33  ;;  %v13140_v24 = vpack.c.bf16 %v5152_v45, %v16140_v2  ;;  %v4973_v55 = vmul.f32 %v16132_v41, %v14153_v14 }
 0x852   :  { %5014 = vrot.lane.b32.xlu0 %v13123_v26, %s13868_s27  ;;  %v16206_v0 = vmul.f32 %v16106_v7, %v14082_v27  ;;  %v16210_v62 = vmul.f32 %v16113_v54, %v14095_v33  ;;  %v16216_v17 = vmul.f32 %v16125_v3, %v14082_v27  ;;  %v16220_v47 = vmul.f32 %v16132_v41, %v14095_v33 }
 0x853   :  { %v13170_v61 = vpack.c.bf16 %v16198_v51, %v16194_v39  ;;  %v16224_v58 = vmul.f32 %v16144_v60, %v14084_v28  ;;  %v16231_v31 = vmul.f32 %v16154_v23, %v14100_v34  ;;  %v16235_v38 = vmul.f32 %v16106_v7, %v14084_v28  ;;  %v16424_v39 = vpop.permute.xlu0 %5610 }
 0x854   :  { %5600 = vrot.lane.b32.xlu1 %v13174_v36, %s13870_s7  ;;  %v13166_v22 = vpack.c.bf16 %v16210_v62, %v16206_v0  ;;  %v16239_v49 = vmul.f32 %v16113_v54, %v14100_v34  ;;  %v13168_v20 = vpack.c.bf16 %v16220_v47, %v16216_v17  ;;  %v16245_v30 = vmul.f32 %v16125_v3, %v14084_v28  ;;  %v16460_v47 = vld [vmem:[#allocation9] sm:$0xff] }
 0x855   :  { %v16249_v11 = vmul.f32 %v16132_v41, %v14100_v34  ;;  %v16253_v1 = vmul.f32 %v16164_v15, %v14082_v27  ;;  %v13162_v46 = vpack.c.bf16 %v16231_v31, %v16224_v58  ;;  %v16262_v5 = vmul.f32 %v16170_v25, %v14095_v33 }
 0x856   :  { %5102 = vrot.lane.b32.xlu0 %v13133_v9, %s13854_s24  ;;  %v13158_v6 = vpack.c.bf16 %v16239_v49, %v16235_v38  ;;  %v16266_v50 = vmul.f32 %v16144_v60, %v19543_v12  ;;  %v16272_v56 = vmul.f32 %v16154_v23, %v19544_v18  ;;  %v16276_v4 = vmul.f32 %v16164_v15, %v14084_v28  ;;  %v12356_v49 = vld [vmem:[%s19426_s8 + $0x80] sm:$0xff] }
 0x857   :  { %v13160_v27 = vpack.c.bf16 %v16249_v11, %v16245_v30  ;;  %v16280_v19 = vmul.f32 %v16170_v25, %v14100_v34  ;;  %v4972_v33 = vmul.f32 %v16125_v3, %v14189_v37  ;;  %v13172_v16 = vpack.c.bf16 %v16262_v5, %v16253_v1  ;;  %v16435_v0 = vpop.permute.xlu0 %5614 }
 0x858   :  { %5100 = vrot.lane.b32.xlu1 %v13132_v13, %s13854_s24  ;;  %v16289_v32 = vmul.f32 %v16106_v7, %v19543_v12  ;;  %v16293_v28 = vmul.f32 %v16113_v54, %v19544_v18  ;;  %v13186_v34 = vpack.c.bf16 %v16272_v56, %v16266_v50  ;;  %v16301_v36 = vmul.f32 %v16164_v15, %v19543_v12 }
 0x859   :  { %v13164_v26 = vpack.c.bf16 %v16280_v19, %v16276_v4  ;;  %v16305_v57 = vmul.f32 %v16170_v25, %v19544_v18  ;;  %v13125_v7 = vpack.c.bf16 %v4973_v55, %v4973_v55  ;;  %v16312_v8 = vmul.f32 %v16125_v3, %v19543_v12 }
 0x85a   :  { %5294 = vrot.lane.b32.xlu0 %v13149_v35, %s13864_s25  ;;  %v13182_v54 = vpack.c.bf16 %v16293_v28, %v16289_v32  ;;  %v16316_v63 = vmul.f32 %v16132_v41, %v19544_v18  ;;  %v13124_v45 = vpack.c.bf16 %v4972_v33, %v16159_v53  ;;  %v13135_v35 = vpack.c.bf16 %v16154_v23, %v16154_v23 }
 0x85b   :  { %v13188_v9 = vpack.c.bf16 %v16305_v57, %v16301_v36  ;;  %v5156_v55 = vmul.f32 %v16154_v23, %v14121_v48  ;;  %v13134_v12 = vpack.c.bf16 %v16144_v60, %v16088_v42  ;;  %v5251_v18 = vmul.f32 %v16144_v60, %v14114_v43 }
 0x85c   :  { %5292 = vrot.lane.b32.xlu1 %v13148_v44, %s13864_s25  ;;  %v13184_v13 = vpack.c.bf16 %v16316_v63, %v16312_v8  ;;  %v5252_v44 = vmul.f32 %v16154_v23, %v14105_v40  ;;  %v12317_v58 = vcombine.high %v16460_v47, %v16460_v47 }
 0x85d   :  { %v13143_v33 = vpack.c.bf16 %v5156_v55, %v5156_v55 }
 0x85e   :  { %5198 = vrot.lane.b32.xlu0 %v13141_v59, %s13863_s23  ;;  %v13176_v59 = vpack.c.bf16 %v16132_v41, %v16125_v3  ;;  %v4976_v3 = vmul.f32 %v16154_v23, %v14153_v14  ;;  %v13150_v41 = vpack.c.bf16 %v5251_v18, %v16121_v29  ;;  %v13178_v18 = vpack.c.bf16 %v16154_v23, %v16144_v60 }
 0x85f   :  { %5999 = vmatprep.mubr.bf16.mxu0 %v12317_v58 }
 0x860   :  { %5196 = vrot.lane.b32.xlu1 %v13140_v24, %s13863_s23  ;;  %v13151_v24 = vpack.c.bf16 %v5252_v44, %v5252_v44  ;;  %v4975_v44 = vmul.f32 %v16144_v60, %v14189_v37 }
 0x862   :  { %5018 = vrot.lane.b32.xlu0 %v13125_v7, %s13868_s27  ;;  %v5155_v7 = vmul.f32 %v16144_v60, %v14129_v52  ;;  %v13126_v55 = vpack.c.bf16 %v4975_v44, %v16159_v53 }
 0x864   :  { %5016 = vrot.lane.b32.xlu1 %v13124_v45, %s13868_s27  ;;  %v13127_v45 = vpack.c.bf16 %v4976_v3, %v4976_v3  ;;  %v5254_v3 = vmul.f32 %v16164_v15, %v14114_v43 }
 0x866   :  { %5106 = vrot.lane.b32.xlu0 %v13135_v35, %s13854_s24  ;;  %v13142_v35 = vpack.c.bf16 %v5155_v7, %v16140_v2  ;;  %v19545_v7 = vld [vmem:[#allocation31_spill] sm:$0xff]  ;;  %v13152_v23 = vpack.c.bf16 %v5254_v3, %v16121_v29  ;;  %v13180_v29 = vpack.c.bf16 %v16170_v25, %v16164_v15 }
 0x867   :  { %v5480_v60 = vmul.f32 %v16088_v42, %v19545_v7 }
 0x868   :  { %5604 = vrot.lane.b32.xlu1 %v13176_v59, %s13870_s7  ;;  %v13137_v59 = vpack.c.bf16 %v16170_v25, %v16170_v25 }
 0x86a   :  { %5298 = vrot.lane.b32.xlu0 %v13151_v24, %s13864_s25  ;;  %v5255_v24 = vmul.f32 %v16170_v25, %v14105_v40  ;;  %v13136_v40 = vpack.c.bf16 %v16164_v15, %v16088_v42 }
 0x86c   :  { %5104 = vrot.lane.b32.xlu1 %v13134_v12, %s13854_s24  ;;  %v13153_v12 = vpack.c.bf16 %v5255_v24, %v5255_v24 }
 0x86e   :  { %5202 = vrot.lane.b32.xlu0 %v13143_v33, %s13863_s23  ;;  %v5159_v33 = vmul.f32 %v16170_v25, %v14121_v48  ;;  %v5158_v48 = vmul.f32 %v16164_v15, %v14129_v52  ;;  %v4979_v52 = vmul.f32 %v16170_v25, %v14153_v14 }
 0x870   :  { %5296 = vrot.lane.b32.xlu1 %v13150_v41, %s13864_s25  ;;  %v13145_v41 = vpack.c.bf16 %v5159_v33, %v5159_v33  ;;  %v13144_v43 = vpack.c.bf16 %v5158_v48, %v16140_v2  ;;  %v13129_v2 = vpack.c.bf16 %v4979_v52, %v4979_v52 }
 0x872   :  { %5022 = vrot.lane.b32.xlu0 %v13127_v45, %s13868_s27  ;;  %v4978_v45 = vmul.f32 %v16164_v15, %v14189_v37  ;;  %v19546_v37 = vld [vmem:[#allocation32_spill] sm:$0xff]  ;;  %v19547_v15 = vld [vmem:[#allocation34_spill] sm:$0xff] }
 0x873   :  { %v5660_v25 = vmul.f32 %v16088_v42, %v19547_v15 }
 0x874   :  { %5200 = vrot.lane.b32.xlu1 %v13142_v35, %s13863_s23  ;;  %v13128_v35 = vpack.c.bf16 %v4978_v45, %v16159_v53  ;;  %v5384_v53 = vmul.f32 %v16088_v42, %v19546_v37  ;;  %v16443_v42 = vpop.permute.xlu0 %5602 }
 0x875   :  { %v13187_v51 = vpack.c.bf16 %v5660_v25, %v5660_v25 }
 0x876   :  { %5110 = vrot.lane.b32.xlu0 %v13137_v59, %s13854_s24  ;;  %v13163_v14 = vpack.c.bf16 %v5384_v53, %v5384_v53 }
 0x878   :  { %5020 = vrot.lane.b32.xlu1 %v13126_v55, %s13868_s27 }
 0x87a   :  { %5302 = vrot.lane.b32.xlu0 %v13153_v12, %s13864_s25 }
 0x87c   :  { %5608 = vrot.lane.b32.xlu1 %v13178_v18, %s13870_s7 }
 0x87e   :  { %5606 = vrot.lane.b32.xlu0 %v16092_v21, %s13870_s7  ;;  %v13171_v21 = vpack.c.bf16 %v5480_v60, %v5480_v60 }
 0x880   :  { %5108 = vrot.lane.b32.xlu1 %v13136_v40, %s13854_s24 }
 0x882   :  { %5206 = vrot.lane.b32.xlu0 %v13145_v41, %s13863_s23 }
 0x884   :  { %5300 = vrot.lane.b32.xlu1 %v13152_v23, %s13864_s25 }
 0x886   :  { %5526 = vrot.lane.b32.xlu0 %v13171_v21, %s13866_s26 }
 0x888   :  { %5204 = vrot.lane.b32.xlu1 %v13144_v43, %s13863_s23 }
 0x88a   :  { %5530 = vrot.lane.b32.xlu0 %v13171_v21, %s13866_s26 }
 0x88c   :  { %5024 = vrot.lane.b32.xlu1 %v13128_v35, %s13868_s27 }
 0x88e   :  { %5518 = vrot.lane.b32.xlu0 %v13171_v21, %s13866_s26 }
 0x890   :  { %5612 = vrot.lane.b32.xlu1 %v13180_v29, %s13870_s7 }
 0x892   :  { %5026 = vrot.lane.b32.xlu0 %v13129_v2, %s13868_s27 }
 0x894   :  { %5524 = vrot.lane.b32.xlu1 %v13170_v61, %s13866_s26 }
 0x896   :  { %5522 = vrot.lane.b32.xlu0 %v13171_v21, %s13866_s26 }
 0x898   :  { %5516 = vrot.lane.b32.xlu1 %v13166_v22, %s13866_s26 }
 0x89a   :  { %5430 = vrot.lane.b32.xlu0 %v13163_v14, %s13865_s3 }
 0x89c   :  { %5520 = vrot.lane.b32.xlu1 %v13168_v20, %s13866_s26 }
 0x89e   :  { %5434 = vrot.lane.b32.xlu0 %v13163_v14, %s13865_s3 }
 0x8a0   :  { %5428 = vrot.lane.b32.xlu1 %v13162_v46, %s13865_s3 }
 0x8a2   :  { %5422 = vrot.lane.b32.xlu0 %v13163_v14, %s13865_s3 }
 0x8a4   :  { %5420 = vrot.lane.b32.xlu1 %v13158_v6, %s13865_s3 }
 0x8a6   :  { %5426 = vrot.lane.b32.xlu0 %v13163_v14, %s13865_s3 }
 0x8a8   :  { %5424 = vrot.lane.b32.xlu1 %v13160_v27, %s13865_s3 }
 0x8aa   :  { %5706 = vrot.lane.b32.xlu0 %v13187_v51, %s13867_s10 }
 0x8ac   :  { %5528 = vrot.lane.b32.xlu1 %v13172_v16, %s13866_s26 }
 0x8ae   :  { %5710 = vrot.lane.b32.xlu0 %v13187_v51, %s13867_s10 }
 0x8b0   :  { %5704 = vrot.lane.b32.xlu1 %v13186_v34, %s13867_s10 }
 0x8b2   :  { %5698 = vrot.lane.b32.xlu0 %v13187_v51, %s13867_s10 }
 0x8b4   :  { %5432 = vrot.lane.b32.xlu1 %v13164_v26, %s13865_s3 }
 0x8b6   :  { %v16449_v62 = vpop.permute.xlu1 %5096  ;;  %5702 = vrot.lane.b32.xlu0 %v13187_v51, %s13867_s10 }
 0x8b8   :  { %5696 = vrot.lane.b32.xlu1 %v13182_v54, %s13867_s10  ;;  %v16456_v61 = vpop.permute.xlu0 %5098 }
 0x8ba   :  { %v16458_v17 = vpop.permute.xlu1 %5288 }
 0x8bb   :  { %v5304_v41 = vrot.slane %v16458_v17, 4 }
 0x8bc   :  { %5708 = vrot.lane.b32.xlu1 %v13188_v9, %s13867_s10  ;;  %v5291_v22 = vpop.permute.xlu0 %5290 }
 0x8bd   :  { %v5305_v18 = vrot.slane %v5291_v22, 4 }
 0x8be   :  { %v16468_v31 = vpop.permute.xlu1 %5192 }
 0x8bf   :  { %v5312_v21 = vsel %vm586_vm8, %v5304_v41, %v5305_v18 }
 0x8c0   :  { %5700 = vrot.lane.b32.xlu1 %v13184_v13, %s13867_s10  ;;  %v16474_v38 = vpop.permute.xlu0 %5194  ;;  %v5313_v22 = vsel %vm756_vm2, %v16458_v17, %v5312_v21 }
 0x8c1   :  { %v5209_v58 = vrot.slane %v16474_v38, 4 }
 0x8c2   :  { %v16479_v20 = vpop.permute.xlu1 %5012 }
 0x8c4   :  { %6053 = vperm.xlu1 %13559, %v12356_v49   ;;  %v16481_v30 = vpop.permute.xlu0 %5014 }
 0x8c6   :  { %v16483_v11 = vpop.permute.xlu1 %5600 }
 0x8c8   :  { %v16485_v1 = vpop.permute.xlu0 %5102 }
 0x8ca   :  { %v16487_v46 = vpop.permute.xlu1 %5100 }
 0x8cc   :  { %v5295_v6 = vpop.permute.xlu0 %5294 }
 0x8cd   :  { %v5307_v55 = vrot.slane %v5295_v6, 4 }
 0x8ce   :  { %v5293_v5 = vpop.permute.xlu1 %5292 }
 0x8cf   :  { %v5306_v44 = vrot.slane %v5293_v5, 4 }
 0x8d0   :  { %v5199_v50 = vpop.permute.xlu0 %5198 }
 0x8d1   :  { %v5314_v40 = vsel %vm586_vm8, %v5306_v44, %v5307_v55  ;;  %v5211_v6 = vrot.slane %v5199_v50, 4  ;;  %v5208_v44 = vrot.slane %v16468_v31, 4 }
 0x8d2   :  { %v16489_v27 = vpop.permute.xlu1 %5196  ;;  %v5315_v43 = vsel %vm756_vm2, %v5293_v5, %v5314_v40 }
 0x8d3   :  { %v5210_v52 = vrot.slane %v16489_v27, 4  ;;  %v12331_v17 = vcombine.low %v5313_v22, %v5315_v43 }
 0x8d4   :  { %v16491_v56 = vpop.permute.xlu0 %5018 }
 0x8d5   :  { %v5218_v38 = vsel %vm586_vm8, %v5210_v52, %v5211_v6 }
 0x8d6   :  { %v16493_v4 = vpop.permute.xlu1 %5016 }
 0x8d8   :  { %v16495_v19 = vpop.permute.xlu0 %5106 }
 0x8da   :  { %v16497_v16 = vpop.permute.xlu1 %5604 }
 0x8dc   :  { %v5299_v32 = vpop.permute.xlu0 %5298 }
 0x8dd   :  { %v5309_v33 = vrot.slane %v5299_v32, 4 }
 0x8de   :  { %v16499_v28 = vpop.permute.xlu1 %5104 }
 0x8df   :  { %v5116_v18 = vrot.slane %v16499_v28, 4 }
 0x8e0   :  { %v5203_v34 = vpop.permute.xlu0 %5202 }
 0x8e1   :  { %v5213_v29 = vrot.slane %v5203_v34, 4  ;;  %v12332_v34 = vcombine.high %v5313_v22, %v5315_v43 }
 0x8e2   :  { %v5297_v26 = vpop.permute.xlu1 %5296 }
 0x8e3   :  { %v5308_v24 = vrot.slane %v5297_v26, 4 }
 0x8e4   :  { %v16501_v36 = vpop.permute.xlu0 %5022 }
 0x8e5   :  { %v5316_v7 = vsel %vm586_vm8, %v5308_v24, %v5309_v33  ;;  %v5033_v22 = vrot.slane %v16501_v36, 4 }
 0x8e6   :  { %v5201_v57 = vpop.permute.xlu1 %5200  ;;  %v5317_v2 = vsel %vm756_vm2, %v5297_v26, %v5316_v7  ;;  %v5114_v7 = vrot.slane %v16487_v46, 4 }
 0x8e7   :  { %v5212_v45 = vrot.slane %v5201_v57, 4 }
 0x8e8   :  { %v5111_v54 = vpop.permute.xlu0 %5110 }
 0x8e9   :  { %v5220_v5 = vsel %vm586_vm8, %v5212_v45, %v5213_v29  ;;  %v5119_v33 = vrot.slane %v5111_v54, 4  ;;  %v5113_v54 = vrot.slane %v16456_v61, 4  ;;  %v5115_v45 = vrot.slane %v16485_v1, 4 }
 0x8ea   :  { %v16503_v8 = vpop.permute.xlu1 %5020  ;;  %v5221_v50 = vsel %vm698_vm1, %v5201_v57, %v5220_v5 }
 0x8ec   :  { %v5303_v63 = vpop.permute.xlu0 %5302 }
 0x8ed   :  { %v5311_v60 = vrot.slane %v5303_v63, 4 }
 0x8ee   :  { %v16505_v9 = vpop.permute.xlu1 %5608 }
 0x8f0   :  { %v16507_v13 = vpop.permute.xlu0 %5606 }
 0x8f2   :  { %v16509_v59 = vpop.permute.xlu1 %5108 }
 0x8f3   :  { %v5118_v24 = vrot.slane %v16509_v59, 4 }
 0x8f4   :  { %v5207_v12 = vpop.permute.xlu0 %5206 }
 0x8f5   :  { %v5215_v14 = vrot.slane %v5207_v12, 4  ;;  %v5216_v12 = vsel %vm586_vm8, %v5208_v44, %v5209_v58  ;;  %v5126_v57 = vsel %vm586_vm8, %v5118_v24, %v5119_v33  ;;  %v5030_v58 = vrot.slane %v16493_v4, 4 }
 0x8f6   :  { %v5301_v3 = vpop.permute.xlu1 %5300  ;;  %v5127_v52 = vsel %vm631_vm7, %v16509_v59, %v5126_v57  ;;  %v5028_v24 = vrot.slane %v16479_v20, 4  ;;  %v5620_v33 = vrot.slane %v16505_v9, 4 }
 0x8f7   :  { %v5310_v23 = vrot.slane %v5301_v3, 4 }
 0x8f8   :  { %v16514_v48 = vpop.permute.xlu0 %5526 }
 0x8f9   :  { %v5318_v35 = vsel %vm586_vm8, %v5310_v23, %v5311_v60  ;;  %v5117_v60 = vrot.slane %v16495_v19, 4  ;;  %v5217_v23 = vsel %vm698_vm1, %v16468_v31, %v5216_v12  ;;  %v5112_v19 = vrot.slane %v16449_v62, 4 }
 0x8fa   :  { %v5319_v37 = vsel %vm756_vm2, %v5301_v3, %v5318_v35  ;;  %v5205_v53 = vpop.permute.xlu1 %5204  ;;  %v5219_v3 = vsel %vm698_vm1, %v16489_v27, %v5218_v38  ;;  %v5623_v12 = vrot.slane %v16435_v0, 4 }
 0x8fb   :  { %v12333_v15 = vcombine.low %v5317_v2, %v5319_v37  ;;  %v5214_v25 = vrot.slane %v5205_v53, 4  ;;  %v12334_v51 = vcombine.high %v5317_v2, %v5319_v37  ;;  %v5124_v27 = vsel %vm586_vm8, %v5116_v18, %v5117_v60 }
 0x8fc   :  { %v16525_v49 = vpop.permute.xlu0 %5530  ;;  %v12328_v35 = vcombine.high %v5217_v23, %v5219_v3  ;;  %v5122_v2 = vsel %vm586_vm8, %v5114_v7, %v5115_v45  ;;  %v12327_v37 = vcombine.low %v5217_v23, %v5219_v3  ;;  %v5125_v61 = vsel %vm631_vm7, %v16499_v28, %v5124_v27 }
 0x8fd   :  { %v5222_v32 = vsel %vm586_vm8, %v5214_v25, %v5215_v14  ;;  %5967 = vmatprep.subr.bf16.mxu0 %v12334_v51  ;;  %v5032_v14 = vrot.slane %v16503_v8, 4  ;;  %v5123_v25 = vsel %vm631_vm7, %v16487_v46, %v5122_v2  ;;  %v12325_v5 = vcombine.low %v5125_v61, %v5127_v52 }
 0x8fe   :  { %v5223_v26 = vsel %vm698_vm1, %v5205_v53, %v5222_v32  ;;  %v5025_v63 = vpop.permute.xlu1 %5024  ;;  %5968 = vmatpush1.bf16.msra.mxu0 %v12333_v15  ;;  %v5120_v53 = vsel %vm586_vm8, %v5112_v19, %v5113_v54  ;;  %v12326_v15 = vcombine.high %v5125_v61, %v5127_v52  ;;  %v5031_v46 = vrot.slane %v16491_v56, 4 }
 0x8ff   :  { %5969 = vmatprep.subr.bf16.mxu0 %v12332_v34  ;;  %v12330_v40 = vcombine.high %v5221_v50, %v5223_v26  ;;  %v12329_v21 = vcombine.low %v5221_v50, %v5223_v26  ;;  %v5034_v59 = vrot.slane %v5025_v63, 4  ;;  %v5121_v6 = vsel %vm631_vm7, %v16449_v62, %v5120_v53 }
 0x900   :  { %v16534_v55 = vpop.permute.xlu0 %5518  ;;  %v5029_v34 = vrot.slane %v16481_v30, 4  ;;  %v5040_v26 = vsel %vm586_vm8, %v5032_v14, %v5033_v22  ;;  %v12324_v44 = vcombine.high %v5121_v6, %v5123_v25  ;;  %v12323_v50 = vcombine.low %v5121_v6, %v5123_v25 }
 0x901   :  { %v5041_v30 = vsel %vm588_vm6, %v16503_v8, %v5040_v26  ;;  %v5621_v7 = vrot.slane %v16424_v39, 4  ;;  %v5619_v60 = vrot.slane %v16507_v13, 4  ;;  %v5617_v45 = vrot.slane %v16443_v42, 4 }
 0x902   :  { %v16540_v41 = vpop.permute.xlu1 %5612  ;;  %5970 = vmatpush1.bf16.msra.mxu0 %v12331_v17  ;;  %v5038_v17 = vsel %vm586_vm8, %v5030_v58, %v5031_v46  ;;  %v5036_v18 = vsel %vm586_vm8, %v5028_v24, %v5029_v34  ;;  %v5539_v58 = vrot.slane %v16525_v49, 4  ;;  %v5533_v22 = vrot.slane %v16534_v55, 4 }
 0x903   :  { %5971 = vmatprep.subr.bf16.mxu0 %v12330_v40  ;;  %v5622_v62 = vrot.slane %v16540_v41, 4  ;;  %v5039_v40 = vsel %vm588_vm6, %v16493_v4, %v5038_v17  ;;  %v5037_v0 = vsel %vm588_vm6, %v16479_v20, %v5036_v18  ;;  %v5618_v4 = vrot.slane %v16497_v16, 4 }
 0x904   :  { %v5027_v43 = vpop.permute.xlu0 %5026  ;;  %v12320_v54 = vcombine.high %v5037_v0, %v5039_v40  ;;  %v12319_v27 = vcombine.low %v5037_v0, %v5039_v40 }
 0x905   :  { %v5035_v31 = vrot.slane %v5027_v43, 4  ;;  %v5630_v8 = vsel %vm586_vm8, %v5622_v62, %v5623_v12  ;;  %v5628_v43 = vsel %vm586_vm8, %v5620_v33, %v5621_v7  ;;  %v5626_v20 = vsel %vm586_vm8, %v5618_v4, %v5619_v60 }
 0x906   :  { %v16552_v29 = vpop.permute.xlu1 %5524  ;;  %5972 = vmatpush1.bf16.msra.mxu0 %v12329_v21  ;;  %v5616_v21 = vrot.slane %v16483_v11, 4  ;;  %v5631_v39 = vsel %vm933_vm9, %v16540_v41, %v5630_v8  ;;  %v5627_v41 = vsel %vm933_vm9, %v16497_v16, %v5626_v20 }
 0x907   :  { %5973 = vmatprep.subr.bf16.mxu0 %v12328_v35  ;;  %v5042_v28 = vsel %vm586_vm8, %v5034_v59, %v5035_v31  ;;  %v5629_v35 = vsel %vm933_vm9, %v16505_v9, %v5628_v43  ;;  %v5537_v9 = vrot.slane %v16514_v48, 4 }
 0x908   :  { %v16558_v1 = vpop.permute.xlu0 %5522  ;;  %v5043_v36 = vsel %vm588_vm6, %v5025_v63, %v5042_v28  ;;  %v5624_v19 = vsel %vm586_vm8, %v5616_v21, %v5617_v45  ;;  %v12350_v2 = vcombine.high %v5629_v35, %v5631_v39  ;;  %v12349_v53 = vcombine.low %v5629_v35, %v5631_v39 }
 0x909   :  { %v12322_v63 = vcombine.high %v5041_v30, %v5043_v36  ;;  %v12321_v57 = vcombine.low %v5041_v30, %v5043_v36  ;;  %v5625_v61 = vsel %vm933_vm9, %v16483_v11, %v5624_v19  ;;  %v5535_v14 = vrot.slane %v16558_v1, 4 }
 0x90a   :  { %v16564_v51 = vpop.permute.xlu1 %5516  ;;  %5974 = vmatpush1.bf16.msra.mxu0 %v12327_v37  ;;  %v5536_v37 = vrot.slane %v16552_v29, 4  ;;  %v12348_v25 = vcombine.high %v5625_v61, %v5627_v41 }
 0x90b   :  { %5975 = vmatprep.subr.bf16.mxu0 %v12326_v15  ;;  %v5532_v59 = vrot.slane %v16564_v51, 4 }
 0x90c   :  { %v16571_v32 = vpop.permute.xlu0 %5430  ;;  %v5544_v28 = vsel %vm586_vm8, %v5536_v37, %v5537_v9 }
 0x90d   :  { %v5540_v48 = vsel %vm586_vm8, %v5532_v59, %v5533_v22  ;;  %v5545_v34 = vsel %vm658_vm4, %v16552_v29, %v5544_v28  ;;  %v5332_v28 = vld [vmem:[#allocation2 + $0x48] sm:$0xff] }
 0x90e   :  { %v16576_v38 = vpop.permute.xlu1 %5520  ;;  %5976 = vmatpush1.bf16.msra.mxu0 %v12325_v5  ;;  %v12347_v5 = vcombine.low %v5625_v61, %v5627_v41  ;;  %v5541_v62 = vsel %vm658_vm4, %v16564_v51, %v5540_v48  ;;  %v5333_v41 = vld [vmem:[#allocation2 + $0x50] sm:$0xff] }
 0x90f   :  { %5977 = vmatprep.subr.bf16.mxu0 %v12324_v44  ;;  %v5534_v42 = vrot.slane %v16576_v38, 4 }
 0x910   :  { %v16584_v56 = vpop.permute.xlu0 %5434 }
 0x911   :  { %v5542_v6 = vsel %vm586_vm8, %v5534_v42, %v5535_v14  ;;  %v5443_v12 = vrot.slane %v16584_v56, 4 }
 0x912   :  { %v16591_v3 = vpop.permute.xlu1 %5428  ;;  %5978 = vmatpush1.bf16.msra.mxu0 %v12323_v50  ;;  %v5543_v49 = vsel %vm658_vm4, %v16576_v38, %v5542_v6  ;;  %v5441_v50 = vrot.slane %v16571_v32, 4 }
 0x913   :  { %5979 = vmatprep.subr.bf16.mxu0 %v12322_v63  ;;  %v5440_v26 = vrot.slane %v16591_v3, 4  ;;  %v12344_v38 = vcombine.high %v5541_v62, %v5543_v49  ;;  %v12343_v51 = vcombine.low %v5541_v62, %v5543_v49  ;;  %v6120_v62 = vld [vmem:[%s19548_s12 + $0xf0] sm:$0xff] }
 0x914   :  { %v16598_v23 = vpop.permute.xlu0 %5422 }
 0x915   :  { %v5448_v33 = vsel %vm586_vm8, %v5440_v26, %v5441_v50  ;;  %v5437_v63 = vrot.slane %v16598_v23, 4  ;;  %v5328_v26 = vld [vmem:[#allocation2 + $0x8] sm:$0xff] }
 0x916   :  { %v16605_v13 = vpop.permute.xlu1 %5420  ;;  %5980 = vmatpush1.bf16.msra.mxu0 %v12321_v57  ;;  %v5449_v0 = vsel %vm716_vm3, %v16591_v3, %v5448_v33  ;;  %v6119_v50 = vld [vmem:[%s19548_s12 + $0xe8] sm:$0xff]  ;;  %v6112_v33 = vld [vmem:[%s19548_s12 + $0xb0] sm:$0xff] }
 0x917   :  { %5981 = vmatprep.subr.bf16.mxu0 %v12320_v54  ;;  %v5436_v29 = vrot.slane %v16605_v13, 4 }
 0x918   :  { %v5427_v52 = vpop.permute.xlu0 %5426 }
 0x919   :  { %v5439_v30 = vrot.slane %v5427_v52, 4  ;;  %v5444_v32 = vsel %vm586_vm8, %v5436_v29, %v5437_v63  ;;  %v6118_v29 = vld [vmem:[%s19548_s12 + $0xe0] sm:$0xff]  ;;  %v6111_v63 = vld [vmem:[%s19548_s12 + $0xa8] sm:$0xff] }
 0x91a   :  { %v5425_v31 = vpop.permute.xlu1 %5424  ;;  %5982 = vmatpush1.bf16.msra.mxu0 %v12319_v27  ;;  %v5445_v54 = vsel %vm716_vm3, %v16605_v13, %v5444_v32  ;;  %v5335_v27 = vld [vmem:[#allocation2 + $0x70] sm:$0xff]  ;;  %v5334_v13 = vld [vmem:[#allocation2 + $0x68] sm:$0xff] }
 0x91b   :  { %5983 = vmatprep.subr.bf16.mxu0 %v12350_v2  ;;  %v5438_v44 = vrot.slane %v5425_v31, 4  ;;  %v13513_v61 = vpack.c.bf16 %v5335_v27, %v5333_v41  ;;  %v13512_v6 = vpack.c.bf16 %v5334_v13, %v5332_v28  ;;  %v6107_v32 = vld [vmem:[%s19548_s12 + $0x88] sm:$0xff]  ;;  %v6093_v27 = vld [vmem:[%s19548_s12 + $0x18] sm:$0xff]  ;;  %v6150_v41 = vld [vmem:[%s19548_s12 + $0x1e0] sm:$0xff] }
 0x91c   :  { %v5707_v15 = vpop.permute.xlu0 %5706  ;;  %v6146_v13 = vld [vmem:[%s19548_s12 + $0x1c0] sm:$0xff]  ;;  %v6136_v28 = vld [vmem:[%s19548_s12 + $0x170] sm:$0xff] }
 0x91d   :  { %v5446_v40 = vsel %vm586_vm8, %v5438_v44, %v5439_v30  ;;  %v5717_v39 = vrot.slane %v5707_v15, 4  ;;  %v5331_v15 = vld [vmem:[#allocation2 + $0x30] sm:$0xff] }
 0x91e   :  { %v5529_v16 = vpop.permute.xlu1 %5528  ;;  %5984 = vmatpush2.bf16.msra.mxu0 %v12349_v53  ;;  %v5447_v56 = vsel %vm716_vm3, %v5425_v31, %v5446_v40  ;;  %v6116_v30 = vld [vmem:[%s19548_s12 + $0xd0] sm:$0xff]  ;;  %v6110_v40 = vld [vmem:[%s19548_s12 + $0xa0] sm:$0xff] }
 0x91f   :  { %v5538_v11 = vrot.slane %v5529_v16, 4  ;;  %5985 = vmatprep.subr.bf16.mxu0 %v12348_v25  ;;  %v12340_v45 = vcombine.high %v5445_v54, %v5447_v56  ;;  %v12339_v31 = vcombine.low %v5445_v54, %v5447_v56  ;;  %v6103_v56 = vld [vmem:[%s19548_s12 + $0x68] sm:$0xff]  ;;  %v6097_v54 = vld [vmem:[%s19548_s12 + $0x38] sm:$0xff] }
 0x920   :  { %v5711_v24 = vpop.permute.xlu0 %5710 }
 0x921   :  { %v5546_v1 = vsel %vm586_vm8, %v5538_v11, %v5539_v58  ;;  %v5719_v35 = vrot.slane %v5711_v24, 4  ;;  %v5329_v11 = vld [vmem:[#allocation2 + $0x10] sm:$0xff]  ;;  %v12316_v24 = vcombine.low %v16460_v47, %v16460_v47  ;;  %v6117_v47 = vld [vmem:[%s19548_s12 + $0xd8] sm:$0xff] }
 0x922   :  { %v5547_v46 = vsel %vm658_vm4, %v5529_v16, %v5546_v1  ;;  %v5705_v55 = vpop.permute.xlu1 %5704  ;;  %5986 = vmatpush2.bf16.msra.mxu0 %v12347_v5  ;;  %v13511_v48 = vpack.c.bf16 %v5331_v15, %v5329_v11  ;;  %v5330_v1 = vld [vmem:[#allocation2 + $0x28] sm:$0xff]  ;;  %v6141_v15 = vld [vmem:[%s19548_s12 + $0x198] sm:$0xff]  ;;  %v6134_v11 = vld [vmem:[%s19548_s12 + $0x160] sm:$0xff] }
 0x923   :  { %v12345_v36 = vcombine.low %v5545_v34, %v5547_v46  ;;  %v12346_v17 = vcombine.high %v5545_v34, %v5547_v46  ;;  %v5716_v23 = vrot.slane %v5705_v55, 4  ;;  %v13510_v44 = vpack.c.bf16 %v5330_v1, %v5328_v26  ;;  %v6131_v1 = vld [vmem:[%s19548_s12 + $0x148] sm:$0xff] }
 0x924   :  { %v5699_v60 = vpop.permute.xlu0 %5698  ;;  %v6266_v26 = vld [vmem:[#allocation19] sm:$0x3] }
 0x925   :  { %5987 = vmatprep.subr.bf16.mxu0 %v12346_v17  ;;  %v5724_v3 = vsel %vm586_vm8, %v5716_v23, %v5717_v39  ;;  %v5713_v37 = vrot.slane %v5699_v60, 4  ;;  %v13592_v17 = vld [vmem:[#allocation9 + $0x8] ss:$0 sps:$4 sm:$0xff]   ;;  %v6106_v60 = vld [vmem:[%s19548_s12 + $0x80] sm:$0xff]  ;;  %v6100_v23 = vld [vmem:[%s19548_s12 + $0x50] sm:$0xff] }
 0x926   :  { %v5433_v18 = vpop.permute.xlu1 %5432  ;;  %5988 = vmatpush2.bf16.msra.mxu0 %v12345_v36  ;;  %v5725_v53 = vsel %vm547_vm5, %v5705_v55, %v5724_v3  ;;  %v6121_v36 = vld [vmem:[%s19548_s12 + $0xf8] sm:$0xff]  ;;  %v6096_v39 = vld [vmem:[%s19548_s12 + $0x30] sm:$0xff]  ;;  %v6091_v3 = vld [vmem:[%s19548_s12 + $0x8] sm:$0xff] }
 0x927   :  { %v5442_v7 = vrot.slane %v5433_v18, 4  ;;  %5989 = vmatprep.subr.bf16.mxu0 %v12344_v38  ;;  %v6115_v38 = vld [vmem:[%s19548_s12 + $0xc8] sm:$0xff] }
 0x928   :  { %v5703_v52 = vpop.permute.xlu0 %5702 }
 0x929   :  { %v5450_v8 = vsel %vm586_vm8, %v5442_v7, %v5443_v12  ;;  %v5715_v9 = vrot.slane %v5703_v52, 4  ;;  %v6114_v12 = vld [vmem:[%s19548_s12 + $0xc0] sm:$0xff]  ;;  %v6109_v7 = vld [vmem:[%s19548_s12 + $0x98] sm:$0xff] }
 0x92a   :  { %v5451_v57 = vsel %vm716_vm3, %v5433_v18, %v5450_v8  ;;  %v5697_v21 = vpop.permute.xlu1 %5696  ;;  %5990 = vmatpush2.bf16.msra.mxu0 %v12343_v51  ;;  %v6113_v18 = vld [vmem:[%s19548_s12 + $0xb8] sm:$0xff]  ;;  %v6108_v51 = vld [vmem:[%s19548_s12 + $0x90] sm:$0xff]  ;;  %v6090_v52 = vld [vmem:[%s19548_s12] sm:$0xff] }
 0x92b   :  { %v12341_v4 = vcombine.low %v5449_v0, %v5451_v57  ;;  %v12342_v43 = vcombine.high %v5449_v0, %v5451_v57  ;;  %v5712_v19 = vrot.slane %v5697_v21, 4  ;;  %v6105_v8 = vld [vmem:[%s19548_s12 + $0x78] sm:$0xff]  ;;  %v6104_v0 = vld [vmem:[%s19548_s12 + $0x70] sm:$0xff]  ;;  %v6102_v57 = vld [vmem:[%s19548_s12 + $0x60] sm:$0xff] }
 0x92d   :  { %5991 = vmatprep.subr.bf16.mxu0 %v12342_v43  ;;  %v5720_v25 = vsel %vm586_vm8, %v5712_v19, %v5713_v37  ;;  %v6098_v43 = vld [vmem:[%s19548_s12 + $0x40] sm:$0xff]  ;;  %v6153_v19 = vld [vmem:[%s19548_s12 + $0x1f8] sm:$0xff] }
 0x92e   :  { %v5709_v20 = vpop.permute.xlu1 %5708  ;;  %5992 = vmatpush2.bf16.msra.mxu0 %v12341_v4  ;;  %v5721_v34 = vsel %vm547_vm5, %v5697_v21, %v5720_v25  ;;  %v6101_v21 = vld [vmem:[%s19548_s12 + $0x58] sm:$0xff]  ;;  %v6099_v4 = vld [vmem:[%s19548_s12 + $0x48] sm:$0xff]  ;;  %v6140_v25 = vld [vmem:[%s19548_s12 + $0x190] sm:$0xff] }
 0x92f   :  { %v5718_v2 = vrot.slane %v5709_v20, 4  ;;  %5993 = vmatprep.subr.bf16.mxu0 %v12340_v45  ;;  %v6095_v45 = vld [vmem:[%s19548_s12 + $0x28] sm:$0xff]  ;;  %v6149_v37 = vld [vmem:[%s19548_s12 + $0x1d8] sm:$0xff] }
 0x931   :  { %v5726_v42 = vsel %vm586_vm8, %v5718_v2, %v5719_v35  ;;  %v6092_v35 = vld [vmem:[%s19548_s12 + $0x10] sm:$0xff] }
 0x932   :  { %v5727_v14 = vsel %vm547_vm5, %v5709_v20, %v5726_v42  ;;  %v5701_v59 = vpop.permute.xlu1 %5700  ;;  %5994 = vmatpush2.bf16.msra.mxu0 %v12339_v31  ;;  %v6094_v20 = vld [vmem:[%s19548_s12 + $0x20] sm:$0xff]  ;;  %v6152_v2 = vld [vmem:[%s19548_s12 + $0x1f0] sm:$0xff]  ;;  %v6151_v31 = vld [vmem:[%s19548_s12 + $0x1e8] sm:$0xff] }
 0x933   :  { %v12353_v58 = vcombine.low %v5725_v53, %v5727_v14  ;;  %v5714_v16 = vrot.slane %v5701_v59, 4  ;;  %5995 = vmatprep.subr.bf16.mxu0 %v13513_v61  ;;  %v12354_v22 = vcombine.high %v5725_v53, %v5727_v14  ;;  %v6148_v42 = vld [vmem:[%s19548_s12 + $0x1d0] sm:$0xff]  ;;  %v6147_v61 = vld [vmem:[%s19548_s12 + $0x1c8] sm:$0xff]  ;;  %v6145_v53 = vld [vmem:[%s19548_s12 + $0x1b8] sm:$0xff] }
 0x934   :  { %v6143_v14 = vld [vmem:[%s19548_s12 + $0x1a8] sm:$0xff] }
 0x935   :  { %v5722_v5 = vsel %vm586_vm8, %v5714_v16, %v5715_v9  ;;  %6020 = vmatprep.subr.bf16.mxu1 %v12354_v22  ;;  %v6144_v9 = vld [vmem:[%s19548_s12 + $0x1b0] sm:$0xff]  ;;  %v6138_v16 = vld [vmem:[%s19548_s12 + $0x180] sm:$0xff]  ;;  %v6137_v22 = vld [vmem:[%s19548_s12 + $0x178] sm:$0xff] }
 0x936   :  { %v5723_v49 = vsel %vm547_vm5, %v5701_v59, %v5722_v5  ;;  %5996 = vmatpush2.bf16.msra.mxu0 %v13512_v6  ;;  %6021 = vmatpush1.bf16.msra.mxu1 %v12353_v58  ;;  %v6142_v59 = vld [vmem:[%s19548_s12 + $0x1a0] sm:$0xff]  ;;  %v6139_v58 = vld [vmem:[%s19548_s12 + $0x188] sm:$0xff]  ;;  %v6133_v5 = vld [vmem:[%s19548_s12 + $0x158] sm:$0xff] }
 0x937   :  { %v12351_v46 = vcombine.low %v5721_v34, %v5723_v49  ;;  %5997 = vmatprep.subr.bf16.mxu0 %v13511_v48  ;;  %v12352_v55 = vcombine.high %v5721_v34, %v5723_v49  ;;  %v6135_v6 = vld [vmem:[%s19548_s12 + $0x168] sm:$0xff]  ;;  %v6132_v48 = vld [vmem:[%s19548_s12 + $0x150] sm:$0xff]  ;;  %v6130_v34 = vld [vmem:[%s19548_s12 + $0x140] sm:$0xff] }
 0x938   :  { %v6129_v49 = vld [vmem:[%s19548_s12 + $0x138] sm:$0xff] }
 0x939   :  { %6022 = vmatprep.subr.bf16.mxu1 %v12352_v55  ;;  %v6265_v55 = vld [vmem:[#allocation18] sm:$0x3] }
 0x93a   :  { %5998 = vmatpush2.bf16.msra.mxu0 %v13510_v44  ;;  %6023 = vmatpush1.bf16.msra.mxu1 %v12351_v46  ;;  %v6128_v46 = vld [vmem:[%s19548_s12 + $0x130] sm:$0xff]  ;;  %v6127_v44 = vld [vmem:[%s19548_s12 + $0x128] sm:$0xff] }
 0x93b   :  { %6154 = vmatprep.subr.mxu1 %v6121_v36  ;;  %v19549_v36 = vld [vmem:[#allocation29_spill] sm:$0xff] }
 0x93d   :  { %6000 = vmatmul.mubr.bf16.vlgmr.msra.gmra.mxu0 %v12316_v24  ;;  %12355 = vmatmul.mubr.msk.bf16.vlgmr.msra.gmra.mxu1 %vm2328_vm12, %v13592_v17  ;;  %v6281_v24 = vrot.slane %v6265_v55, %v19549_v36  ;;  %v19550_v17 = vld [vmem:[#allocation30_spill] sm:$0xff] }
 0x93e   :  { %6155 = vmatpush1.msra.mxu1 %v6120_v62  ;;  %v6277_v62 = vrot.slane %v6265_v55, %v19550_v17 }
 0x93f   :  { %6156 = vmatprep.subr.mxu1 %v6119_v50  ;;  %v6126_v50 = vld [vmem:[%s19548_s12 + $0x120] sm:$0xff]  ;;  %6577 = vrot.lane.b32.xlu1 %v6281_v24, %s13863_s23 }
 0x940   :  { %6157 = vmatpush1.msra.mxu1 %v6118_v29  ;;  %v6125_v29 = vld [vmem:[%s19548_s12 + $0x118] sm:$0xff]  ;;  %6575 = vrot.lane.b32.xlu0 %v6277_v62, %s13863_s23 }
 0x941   :  { %6158 = vmatprep.subr.mxu1 %v6117_v47  ;;  %v6388_v47 = vrot.slane %v6266_v26, %v19549_v36 }
 0x942   :  { %6159 = vmatpush1.msra.mxu1 %v6116_v30  ;;  %v6124_v30 = vld [vmem:[%s19548_s12 + $0x110] sm:$0xff] }
 0x943   :  { %6160 = vmatprep.subr.mxu1 %v6115_v38  ;;  %v6384_v38 = vrot.slane %v6266_v26, %v19550_v17  ;;  %6521 = vrot.lane.b32.xlu1 %v6388_v47, %s13864_s25 }
 0x944   :  { %6161 = vmatpush1.msra.mxu1 %v6114_v12  ;;  %v6123_v12 = vld [vmem:[%s19548_s12 + $0x108] sm:$0xff] }
 0x945   :  { %6162 = vmatprep.subr.mxu1 %v6113_v18  ;;  %v6122_v18 = vld [vmem:[%s19548_s12 + $0x100] sm:$0xff]  ;;  %6519 = vrot.lane.b32.xlu0 %v6384_v38, %s13864_s25 }
 0x946   :  { %6163 = vmatpush1.msra.mxu1 %v6112_v33  ;;  %v16867_v33 = vld [vmem:[#allocation2 + $0x18] sm:$0xff] }
 0x947   :  { %6164 = vmatprep.subr.mxu1 %v6111_v63  ;;  %6447 = vrot.lane.b32.xlu1 %v6281_v24, %s13865_s3  ;;  %v16871_v63 = vpack.c.bf16 %v16867_v33, %v16867_v33 }
 0x948   :  { %6165 = vmatpush1.msra.mxu1 %v6110_v40 }
 0x949   :  { %6166 = vmatprep.subr.mxu1 %v6109_v7  ;;  %6445 = vrot.lane.b32.xlu0 %v6277_v62, %s13865_s3 }
 0x94a   :  { %6167 = vmatpush1.msra.mxu1 %v6108_v51 }
 0x94b   :  { %6168 = vmatprep.subr.mxu1 %v6107_v32  ;;  %6391 = vrot.lane.b32.xlu1 %v6388_v47, %s13866_s26 }
 0x94c   :  { %6169 = vmatpush1.msra.mxu1 %v6106_v60 }
 0x94d   :  { %6170 = vmatprep.subr.mxu1 %v6105_v8  ;;  %6389 = vrot.lane.b32.xlu0 %v6384_v38, %s13866_s26  ;;  %v6054_v8 = vpop.permute.xlu1 %6053 }
 0x94e   :  { %6171 = vmatpush1.msra.mxu1 %v6104_v0 }
 0x94f   :  { %6172 = vmatprep.subr.mxu1 %v6103_v56  ;;  %6284 = vrot.lane.b32.xlu1 %v6281_v24, %s13867_s10 }
 0x950   :  { %6173 = vmatpush1.msra.mxu1 %v6102_v57 }
 0x951   :  { %6174 = vmatprep.subr.mxu1 %v6101_v21  ;;  %6282 = vrot.lane.b32.xlu0 %v6277_v62, %s13867_s10 }
 0x952   :  { %6175 = vmatpush1.msra.mxu1 %v6100_v23 }
 0x953   :  { %6176 = vmatprep.subr.mxu1 %v6099_v4  ;;  %6675 = vrot.lane.b32.xlu1 %v6388_v47, %s13868_s27 }
 0x954   :  { %6177 = vmatpush1.msra.mxu1 %v6098_v43 }
 0x955   :  { %6178 = vmatprep.subr.mxu1 %v6097_v54  ;;  %6673 = vrot.lane.b32.xlu0 %v6384_v38, %s13868_s27 }
 0x956   :  { %6179 = vmatpush1.msra.mxu1 %v6096_v39 }
 0x957   :  { %6180 = vmatprep.subr.mxu1 %v6095_v45  ;;  %6649 = vrot.lane.b32.xlu1 %v16871_v63, %s13870_s7 }
 0x958   :  { %6181 = vmatpush1.msra.mxu1 %v6094_v20 }
 0x959   :  { %6182 = vmatprep.subr.mxu1 %v6093_v27  ;;  %6651 = vrot.lane.b32.xlu0 %v16871_v63, %s13870_s7  ;;  %v19552_v27 = vld [vmem:[#allocation33_spill] sm:$0xff] }
 0x95a   :  { %6183 = vmatpush1.msra.mxu1 %v6092_v35 }
 0x95b   :  { %6184 = vmatprep.subr.mxu1 %v6091_v3  ;;  %6653 = vrot.lane.b32.xlu1 %v16871_v63, %s13870_s7 }
 0x95c   :  { %6185 = vmatpush1.msra.mxu1 %v6090_v52 }
 0x95d   :  { %6186 = vmatprep.subr.mxu1 %v6153_v19  ;;  %v6058_v19 = vld [vmem:[%s19494_s2] sm:$0x3] }
 0x95e   :  { %6187 = vmatpush2.msra.mxu1 %v6152_v2 }
 0x95f   :  { %6188 = vmatprep.subr.mxu1 %v6151_v31 }
 0x960   :  { %6189 = vmatpush2.msra.mxu1 %v6150_v41 }
 0x961   :  { %6190 = vmatprep.subr.mxu1 %v6149_v37 }
 0x962   :  { %6191 = vmatpush2.msra.mxu1 %v6148_v42 }
 0x963   :  { %6192 = vmatprep.subr.mxu1 %v6147_v61 }
 0x964   :  { %6193 = vmatpush2.msra.mxu1 %v6146_v13 }
 0x965   :  { %6194 = vmatprep.subr.mxu1 %v6145_v53 }
 0x966   :  { %6195 = vmatpush2.msra.mxu1 %v6144_v9 }
 0x967   :  { %6196 = vmatprep.subr.mxu1 %v6143_v14 }
 0x968   :  { %6197 = vmatpush2.msra.mxu1 %v6142_v59 }
 0x969   :  { %6198 = vmatprep.subr.mxu1 %v6141_v15 }
 0x96a   :  { %6199 = vmatpush2.msra.mxu1 %v6140_v25 }
 0x96b   :  { %6200 = vmatprep.subr.mxu1 %v6139_v58 }
 0x96c   :  { %6201 = vmatpush2.msra.mxu1 %v6138_v16 }
 0x96d   :  { %6202 = vmatprep.subr.mxu1 %v6137_v22 }
 0x96e   :  { %6203 = vmatpush2.msra.mxu1 %v6136_v28 }
 0x96f   :  { %6204 = vmatprep.subr.mxu1 %v6135_v6 }
 0x970   :  { %6205 = vmatpush2.msra.mxu1 %v6134_v11 }
 0x971   :  { %6206 = vmatprep.subr.mxu1 %v6133_v5 }
 0x972   :  { %6207 = vmatpush2.msra.mxu1 %v6132_v48 }
 0x973   :  { %6208 = vmatprep.subr.mxu1 %v6131_v1 }
 0x974   :  { %6209 = vmatpush2.msra.mxu1 %v6130_v34 }
 0x975   :  { %6210 = vmatprep.subr.mxu1 %v6129_v49 }
 0x976   :  { %6211 = vmatpush2.msra.mxu1 %v6128_v46 }
 0x977   :  { %6212 = vmatprep.subr.mxu1 %v6127_v44 }
 0x978   :  { %6213 = vmatpush2.msra.mxu1 %v6126_v50 }
 0x979   :  { %6214 = vmatprep.subr.mxu1 %v6125_v29 }
 0x97a   :  { %6215 = vmatpush2.msra.mxu1 %v6124_v30 }
 0x97b   :  { %6216 = vmatprep.subr.mxu1 %v6123_v12 }
 0x97c   :  { %6217 = vmatpush2.msra.mxu1 %v6122_v18 }
 0x9b1   :  { %v16880_v39 = vpop.permute.xlu1 %6577 }
 0x9b2   :  { %19551 = vst [vmem:[#allocation35_spill] sm:$0xff] %v16880_v39  ;;  %v6585_v45 = vmul.f32 %v16867_v33, %v16880_v39  ;;  %v16884_v20 = vpop.permute.xlu0 %6575 }
 0x9b3   :  { %v16890_v3 = vsel %vm698_vm1, %v16884_v20, %v16880_v39  ;;  %v6586_v52 = vmul.f32 %v16867_v33, %v16884_v20 }
 0x9b4   :  { %v16897_v2 = vpack.c.bf16 %v6585_v45, %v6585_v45  ;;  %v6587_v31 = vmul.f32 %v16867_v33, %v16890_v3 }
 0x9b5   :  { %v16902_v37 = vpop.permute.xlu1 %6521 }
 0x9b6   :  { %19553 = vst [vmem:[#allocation36_spill] sm:$0xff] %v16902_v37  ;;  %6607 = vrot.lane.b32.xlu1 %v16897_v2, %s13866_s26  ;;  %v6529_v61 = vmul.f32 %v16867_v33, %v16902_v37  ;;  %v13214_v13 = vpack.c.bf16 %v6587_v31, %v6586_v52 }
 0x9b7   :  { %v16906_v42 = vpop.permute.xlu0 %6519 }
 0x9b8   :  { %v16913_v9 = vsel %vm756_vm2, %v16906_v42, %v16902_v37  ;;  %v6530_v14 = vmul.f32 %v16867_v33, %v16906_v42  ;;  %6609 = vrot.lane.b32.xlu0 %v13214_v13, %s13866_s26  ;;  %v16929_v16 = vpack.c.bf16 %v6529_v61, %v6529_v61 }
 0x9b9   :  { %v6531_v59 = vmul.f32 %v16867_v33, %v16913_v9  ;;  %v16936_v28 = vpop.permute.xlu1 %6447 }
 0x9ba   :  { %6611 = vrot.lane.b32.xlu1 %v16897_v2, %s13866_s26  ;;  %v6458_v48 = vmul.f32 %v16867_v33, %v16936_v28 }
 0x9bb   :  { %v13210_v22 = vpack.c.bf16 %v6531_v59, %v6530_v14  ;;  %v16938_v6 = vpop.permute.xlu0 %6445 }
 0x9bc   :  { %v16949_v1 = vsel %vm716_vm3, %v16938_v6, %v16936_v28  ;;  %v16953_v34 = vmul.f32 %v16867_v33, %v16938_v6  ;;  %v13205_v44 = vpack.c.bf16 %v6458_v48, %v6458_v48 }
 0x9bd   :  { %6553 = vrot.lane.b32.xlu0 %v13210_v22, %s13865_s3  ;;  %v16940_v11 = vpop.permute.xlu1 %6391  ;;  %v6457_v46 = vmul.f32 %v16867_v33, %v16949_v1 }
 0x9be   :  { %6551 = vrot.lane.b32.xlu1 %v16929_v16, %s13865_s3  ;;  %v6402_v49 = vmul.f32 %v16867_v33, %v16940_v11 }
 0x9bf   :  { %v16942_v5 = vpop.permute.xlu0 %6389  ;;  %v13204_v24 = vpack.c.bf16 %v6457_v46, %v16953_v34 }
 0x9c0   :  { %v16962_v55 = vsel %vm658_vm4, %v16942_v5, %v16940_v11  ;;  %v16966_v26 = vmul.f32 %v16867_v33, %v16942_v5 }
 0x9c1   :  { %6479 = vrot.lane.b32.xlu0 %v13204_v24, %s13864_s25  ;;  %v16984_v12 = vpop.permute.xlu1 %6284  ;;  %v6748_v24 = vld [vmem:[%s19433_s15 + $0x18] sm:$0xff] }
 0x9c2   :  { %6555 = vrot.lane.b32.xlu1 %v16929_v16, %s13865_s3  ;;  %v6295_v18 = vmul.f32 %v16867_v33, %v16984_v12 }
 0x9c6   :  { %6481 = vrot.lane.b32.xlu1 %v13205_v44, %s13864_s25 }
 0x9fd   :  { %v6001_v40 = vpop.f32.mrf.mxu0  ;;  %v6042_v7 = vpop.f32.mrf.mxu1 }
 0x9fe   :  { %v6043_v51 = vadd.f32 %v6042_v7, %v6001_v40 }
 0x9ff   :  { %v6003_v32 = vpop.f32.mrf.mxu0  ;;  %v6044_v60 = vpop.f32.mrf.mxu1 }
 0xa00   :  { %v6045_v0 = vadd.f32 %v6044_v60, %v6003_v32  ;;  %v6056_v21 = vadd.f32 %v6054_v8, %v6043_v51  ;;  %v13193_v60 = vpack.c.bf16 %v6295_v18, %v6295_v18  ;;  %v13593_v18 = vld [vmem:[#allocation13 + $0x4] ss:$8 sps:$4 sm:$0xff]  }
 0xa01   :  { %v6005_v56 = vpop.f32.mrf.mxu0  ;;  %v6046_v57 = vpop.f32.mrf.mxu1  ;;  %12413 = vmatprep.mubr.msk.bf16.mxu0 %vm631_vm7, %v13593_v18 }
 0xa02   :  { %v6057_v23 = vadd.f32 %v6054_v8, %v6045_v0 }
 0xa03   :  { %v6006_v4 = vpop.f32.mrf.mxu0  ;;  %v6047_v43 = vpop.f32.mrf.mxu1 }
 0xa04   :  { %v6061_v54 = vcombine.low %v6056_v21, %v6057_v23  ;;  %v17010_v23 = vpop.permute.xlu0 %6282 }
 0xa05   :  { %v17021_v52 = vsel %vm547_vm5, %v17010_v23, %v16984_v12  ;;  %v17031_v13 = vmul.f32 %v16867_v33, %v17010_v23 }
 0xa06   :  { %v6068_v35 = vrot.slane %v6061_v54, %v19552_v27  ;;  %v6294_v31 = vmul.f32 %v16867_v33, %v17021_v52 }
 0xa08   :  { %v6075_v41 = vrot.slane %v6068_v35, %v19552_v27  ;;  %v17016_v35 = vpop.permute.xlu1 %6675  ;;  %v13192_v14 = vpack.c.bf16 %v6294_v31, %v17031_v13 }
 0xa09   :  { %19555 = vst [vmem:[#allocation31_spill] sm:$0xff] %v17016_v35 }
 0xa0a   :  { %v6077_v53 = vadd.f32 %v6075_v41, %v6058_v19  ;;  %v6683_v19 = vmul.f32 %v16867_v33, %v17016_v35 }
 0xa0c   :  { %6078 = vst.msk [vmem:[%s19438_s20] sm:$0x3] %vm14023_vm0, %v6077_v53  ;;  %v6087_v25 = vrot.slane %v6077_v53, %v19549_v36  ;;  %v6083_v58 = vrot.slane %v6077_v53, %v19550_v17  ;;  %v6401_v36 = vmul.f32 %v16867_v33, %v16962_v55  ;;  %v13201_v17 = vpack.c.bf16 %v6402_v49, %v6402_v49  ;;  %v17048_v49 = vpop.permute.xlu0 %6673 }
 0xa0d   :  { %v17035_v53 = vpack.c.bf16 %v6683_v19, %v6683_v19  ;;  %19556 = vst [vmem:[#allocation32_spill] sm:$0xff] %v17048_v49 }
 0xa0e   :  { %6218 = vmatprep.mubr.f32.mxu1 %v6087_v25  ;;  %v13200_v62 = vpack.c.bf16 %v6401_v36, %v16966_v26  ;;  %6425 = vrot.lane.b32.xlu1 %v13201_v17, %s13863_s23  ;;  %v17058_v36 = vsel %vm588_vm6, %v17048_v49, %v17016_v35 }
 0xa0f   :  { %6219 = vmatmul.mubr.f32.vlgmr.msra.gmra.mxu1 %v6083_v58  ;;  %19557 = vst [vmem:[#allocation34_spill] sm:$0xff] %v17058_v36 }
 0xa10   :  { %6423 = vrot.lane.b32.xlu0 %v13200_v62, %s13863_s23 }
 0xa12   :  { %6360 = vrot.lane.b32.xlu1 %v16871_v63, %s13854_s24 }
 0xa14   :  { %6358 = vrot.lane.b32.xlu0 %v16871_v63, %s13854_s24 }
 0xacf   :  { %v6220_v50 = vpop.f32.mrf.mxu1 }
 0xad1   :  { %v6222_v29 = vpop.f32.mrf.mxu1 }
 0xad2   :  { %v6242_v47 = vcombine.low %v6220_v50, %v6222_v29  ;;  %v6947_v29 = vld [vmem:[%s19434_s16 + $0x18] sm:$0xff] }
 0xad4   :  { %v6249_v30 = vrot.slane %v6242_v47, %v19552_v27 }
 0xad6   :  { %v6256_v38 = vrot.slane %v6249_v30, %v19552_v27  ;;  %v6684_v30 = vmul.f32 %v16867_v33, %v17048_v49 }
 0xad8   :  { %6259 = vst.msk [vmem:[#allocation3 + $0x9] ss:$8 sm:$0x3] %vm14023_vm0, %v6256_v38  ;;  %v6685_v38 = vmul.f32 %v16867_v33, %v17058_v36 }
 0xadf   :  { %v16988_v40 = vld [vmem:[#allocation3 + $0x10] sm:$0xff]  ;;  %v16990_v7 = vld [vmem:[#allocation3 + $0x8] sm:$0xff] }
 0xae0   :  { %v13195_v51 = vpack.c.bf16 %v16988_v40, %v16988_v40  ;;  %v13216_v32 = vpack.c.bf16 %v16988_v40, %v16990_v7  ;;  %v13194_v8 = vpack.c.bf16 %v16990_v7, %v16867_v33  ;;  %v6455_v0 = vmul.f32 %v16936_v28, %v16988_v40 }
 0xae1   :  { %v6583_v56 = vmul.f32 %v16990_v7, %v16884_v20  ;;  %v6584_v57 = vmul.f32 %v16890_v3, %v16988_v40  ;;  %v6399_v21 = vmul.f32 %v16940_v11, %v16988_v40  ;;  %v6527_v54 = vmul.f32 %v16990_v7, %v16906_v42 }
 0xae2   :  { %6356 = vrot.lane.b32.xlu1 %v13195_v51, %s13854_s24  ;;  %6647 = vrot.lane.b32.xlu0 %v13216_v32, %s13870_s7  ;;  %v13203_v4 = vpack.c.bf16 %v6455_v0, %v6455_v0  ;;  %v6528_v45 = vmul.f32 %v16913_v9, %v16988_v40  ;;  %v6292_v59 = vmul.f32 %v16988_v40, %v16984_v12  ;;  %v6746_v51 = vld [vmem:[%s19433_s15 + $0x8] sm:$0xff]  ;;  %v6946_v0 = vld [vmem:[%s19434_s16 + $0x10] sm:$0xff] }
 0xae3   :  { %v13212_v43 = vpack.c.bf16 %v6584_v57, %v6583_v56  ;;  %v13199_v41 = vpack.c.bf16 %v6399_v21, %v6399_v21  ;;  %v6454_v25 = vmul.f32 %v16990_v7, %v16949_v1  ;;  %v6398_v48 = vmul.f32 %v16990_v7, %v16962_v55  ;;  %v6745_v56 = vld [vmem:[%s19433_s15] sm:$0xff]  ;;  %v6650_v21 = vpop.permute.xlu1 %6649 }
 0xae4   :  { %v13208_v61 = vpack.c.bf16 %v6528_v45, %v6527_v54  ;;  %v13191_v58 = vpack.c.bf16 %v6292_v59, %v6292_v59  ;;  %v6291_v44 = vmul.f32 %v16990_v7, %v17021_v52  ;;  %v6681_v62 = vmul.f32 %v17048_v49, %v16990_v7  ;;  %v6944_v57 = vld [vmem:[%s19434_s16] sm:$0xff]  ;;  %v6652_v45 = vpop.permute.xlu0 %6651 }
 0xae5   :  { %v13202_v22 = vpack.c.bf16 %v6454_v25, %v16953_v34  ;;  %v13198_v46 = vpack.c.bf16 %v6398_v48, %v16966_v26  ;;  %v6682_v50 = vmul.f32 %v17058_v36, %v16988_v40  ;;  %v13222_v32 = vpack.c.bf16 %v6685_v38, %v6684_v30 }
 0xae6   :  { %6318 = vrot.lane.b32.xlu1 %v13193_v60, %s13868_s27  ;;  %6354 = vrot.lane.b32.xlu0 %v13194_v8, %s13854_s24  ;;  %v13190_v17 = vpack.c.bf16 %v6291_v44, %v17031_v13  ;;  %v6945_v60 = vld [vmem:[%s19434_s16 + $0x8] sm:$0xff]  ;;  %v6747_v8 = vld [vmem:[%s19433_s15 + $0x10] sm:$0xff]  ;;  %v6657_v44 = vrot.slane %v6652_v45, 4 }
 0xae7   :  { %v13220_v47 = vpack.c.bf16 %v6682_v50, %v6681_v62  ;;  %v6656_v62 = vrot.slane %v6650_v21, 4 }
 0xae8   :  { %v6610_v31 = vpop.permute.xlu0 %6609 }
 0xaea   :  { %6477 = vrot.lane.b32.xlu1 %v13203_v4, %s13864_s25  ;;  %6605 = vrot.lane.b32.xlu0 %v13212_v43, %s13866_s26  ;;  %v6654_v4 = vpop.permute.xlu1 %6653 }
 0xaee   :  { %6421 = vrot.lane.b32.xlu1 %v13199_v41, %s13863_s23  ;;  %6549 = vrot.lane.b32.xlu0 %v13208_v61, %s13865_s3  ;;  %v6608_v43 = vpop.permute.xlu1 %6607  ;;  %v6554_v61 = vpop.permute.xlu0 %6553 }
 0xaf2   :  { %6705 = vrot.lane.b32.xlu1 %v17035_v53, %s13867_s10  ;;  %6316 = vrot.lane.b32.xlu0 %v13192_v14, %s13868_s27  ;;  %v6612_v54 = vpop.permute.xlu1 %6611  ;;  %v17104_v59 = vpop.permute.xlu0 %6479 }
 0xaf6   :  { %6314 = vrot.lane.b32.xlu1 %v13191_v58, %s13868_s27  ;;  %6475 = vrot.lane.b32.xlu0 %v13202_v22, %s13864_s25  ;;  %v6552_v19 = vpop.permute.xlu1 %6551  ;;  %v17108_v58 = vpop.permute.xlu0 %6423 }
 0xafa   :  { %6709 = vrot.lane.b32.xlu1 %v17035_v53, %s13867_s10  ;;  %6419 = vrot.lane.b32.xlu0 %v13198_v46, %s13863_s23  ;;  %v6556_v41 = vpop.permute.xlu1 %6555  ;;  %v17112_v48 = vpop.permute.xlu0 %6358  ;;  %v6658_v46 = vrot.slane %v6654_v4, 4 }
 0xafc   :  { %v6661_v50 = vsel %vm586_vm8, %v6657_v44, %v6658_v46  ;;  %v6560_v46 = vrot.slane %v6556_v41, 4  ;;  %v6559_v44 = vrot.slane %v6554_v61, 4 }
 0xafd   :  { %v6662_v30 = vsel %vm933_vm9, %v6652_v45, %v6661_v50 }
 0xafe   :  { %6766 = vperm.xlu1 %13559, %v6748_v24   ;;  %6312 = vrot.lane.b32.xlu0 %v13190_v17, %s13868_s27  ;;  %v6482_v14 = vpop.permute.xlu1 %6481 }
 0xb02   :  { %6965 = vperm.xlu1 %13559, %v6947_v29   ;;  %6703 = vrot.lane.b32.xlu0 %v13220_v47, %s13867_s10  ;;  %v17106_v25 = vpop.permute.xlu1 %6425 }
 0xb06   :  { %6756 = vperm.xlu1 %13559, %v6746_v51   ;;  %6707 = vrot.lane.b32.xlu0 %v13222_v32, %s13867_s10  ;;  %v17110_v22 = vpop.permute.xlu1 %6360  ;;  %v6616_v32 = vrot.slane %v6612_v54, 4 }
 0xb0a   :  { %6955 = vperm.xlu1 %13559, %v6945_v60   ;;  %6761 = vperm.xlu0 %13558, %v6747_v8   ;;  %v6615_v60 = vrot.slane %v6610_v31, 4 }
 0xb0c   :  { %v6619_v4 = vsel %vm586_vm8, %v6615_v60, %v6616_v32  ;;  %v6486_v60 = vrot.slane %v6482_v14, 4 }
 0xb0d   :  { %v6620_v50 = vsel %vm658_vm4, %v6610_v31, %v6619_v4  ;;  %v6485_v31 = vrot.slane %v17104_v59, 4  ;;  %v13515_v4 = vpack.c.bf16 %v16867_v33, %v16988_v40  ;;  %v6365_v40 = vrot.slane %v17110_v22, 4 }
 0xb0e   :  { %6960 = vperm.xlu0 %13558, %v6946_v0   ;;  %7646 = vrot.lane.b32.xlu1 %v16871_v63, %s13870_s7 }
 0xb12   :  { %6751 = vperm.xlu0 %13558, %v6745_v56   ;;  %7650 = vrot.lane.b32.xlu1 %v16871_v63, %s13870_s7  ;;  %v6614_v56 = vrot.slane %v6608_v43, 4 }
 0xb16   :  { %6950 = vperm.xlu0 %13558, %v6944_v57  }
 0xb54   :  { %v17114_v24 = vpop.permute.xlu1 %6356  ;;  %v6648_v17 = vpop.permute.xlu0 %6647 }
 0xb55   :  { %v6655_v29 = vrot.slane %v6648_v17, 4 }
 0xb57   :  { %v6659_v47 = vsel %vm586_vm8, %v6655_v29, %v6656_v62  ;;  %v6558_v62 = vrot.slane %v6552_v19, 4 }
 0xb58   :  { %v6660_v38 = vsel %vm933_vm9, %v6648_v17, %v6659_v47  ;;  %v17120_v18 = vpop.permute.xlu1 %6318  ;;  %v17122_v51 = vpop.permute.xlu0 %6354  ;;  %v6563_v47 = vsel %vm586_vm8, %v6559_v44, %v6560_v46  ;;  %v6430_v46 = vrot.slane %v17106_v25, 4  ;;  %v6429_v44 = vrot.slane %v17108_v58, 4 }
 0xb59   :  { %v12409_v8 = vcombine.low %v6660_v38, %v6662_v30  ;;  %v12410_v0 = vcombine.high %v6660_v38, %v6662_v30  ;;  %v6564_v41 = vsel %vm716_vm3, %v6554_v61, %v6563_v47  ;;  %v6364_v25 = vrot.slane %v17112_v48, 4 }
 0xb5b   :  { %6883 = vmatprep.subr.bf16.mxu0 %v12410_v0 }
 0xb5c   :  { %v6478_v57 = vpop.permute.xlu1 %6477  ;;  %6884 = vmatpush1.bf16.msra.mxu0 %v12409_v8  ;;  %v6606_v21 = vpop.permute.xlu0 %6605 }
 0xb5d   :  { %v6613_v45 = vrot.slane %v6606_v21, 4  ;;  %v6484_v14 = vrot.slane %v6478_v57, 4 }
 0xb5f   :  { %v6617_v17 = vsel %vm586_vm8, %v6613_v45, %v6614_v56  ;;  %v6362_v45 = vrot.slane %v17122_v51, 4 }
 0xb60   :  { %v6618_v54 = vsel %vm658_vm4, %v6606_v21, %v6617_v17  ;;  %v6550_v29 = vpop.permute.xlu0 %6549  ;;  %v6422_v8 = vpop.permute.xlu1 %6421 }
 0xb61   :  { %v12407_v30 = vcombine.low %v6618_v54, %v6620_v50  ;;  %v6557_v43 = vrot.slane %v6550_v29, 4  ;;  %v12408_v38 = vcombine.high %v6618_v54, %v6620_v50  ;;  %v6363_v54 = vrot.slane %v17114_v24, 4 }
 0xb63   :  { %v6561_v0 = vsel %vm586_vm8, %v6557_v43, %v6558_v62  ;;  %6885 = vmatprep.subr.bf16.mxu0 %v12408_v38  ;;  %v6489_v62 = vsel %vm586_vm8, %v6485_v31, %v6486_v60  ;;  %v6433_v43 = vsel %vm586_vm8, %v6429_v44, %v6430_v46  ;;  %v6366_v57 = vsel %vm586_vm8, %v6362_v45, %v6363_v54 }
 0xb64   :  { %v6562_v32 = vsel %vm716_vm3, %v6550_v29, %v6561_v0  ;;  %6886 = vmatpush1.bf16.msra.mxu0 %v12407_v30  ;;  %v6317_v19 = vpop.permute.xlu0 %6316  ;;  %v6706_v61 = vpop.permute.xlu1 %6705  ;;  %v13514_v29 = vpack.c.bf16 %v16867_v33, %v16990_v7  ;;  %v6490_v30 = vsel %vm756_vm2, %v17104_v59, %v6489_v62  ;;  %v6428_v0 = vrot.slane %v6422_v8, 4 }
 0xb65   :  { %v12405_v56 = vcombine.low %v6562_v32, %v6564_v41  ;;  %v12406_v21 = vcombine.high %v6562_v32, %v6564_v41  ;;  %v6368_v60 = vsel %vm586_vm8, %v6364_v25, %v6365_v40  ;;  %v6323_v31 = vrot.slane %v17120_v18, 4 }
 0xb66   :  { %v6369_v18 = vsel %vm631_vm7, %v17112_v48, %v6368_v60  ;;  %v13596_v60 = vld [vmem:[#allocation13 + $0x14] ss:$8 sps:$4 sm:$0xff]  }
 0xb67   :  { %6887 = vmatprep.subr.bf16.mxu0 %v12406_v21  ;;  %v6434_v21 = vsel %vm698_vm1, %v17108_v58, %v6433_v43 }
 0xb68   :  { %6888 = vmatpush1.bf16.msra.mxu0 %v12405_v56  ;;  %v6476_v17 = vpop.permute.xlu0 %6475  ;;  %v6315_v22 = vpop.permute.xlu1 %6314  ;;  %v6322_v56 = vrot.slane %v6317_v19, 4 }
 0xb69   :  { %v6483_v50 = vrot.slane %v6476_v17, 4  ;;  %6889 = vmatprep.subr.bf16.mxu0 %v13515_v4  ;;  %v6367_v4 = vsel %vm631_vm7, %v17122_v51, %v6366_v57  ;;  %v6321_v44 = vrot.slane %v6315_v22, 4 }
 0xb6a   :  { %v12398_v58 = vcombine.high %v6367_v4, %v6369_v18  ;;  %v12397_v40 = vcombine.low %v6367_v4, %v6369_v18 }
 0xb6b   :  { %v6487_v47 = vsel %vm586_vm8, %v6483_v50, %v6484_v14  ;;  %v6326_v14 = vsel %vm586_vm8, %v6322_v56, %v6323_v31  ;;  %v13598_v31 = vld [vmem:[#allocation13 + $0x10] ss:$8 sps:$4 sm:$0xff]  }
 0xb6c   :  { %v6488_v38 = vsel %vm756_vm2, %v6476_v17, %v6487_v47  ;;  %6890 = vmatpush1.bf16.msra.mxu0 %v13514_v29  ;;  %v6420_v24 = vpop.permute.xlu0 %6419  ;;  %v6327_v25 = vsel %vm588_vm6, %v6317_v19, %v6326_v14  ;;  %v6710_v47 = vpop.permute.xlu1 %6709 }
 0xb6d   :  { %v12401_v41 = vcombine.low %v6488_v38, %v6490_v30  ;;  %v6427_v7 = vrot.slane %v6420_v24, 4  ;;  %v12402_v32 = vcombine.high %v6488_v38, %v6490_v30  ;;  %v6712_v30 = vrot.slane %v6706_v61, 4  ;;  %v13595_v61 = vld [vmem:[#allocation13] ss:$8 sps:$4 sm:$0xff]  }
 0xb6e   :  { %v6714_v57 = vrot.slane %v6710_v47, 4 }
 0xb6f   :  { %v6431_v59 = vsel %vm586_vm8, %v6427_v7, %v6428_v0  ;;  %6891 = vmatprep.subr.bf16.mxu0 %v12402_v32 }
 0xb70   :  { %v6432_v8 = vsel %vm698_vm1, %v6420_v24, %v6431_v59  ;;  %6892 = vmatpush1.bf16.msra.mxu0 %v12401_v41  ;;  %v6313_v46 = vpop.permute.xlu0 %6312 }
 0xb71   :  { %v12399_v45 = vcombine.low %v6432_v8, %v6434_v21  ;;  %v6320_v17 = vrot.slane %v6313_v46, 4  ;;  %v12400_v62 = vcombine.high %v6432_v8, %v6434_v21 }
 0xb73   :  { %v6324_v50 = vsel %vm586_vm8, %v6320_v17, %v6321_v44  ;;  %6893 = vmatprep.subr.bf16.mxu0 %v12400_v62 }
 0xb74   :  { %v6325_v54 = vsel %vm588_vm6, %v6313_v46, %v6324_v50  ;;  %6894 = vmatpush1.bf16.msra.mxu0 %v12399_v45  ;;  %v6704_v51 = vpop.permute.xlu0 %6703 }
 0xb75   :  { %v6711_v29 = vrot.slane %v6704_v51, 4  ;;  %6895 = vmatprep.subr.bf16.mxu0 %v12398_v58  ;;  %v12396_v43 = vcombine.high %v6325_v54, %v6327_v25  ;;  %v12395_v0 = vcombine.low %v6325_v54, %v6327_v25 }
 0xb77   :  { %v6715_v38 = vsel %vm586_vm8, %v6711_v29, %v6712_v30 }
 0xb78   :  { %6896 = vmatpush1.bf16.msra.mxu0 %v12397_v40  ;;  %v6708_v48 = vpop.permute.xlu0 %6707  ;;  %v6716_v7 = vsel %vm547_vm5, %v6704_v51, %v6715_v38 }
 0xb79   :  { %v6713_v24 = vrot.slane %v6708_v48, 4  ;;  %6897 = vmatprep.subr.bf16.mxu0 %v12396_v43  ;;  %v6767_v59 = vpop.permute.xlu1 %6766 }
 0xb7b   :  { %v6717_v41 = vsel %vm586_vm8, %v6713_v24, %v6714_v57 }
 0xb7c   :  { %v6718_v32 = vsel %vm547_vm5, %v6708_v48, %v6717_v41  ;;  %6898 = vmatpush1.bf16.msra.mxu0 %v12395_v0 }
 0xb7d   :  { %v12411_v22 = vcombine.low %v6716_v7, %v6718_v32  ;;  %v12412_v19 = vcombine.high %v6716_v7, %v6718_v32  ;;  %v17170_v4 = vpop.permute.xlu1 %6965 }
 0xb7f   :  { %6913 = vmatprep.subr.bf16.mxu0 %v12412_v19 }
 0xb80   :  { %6914 = vmatpush2.bf16.msra.mxu0 %v12411_v22 }
 0xb81   :  { %v6757_v46 = vpop.permute.xlu1 %6756 }
 0xb83   :  { %6916 = vmatmul.mubr.bf16.vlgmr.msra.gmra.mxu0 %v13595_v61 }
 0xb84   :  { %12414 = vmatprep.mubr.msk.bf16.mxu0 %vm631_vm7, %v13596_v60 }
 0xb85   :  { %v6762_v56 = vpop.permute.xlu0 %6761  ;;  %v6956_v29 = vpop.permute.xlu1 %6955 }
 0xb89   :  { %v6961_v21 = vpop.permute.xlu0 %6960 }
 0xb8b   :  { %6926 = vmatmul.mubr.bf16.gmra.mxu0 %v13598_v31 }
 0xb8c   :  { %8142 = vmatprep.mubr.bf16.mxu0 %v19515_v10 }
 0xb8d   :  { %v6752_v8 = vpop.permute.xlu0 %6751 }
 0xb91   :  { %v6951_v17 = vpop.permute.xlu0 %6950 }
 0xc43   :  { %v6917_v44 = vpop.f32.mrf.mxu0 }
 0xc44   :  { %v6918_v45 = vadd.f32 %v6917_v44, %v6752_v8 }
 0xc45   :  { %v6919_v62 = vpop.f32.mrf.mxu0 }
 0xc46   :  { %vm6936_vm11 = vcmp.ge.f32.partialorder %v6918_v45, 0.0  ;;  %v6968_v18 = vmul.f32 %v6951_v17, %v6918_v45  ;;  %v6920_v14 = vadd.f32 %v6919_v62, %v6752_v8 }
 0xc47   :  { %v6921_v50 = vpop.f32.mrf.mxu0 }
 0xc48   :  { %v17172_v58 = vsel %vm6936_vm11, %v6918_v45, %v6968_v18  ;;  %vm6937_vm13 = vcmp.ge.f32.partialorder %v6920_v14, 0.0  ;;  %v6969_v54 = vmul.f32 %v6951_v17, %v6920_v14  ;;  %v6922_v51 = vadd.f32 %v6921_v50, %v6757_v46 }
 0xc49   :  { %6984 = vst [vmem:[#allocation3 + $0x8] sm:$0xff] %v17172_v58  ;;  %v6923_v40 = vpop.f32.mrf.mxu0  ;;  %v13232_v25 = vpack.c.bf16 %v17172_v58, %v16867_v33  ;;  %v7281_v47 = vmul.f32 %v17172_v58, %v16949_v1  ;;  %v7185_v19 = vmul.f32 %v17172_v58, %v16962_v55 }
 0xc4a   :  { %v17179_v30 = vsel %vm6937_vm13, %v6920_v14, %v6969_v54  ;;  %vm6938_vm14 = vcmp.ge.f32.partialorder %v6922_v51, 0.0  ;;  %v6970_v43 = vmul.f32 %v6956_v29, %v6922_v51  ;;  %v6924_v48 = vadd.f32 %v6923_v40, %v6757_v46 }
 0xc4b   :  { %6985 = vst [vmem:[#allocation3 + $0x10] sm:$0xff] %v17179_v30  ;;  %v6927_v57 = vpop.f32.mrf.mxu0  ;;  %7132 = vrot.lane.b32.xlu0 %v13232_v25, %s13854_s24  ;;  %v13233_v38 = vpack.c.bf16 %v17179_v30, %v17179_v30  ;;  %v7282_v24 = vmul.f32 %v17179_v30, %v16936_v28  ;;  %v13248_v22 = vpack.c.bf16 %v7281_v47, %v16953_v34 }
 0xc4c   :  { %v17187_v0 = vsel %vm6938_vm14, %v6922_v51, %v6970_v43  ;;  %vm6939_vm15 = vcmp.ge.f32.partialorder %v6924_v48, 0.0  ;;  %v6971_v41 = vmul.f32 %v6956_v29, %v6924_v48  ;;  %v6928_v7 = vadd.f32 %v6927_v57, %v6762_v56 }
 0xc4d   :  { %6986 = vst [vmem:[#allocation3 + $0x28] sm:$0xff] %v17187_v0  ;;  %v6929_v32 = vpop.f32.mrf.mxu0  ;;  %7134 = vrot.lane.b32.xlu1 %v13233_v38, %s13854_s24  ;;  %v13249_v46 = vpack.c.bf16 %v7282_v24, %v7282_v24  ;;  %v7186_v44 = vmul.f32 %v17179_v30, %v16940_v11  ;;  %v7005_v14 = vmul.f32 %v17172_v58, %v17021_v52 }
 0xc4e   :  { %v17194_v61 = vsel %vm6939_vm15, %v6924_v48, %v6971_v41  ;;  %vm6940_vm10 = vcmp.ge.f32.partialorder %v6928_v7, 0.0  ;;  %v6972_v60 = vmul.f32 %v6961_v21, %v6928_v7  ;;  %v6930_v31 = vadd.f32 %v6929_v32, %v6762_v56 }
 0xc4f   :  { %6987 = vst [vmem:[#allocation3 + $0x30] sm:$0xff] %v17194_v61  ;;  %v6931_v8 = vpop.f32.mrf.mxu0  ;;  %7324 = vrot.lane.b32.xlu0 %v13248_v22, %s13864_s25  ;;  %v13240_v56 = vpack.c.bf16 %v7185_v19, %v16966_v26  ;;  %v7006_v29 = vmul.f32 %v17179_v30, %v16984_v12  ;;  %v13224_v47 = vpack.c.bf16 %v7005_v14, %v17031_v13 }
 0xc50   :  { %v17200_v45 = vsel %vm6940_vm10, %v6928_v7, %v6972_v60  ;;  %vm6941_vm11 = vcmp.ge.f32.partialorder %v6930_v31, 0.0  ;;  %v6973_v17 = vmul.f32 %v6961_v21, %v6930_v31  ;;  %v6932_v62 = vadd.f32 %v6931_v8, %v6767_v59 }
 0xc51   :  { %6988 = vst [vmem:[#allocation3 + $0x48] sm:$0xff] %v17200_v45  ;;  %v6933_v18 = vpop.f32.mrf.mxu0  ;;  %7326 = vrot.lane.b32.xlu1 %v13249_v46, %s13864_s25  ;;  %v13241_v21 = vpack.c.bf16 %v7186_v44, %v7186_v44  ;;  %v13225_v43 = vpack.c.bf16 %v7006_v29, %v7006_v29  ;;  %v7285_v48 = vmul.f32 %v17194_v61, %v16936_v28 }
 0xc52   :  { %v17207_v50 = vsel %vm6941_vm11, %v6930_v31, %v6973_v17  ;;  %vm6942_vm13 = vcmp.ge.f32.partialorder %v6932_v62, 0.0  ;;  %v6974_v54 = vmul.f32 %v17170_v4, %v6932_v62  ;;  %v6934_v51 = vadd.f32 %v6933_v18, %v6767_v59 }
 0xc53   :  { %6989 = vst [vmem:[#allocation3 + $0x50] sm:$0xff] %v17207_v50  ;;  %7228 = vrot.lane.b32.xlu0 %v13240_v56, %s13863_s23  ;;  %v7284_v57 = vmul.f32 %v17187_v0, %v16949_v1  ;;  %v7189_v38 = vmul.f32 %v17194_v61, %v16940_v11  ;;  %v7188_v24 = vmul.f32 %v17187_v0, %v16962_v55 }
 0xc54   :  { %v17214_v40 = vsel %vm6942_vm13, %v6932_v62, %v6974_v54  ;;  %vm6943_vm14 = vcmp.ge.f32.partialorder %v6934_v51, 0.0  ;;  %v6975_v25 = vmul.f32 %v17170_v4, %v6934_v51  ;;  %v13276_v4 = vpack.c.bf16 %v17179_v30, %v17172_v58 }
 0xc55   :  { %6990 = vst [vmem:[#allocation3 + $0x68] sm:$0xff] %v17214_v40  ;;  %7230 = vrot.lane.b32.xlu1 %v13241_v21, %s13863_s23  ;;  %v13235_v41 = vpack.c.bf16 %v17194_v61, %v17194_v61  ;;  %v13234_v7 = vpack.c.bf16 %v17187_v0, %v16867_v33  ;;  %v13251_v32 = vpack.c.bf16 %v7285_v48, %v7285_v48 }
 0xc56   :  { %v17220_v59 = vsel %vm6943_vm14, %v6934_v51, %v6975_v25  ;;  %v13250_v19 = vpack.c.bf16 %v7284_v57, %v16953_v34  ;;  %v13243_v60 = vpack.c.bf16 %v7189_v38, %v7189_v38  ;;  %v13242_v31 = vpack.c.bf16 %v7188_v24, %v16966_v26 }
 0xc57   :  { %6991 = vst [vmem:[#allocation3 + $0x70] sm:$0xff] %v17220_v59  ;;  %7048 = vrot.lane.b32.xlu0 %v13224_v47, %s13868_s27  ;;  %v7009_v8 = vmul.f32 %v17194_v61, %v16984_v12  ;;  %v17249_v46 = vmul.f32 %v17200_v45, %v16884_v20  ;;  %v17253_v44 = vmul.f32 %v17207_v50, %v16890_v3 }
 0xc58   :  { %v17257_v17 = vmul.f32 %v17172_v58, %v16884_v20  ;;  %v17261_v62 = vmul.f32 %v17179_v30, %v16890_v3  ;;  %v17266_v18 = vmul.f32 %v17187_v0, %v16884_v20  ;;  %v17270_v56 = vmul.f32 %v17194_v61, %v16890_v3 }
 0xc59   :  { %7050 = vrot.lane.b32.xlu1 %v13225_v43, %s13868_s27  ;;  %v17274_v14 = vmul.f32 %v17200_v45, %v16906_v42  ;;  %v17278_v54 = vmul.f32 %v17207_v50, %v16913_v9  ;;  %v17286_v29 = vmul.f32 %v17172_v58, %v16906_v42  ;;  %v17290_v25 = vmul.f32 %v17179_v30, %v16913_v9 }
 0xc5a   :  { %v17299_v48 = vmul.f32 %v17214_v40, %v16884_v20  ;;  %v17309_v38 = vmul.f32 %v17187_v0, %v16906_v42  ;;  %v17313_v24 = vmul.f32 %v17194_v61, %v16913_v9  ;;  %v17328_v57 = vmul.f32 %v17200_v45, %v17048_v49 }
 0xc5b   :  { %7636 = vrot.lane.b32.xlu0 %v13276_v4, %s13870_s7  ;;  %v17303_v4 = vmul.f32 %v17220_v59, %v16890_v3  ;;  %v17332_v43 = vmul.f32 %v17207_v50, %v17058_v36  ;;  %v7008_v47 = vmul.f32 %v17187_v0, %v17021_v52  ;;  %v17344_v21 = vmul.f32 %v17179_v30, %v17058_v36 }
 0xc5c   :  { %v17353_v15 = vmul.f32 %v17214_v40, %v17048_v49  ;;  %v17367_v51 = vmul.f32 %v17194_v61, %v17058_v36  ;;  %v13227_v22 = vpack.c.bf16 %v7009_v8, %v7009_v8  ;;  %v13237_v35 = vpack.c.bf16 %v17207_v50, %v17207_v50 }
 0xc5d   :  { %7138 = vrot.lane.b32.xlu1 %v13235_v41, %s13854_s24  ;;  %v17317_v41 = vmul.f32 %v17214_v40, %v16906_v42  ;;  %v13226_v30 = vpack.c.bf16 %v7008_v47, %v17031_v13  ;;  %v7288_v37 = vmul.f32 %v17207_v50, %v16936_v28  ;;  %v7287_v8 = vmul.f32 %v17200_v45, %v16949_v1 }
 0xc5e   :  { %v7192_v47 = vmul.f32 %v17207_v50, %v16940_v11  ;;  %v7191_v27 = vmul.f32 %v17200_v45, %v16962_v55 }
 0xc5f   :  { %7136 = vrot.lane.b32.xlu0 %v13234_v7, %s13854_s24  ;;  %v17340_v7 = vmul.f32 %v17172_v58, %v17048_v49  ;;  %v17357_v58 = vmul.f32 %v17220_v59, %v17058_v36 }
 0xc61   :  { %7330 = vrot.lane.b32.xlu1 %v13251_v32, %s13864_s25  ;;  %v17324_v32 = vmul.f32 %v17220_v59, %v16913_v9 }
 0xc63   :  { %7328 = vrot.lane.b32.xlu0 %v13250_v19, %s13864_s25  ;;  %v7012_v19 = vmul.f32 %v17207_v50, %v16984_v12 }
 0xc65   :  { %7234 = vrot.lane.b32.xlu1 %v13243_v60, %s13863_s23  ;;  %v17363_v60 = vmul.f32 %v17187_v0, %v17048_v49 }
 0xc67   :  { %7232 = vrot.lane.b32.xlu0 %v13242_v31, %s13863_s23  ;;  %v13236_v31 = vpack.c.bf16 %v17200_v45, %v16867_v33 }
 0xc69   :  { %7054 = vrot.lane.b32.xlu1 %v13227_v22, %s13868_s27  ;;  %v13253_v22 = vpack.c.bf16 %v7288_v37, %v7288_v37  ;;  %v13244_v37 = vpack.c.bf16 %v7191_v27, %v16966_v26  ;;  %v13280_v27 = vpack.c.bf16 %v17207_v50, %v17200_v45  ;;  %v7194_v50 = vmul.f32 %v17214_v40, %v16962_v55 }
 0xc6b   :  { %7052 = vrot.lane.b32.xlu0 %v13226_v30, %s13868_s27  ;;  %v13252_v30 = vpack.c.bf16 %v7287_v8, %v16953_v34 }
 0xc6d   :  { %7142 = vrot.lane.b32.xlu1 %v13237_v35, %s13854_s24  ;;  %v13245_v35 = vpack.c.bf16 %v7192_v47, %v7192_v47  ;;  %v13239_v47 = vpack.c.bf16 %v17220_v59, %v17220_v59 }
 0xc6f   :  { %7140 = vrot.lane.b32.xlu0 %v13236_v31, %s13854_s24  ;;  %v7011_v31 = vmul.f32 %v17200_v45, %v17021_v52 }
 0xc71   :  { %7334 = vrot.lane.b32.xlu1 %v13253_v22, %s13864_s25  ;;  %v13229_v22 = vpack.c.bf16 %v7012_v19, %v7012_v19  ;;  %v13228_v8 = vpack.c.bf16 %v7011_v31, %v17031_v13  ;;  %v7195_v31 = vmul.f32 %v17220_v59, %v16940_v11 }
 0xc73   :  { %7332 = vrot.lane.b32.xlu0 %v13252_v30, %s13864_s25  ;;  %v7291_v30 = vmul.f32 %v17220_v59, %v16936_v28 }
 0xc75   :  { %7238 = vrot.lane.b32.xlu1 %v13245_v35, %s13863_s23  ;;  %v13255_v19 = vpack.c.bf16 %v7291_v30, %v7291_v30  ;;  %v13238_v35 = vpack.c.bf16 %v17214_v40, %v16867_v33  ;;  %v13246_v33 = vpack.c.bf16 %v7194_v50, %v16966_v26  ;;  %v7015_v26 = vmul.f32 %v17220_v59, %v16984_v12  ;;  %v12533_v30 = vld [vmem:[%s19434_s16 + $0x30] sm:$0xff] }
 0xc77   :  { %7236 = vrot.lane.b32.xlu0 %v13244_v37, %s13863_s23  ;;  %v7290_v37 = vmul.f32 %v17214_v40, %v16949_v1 }
 0xc79   :  { %7058 = vrot.lane.b32.xlu1 %v13229_v22, %s13868_s27  ;;  %v13254_v45 = vpack.c.bf16 %v7290_v37, %v16953_v34  ;;  %v13247_v22 = vpack.c.bf16 %v7195_v31, %v7195_v31 }
 0xc7b   :  { %7056 = vrot.lane.b32.xlu0 %v13228_v8, %s13868_s27  ;;  %v7014_v8 = vmul.f32 %v17214_v40, %v17021_v52 }
 0xc7d   :  { %7146 = vrot.lane.b32.xlu1 %v13239_v47, %s13854_s24  ;;  %v13230_v34 = vpack.c.bf16 %v7014_v8, %v17031_v13  ;;  %v13282_v47 = vpack.c.bf16 %v17220_v59, %v17214_v40  ;;  %v13231_v13 = vpack.c.bf16 %v7015_v26, %v7015_v26  ;;  %v19559_v40 = vpack.c.bf16 %v17253_v44, %v17249_v46 }
 0xc7e   :  { %v19560_v59 = vpack.c.bf16 %v17261_v62, %v17257_v17  ;;  %v19564_v46 = vpack.c.bf16 %v17303_v4, %v17299_v48  ;;  %v19565_v44 = vpack.c.bf16 %v17313_v24, %v17309_v38  ;;  %v17489_v17 = vpop.permute.xlu1 %7646  ;;  %v19566_v62 = vpack.c.bf16 %v17324_v32, %v17317_v41  ;;  %v12485_v24 = vld [vmem:[%s19433_s15 + $0x30] sm:$0xff]  ;;  %v12534_v41 = vld [vmem:[%s19434_s16 + $0x38] sm:$0xff]  ;;  %v12483_v32 = vld [vmem:[%s19433_s15 + $0x20] sm:$0xff] }
 0xc7f   :  { %7644 = vrot.lane.b32.xlu0 %v13280_v27, %s13870_s7  ;;  %v19569_v4 = vpack.c.bf16 %v17357_v58, %v17353_v15  ;;  %v19570_v38 = vpack.c.bf16 %v17367_v51, %v17363_v60  ;;  %v12532_v58 = vld [vmem:[%s19434_s16 + $0x28] sm:$0xff] }
 0xc81   :  { %7338 = vrot.lane.b32.xlu1 %v13255_v19, %s13864_s25 }
 0xc83   :  { %7144 = vrot.lane.b32.xlu0 %v13238_v35, %s13854_s24  ;;  %v12531_v35 = vld [vmem:[%s19434_s16 + $0x20] sm:$0xff] }
 0xc85   :  { %7638 = vrot.lane.b32.xlu1 %v16871_v63, %s13870_s7 }
 0xc87   :  { %7336 = vrot.lane.b32.xlu0 %v13254_v45, %s13864_s25 }
 0xc89   :  { %7242 = vrot.lane.b32.xlu1 %v13247_v22, %s13863_s23 }
 0xc8b   :  { %7240 = vrot.lane.b32.xlu0 %v13246_v33, %s13863_s23 }
 0xc8d   :  { %7642 = vrot.lane.b32.xlu1 %v16871_v63, %s13870_s7  ;;  %v19558_v63 = vpack.c.bf16 %v17194_v61, %v17187_v0  ;;  %v19561_v0 = vpack.c.bf16 %v17270_v56, %v17266_v18  ;;  %v19562_v61 = vpack.c.bf16 %v17278_v54, %v17274_v14  ;;  %v17499_v18 = vpop.permute.xlu1 %7650  ;;  %v13601_v14 = vld [vmem:[#allocation15 + $0x4] ss:$12 sps:$4 sm:$0xff]  }
 0xc8e   :  { %8089 = vmatprep.mubr.bf16.mxu1 %v13601_v14 }
 0xc8f   :  { %7060 = vrot.lane.b32.xlu0 %v13230_v34, %s13868_s27 }
 0xc91   :  { %7562 = vrot.lane.b32.xlu1 %v16897_v2, %s13866_s26 }
 0xc93   :  { %7648 = vrot.lane.b32.xlu0 %v13282_v47, %s13870_s7 }
 0xc95   :  { %7566 = vrot.lane.b32.xlu1 %v16897_v2, %s13866_s26 }
 0xc97   :  { %7640 = vrot.lane.b32.xlu0 %v19558_v63, %s13870_s7 }
 0xc99   :  { %7062 = vrot.lane.b32.xlu1 %v13231_v13, %s13868_s27 }
 0xc9b   :  { %7560 = vrot.lane.b32.xlu0 %v19559_v40, %s13866_s26 }
 0xc9d   :  { %7554 = vrot.lane.b32.xlu1 %v16897_v2, %s13866_s26 }
 0xc9f   :  { %7552 = vrot.lane.b32.xlu0 %v19560_v59, %s13866_s26 }
 0xca1   :  { %7558 = vrot.lane.b32.xlu1 %v16897_v2, %s13866_s26  ;;  %v19563_v2 = vpack.c.bf16 %v17290_v25, %v17286_v29  ;;  %v19568_v29 = vpack.c.bf16 %v17344_v21, %v17340_v7  ;;  %v12484_v21 = vld [vmem:[%s19433_s15 + $0x28] sm:$0xff] }
 0xca3   :  { %7556 = vrot.lane.b32.xlu0 %v19561_v0, %s13866_s26 }
 0xca5   :  { %7466 = vrot.lane.b32.xlu1 %v16929_v16, %s13865_s3 }
 0xca7   :  { %7464 = vrot.lane.b32.xlu0 %v19562_v61, %s13865_s3 }
 0xca9   :  { %7470 = vrot.lane.b32.xlu1 %v16929_v16, %s13865_s3 }
 0xcab   :  { %7456 = vrot.lane.b32.xlu0 %v19563_v2, %s13865_s3 }
 0xcad   :  { %7458 = vrot.lane.b32.xlu1 %v16929_v16, %s13865_s3 }
 0xcaf   :  { %7564 = vrot.lane.b32.xlu0 %v19564_v46, %s13866_s26 }
 0xcb1   :  { %7462 = vrot.lane.b32.xlu1 %v16929_v16, %s13865_s3  ;;  %v19567_v16 = vpack.c.bf16 %v17332_v43, %v17328_v57  ;;  %v12486_v43 = vld [vmem:[%s19433_s15 + $0x38] sm:$0xff] }
 0xcb3   :  { %7460 = vrot.lane.b32.xlu0 %v19565_v44, %s13865_s3 }
 0xcb5   :  { %7742 = vrot.lane.b32.xlu1 %v17035_v53, %s13867_s10 }
 0xcb7   :  { %7468 = vrot.lane.b32.xlu0 %v19566_v62, %s13865_s3 }
 0xcb9   :  { %7746 = vrot.lane.b32.xlu1 %v17035_v53, %s13867_s10 }
 0xcbb   :  { %7740 = vrot.lane.b32.xlu0 %v19567_v16, %s13867_s10 }
 0xcbd   :  { %7734 = vrot.lane.b32.xlu1 %v17035_v53, %s13867_s10  ;;  %v17507_v56 = vpop.permute.xlu0 %7132 }
 0xcbf   :  { %v17509_v54 = vpop.permute.xlu1 %7134  ;;  %7732 = vrot.lane.b32.xlu0 %v19568_v29, %s13867_s10 }
 0xcc1   :  { %7738 = vrot.lane.b32.xlu1 %v17035_v53, %s13867_s10  ;;  %v17517_v25 = vpop.permute.xlu0 %7324 }
 0xcc3   :  { %v7327_v48 = vpop.permute.xlu1 %7326  ;;  %7744 = vrot.lane.b32.xlu0 %v19569_v4, %s13867_s10 }
 0xcc4   :  { %v7341_v14 = vrot.slane %v7327_v48, 4 }
 0xcc5   :  { %7838 = vperm.xlu1 %13559, %v12486_v43   ;;  %v17526_v57 = vpop.permute.xlu0 %7228 }
 0xcc7   :  { %v17531_v53 = vpop.permute.xlu1 %7230  ;;  %7736 = vrot.lane.b32.xlu0 %v19570_v38, %s13867_s10 }
 0xcc8   :  { %v7245_v49 = vrot.slane %v17531_v53, 4 }
 0xcc9   :  { %7828 = vperm.xlu1 %13559, %v12484_v21   ;;  %v17540_v15 = vpop.permute.xlu0 %7048  ;;  %v7340_v21 = vrot.slane %v17517_v25, 4 }
 0xccb   :  { %v17545_v7 = vpop.permute.xlu1 %7050  ;;  %7833 = vperm.xlu0 %13558, %v12485_v24  }
 0xccd   :  { %8193 = vperm.xlu1 %13559, %v12534_v41   ;;  %v17550_v51 = vpop.permute.xlu0 %7636 }
 0xccf   :  { %v17555_v60 = vpop.permute.xlu1 %7138  ;;  %7823 = vperm.xlu0 %13558, %v12483_v32  }
 0xcd1   :  { %8183 = vperm.xlu1 %13559, %v12532_v58   ;;  %v17560_v27 = vpop.permute.xlu0 %7136  ;;  %v7348_v58 = vsel %vm586_vm8, %v7340_v21, %v7341_v14 }
 0xcd3   :  { %v7331_v19 = vpop.permute.xlu1 %7330  ;;  %8188 = vperm.xlu0 %13558, %v12533_v30  }
 0xcd4   :  { %v7343_v62 = vrot.slane %v7331_v19, 4 }
 0xcd5   :  { %v7329_v37 = vpop.permute.xlu0 %7328 }
 0xcd6   :  { %v7342_v2 = vrot.slane %v7329_v37, 4 }
 0xcd7   :  { %v7235_v31 = vpop.permute.xlu1 %7234  ;;  %8178 = vperm.xlu0 %13558, %v12531_v35  }
 0xcd8   :  { %v7350_v43 = vsel %vm586_vm8, %v7342_v2, %v7343_v62 }
 0xcd9   :  { %v17565_v45 = vpop.permute.xlu0 %7232  ;;  %v7351_v30 = vsel %vm756_vm2, %v7329_v37, %v7350_v43  ;;  %v7349_v37 = vsel %vm756_vm2, %v17517_v25, %v7348_v58  ;;  %v7247_v43 = vrot.slane %v7235_v31, 4 }
 0xcda   :  { %v7246_v48 = vrot.slane %v17565_v45, 4  ;;  %v12505_v25 = vcombine.low %v7349_v37, %v7351_v30 }
 0xcdb   :  { %v17567_v50 = vpop.permute.xlu1 %7054 }
 0xcdc   :  { %v7254_v53 = vsel %vm586_vm8, %v7246_v48, %v7247_v43  ;;  %v7150_v48 = vrot.slane %v17560_v27, 4 }
 0xcdd   :  { %v17569_v22 = vpop.permute.xlu0 %7052 }
 0xcdf   :  { %v17571_v33 = vpop.permute.xlu1 %7142 }
 0xce1   :  { %v17573_v8 = vpop.permute.xlu0 %7140 }
 0xce3   :  { %v7335_v34 = vpop.permute.xlu1 %7334 }
 0xce4   :  { %v7345_v29 = vrot.slane %v7335_v34, 4 }
 0xce5   :  { %v7333_v47 = vpop.permute.xlu0 %7332 }
 0xce6   :  { %v7344_v44 = vrot.slane %v7333_v47, 4 }
 0xce7   :  { %v7239_v26 = vpop.permute.xlu1 %7238 }
 0xce8   :  { %v7352_v38 = vsel %vm586_vm8, %v7344_v44, %v7345_v29  ;;  %v7249_v2 = vrot.slane %v7239_v26, 4  ;;  %v12506_v26 = vcombine.high %v7349_v37, %v7351_v30  ;;  %v7153_v30 = vrot.slane %v17571_v33, 4 }
 0xce9   :  { %v7237_v63 = vpop.permute.xlu0 %7236  ;;  %v7353_v34 = vsel %vm756_vm2, %v7333_v47, %v7352_v38 }
 0xcea   :  { %v7248_v35 = vrot.slane %v7237_v63, 4 }
 0xceb   :  { %v17575_v13 = vpop.permute.xlu1 %7058 }
 0xcec   :  { %v7256_v21 = vsel %vm586_vm8, %v7248_v35, %v7249_v2  ;;  %v7152_v35 = vrot.slane %v17573_v8, 4  ;;  %v7149_v2 = vrot.slane %v17509_v54, 4 }
 0xced   :  { %v17577_v40 = vpop.permute.xlu0 %7056  ;;  %v7257_v31 = vsel %vm698_vm1, %v7237_v63, %v7256_v21 }
 0xcef   :  { %v7147_v59 = vpop.permute.xlu1 %7146 }
 0xcf1   :  { %v17579_v0 = vpop.permute.xlu0 %7644 }
 0xcf3   :  { %v7339_v61 = vpop.permute.xlu1 %7338 }
 0xcf4   :  { %v7347_v24 = vrot.slane %v7339_v61, 4 }
 0xcf5   :  { %v17581_v46 = vpop.permute.xlu0 %7144 }
 0xcf7   :  { %v17583_v16 = vpop.permute.xlu1 %7638 }
 0xcf9   :  { %v7337_v4 = vpop.permute.xlu0 %7336 }
 0xcfa   :  { %v7346_v41 = vrot.slane %v7337_v4, 4 }
 0xcfb   :  { %v7243_v32 = vpop.permute.xlu1 %7242 }
 0xcfc   :  { %v7354_v19 = vsel %vm586_vm8, %v7346_v41, %v7347_v24  ;;  %v7251_v44 = vrot.slane %v7243_v32, 4  ;;  %v7244_v24 = vrot.slane %v17526_v57, 4  ;;  %v7154_v41 = vrot.slane %v17581_v46, 4 }
 0xcfd   :  { %v7355_v62 = vsel %vm756_vm2, %v7337_v4, %v7354_v19  ;;  %v7241_v39 = vpop.permute.xlu0 %7240  ;;  %v7155_v19 = vrot.slane %v7147_v59, 4 }
 0xcfe   :  { %v12507_v36 = vcombine.low %v7353_v34, %v7355_v62  ;;  %v7250_v61 = vrot.slane %v7241_v39, 4  ;;  %v12508_v29 = vcombine.high %v7353_v34, %v7355_v62  ;;  %v7252_v58 = vsel %vm586_vm8, %v7244_v24, %v7245_v49 }
 0xcff   :  { %v17597_v14 = vpop.permute.xlu1 %7642  ;;  %v7162_v63 = vsel %vm586_vm8, %v7154_v41, %v7155_v19  ;;  %v7253_v49 = vsel %vm698_vm1, %v17526_v57, %v7252_v58  ;;  %v7066_v41 = vrot.slane %v17569_v22, 4  ;;  %v7065_v19 = vrot.slane %v17545_v7, 4 }
 0xd00   :  { %v7258_v47 = vsel %vm586_vm8, %v7250_v61, %v7251_v44  ;;  %8057 = vmatprep.subr.bf16.mxu1 %v12508_v29  ;;  %v7160_v44 = vsel %vm586_vm8, %v7152_v35, %v7153_v30  ;;  %v7148_v29 = vrot.slane %v17507_v56, 4  ;;  %v7163_v33 = vsel %vm631_vm7, %v17581_v46, %v7162_v63 }
 0xd01   :  { %v7259_v4 = vsel %vm698_vm1, %v7241_v39, %v7258_v47  ;;  %8058 = vmatpush1.bf16.msra.mxu1 %v12507_v36  ;;  %v7061_v38 = vpop.permute.xlu0 %7060  ;;  %v7255_v36 = vsel %vm698_vm1, %v17565_v45, %v7254_v53  ;;  %v7151_v45 = vrot.slane %v17555_v60, 4  ;;  %v7161_v60 = vsel %vm631_vm7, %v17573_v8, %v7160_v44 }
 0xd02   :  { %8059 = vmatprep.subr.bf16.mxu1 %v12506_v26  ;;  %v12504_v39 = vcombine.high %v7257_v31, %v7259_v4  ;;  %v12503_v59 = vcombine.low %v7257_v31, %v7259_v4  ;;  %v12502_v61 = vcombine.high %v7253_v49, %v7255_v36  ;;  %v7156_v57 = vsel %vm586_vm8, %v7148_v29, %v7149_v2 }
 0xd03   :  { %v17606_v32 = vpop.permute.xlu1 %7562  ;;  %v7158_v54 = vsel %vm586_vm8, %v7150_v48, %v7151_v45  ;;  %v12501_v43 = vcombine.low %v7253_v49, %v7255_v36  ;;  %v7068_v47 = vrot.slane %v17577_v40, 4  ;;  %v7070_v26 = vrot.slane %v7061_v38, 4 }
 0xd04   :  { %v12500_v24 = vcombine.high %v7161_v60, %v7163_v33  ;;  %v7159_v46 = vsel %vm631_vm7, %v17560_v27, %v7158_v54  ;;  %v7157_v8 = vsel %vm631_vm7, %v17507_v56, %v7156_v57  ;;  %v12499_v58 = vcombine.low %v7161_v60, %v7163_v33 }
 0xd05   :  { %8060 = vmatpush1.bf16.msra.mxu1 %v12505_v25  ;;  %v17612_v34 = vpop.permute.xlu0 %7648  ;;  %v7069_v25 = vrot.slane %v17575_v13, 4  ;;  %v7067_v27 = vrot.slane %v17567_v50, 4  ;;  %v12498_v36 = vcombine.high %v7157_v8, %v7159_v46  ;;  %v7064_v30 = vrot.slane %v17540_v15, 4 }
 0xd06   :  { %8061 = vmatprep.subr.bf16.mxu1 %v12504_v39  ;;  %v7658_v56 = vrot.slane %v17612_v34, 4  ;;  %v12497_v2 = vcombine.low %v7157_v8, %v7159_v46  ;;  %v7659_v49 = vrot.slane %v17499_v18, 4  ;;  %v7656_v45 = vrot.slane %v17579_v0, 4 }
 0xd07   :  { %v17620_v62 = vpop.permute.xlu1 %7566  ;;  %v7076_v39 = vsel %vm586_vm8, %v7068_v47, %v7069_v25  ;;  %v7074_v63 = vsel %vm586_vm8, %v7066_v41, %v7067_v27  ;;  %v7657_v29 = vrot.slane %v17489_v17, 4  ;;  %v7653_v60 = vrot.slane %v17583_v16, 4 }
 0xd08   :  { %v7077_v7 = vsel %vm588_vm6, %v17577_v40, %v7076_v39  ;;  %v7666_v33 = vsel %vm586_vm8, %v7658_v56, %v7659_v49 }
 0xd09   :  { %8062 = vmatpush1.bf16.msra.mxu1 %v12503_v59  ;;  %v17627_v37 = vpop.permute.xlu0 %7640  ;;  %v7072_v59 = vsel %vm586_vm8, %v7064_v30, %v7065_v19  ;;  %v7667_v17 = vsel %vm933_vm9, %v17612_v34, %v7666_v33 }
 0xd0a   :  { %8063 = vmatprep.subr.bf16.mxu1 %v12502_v61  ;;  %v7654_v54 = vrot.slane %v17627_v37, 4  ;;  %v7073_v18 = vsel %vm588_vm6, %v17540_v15, %v7072_v59 }
 0xd0b   :  { %v7063_v21 = vpop.permute.xlu1 %7062 }
 0xd0c   :  { %v7071_v4 = vrot.slane %v7063_v21, 4 }
 0xd0d   :  { %8064 = vmatpush1.bf16.msra.mxu1 %v12501_v43  ;;  %v17636_v53 = vpop.permute.xlu0 %7560  ;;  %v7664_v43 = vsel %vm586_vm8, %v7656_v45, %v7657_v29 }
 0xd0e   :  { %v7078_v31 = vsel %vm586_vm8, %v7070_v26, %v7071_v4  ;;  %8065 = vmatprep.subr.bf16.mxu1 %v12500_v24  ;;  %v7652_v26 = vrot.slane %v17550_v51, 4  ;;  %v7665_v24 = vsel %vm933_vm9, %v17579_v0, %v7664_v43  ;;  %v7572_v25 = vrot.slane %v17636_v53, 4 }
 0xd0f   :  { %v17643_v35 = vpop.permute.xlu1 %7554  ;;  %v7079_v13 = vsel %vm588_vm6, %v7061_v38, %v7078_v31  ;;  %v7075_v38 = vsel %vm588_vm6, %v17569_v22, %v7074_v63  ;;  %v7655_v22 = vrot.slane %v17597_v14, 4  ;;  %v12524_v14 = vcombine.high %v7665_v24, %v7667_v17 }
 0xd10   :  { %v12496_v44 = vcombine.high %v7077_v7, %v7079_v13  ;;  %v12495_v40 = vcombine.low %v7077_v7, %v7079_v13  ;;  %v12494_v21 = vcombine.high %v7073_v18, %v7075_v38  ;;  %v12493_v15 = vcombine.low %v7073_v18, %v7075_v38 }
 0xd11   :  { %8066 = vmatpush1.bf16.msra.mxu1 %v12499_v58  ;;  %v17648_v48 = vpop.permute.xlu0 %7552  ;;  %v7662_v4 = vsel %vm586_vm8, %v7654_v54, %v7655_v22  ;;  %v7660_v16 = vsel %vm586_vm8, %v7652_v26, %v7653_v60  ;;  %v12523_v8 = vcombine.low %v7665_v24, %v7667_v17  ;;  %v7573_v0 = vrot.slane %v17606_v32, 4 }
 0xd12   :  { %8067 = vmatprep.subr.bf16.mxu1 %v12498_v36  ;;  %v7663_v41 = vsel %vm933_vm9, %v17627_v37, %v7662_v4  ;;  %v7661_v58 = vsel %vm933_vm9, %v17550_v51, %v7660_v16  ;;  %v7568_v27 = vrot.slane %v17648_v48, 4  ;;  %v7575_v13 = vrot.slane %v17620_v62, 4 }
 0xd13   :  { %v7559_v50 = vpop.permute.xlu1 %7558  ;;  %v12522_v36 = vcombine.high %v7661_v58, %v7663_v41  ;;  %v7580_v30 = vsel %vm586_vm8, %v7572_v25, %v7573_v0  ;;  %v7569_v63 = vrot.slane %v17643_v35, 4  ;;  %v12521_v51 = vcombine.low %v7661_v58, %v7663_v41  ;;  %v7371_v0 = vld [vmem:[#allocation3 + $0x70] sm:$0xff] }
 0xd14   :  { %v7571_v39 = vrot.slane %v7559_v50, 4  ;;  %v7581_v50 = vsel %vm658_vm4, %v17636_v53, %v7580_v30 }
 0xd15   :  { %8068 = vmatpush1.bf16.msra.mxu1 %v12497_v2  ;;  %v7557_v61 = vpop.permute.xlu0 %7556  ;;  %v7576_v32 = vsel %vm586_vm8, %v7568_v27, %v7569_v63 }
 0xd16   :  { %8069 = vmatprep.subr.bf16.mxu1 %v12496_v44  ;;  %v7570_v31 = vrot.slane %v7557_v61, 4  ;;  %v7577_v33 = vsel %vm658_vm4, %v17648_v48, %v7576_v32 }
 0xd17   :  { %v7467_v57 = vpop.permute.xlu1 %7466 }
 0xd18   :  { %v7578_v56 = vsel %vm586_vm8, %v7570_v31, %v7571_v39  ;;  %v7477_v54 = vrot.slane %v7467_v57, 4 }
 0xd19   :  { %8070 = vmatpush1.bf16.msra.mxu1 %v12495_v40  ;;  %v17671_v47 = vpop.permute.xlu0 %7464  ;;  %v7579_v62 = vsel %vm658_vm4, %v7557_v61, %v7578_v56  ;;  %v7367_v56 = vld [vmem:[#allocation3 + $0x30] sm:$0xff] }
 0xd1a   :  { %8071 = vmatprep.subr.bf16.mxu1 %v12494_v21  ;;  %v7476_v59 = vrot.slane %v17671_v47, 4  ;;  %v12518_v53 = vcombine.high %v7577_v33, %v7579_v62  ;;  %v12517_v4 = vcombine.low %v7577_v33, %v7579_v62  ;;  %v7365_v62 = vld [vmem:[#allocation3 + $0x10] sm:$0xff] }
 0xd1b   :  { %v7471_v46 = vpop.permute.xlu1 %7470 }
 0xd1c   :  { %v7484_v61 = vsel %vm586_vm8, %v7476_v59, %v7477_v54  ;;  %v7479_v22 = vrot.slane %v7471_v46, 4 }
 0xd1d   :  { %8072 = vmatpush1.bf16.msra.mxu1 %v12493_v15  ;;  %v7457_v34 = vpop.permute.xlu0 %7456  ;;  %v7485_v24 = vsel %vm716_vm3, %v17671_v47, %v7484_v61  ;;  %v7369_v47 = vld [vmem:[#allocation3 + $0x50] sm:$0xff] }
 0xd1e   :  { %8073 = vmatprep.subr.bf16.mxu1 %v12524_v14  ;;  %v7472_v21 = vrot.slane %v7457_v34, 4 }
 0xd1f   :  { %v7459_v19 = vpop.permute.xlu1 %7458 }
 0xd20   :  { %v7473_v40 = vrot.slane %v7459_v19, 4 }
 0xd21   :  { %8074 = vmatpush2.bf16.msra.mxu1 %v12523_v8  ;;  %v7565_v37 = vpop.permute.xlu0 %7564 }
 0xd22   :  { %v7574_v2 = vrot.slane %v7565_v37, 4  ;;  %8075 = vmatprep.subr.bf16.mxu1 %v12522_v36  ;;  %v7480_v48 = vsel %vm586_vm8, %v7472_v21, %v7473_v40 }
 0xd23   :  { %v7463_v7 = vpop.permute.xlu1 %7462  ;;  %v7481_v31 = vsel %vm716_vm3, %v7457_v34, %v7480_v48  ;;  %v13602_v48 = vld [vmem:[#allocation15 + $0x8] ss:$12 sps:$4 sm:$0xff]  }
 0xd24   :  { %v7582_v49 = vsel %vm586_vm8, %v7574_v2, %v7575_v13  ;;  %v7475_v43 = vrot.slane %v7463_v7, 4  ;;  %v13519_v13 = vpack.c.bf16 %v7371_v0, %v7369_v47  ;;  %v7368_v7 = vld [vmem:[#allocation3 + $0x48] sm:$0xff] }
 0xd25   :  { %v7583_v45 = vsel %vm658_vm4, %v7565_v37, %v7582_v49  ;;  %8076 = vmatpush2.bf16.msra.mxu1 %v12521_v51  ;;  %v7461_v35 = vpop.permute.xlu0 %7460  ;;  %v7370_v37 = vld [vmem:[#allocation3 + $0x68] sm:$0xff] }
 0xd26   :  { %v12519_v44 = vcombine.low %v7581_v50, %v7583_v45  ;;  %v7474_v38 = vrot.slane %v7461_v35, 4  ;;  %v12520_v29 = vcombine.high %v7581_v50, %v7583_v45  ;;  %v13518_v50 = vpack.c.bf16 %v7370_v37, %v7368_v7 }
 0xd27   :  { %v7743_v18 = vpop.permute.xlu1 %7742  ;;  %v13517_v45 = vpack.c.bf16 %v7367_v56, %v7365_v62 }
 0xd28   :  { %8077 = vmatprep.subr.bf16.mxu1 %v12520_v29  ;;  %v7482_v17 = vsel %vm586_vm8, %v7474_v38, %v7475_v43  ;;  %v7753_v36 = vrot.slane %v7743_v18, 4 }
 0xd29   :  { %8078 = vmatpush2.bf16.msra.mxu1 %v12519_v44  ;;  %v7469_v60 = vpop.permute.xlu0 %7468  ;;  %v7483_v16 = vsel %vm716_vm3, %v7461_v35, %v7482_v17  ;;  %v7366_v35 = vld [vmem:[#allocation3 + $0x28] sm:$0xff] }
 0xd2a   :  { %v7478_v26 = vrot.slane %v7469_v60, 4  ;;  %8079 = vmatprep.subr.bf16.mxu1 %v12518_v53  ;;  %v12514_v8 = vcombine.high %v7481_v31, %v7483_v16  ;;  %v12513_v39 = vcombine.low %v7481_v31, %v7483_v16  ;;  %v7364_v53 = vld [vmem:[#allocation3 + $0x8] sm:$0xff]  ;;  %v17719_v16 = vld [vmem:[#allocation2 + $0x18] sm:$0xff] }
 0xd2b   :  { %v7747_v15 = vpop.permute.xlu1 %7746  ;;  %v13516_v61 = vpack.c.bf16 %v7366_v35, %v7364_v53 }
 0xd2c   :  { %v7486_v57 = vsel %vm586_vm8, %v7478_v26, %v7479_v22  ;;  %v7755_v2 = vrot.slane %v7747_v15, 4  ;;  %v13599_v22 = vld [vmem:[#allocation15] ss:$12 sps:$4 sm:$0xff]   ;;  %v13603_v26 = vld [vmem:[#allocation15 + $0x1c] ss:$12 sps:$4 sm:$0xff]  }
 0xd2d   :  { %v7487_v14 = vsel %vm716_vm3, %v7469_v60, %v7486_v57  ;;  %8080 = vmatpush2.bf16.msra.mxu1 %v12517_v4  ;;  %v7741_v46 = vpop.permute.xlu0 %7740  ;;  %v13605_v57 = vld [vmem:[#allocation15 + $0x18] ss:$12 sps:$4 sm:$0xff]  }
 0xd2e   :  { %v12515_v41 = vcombine.low %v7485_v24, %v7487_v14  ;;  %v12516_v25 = vcombine.high %v7485_v24, %v7487_v14  ;;  %v7752_v27 = vrot.slane %v7741_v46, 4  ;;  %v13606_v24 = vld [vmem:[#allocation15 + $0x20] ss:$12 sps:$4 sm:$0xff]   ;;  %v17723_v14 = vpack.c.bf16 %v17719_v16, %v17719_v16 }
 0xd2f   :  { %v7735_v58 = vpop.permute.xlu1 %7734 }
 0xd30   :  { %8081 = vmatprep.subr.bf16.mxu1 %v12516_v25  ;;  %v7760_v34 = vsel %vm586_vm8, %v7752_v27, %v7753_v36  ;;  %v7749_v32 = vrot.slane %v7735_v58, 4  ;;  %8874 = vrot.lane.b32.xlu1 %v17723_v14, %s13870_s7 }
 0xd31   :  { %8082 = vmatpush2.bf16.msra.mxu1 %v12515_v41  ;;  %v7733_v19 = vpop.permute.xlu0 %7732  ;;  %v7761_v44 = vsel %vm547_vm5, %v7741_v46, %v7760_v34 }
 0xd32   :  { %8083 = vmatprep.subr.bf16.mxu1 %v12514_v8  ;;  %v7748_v30 = vrot.slane %v7733_v19, 4 }
 0xd33   :  { %v7739_v49 = vpop.permute.xlu1 %7738 }
 0xd34   :  { %v7756_v38 = vsel %vm586_vm8, %v7748_v30, %v7749_v32  ;;  %v7751_v54 = vrot.slane %v7739_v49, 4  ;;  %8878 = vrot.lane.b32.xlu1 %v17723_v14, %s13870_s7 }
 0xd35   :  { %8084 = vmatpush2.bf16.msra.mxu1 %v12513_v39  ;;  %v7745_v63 = vpop.permute.xlu0 %7744  ;;  %v7757_v21 = vsel %vm547_vm5, %v7733_v19, %v7756_v38 }
 0xd36   :  { %v7754_v51 = vrot.slane %v7745_v63, 4  ;;  %8085 = vmatprep.subr.bf16.mxu1 %v13519_v13 }
 0xd38   :  { %v7762_v59 = vsel %vm586_vm8, %v7754_v51, %v7755_v2 }
 0xd39   :  { %v7763_v29 = vsel %vm547_vm5, %v7745_v63, %v7762_v59  ;;  %8086 = vmatpush2.bf16.msra.mxu1 %v13518_v50  ;;  %v7737_v33 = vpop.permute.xlu0 %7736 }
 0xd3a   :  { %v12527_v18 = vcombine.low %v7761_v44, %v7763_v29  ;;  %v7750_v40 = vrot.slane %v7737_v33, 4  ;;  %8087 = vmatprep.subr.bf16.mxu1 %v13517_v45  ;;  %v12528_v43 = vcombine.high %v7761_v44, %v7763_v29 }
 0xd3c   :  { %v7758_v60 = vsel %vm586_vm8, %v7750_v40, %v7751_v54  ;;  %8122 = vmatprep.subr.bf16.mxu0 %v12528_v43 }
 0xd3d   :  { %v7759_v17 = vsel %vm547_vm5, %v7737_v33, %v7758_v60  ;;  %8088 = vmatpush2.bf16.msra.mxu1 %v13516_v61  ;;  %8123 = vmatpush1.bf16.msra.mxu0 %v12527_v18  ;;  %v17750_v61 = vmul.f32 %v17719_v16, %v16938_v6 }
 0xd3e   :  { %v12525_v4 = vcombine.low %v7757_v21, %v7759_v17  ;;  %v12526_v15 = vcombine.high %v7757_v21, %v7759_v17 }
 0xd40   :  { %8090 = vmatmul.mubr.bf16.vlgmr.msra.gmra.mxu1 %v13599_v22  ;;  %8124 = vmatprep.subr.bf16.mxu0 %v12526_v15  ;;  %v17729_v41 = vpop.permute.xlu1 %7838 }
 0xd41   :  { %8125 = vmatpush1.bf16.msra.mxu0 %v12525_v4  ;;  %8099 = vmatprep.mubr.bf16.mxu1 %v13603_v26 }
 0xd44   :  { %12529 = vmatmul.mubr.msk.bf16.vlgmr.msra.gmra.mxu0 %vm2328_vm12, %v13602_v48  ;;  %v7829_v31 = vpop.permute.xlu1 %7828 }
 0xd45   :  { %8152 = vmatprep.mubr.bf16.mxu0 %v19515_v10 }
 0xd46   :  { %v7834_v46 = vpop.permute.xlu0 %7833 }
 0xd48   :  { %8100 = vmatmul.mubr.bf16.gmra.mxu1 %v13605_v57  ;;  %v17733_v47 = vpop.permute.xlu1 %8193 }
 0xd49   :  { %9371 = vmatprep.mubr.bf16.mxu1 %v19515_v10 }
 0xd4a   :  { %v7824_v25 = vpop.permute.xlu0 %7823 }
 0xd4c   :  { %12530 = vmatmul.mubr.msk.bf16.gmra.mxu0 %vm2328_vm12, %v13606_v24  ;;  %v8184_v38 = vpop.permute.xlu1 %8183 }
 0xd4e   :  { %v17731_v8 = vpop.permute.xlu0 %8188 }
 0xd52   :  { %v8179_v36 = vpop.permute.xlu0 %8178 }
 0xe00   :  { %v8091_v58 = vpop.f32.mrf.mxu1 }
 0xe01   :  { %v8092_v0 = vadd.f32 %v8091_v58, %v7824_v25 }
 0xe02   :  { %v8093_v19 = vpop.f32.mrf.mxu1 }
 0xe03   :  { %v8094_v13 = vadd.f32 %v8093_v19, %v7824_v25 }
 0xe04   :  { %v8095_v27 = vpop.f32.mrf.mxu1  ;;  %v8144_v39 = vpop.f32.mrf.mxu0 }
 0xe05   :  { %v8145_v37 = vadd.f32 %v8144_v39, %v8092_v0  ;;  %v8096_v34 = vadd.f32 %v8095_v27, %v7829_v31  ;;  %v17769_v0 = vmul.f32 %v17719_v16, %v16942_v5 }
 0xe06   :  { %v8097_v30 = vpop.f32.mrf.mxu1  ;;  %v8146_v63 = vpop.f32.mrf.mxu0 }
 0xe07   :  { %vm8163_vm15 = vcmp.ge.f32.partialorder %v8145_v37, 0.0  ;;  %v8196_v56 = vmul.f32 %v8179_v36, %v8145_v37  ;;  %v8147_v2 = vadd.f32 %v8146_v63, %v8094_v13  ;;  %v8098_v49 = vadd.f32 %v8097_v30, %v7829_v31 }
 0xe08   :  { %v8101_v51 = vpop.f32.mrf.mxu1  ;;  %v8148_v7 = vpop.f32.mrf.mxu0 }
 0xe09   :  { %v17735_v32 = vsel %vm8163_vm15, %v8145_v37, %v8196_v56  ;;  %vm8164_vm10 = vcmp.ge.f32.partialorder %v8147_v2, 0.0  ;;  %v8197_v50 = vmul.f32 %v8179_v36, %v8147_v2  ;;  %v8149_v62 = vadd.f32 %v8148_v7, %v8096_v34 }
 0xe0a   :  { %8212 = vst [vmem:[#allocation3 + $0x8] sm:$0xff] %v17735_v32  ;;  %v8103_v59 = vpop.f32.mrf.mxu1  ;;  %v8150_v45 = vpop.f32.mrf.mxu0  ;;  %v13300_v35 = vpack.c.bf16 %v17735_v32, %v17719_v16  ;;  %v8509_v44 = vmul.f32 %v17735_v32, %v16949_v1  ;;  %v8102_v33 = vadd.f32 %v8101_v51, %v7834_v46  ;;  %v8413_v21 = vmul.f32 %v17735_v32, %v16962_v55 }
 0xe0b   :  { %v17742_v29 = vsel %vm8164_vm10, %v8147_v2, %v8197_v50  ;;  %v8151_v54 = vadd.f32 %v8150_v45, %v8098_v49  ;;  %vm8165_vm11 = vcmp.ge.f32.partialorder %v8149_v62, 0.0  ;;  %v8198_v18 = vmul.f32 %v8184_v38, %v8149_v62 }
 0xe0c   :  { %8213 = vst [vmem:[#allocation3 + $0x10] sm:$0xff] %v17742_v29  ;;  %v8105_v40 = vpop.f32.mrf.mxu1  ;;  %v8154_v43 = vpop.f32.mrf.mxu0  ;;  %8360 = vrot.lane.b32.xlu0 %v13300_v35, %s13854_s24  ;;  %v13301_v53 = vpack.c.bf16 %v17742_v29, %v17742_v29  ;;  %v8104_v26 = vadd.f32 %v8103_v59, %v7834_v46  ;;  %v13316_v48 = vpack.c.bf16 %v8509_v44, %v17750_v61 }
 0xe0d   :  { %vm8166_vm13 = vcmp.ge.f32.partialorder %v8151_v54, 0.0  ;;  %v8199_v60 = vmul.f32 %v8184_v38, %v8151_v54  ;;  %v8155_v22 = vadd.f32 %v8154_v43, %v8102_v33  ;;  %v17754_v17 = vsel %vm8165_vm11, %v8149_v62, %v8198_v18 }
 0xe0e   :  { %v8107_v4 = vpop.f32.mrf.mxu1  ;;  %v8156_v15 = vpop.f32.mrf.mxu0  ;;  %8362 = vrot.lane.b32.xlu1 %v13301_v53, %s13854_s24  ;;  %v8510_v57 = vmul.f32 %v17742_v29, %v16936_v28  ;;  %8214 = vst [vmem:[#allocation3 + $0x28] sm:$0xff] %v17754_v17  ;;  %v8106_v25 = vadd.f32 %v8105_v40, %v17729_v41  ;;  %v8414_v27 = vmul.f32 %v17742_v29, %v16940_v11 }
 0xe0f   :  { %v17761_v24 = vsel %vm8166_vm13, %v8151_v54, %v8199_v60  ;;  %vm8167_vm14 = vcmp.ge.f32.partialorder %v8155_v22, 0.0  ;;  %v8200_v31 = vmul.f32 %v17731_v8, %v8155_v22  ;;  %v8157_v46 = vadd.f32 %v8156_v15, %v8104_v26 }
 0xe10   :  { %8215 = vst [vmem:[#allocation3 + $0x30] sm:$0xff] %v17761_v24  ;;  %v8158_v58 = vpop.f32.mrf.mxu0  ;;  %8552 = vrot.lane.b32.xlu0 %v13316_v48, %s13864_s25  ;;  %v13317_v19 = vpack.c.bf16 %v8510_v57, %v8510_v57  ;;  %v8108_v36 = vadd.f32 %v8107_v4, %v17729_v41  ;;  %v13308_v63 = vpack.c.bf16 %v8413_v21, %v17769_v0 }
 0xe11   :  { %v17773_v39 = vsel %vm8167_vm14, %v8155_v22, %v8200_v31  ;;  %v8159_v13 = vadd.f32 %v8158_v58, %v8106_v25  ;;  %vm8168_vm15 = vcmp.ge.f32.partialorder %v8157_v46, 0.0  ;;  %v8201_v37 = vmul.f32 %v17731_v8, %v8157_v46 }
 0xe12   :  { %8216 = vst [vmem:[#allocation3 + $0x48] sm:$0xff] %v17773_v39  ;;  %v8160_v30 = vpop.f32.mrf.mxu0  ;;  %8554 = vrot.lane.b32.xlu1 %v13317_v19, %s13864_s25  ;;  %v8233_v56 = vmul.f32 %v17735_v32, %v17021_v52  ;;  %v13309_v41 = vpack.c.bf16 %v8414_v27, %v8414_v27  ;;  %v17788_v8 = vmul.f32 %v17719_v16, %v17010_v23 }
 0xe13   :  { %vm8169_vm10 = vcmp.ge.f32.partialorder %v8159_v13, 0.0  ;;  %v8202_v2 = vmul.f32 %v17733_v47, %v8159_v13  ;;  %v8161_v34 = vadd.f32 %v8160_v30, %v8108_v36  ;;  %v17783_v51 = vsel %vm8168_vm15, %v8157_v46, %v8201_v37 }
 0xe14   :  { %8456 = vrot.lane.b32.xlu0 %v13308_v63, %s13863_s23  ;;  %v8234_v7 = vmul.f32 %v17742_v29, %v16984_v12  ;;  %8217 = vst [vmem:[#allocation3 + $0x50] sm:$0xff] %v17783_v51  ;;  %v13292_v62 = vpack.c.bf16 %v8233_v56, %v17788_v8  ;;  %v13344_v35 = vpack.c.bf16 %v17742_v29, %v17735_v32 }
 0xe15   :  { %v17793_v49 = vsel %vm8169_vm10, %v8159_v13, %v8202_v2  ;;  %vm8170_vm11 = vcmp.ge.f32.partialorder %v8161_v34, 0.0  ;;  %v8203_v50 = vmul.f32 %v17733_v47, %v8161_v34  ;;  %v8513_v47 = vmul.f32 %v17761_v24, %v16936_v28 }
 0xe16   :  { %8218 = vst [vmem:[#allocation3 + $0x68] sm:$0xff] %v17793_v49  ;;  %8458 = vrot.lane.b32.xlu1 %v13309_v41, %s13863_s23  ;;  %v13293_v45 = vpack.c.bf16 %v8234_v7, %v8234_v7  ;;  %v8512_v44 = vmul.f32 %v17754_v17, %v16949_v1  ;;  %v8417_v38 = vmul.f32 %v17761_v24, %v16940_v11 }
 0xe17   :  { %v17799_v59 = vsel %vm8170_vm11, %v8161_v34, %v8203_v50  ;;  %v8416_v33 = vmul.f32 %v17754_v17, %v16962_v55  ;;  %v13303_v54 = vpack.c.bf16 %v17761_v24, %v17761_v24  ;;  %v13302_v18 = vpack.c.bf16 %v17754_v17, %v17719_v16 }
 0xe18   :  { %8219 = vst [vmem:[#allocation3 + $0x70] sm:$0xff] %v17799_v59  ;;  %8276 = vrot.lane.b32.xlu0 %v13292_v62, %s13868_s27  ;;  %v13319_v40 = vpack.c.bf16 %v8513_v47, %v8513_v47  ;;  %v13346_v43 = vpack.c.bf16 %v17761_v24, %v17754_v17  ;;  %v13318_v53 = vpack.c.bf16 %v8512_v44, %v17750_v61  ;;  %v19572_v44 = vld [vmem:[#allocation34_spill] sm:$0xff] }
 0xe19   :  { %v13311_v60 = vpack.c.bf16 %v8417_v38, %v8417_v38  ;;  %v13310_v22 = vpack.c.bf16 %v8416_v33, %v17769_v0  ;;  %v8237_v21 = vmul.f32 %v17761_v24, %v16984_v12  ;;  %v17829_v26 = vmul.f32 %v17773_v39, %v16884_v20 }
 0xe1a   :  { %8278 = vrot.lane.b32.xlu1 %v13293_v45, %s13868_s27  ;;  %v17833_v4 = vmul.f32 %v17783_v51, %v16890_v3  ;;  %v17837_v15 = vmul.f32 %v17735_v32, %v16884_v20  ;;  %v17841_v48 = vmul.f32 %v17742_v29, %v16890_v3  ;;  %v17845_v57 = vmul.f32 %v17754_v17, %v16884_v20  ;;  %v19571_v45 = vld [vmem:[#allocation32_spill] sm:$0xff] }
 0xe1b   :  { %v17849_v25 = vmul.f32 %v17761_v24, %v16890_v3  ;;  %v17853_v31 = vmul.f32 %v17773_v39, %v16906_v42  ;;  %v17857_v46 = vmul.f32 %v17783_v51, %v16913_v9  ;;  %v17866_v27 = vmul.f32 %v17735_v32, %v16906_v42 }
 0xe1c   :  { %8864 = vrot.lane.b32.xlu0 %v13344_v35, %s13870_s7  ;;  %v13340_v58 = vpack.c.bf16 %v17833_v4, %v17829_v26  ;;  %v13336_v19 = vpack.c.bf16 %v17841_v48, %v17837_v15  ;;  %v17870_v36 = vmul.f32 %v17742_v29, %v16913_v9  ;;  %v17878_v30 = vmul.f32 %v17793_v49, %v16884_v20  ;;  %v19578_v26 = vld [vmem:[#allocation31_spill] sm:$0xff] }
 0xe1d   :  { %v13338_v13 = vpack.c.bf16 %v17849_v25, %v17845_v57  ;;  %v17882_v63 = vmul.f32 %v17799_v59, %v16890_v3  ;;  %v8236_v56 = vmul.f32 %v17754_v17, %v17021_v52  ;;  %v17891_v34 = vmul.f32 %v17754_v17, %v16906_v42  ;;  %v18066_v57 = vpop.permute.xlu1 %8874 }
 0xe1e   :  { %8366 = vrot.lane.b32.xlu1 %v13303_v54, %s13854_s24  ;;  %v17895_v41 = vmul.f32 %v17761_v24, %v16913_v9  ;;  %v17901_v50 = vmul.f32 %v17793_v49, %v16906_v42  ;;  %v17905_v62 = vmul.f32 %v17799_v59, %v16913_v9  ;;  %v17909_v35 = vmul.f32 %v17773_v39, %v19571_v45 }
 0xe1f   :  { %v17916_v38 = vmul.f32 %v17783_v51, %v19572_v44  ;;  %v17920_v33 = vmul.f32 %v17735_v32, %v19571_v45  ;;  %v17924_v54 = vmul.f32 %v17742_v29, %v19572_v44  ;;  %v13305_v29 = vpack.c.bf16 %v17783_v51, %v17783_v51 }
 0xe20   :  { %8364 = vrot.lane.b32.xlu0 %v13302_v18, %s13854_s24  ;;  %v13295_v18 = vpack.c.bf16 %v8237_v21, %v8237_v21  ;;  %v17943_v21 = vmul.f32 %v17754_v17, %v19571_v45  ;;  %v8516_v7 = vmul.f32 %v17783_v51, %v16936_v28  ;;  %v13304_v47 = vpack.c.bf16 %v17773_v39, %v17719_v16 }
 0xe21   :  { %v8419_v2 = vmul.f32 %v17773_v39, %v16962_v55  ;;  %v8240_v37 = vmul.f32 %v17783_v51, %v16984_v12  ;;  %v8924_v4 = vmul.f32 %v17719_v16, %v19578_v26  ;;  %v19579_v15 = vpack.c.bf16 %v17895_v41, %v17891_v34  ;;  %v12604_v41 = vld [vmem:[%s19433_s15 + $0x48] sm:$0xff] }
 0xe22   :  { %8558 = vrot.lane.b32.xlu1 %v13319_v40, %s13864_s25  ;;  %v17947_v40 = vmul.f32 %v17761_v24, %v19572_v44  ;;  %v19575_v24 = vpack.c.bf16 %v17857_v46, %v17853_v31  ;;  %v19580_v25 = vpack.c.bf16 %v17905_v62, %v17901_v50  ;;  %v19581_v31 = vpack.c.bf16 %v17916_v38, %v17909_v35  ;;  %v12605_v35 = vld [vmem:[%s19433_s15 + $0x50] sm:$0xff] }
 0xe23   :  { %v13357_v48 = vpack.c.bf16 %v8924_v4, %v8924_v4 }
 0xe24   :  { %8556 = vrot.lane.b32.xlu0 %v13318_v53, %s13864_s25  ;;  %v17930_v53 = vmul.f32 %v17793_v49, %v19571_v45  ;;  %v19584_v62 = vpack.c.bf16 %v17947_v40, %v17943_v21 }
 0xe26   :  { %8462 = vrot.lane.b32.xlu1 %v13311_v60, %s13863_s23  ;;  %v17934_v60 = vmul.f32 %v17799_v59, %v19572_v44 }
 0xe28   :  { %8460 = vrot.lane.b32.xlu0 %v13310_v22, %s13863_s23  ;;  %v13294_v22 = vpack.c.bf16 %v8236_v56, %v17788_v8  ;;  %v13321_v56 = vpack.c.bf16 %v8516_v7, %v8516_v7  ;;  %v13312_v7 = vpack.c.bf16 %v8419_v2, %v17769_v0  ;;  %v13348_v2 = vpack.c.bf16 %v17783_v51, %v17773_v39 }
 0xe2a   :  { %8282 = vrot.lane.b32.xlu1 %v13295_v18, %s13868_s27  ;;  %v8515_v18 = vmul.f32 %v17773_v39, %v16949_v1 }
 0xe2c   :  { %8280 = vrot.lane.b32.xlu0 %v13294_v22, %s13868_s27  ;;  %v8420_v22 = vmul.f32 %v17783_v51, %v16940_v11  ;;  %v13320_v32 = vpack.c.bf16 %v8515_v18, %v17750_v61  ;;  %v8422_v51 = vmul.f32 %v17793_v49, %v16962_v55 }
 0xe2e   :  { %8370 = vrot.lane.b32.xlu1 %v13305_v29, %s13854_s24  ;;  %v13313_v29 = vpack.c.bf16 %v8420_v22, %v8420_v22  ;;  %v8519_v22 = vmul.f32 %v17799_v59, %v16936_v28 }
 0xe30   :  { %8368 = vrot.lane.b32.xlu0 %v13304_v47, %s13854_s24  ;;  %v8239_v47 = vmul.f32 %v17773_v39, %v17021_v52 }
 0xe32   :  { %8562 = vrot.lane.b32.xlu1 %v13321_v56, %s13864_s25  ;;  %v13297_v56 = vpack.c.bf16 %v8240_v37, %v8240_v37  ;;  %v13296_v18 = vpack.c.bf16 %v8239_v47, %v17788_v8  ;;  %v13323_v37 = vpack.c.bf16 %v8519_v22, %v8519_v22  ;;  %v8423_v47 = vmul.f32 %v17799_v59, %v16940_v11  ;;  %v19573_v22 = vld [vmem:[#allocation35_spill] sm:$0xff] }
 0xe34   :  { %8560 = vrot.lane.b32.xlu0 %v13320_v32, %s13864_s25  ;;  %v13307_v32 = vpack.c.bf16 %v17799_v59, %v17799_v59 }
 0xe36   :  { %8466 = vrot.lane.b32.xlu1 %v13313_v29, %s13863_s23  ;;  %v13306_v29 = vpack.c.bf16 %v17793_v49, %v17719_v16 }
 0xe38   :  { %8464 = vrot.lane.b32.xlu0 %v13312_v7, %s13863_s23  ;;  %v8518_v7 = vmul.f32 %v17793_v49, %v16949_v1 }
 0xe3a   :  { %8286 = vrot.lane.b32.xlu1 %v13297_v56, %s13868_s27  ;;  %v13322_v39 = vpack.c.bf16 %v8518_v7, %v17750_v61  ;;  %v13315_v56 = vpack.c.bf16 %v8423_v47, %v8423_v47  ;;  %v12653_v7 = vld [vmem:[%s19434_s16 + $0x50] sm:$0xff] }
 0xe3c   :  { %8284 = vrot.lane.b32.xlu0 %v13296_v18, %s13868_s27  ;;  %v13314_v18 = vpack.c.bf16 %v8422_v51, %v17769_v0  ;;  %v13350_v0 = vpack.c.bf16 %v17799_v59, %v17793_v49  ;;  %v12651_v51 = vld [vmem:[%s19434_s16 + $0x40] sm:$0xff] }
 0xe3e   :  { %8374 = vrot.lane.b32.xlu1 %v13307_v32, %s13854_s24  ;;  %v8242_v32 = vmul.f32 %v17793_v49, %v17021_v52 }
 0xe40   :  { %8872 = vrot.lane.b32.xlu0 %v13348_v2, %s13870_s7  ;;  %v8744_v2 = vmul.f32 %v17719_v16, %v19573_v22  ;;  %v13298_v61 = vpack.c.bf16 %v8242_v32, %v17788_v8  ;;  %v19574_v8 = vld [vmem:[#allocation36_spill] sm:$0xff] }
 0xe41   :  { %v8648_v49 = vmul.f32 %v17719_v16, %v19574_v8  ;;  %v18074_v16 = vpop.permute.xlu1 %8878 }
 0xe42   :  { %8566 = vrot.lane.b32.xlu1 %v13323_v37, %s13864_s25  ;;  %v13341_v37 = vpack.c.bf16 %v8744_v2, %v8744_v2 }
 0xe43   :  { %v13333_v17 = vpack.c.bf16 %v8648_v49, %v8648_v49 }
 0xe44   :  { %8372 = vrot.lane.b32.xlu0 %v13306_v29, %s13854_s24  ;;  %v8243_v29 = vmul.f32 %v17799_v59, %v16984_v12  ;;  %v19576_v59 = vpack.c.bf16 %v17870_v36, %v17866_v27  ;;  %v19582_v27 = vpack.c.bf16 %v17924_v54, %v17920_v33  ;;  %v12654_v33 = vld [vmem:[%s19434_s16 + $0x58] sm:$0xff] }
 0xe46   :  { %8866 = vrot.lane.b32.xlu1 %v17723_v14, %s13870_s7 }
 0xe48   :  { %8564 = vrot.lane.b32.xlu0 %v13322_v39, %s13864_s25 }
 0xe4a   :  { %8470 = vrot.lane.b32.xlu1 %v13315_v56, %s13863_s23 }
 0xe4c   :  { %8468 = vrot.lane.b32.xlu0 %v13314_v18, %s13863_s23 }
 0xe4e   :  { %8870 = vrot.lane.b32.xlu1 %v17723_v14, %s13870_s7  ;;  %v13299_v14 = vpack.c.bf16 %v8243_v29, %v8243_v29 }
 0xe50   :  { %8288 = vrot.lane.b32.xlu0 %v13298_v61, %s13868_s27 }
 0xe52   :  { %8790 = vrot.lane.b32.xlu1 %v13341_v37, %s13866_s26 }
 0xe54   :  { %8876 = vrot.lane.b32.xlu0 %v13350_v0, %s13870_s7 }
 0xe56   :  { %8794 = vrot.lane.b32.xlu1 %v13341_v37, %s13866_s26 }
 0xe58   :  { %8868 = vrot.lane.b32.xlu0 %v13346_v43, %s13870_s7  ;;  %v19577_v43 = vpack.c.bf16 %v17882_v63, %v17878_v30  ;;  %v19583_v63 = vpack.c.bf16 %v17934_v60, %v17930_v53  ;;  %v12603_v53 = vld [vmem:[%s19433_s15 + $0x40] sm:$0xff]  ;;  %v12652_v60 = vld [vmem:[%s19434_s16 + $0x48] sm:$0xff] }
 0xe5a   :  { %8290 = vrot.lane.b32.xlu1 %v13299_v14, %s13868_s27 }
 0xe5c   :  { %8788 = vrot.lane.b32.xlu0 %v13340_v58, %s13866_s26  ;;  %v13609_v58 = vld [vmem:[#allocation15 + $0x34] ss:$12 sps:$4 sm:$0xff]  }
 0xe5d   :  { %9318 = vmatprep.mubr.bf16.mxu0 %v13609_v58 }
 0xe5e   :  { %8782 = vrot.lane.b32.xlu1 %v13341_v37, %s13866_s26 }
 0xe60   :  { %8780 = vrot.lane.b32.xlu0 %v13336_v19, %s13866_s26 }
 0xe62   :  { %8786 = vrot.lane.b32.xlu1 %v13341_v37, %s13866_s26 }
 0xe64   :  { %8784 = vrot.lane.b32.xlu0 %v13338_v13, %s13866_s26  ;;  %v12606_v13 = vld [vmem:[%s19433_s15 + $0x58] sm:$0xff] }
 0xe66   :  { %8694 = vrot.lane.b32.xlu1 %v13333_v17, %s13865_s3 }
 0xe68   :  { %8692 = vrot.lane.b32.xlu0 %v19575_v24, %s13865_s3 }
 0xe6a   :  { %8698 = vrot.lane.b32.xlu1 %v13333_v17, %s13865_s3 }
 0xe6c   :  { %8684 = vrot.lane.b32.xlu0 %v19576_v59, %s13865_s3 }
 0xe6e   :  { %8686 = vrot.lane.b32.xlu1 %v13333_v17, %s13865_s3 }
 0xe70   :  { %8792 = vrot.lane.b32.xlu0 %v19577_v43, %s13866_s26 }
 0xe72   :  { %8690 = vrot.lane.b32.xlu1 %v13333_v17, %s13865_s3 }
 0xe74   :  { %8688 = vrot.lane.b32.xlu0 %v19579_v15, %s13865_s3 }
 0xe76   :  { %8970 = vrot.lane.b32.xlu1 %v13357_v48, %s13867_s10 }
 0xe78   :  { %8696 = vrot.lane.b32.xlu0 %v19580_v25, %s13865_s3 }
 0xe7a   :  { %8974 = vrot.lane.b32.xlu1 %v13357_v48, %s13867_s10 }
 0xe7c   :  { %8968 = vrot.lane.b32.xlu0 %v19581_v31, %s13867_s10 }
 0xe7e   :  { %8962 = vrot.lane.b32.xlu1 %v13357_v48, %s13867_s10  ;;  %v18081_v46 = vpop.permute.xlu0 %8360 }
 0xe80   :  { %v18083_v19 = vpop.permute.xlu1 %8362  ;;  %8960 = vrot.lane.b32.xlu0 %v19582_v27, %s13867_s10 }
 0xe82   :  { %8966 = vrot.lane.b32.xlu1 %v13357_v48, %s13867_s10  ;;  %v18090_v36 = vpop.permute.xlu0 %8552 }
 0xe84   :  { %v8555_v30 = vpop.permute.xlu1 %8554  ;;  %8972 = vrot.lane.b32.xlu0 %v19583_v63, %s13867_s10 }
 0xe86   :  { %9067 = vperm.xlu1 %13559, %v12606_v13   ;;  %v18099_v34 = vpop.permute.xlu0 %8456  ;;  %v8569_v13 = vrot.slane %v8555_v30, 4 }
 0xe88   :  { %v18104_v50 = vpop.permute.xlu1 %8458  ;;  %8964 = vrot.lane.b32.xlu0 %v19584_v62, %s13867_s10 }
 0xe89   :  { %v8473_v45 = vrot.slane %v18104_v50, 4 }
 0xe8a   :  { %9057 = vperm.xlu1 %13559, %v12604_v41   ;;  %v18113_v38 = vpop.permute.xlu0 %8276 }
 0xe8c   :  { %v18118_v54 = vpop.permute.xlu1 %8278  ;;  %9062 = vperm.xlu0 %13558, %v12605_v35   ;;  %v8568_v35 = vrot.slane %v18090_v36, 4 }
 0xe8e   :  { %9422 = vperm.xlu1 %13559, %v12654_v33   ;;  %v18123_v40 = vpop.permute.xlu0 %8864 }
 0xe90   :  { %v18128_v21 = vpop.permute.xlu1 %8366  ;;  %9052 = vperm.xlu0 %13558, %v12603_v53  }
 0xe92   :  { %9412 = vperm.xlu1 %13559, %v12652_v60   ;;  %v18133_v47 = vpop.permute.xlu0 %8364 }
 0xe94   :  { %v8559_v39 = vpop.permute.xlu1 %8558  ;;  %9417 = vperm.xlu0 %13558, %v12653_v7  }
 0xe95   :  { %v8571_v58 = vrot.slane %v8559_v39, 4 }
 0xe96   :  { %v8557_v56 = vpop.permute.xlu0 %8556 }
 0xe97   :  { %v8570_v48 = vrot.slane %v8557_v56, 4 }
 0xe98   :  { %v8463_v18 = vpop.permute.xlu1 %8462  ;;  %9407 = vperm.xlu0 %13558, %v12651_v51   ;;  %v8576_v51 = vsel %vm586_vm8, %v8568_v35, %v8569_v13 }
 0xe99   :  { %v8578_v41 = vsel %vm586_vm8, %v8570_v48, %v8571_v58 }
 0xe9a   :  { %v18138_v32 = vpop.permute.xlu0 %8460  ;;  %v8579_v26 = vsel %vm756_vm2, %v8557_v56, %v8578_v41  ;;  %v8577_v56 = vsel %vm756_vm2, %v18090_v36, %v8576_v51  ;;  %v8475_v41 = vrot.slane %v8463_v18, 4 }
 0xe9b   :  { %v8474_v30 = vrot.slane %v18138_v32, 4  ;;  %v12625_v36 = vcombine.low %v8577_v56, %v8579_v26 }
 0xe9c   :  { %v18140_v2 = vpop.permute.xlu1 %8282 }
 0xe9d   :  { %v8482_v50 = vsel %vm586_vm8, %v8474_v30, %v8475_v41  ;;  %v8378_v30 = vrot.slane %v18133_v47, 4 }
 0xe9e   :  { %v18142_v61 = vpop.permute.xlu0 %8280 }
 0xea0   :  { %v18144_v37 = vpop.permute.xlu1 %8370 }
 0xea2   :  { %v18146_v0 = vpop.permute.xlu0 %8368 }
 0xea3   :  { %v8380_v51 = vrot.slane %v18146_v0, 4 }
 0xea4   :  { %v8563_v29 = vpop.permute.xlu1 %8562 }
 0xea5   :  { %v8573_v63 = vrot.slane %v8563_v29, 4 }
 0xea6   :  { %v8561_v14 = vpop.permute.xlu0 %8560 }
 0xea7   :  { %v8572_v31 = vrot.slane %v8561_v14, 4 }
 0xea8   :  { %v8467_v49 = vpop.permute.xlu1 %8466 }
 0xea9   :  { %v8580_v33 = vsel %vm586_vm8, %v8572_v31, %v8573_v63  ;;  %v8477_v48 = vrot.slane %v8467_v49, 4  ;;  %v12626_v49 = vcombine.high %v8577_v56, %v8579_v26  ;;  %v8381_v26 = vrot.slane %v18144_v37, 4 }
 0xeaa   :  { %v8465_v17 = vpop.permute.xlu0 %8464  ;;  %v8581_v29 = vsel %vm756_vm2, %v8561_v14, %v8580_v33 }
 0xeab   :  { %v8476_v8 = vrot.slane %v8465_v17, 4 }
 0xeac   :  { %v18148_v24 = vpop.permute.xlu1 %8286 }
 0xead   :  { %v8484_v35 = vsel %vm586_vm8, %v8476_v8, %v8477_v48  ;;  %v8377_v48 = vrot.slane %v18083_v19, 4 }
 0xeae   :  { %v18150_v59 = vpop.permute.xlu0 %8284  ;;  %v8485_v18 = vsel %vm698_vm1, %v8465_v17, %v8484_v35 }
 0xeb0   :  { %v8375_v43 = vpop.permute.xlu1 %8374 }
 0xeb2   :  { %v18152_v4 = vpop.permute.xlu0 %8872 }
 0xeb4   :  { %v8567_v15 = vpop.permute.xlu1 %8566 }
 0xeb5   :  { %v8575_v53 = vrot.slane %v8567_v15, 4 }
 0xeb6   :  { %v18154_v25 = vpop.permute.xlu0 %8372 }
 0xeb8   :  { %v18156_v27 = vpop.permute.xlu1 %8866 }
 0xeba   :  { %v8565_v62 = vpop.permute.xlu0 %8564 }
 0xebb   :  { %v8574_v60 = vrot.slane %v8565_v62, 4 }
 0xebc   :  { %v8471_v7 = vpop.permute.xlu1 %8470 }
 0xebd   :  { %v8582_v39 = vsel %vm586_vm8, %v8574_v60, %v8575_v53  ;;  %v8479_v31 = vrot.slane %v8471_v7, 4  ;;  %v8472_v53 = vrot.slane %v18099_v34, 4  ;;  %v8382_v60 = vrot.slane %v18154_v25, 4 }
 0xebe   :  { %v8583_v58 = vsel %vm756_vm2, %v8565_v62, %v8582_v39  ;;  %v8469_v22 = vpop.permute.xlu0 %8468  ;;  %v8383_v39 = vrot.slane %v8375_v43, 4 }
 0xebf   :  { %v12627_v44 = vcombine.low %v8581_v29, %v8583_v58  ;;  %v8478_v15 = vrot.slane %v8469_v22, 4  ;;  %v12628_v63 = vcombine.high %v8581_v29, %v8583_v58  ;;  %v8480_v8 = vsel %vm586_vm8, %v8472_v53, %v8473_v45 }
 0xec0   :  { %v18170_v13 = vpop.permute.xlu1 %8870  ;;  %v8390_v17 = vsel %vm586_vm8, %v8382_v60, %v8383_v39  ;;  %v8481_v45 = vsel %vm698_vm1, %v18099_v34, %v8480_v8  ;;  %v8294_v60 = vrot.slane %v18142_v61, 4  ;;  %v8293_v39 = vrot.slane %v18118_v54, 4 }
 0xec1   :  { %v8486_v14 = vsel %vm586_vm8, %v8478_v15, %v8479_v31  ;;  %9286 = vmatprep.subr.bf16.mxu0 %v12628_v63  ;;  %v8388_v31 = vsel %vm586_vm8, %v8380_v51, %v8381_v26  ;;  %v8376_v63 = vrot.slane %v18081_v46, 4  ;;  %v8391_v37 = vsel %vm631_vm7, %v18154_v25, %v8390_v17 }
 0xec2   :  { %v8487_v62 = vsel %vm698_vm1, %v8469_v22, %v8486_v14  ;;  %9287 = vmatpush1.bf16.msra.mxu0 %v12627_v44  ;;  %v8289_v33 = vpop.permute.xlu0 %8288  ;;  %v8483_v44 = vsel %vm698_vm1, %v18138_v32, %v8482_v50  ;;  %v8379_v32 = vrot.slane %v18128_v21, 4  ;;  %v8389_v21 = vsel %vm631_vm7, %v18146_v0, %v8388_v31 }
 0xec3   :  { %9288 = vmatprep.subr.bf16.mxu0 %v12626_v49  ;;  %v12624_v22 = vcombine.high %v8485_v18, %v8487_v62  ;;  %v12623_v43 = vcombine.low %v8485_v18, %v8487_v62  ;;  %v12622_v15 = vcombine.high %v8481_v45, %v8483_v44  ;;  %v8384_v34 = vsel %vm586_vm8, %v8376_v63, %v8377_v48 }
 0xec4   :  { %v18179_v7 = vpop.permute.xlu1 %8790  ;;  %v8386_v19 = vsel %vm586_vm8, %v8378_v30, %v8379_v32  ;;  %v12621_v41 = vcombine.low %v8481_v45, %v8483_v44  ;;  %v8296_v14 = vrot.slane %v18150_v59, 4  ;;  %v8298_v49 = vrot.slane %v8289_v33, 4 }
 0xec5   :  { %v12620_v53 = vcombine.high %v8389_v21, %v8391_v37  ;;  %v8387_v25 = vsel %vm631_vm7, %v18133_v47, %v8386_v19  ;;  %v8385_v0 = vsel %vm631_vm7, %v18081_v46, %v8384_v34  ;;  %v12619_v8 = vcombine.low %v8389_v21, %v8391_v37 }
 0xec6   :  { %9289 = vmatpush1.bf16.msra.mxu0 %v12625_v36  ;;  %v18185_v29 = vpop.permute.xlu0 %8876  ;;  %v8297_v36 = vrot.slane %v18148_v24, 4  ;;  %v8295_v47 = vrot.slane %v18140_v2, 4  ;;  %v12618_v44 = vcombine.high %v8385_v0, %v8387_v25  ;;  %v8292_v26 = vrot.slane %v18113_v38, 4 }
 0xec7   :  { %9290 = vmatprep.subr.bf16.mxu0 %v12624_v22  ;;  %v8886_v46 = vrot.slane %v18185_v29, 4  ;;  %v12617_v48 = vcombine.low %v8385_v0, %v8387_v25  ;;  %v8887_v45 = vrot.slane %v18074_v16, 4  ;;  %v8884_v32 = vrot.slane %v18152_v4, 4 }
 0xec8   :  { %v18193_v58 = vpop.permute.xlu1 %8794  ;;  %v8304_v22 = vsel %vm586_vm8, %v8296_v14, %v8297_v36  ;;  %v8302_v17 = vsel %vm586_vm8, %v8294_v60, %v8295_v47  ;;  %v8885_v63 = vrot.slane %v18066_v57, 4  ;;  %v8881_v21 = vrot.slane %v18156_v27, 4 }
 0xec9   :  { %v8305_v54 = vsel %vm588_vm6, %v18150_v59, %v8304_v22  ;;  %v8894_v37 = vsel %vm586_vm8, %v8886_v46, %v8887_v45 }
 0xeca   :  { %9291 = vmatpush1.bf16.msra.mxu0 %v12623_v43  ;;  %v18200_v56 = vpop.permute.xlu0 %8868  ;;  %v8300_v43 = vsel %vm586_vm8, %v8292_v26, %v8293_v39  ;;  %v8895_v57 = vsel %vm933_vm9, %v18185_v29, %v8894_v37 }
 0xecb   :  { %9292 = vmatprep.subr.bf16.mxu0 %v12622_v15  ;;  %v8882_v19 = vrot.slane %v18200_v56, 4  ;;  %v8301_v16 = vsel %vm588_vm6, %v18113_v38, %v8300_v43 }
 0xecc   :  { %v8291_v35 = vpop.permute.xlu1 %8290 }
 0xecd   :  { %v8299_v62 = vrot.slane %v8291_v35, 4 }
 0xece   :  { %9293 = vmatpush1.bf16.msra.mxu0 %v12621_v41  ;;  %v18209_v50 = vpop.permute.xlu0 %8788  ;;  %v8892_v41 = vsel %vm586_vm8, %v8884_v32, %v8885_v63 }
 0xecf   :  { %v8306_v18 = vsel %vm586_vm8, %v8298_v49, %v8299_v62  ;;  %9294 = vmatprep.subr.bf16.mxu0 %v12620_v53  ;;  %v8880_v49 = vrot.slane %v18123_v40, 4  ;;  %v8893_v53 = vsel %vm933_vm9, %v18152_v4, %v8892_v41  ;;  %v8800_v36 = vrot.slane %v18209_v50, 4 }
 0xed0   :  { %v18216_v51 = vpop.permute.xlu1 %8782  ;;  %v8307_v24 = vsel %vm588_vm6, %v8289_v33, %v8306_v18  ;;  %v8303_v33 = vsel %vm588_vm6, %v18142_v61, %v8302_v17  ;;  %v8883_v61 = vrot.slane %v18170_v13, 4  ;;  %v12644_v13 = vcombine.high %v8893_v53, %v8895_v57 }
 0xed1   :  { %v12616_v31 = vcombine.high %v8305_v54, %v8307_v24  ;;  %v12615_v59 = vcombine.low %v8305_v54, %v8307_v24  ;;  %v12614_v35 = vcombine.high %v8301_v16, %v8303_v33  ;;  %v12613_v38 = vcombine.low %v8301_v16, %v8303_v33 }
 0xed2   :  { %9295 = vmatpush1.bf16.msra.mxu0 %v12619_v8  ;;  %v18221_v30 = vpop.permute.xlu0 %8780  ;;  %v8890_v62 = vsel %vm586_vm8, %v8882_v19, %v8883_v61  ;;  %v8888_v27 = vsel %vm586_vm8, %v8880_v49, %v8881_v21  ;;  %v12643_v0 = vcombine.low %v8893_v53, %v8895_v57  ;;  %v8801_v4 = vrot.slane %v18179_v7, 4 }
 0xed3   :  { %9296 = vmatprep.subr.bf16.mxu0 %v12618_v44  ;;  %v8891_v60 = vsel %vm933_vm9, %v18200_v56, %v8890_v62  ;;  %v8889_v8 = vsel %vm933_vm9, %v18123_v40, %v8888_v27  ;;  %v8796_v47 = vrot.slane %v18221_v30, 4  ;;  %v8803_v24 = vrot.slane %v18193_v58, 4 }
 0xed4   :  { %v8787_v2 = vpop.permute.xlu1 %8786  ;;  %v12642_v44 = vcombine.high %v8889_v8, %v8891_v60  ;;  %v8808_v26 = vsel %vm586_vm8, %v8800_v36, %v8801_v4  ;;  %v8797_v17 = vrot.slane %v18216_v51, 4  ;;  %v12641_v40 = vcombine.low %v8889_v8, %v8891_v60  ;;  %v8599_v4 = vld [vmem:[#allocation3 + $0x70] sm:$0xff] }
 0xed5   :  { %v8799_v22 = vrot.slane %v8787_v2, 4  ;;  %v8809_v2 = vsel %vm658_vm4, %v18209_v50, %v8808_v26 }
 0xed6   :  { %9297 = vmatpush1.bf16.msra.mxu0 %v12617_v48  ;;  %v8785_v15 = vpop.permute.xlu0 %8784  ;;  %v8804_v7 = vsel %vm586_vm8, %v8796_v47, %v8797_v17 }
 0xed7   :  { %9298 = vmatprep.subr.bf16.mxu0 %v12616_v31  ;;  %v8798_v18 = vrot.slane %v8785_v15, 4  ;;  %v8805_v37 = vsel %vm658_vm4, %v18221_v30, %v8804_v7 }
 0xed8   :  { %v8695_v34 = vpop.permute.xlu1 %8694 }
 0xed9   :  { %v8806_v46 = vsel %vm586_vm8, %v8798_v18, %v8799_v22  ;;  %v8705_v19 = vrot.slane %v8695_v34, 4 }
 0xeda   :  { %9299 = vmatpush1.bf16.msra.mxu0 %v12615_v59  ;;  %v18244_v14 = vpop.permute.xlu0 %8692  ;;  %v8807_v58 = vsel %vm658_vm4, %v8785_v15, %v8806_v46  ;;  %v8595_v46 = vld [vmem:[#allocation3 + $0x30] sm:$0xff] }
 0xedb   :  { %9300 = vmatprep.subr.bf16.mxu0 %v12614_v35  ;;  %v8704_v43 = vrot.slane %v18244_v14, 4  ;;  %v12638_v50 = vcombine.high %v8805_v37, %v8807_v58  ;;  %v12637_v62 = vcombine.low %v8805_v37, %v8807_v58  ;;  %v8593_v58 = vld [vmem:[#allocation3 + $0x10] sm:$0xff] }
 0xedc   :  { %v8699_v25 = vpop.permute.xlu1 %8698 }
 0xedd   :  { %v8712_v15 = vsel %vm586_vm8, %v8704_v43, %v8705_v19  ;;  %v8707_v61 = vrot.slane %v8699_v25, 4 }
 0xede   :  { %9301 = vmatpush1.bf16.msra.mxu0 %v12613_v38  ;;  %v8685_v29 = vpop.permute.xlu0 %8684  ;;  %v8713_v53 = vsel %vm716_vm3, %v18244_v14, %v8712_v15  ;;  %v8597_v14 = vld [vmem:[#allocation3 + $0x50] sm:$0xff] }
 0xedf   :  { %9302 = vmatprep.subr.bf16.mxu0 %v12644_v13  ;;  %v8700_v35 = vrot.slane %v8685_v29, 4 }
 0xee0   :  { %v8687_v39 = vpop.permute.xlu1 %8686 }
 0xee1   :  { %v8701_v59 = vrot.slane %v8687_v39, 4 }
 0xee2   :  { %9303 = vmatpush2.bf16.msra.mxu0 %v12643_v0  ;;  %v8793_v56 = vpop.permute.xlu0 %8792 }
 0xee3   :  { %v8802_v48 = vrot.slane %v8793_v56, 4  ;;  %9304 = vmatprep.subr.bf16.mxu0 %v12642_v44  ;;  %v8708_v30 = vsel %vm586_vm8, %v8700_v35, %v8701_v59 }
 0xee4   :  { %v8691_v54 = vpop.permute.xlu1 %8690  ;;  %v8709_v18 = vsel %vm716_vm3, %v8685_v29, %v8708_v30  ;;  %v13610_v30 = vld [vmem:[#allocation15 + $0x38] ss:$12 sps:$4 sm:$0xff]  }
 0xee5   :  { %v8810_v45 = vsel %vm586_vm8, %v8802_v48, %v8803_v24  ;;  %v8703_v41 = vrot.slane %v8691_v54, 4  ;;  %v13523_v24 = vpack.c.bf16 %v8599_v4, %v8597_v14  ;;  %v8596_v54 = vld [vmem:[#allocation3 + $0x48] sm:$0xff] }
 0xee6   :  { %v8811_v32 = vsel %vm658_vm4, %v8793_v56, %v8810_v45  ;;  %9305 = vmatpush2.bf16.msra.mxu0 %v12641_v40  ;;  %v8689_v51 = vpop.permute.xlu0 %8688  ;;  %v8598_v56 = vld [vmem:[#allocation3 + $0x68] sm:$0xff] }
 0xee7   :  { %v12639_v31 = vcombine.low %v8809_v2, %v8811_v32  ;;  %v8702_v33 = vrot.slane %v8689_v51, 4  ;;  %v12640_v63 = vcombine.high %v8809_v2, %v8811_v32  ;;  %v13522_v2 = vpack.c.bf16 %v8598_v56, %v8596_v54 }
 0xee8   :  { %v8971_v16 = vpop.permute.xlu1 %8970  ;;  %v13521_v32 = vpack.c.bf16 %v8595_v46, %v8593_v58 }
 0xee9   :  { %9306 = vmatprep.subr.bf16.mxu0 %v12640_v63  ;;  %v8710_v57 = vsel %vm586_vm8, %v8702_v33, %v8703_v41  ;;  %v8981_v44 = vrot.slane %v8971_v16, 4 }
 0xeea   :  { %9307 = vmatpush2.bf16.msra.mxu0 %v12639_v31  ;;  %v8697_v21 = vpop.permute.xlu0 %8696  ;;  %v8711_v27 = vsel %vm716_vm3, %v8689_v51, %v8710_v57  ;;  %v8594_v51 = vld [vmem:[#allocation3 + $0x28] sm:$0xff] }
 0xeeb   :  { %v8706_v49 = vrot.slane %v8697_v21, 4  ;;  %9308 = vmatprep.subr.bf16.mxu0 %v12638_v50  ;;  %v12634_v0 = vcombine.high %v8709_v18, %v8711_v27  ;;  %v12633_v22 = vcombine.low %v8709_v18, %v8711_v27  ;;  %v8592_v50 = vld [vmem:[#allocation3 + $0x8] sm:$0xff]  ;;  %v18292_v27 = vld [vmem:[#allocation2 + $0x18] sm:$0xff] }
 0xeec   :  { %v8975_v38 = vpop.permute.xlu1 %8974  ;;  %v13520_v15 = vpack.c.bf16 %v8594_v51, %v8592_v50 }
 0xeed   :  { %v8714_v34 = vsel %vm586_vm8, %v8706_v49, %v8707_v61  ;;  %v8983_v48 = vrot.slane %v8975_v38, 4  ;;  %v13607_v61 = vld [vmem:[#allocation15 + $0x30] ss:$12 sps:$4 sm:$0xff]   ;;  %v13611_v49 = vld [vmem:[#allocation15 + $0x4c] ss:$12 sps:$4 sm:$0xff]  }
 0xeee   :  { %v8715_v13 = vsel %vm716_vm3, %v8697_v21, %v8714_v34  ;;  %9309 = vmatpush2.bf16.msra.mxu0 %v12637_v62  ;;  %v8969_v25 = vpop.permute.xlu0 %8968  ;;  %v13613_v34 = vld [vmem:[#allocation15 + $0x48] ss:$12 sps:$4 sm:$0xff]  }
 0xeef   :  { %v12635_v60 = vcombine.low %v8713_v53, %v8715_v13  ;;  %v12636_v36 = vcombine.high %v8713_v53, %v8715_v13  ;;  %v8980_v47 = vrot.slane %v8969_v25, 4  ;;  %v13614_v53 = vld [vmem:[#allocation15 + $0x50] ss:$12 sps:$4 sm:$0xff]   ;;  %v18296_v13 = vpack.c.bf16 %v18292_v27, %v18292_v27 }
 0xef0   :  { %v8963_v8 = vpop.permute.xlu1 %8962 }
 0xef1   :  { %9310 = vmatprep.subr.bf16.mxu0 %v12636_v36  ;;  %v8988_v29 = vsel %vm586_vm8, %v8980_v47, %v8981_v44  ;;  %v8977_v7 = vrot.slane %v8963_v8, 4  ;;  %10103 = vrot.lane.b32.xlu1 %v18296_v13, %s13870_s7 }
 0xef2   :  { %9311 = vmatpush2.bf16.msra.mxu0 %v12635_v60  ;;  %v8961_v39 = vpop.permute.xlu0 %8960  ;;  %v8989_v31 = vsel %vm547_vm5, %v8969_v25, %v8988_v29 }
 0xef3   :  { %9312 = vmatprep.subr.bf16.mxu0 %v12634_v0  ;;  %v8976_v26 = vrot.slane %v8961_v39, 4 }
 0xef4   :  { %v8967_v45 = vpop.permute.xlu1 %8966 }
 0xef5   :  { %v8984_v33 = vsel %vm586_vm8, %v8976_v26, %v8977_v7  ;;  %v8979_v19 = vrot.slane %v8967_v45, 4  ;;  %10107 = vrot.lane.b32.xlu1 %v18296_v13, %s13870_s7 }
 0xef6   :  { %9313 = vmatpush2.bf16.msra.mxu0 %v12633_v22  ;;  %v8973_v17 = vpop.permute.xlu0 %8972  ;;  %v8985_v35 = vsel %vm547_vm5, %v8961_v39, %v8984_v33 }
 0xef7   :  { %v8982_v40 = vrot.slane %v8973_v17, 4  ;;  %9314 = vmatprep.subr.bf16.mxu0 %v13523_v24 }
 0xef9   :  { %v8990_v43 = vsel %vm586_vm8, %v8982_v40, %v8983_v48 }
 0xefa   :  { %v8991_v63 = vsel %vm547_vm5, %v8973_v17, %v8990_v43  ;;  %9315 = vmatpush2.bf16.msra.mxu0 %v13522_v2  ;;  %v8965_v37 = vpop.permute.xlu0 %8964 }
 0xefb   :  { %v12647_v16 = vcombine.low %v8989_v31, %v8991_v63  ;;  %v8978_v59 = vrot.slane %v8965_v37, 4  ;;  %9316 = vmatprep.subr.bf16.mxu0 %v13521_v32  ;;  %v12648_v41 = vcombine.high %v8989_v31, %v8991_v63 }
 0xefd   :  { %v8986_v21 = vsel %vm586_vm8, %v8978_v59, %v8979_v19  ;;  %9351 = vmatprep.subr.bf16.mxu1 %v12648_v41 }
 0xefe   :  { %v8987_v57 = vsel %vm547_vm5, %v8965_v37, %v8986_v21  ;;  %9317 = vmatpush2.bf16.msra.mxu0 %v13520_v15  ;;  %9352 = vmatpush1.bf16.msra.mxu1 %v12647_v16  ;;  %v18323_v15 = vmul.f32 %v18292_v27, %v16938_v6 }
 0xeff   :  { %v12645_v62 = vcombine.low %v8985_v35, %v8987_v57  ;;  %v12646_v38 = vcombine.high %v8985_v35, %v8987_v57 }
 0xf01   :  { %9319 = vmatmul.mubr.bf16.vlgmr.msra.gmra.mxu0 %v13607_v61  ;;  %9353 = vmatprep.subr.bf16.mxu1 %v12646_v38  ;;  %v18302_v60 = vpop.permute.xlu1 %9067 }
 0xf02   :  { %9354 = vmatpush1.bf16.msra.mxu1 %v12645_v62  ;;  %9328 = vmatprep.mubr.bf16.mxu0 %v13611_v49 }
 0xf05   :  { %12649 = vmatmul.mubr.msk.bf16.vlgmr.msra.gmra.mxu1 %vm2328_vm12, %v13610_v30  ;;  %v9058_v18 = vpop.permute.xlu1 %9057 }
 0xf06   :  { %9381 = vmatprep.mubr.bf16.mxu1 %v19515_v10 }
 0xf07   :  { %v9063_v25 = vpop.permute.xlu0 %9062 }
 0xf09   :  { %9329 = vmatmul.mubr.bf16.gmra.mxu0 %v13613_v34  ;;  %v18306_v14 = vpop.permute.xlu1 %9422 }
 0xf0a   :  { %10600 = vmatprep.mubr.bf16.mxu0 %v19515_v10 }
 0xf0b   :  { %v9053_v36 = vpop.permute.xlu0 %9052 }
 0xf0d   :  { %12650 = vmatmul.mubr.msk.bf16.gmra.mxu1 %vm2328_vm12, %v13614_v53  ;;  %v9413_v33 = vpop.permute.xlu1 %9412 }
 0xf0f   :  { %v18304_v0 = vpop.permute.xlu0 %9417 }
 0xf13   :  { %v9408_v44 = vpop.permute.xlu0 %9407 }
 0xfc1   :  { %v9320_v8 = vpop.f32.mrf.mxu0 }
 0xfc2   :  { %v9321_v4 = vadd.f32 %v9320_v8, %v9053_v36 }
 0xfc3   :  { %v9322_v39 = vpop.f32.mrf.mxu0 }
 0xfc4   :  { %v9323_v24 = vadd.f32 %v9322_v39, %v9053_v36 }
 0xfc5   :  { %v9324_v47 = vpop.f32.mrf.mxu0  ;;  %v9373_v22 = vpop.f32.mrf.mxu1 }
 0xfc6   :  { %v9374_v56 = vadd.f32 %v9373_v22, %v9321_v4  ;;  %v9325_v29 = vadd.f32 %v9324_v47, %v9058_v18  ;;  %v18342_v4 = vmul.f32 %v18292_v27, %v16942_v5 }
 0xfc7   :  { %v9326_v26 = vpop.f32.mrf.mxu0  ;;  %v9375_v17 = vpop.f32.mrf.mxu1 }
 0xfc8   :  { %vm9392_vm13 = vcmp.ge.f32.partialorder %v9374_v56, 0.0  ;;  %v9425_v46 = vmul.f32 %v9408_v44, %v9374_v56  ;;  %v9376_v48 = vadd.f32 %v9375_v17, %v9323_v24  ;;  %v9327_v45 = vadd.f32 %v9326_v26, %v9058_v18 }
 0xfc9   :  { %v9330_v40 = vpop.f32.mrf.mxu0  ;;  %v9377_v54 = vpop.f32.mrf.mxu1 }
 0xfca   :  { %v18308_v7 = vsel %vm9392_vm13, %v9374_v56, %v9425_v46  ;;  %vm9393_vm14 = vcmp.ge.f32.partialorder %v9376_v48, 0.0  ;;  %v9426_v2 = vmul.f32 %v9408_v44, %v9376_v48  ;;  %v9378_v58 = vadd.f32 %v9377_v54, %v9325_v29 }
 0xfcb   :  { %9441 = vst [vmem:[#allocation3 + $0x8] sm:$0xff] %v18308_v7  ;;  %v9332_v43 = vpop.f32.mrf.mxu0  ;;  %v9379_v32 = vpop.f32.mrf.mxu1  ;;  %v13368_v51 = vpack.c.bf16 %v18308_v7, %v18292_v27  ;;  %v9738_v31 = vmul.f32 %v18308_v7, %v16949_v1  ;;  %v9331_v37 = vadd.f32 %v9330_v40, %v9063_v25  ;;  %v9642_v35 = vmul.f32 %v18308_v7, %v16962_v55 }
 0xfcc   :  { %v18315_v63 = vsel %vm9393_vm14, %v9376_v48, %v9426_v2  ;;  %v9380_v19 = vadd.f32 %v9379_v32, %v9327_v45  ;;  %vm9394_vm15 = vcmp.ge.f32.partialorder %v9378_v58, 0.0  ;;  %v9427_v16 = vmul.f32 %v9413_v33, %v9378_v58 }
 0xfcd   :  { %9442 = vst [vmem:[#allocation3 + $0x10] sm:$0xff] %v18315_v63  ;;  %v9334_v59 = vpop.f32.mrf.mxu0  ;;  %v9383_v41 = vpop.f32.mrf.mxu1  ;;  %9589 = vrot.lane.b32.xlu0 %v13368_v51, %s13854_s24  ;;  %v13369_v50 = vpack.c.bf16 %v18315_v63, %v18315_v63  ;;  %v9333_v49 = vadd.f32 %v9332_v43, %v9063_v25  ;;  %v13384_v30 = vpack.c.bf16 %v9738_v31, %v18323_v15 }
 0xfce   :  { %vm9395_vm10 = vcmp.ge.f32.partialorder %v9380_v19, 0.0  ;;  %v9428_v21 = vmul.f32 %v9413_v33, %v9380_v19  ;;  %v9384_v61 = vadd.f32 %v9383_v41, %v9331_v37  ;;  %v18327_v57 = vsel %vm9394_vm15, %v9378_v58, %v9427_v16 }
 0xfcf   :  { %v9336_v62 = vpop.f32.mrf.mxu0  ;;  %v9385_v38 = vpop.f32.mrf.mxu1  ;;  %9591 = vrot.lane.b32.xlu1 %v13369_v50, %s13854_s24  ;;  %v9739_v34 = vmul.f32 %v18315_v63, %v16936_v28  ;;  %9443 = vst [vmem:[#allocation3 + $0x28] sm:$0xff] %v18327_v57  ;;  %v9335_v36 = vadd.f32 %v9334_v59, %v18302_v60  ;;  %v9643_v47 = vmul.f32 %v18315_v63, %v16940_v11 }
 0xfd0   :  { %v18334_v53 = vsel %vm9395_vm10, %v9380_v19, %v9428_v21  ;;  %vm9396_vm11 = vcmp.ge.f32.partialorder %v9384_v61, 0.0  ;;  %v9429_v18 = vmul.f32 %v18304_v0, %v9384_v61  ;;  %v9386_v25 = vadd.f32 %v9385_v38, %v9333_v49 }
 0xfd1   :  { %9444 = vst [vmem:[#allocation3 + $0x30] sm:$0xff] %v18334_v53  ;;  %v9387_v8 = vpop.f32.mrf.mxu1  ;;  %9781 = vrot.lane.b32.xlu0 %v13384_v30, %s13864_s25  ;;  %v13385_v39 = vpack.c.bf16 %v9739_v34, %v9739_v34  ;;  %v9337_v44 = vadd.f32 %v9336_v62, %v18302_v60  ;;  %v13376_v17 = vpack.c.bf16 %v9642_v35, %v18342_v4 }
 0xfd2   :  { %v18346_v22 = vsel %vm9396_vm11, %v9384_v61, %v9429_v18  ;;  %v9388_v24 = vadd.f32 %v9387_v8, %v9335_v36  ;;  %vm9397_vm13 = vcmp.ge.f32.partialorder %v9386_v25, 0.0  ;;  %v9430_v56 = vmul.f32 %v18304_v0, %v9386_v25 }
 0xfd3   :  { %9445 = vst [vmem:[#allocation3 + $0x48] sm:$0xff] %v18346_v22  ;;  %v9389_v26 = vpop.f32.mrf.mxu1  ;;  %9783 = vrot.lane.b32.xlu1 %v13385_v39, %s13864_s25  ;;  %v9462_v46 = vmul.f32 %v18308_v7, %v17021_v52  ;;  %v13377_v60 = vpack.c.bf16 %v9643_v47, %v9643_v47  ;;  %v18361_v0 = vmul.f32 %v18292_v27, %v17010_v23 }
 0xfd4   :  { %vm9398_vm14 = vcmp.ge.f32.partialorder %v9388_v24, 0.0  ;;  %v9431_v48 = vmul.f32 %v18306_v14, %v9388_v24  ;;  %v9390_v29 = vadd.f32 %v9389_v26, %v9337_v44  ;;  %v18356_v40 = vsel %vm9397_vm13, %v9386_v25, %v9430_v56 }
 0xfd5   :  { %9685 = vrot.lane.b32.xlu0 %v13376_v17, %s13863_s23  ;;  %v9463_v54 = vmul.f32 %v18315_v63, %v16984_v12  ;;  %9446 = vst [vmem:[#allocation3 + $0x50] sm:$0xff] %v18356_v40  ;;  %v13360_v58 = vpack.c.bf16 %v9462_v46, %v18361_v0  ;;  %v13412_v51 = vpack.c.bf16 %v18315_v63, %v18308_v7 }
 0xfd6   :  { %v18366_v45 = vsel %vm9398_vm14, %v9388_v24, %v9431_v48  ;;  %vm9399_vm15 = vcmp.ge.f32.partialorder %v9390_v29, 0.0  ;;  %v9432_v2 = vmul.f32 %v18306_v14, %v9390_v29  ;;  %v9742_v14 = vmul.f32 %v18334_v53, %v16936_v28 }
 0xfd7   :  { %9447 = vst [vmem:[#allocation3 + $0x68] sm:$0xff] %v18366_v45  ;;  %9687 = vrot.lane.b32.xlu1 %v13377_v60, %s13863_s23  ;;  %v13361_v32 = vpack.c.bf16 %v9463_v54, %v9463_v54  ;;  %v9741_v31 = vmul.f32 %v18327_v57, %v16949_v1  ;;  %v9646_v33 = vmul.f32 %v18334_v53, %v16940_v11 }
 0xfd8   :  { %v18372_v43 = vsel %vm9399_vm15, %v9390_v29, %v9432_v2  ;;  %v9645_v37 = vmul.f32 %v18327_v57, %v16962_v55  ;;  %v13371_v19 = vpack.c.bf16 %v18334_v53, %v18334_v53  ;;  %v13370_v16 = vpack.c.bf16 %v18327_v57, %v18292_v27 }
 0xfd9   :  { %9448 = vst [vmem:[#allocation3 + $0x70] sm:$0xff] %v18372_v43  ;;  %9505 = vrot.lane.b32.xlu0 %v13360_v58, %s13868_s27  ;;  %v13387_v59 = vpack.c.bf16 %v9742_v14, %v9742_v14  ;;  %v13414_v41 = vpack.c.bf16 %v18334_v53, %v18327_v57  ;;  %v13386_v50 = vpack.c.bf16 %v9741_v31, %v18323_v15  ;;  %v19586_v31 = vld [vmem:[#allocation34_spill] sm:$0xff] }
 0xfda   :  { %v13379_v21 = vpack.c.bf16 %v9646_v33, %v9646_v33  ;;  %v13378_v61 = vpack.c.bf16 %v9645_v37, %v18342_v4  ;;  %v9466_v35 = vmul.f32 %v18334_v53, %v16984_v12  ;;  %v18402_v49 = vmul.f32 %v18346_v22, %v16884_v20 }
 0xfdb   :  { %9507 = vrot.lane.b32.xlu1 %v13361_v32, %s13868_s27  ;;  %v18406_v62 = vmul.f32 %v18356_v40, %v16890_v3  ;;  %v18410_v38 = vmul.f32 %v18308_v7, %v16884_v20  ;;  %v18414_v30 = vmul.f32 %v18315_v63, %v16890_v3  ;;  %v18418_v34 = vmul.f32 %v18327_v57, %v16884_v20  ;;  %v19585_v32 = vld [vmem:[#allocation32_spill] sm:$0xff] }
 0xfdc   :  { %v18422_v36 = vmul.f32 %v18334_v53, %v16890_v3  ;;  %v18426_v18 = vmul.f32 %v18346_v22, %v16906_v42  ;;  %v18430_v25 = vmul.f32 %v18356_v40, %v16913_v9  ;;  %v18439_v47 = vmul.f32 %v18308_v7, %v16906_v42 }
 0xfdd   :  { %10093 = vrot.lane.b32.xlu0 %v13412_v51, %s13870_s7  ;;  %v13408_v8 = vpack.c.bf16 %v18406_v62, %v18402_v49  ;;  %v13404_v39 = vpack.c.bf16 %v18414_v30, %v18410_v38  ;;  %v18443_v44 = vmul.f32 %v18315_v63, %v16913_v9  ;;  %v18451_v26 = vmul.f32 %v18366_v45, %v16884_v20  ;;  %v19592_v49 = vld [vmem:[#allocation31_spill] sm:$0xff] }
 0xfde   :  { %v13406_v24 = vpack.c.bf16 %v18422_v36, %v18418_v34  ;;  %v18455_v17 = vmul.f32 %v18372_v43, %v16890_v3  ;;  %v9465_v46 = vmul.f32 %v18327_v57, %v17021_v52  ;;  %v18464_v29 = vmul.f32 %v18327_v57, %v16906_v42  ;;  %v18639_v34 = vpop.permute.xlu1 %10103 }
 0xfdf   :  { %9595 = vrot.lane.b32.xlu1 %v13371_v19, %s13854_s24  ;;  %v18468_v60 = vmul.f32 %v18334_v53, %v16913_v9  ;;  %v18474_v2 = vmul.f32 %v18366_v45, %v16906_v42  ;;  %v18478_v58 = vmul.f32 %v18372_v43, %v16913_v9  ;;  %v18482_v51 = vmul.f32 %v18346_v22, %v19585_v32 }
 0xfe0   :  { %v18489_v33 = vmul.f32 %v18356_v40, %v19586_v31  ;;  %v18493_v37 = vmul.f32 %v18308_v7, %v19585_v32  ;;  %v18497_v19 = vmul.f32 %v18315_v63, %v19586_v31  ;;  %v13373_v63 = vpack.c.bf16 %v18356_v40, %v18356_v40 }
 0xfe1   :  { %9593 = vrot.lane.b32.xlu0 %v13370_v16, %s13854_s24  ;;  %v13363_v16 = vpack.c.bf16 %v9466_v35, %v9466_v35  ;;  %v18516_v35 = vmul.f32 %v18327_v57, %v19585_v32  ;;  %v9745_v54 = vmul.f32 %v18356_v40, %v16936_v28  ;;  %v13372_v14 = vpack.c.bf16 %v18346_v22, %v18292_v27 }
 0xfe2   :  { %v9648_v48 = vmul.f32 %v18346_v22, %v16962_v55  ;;  %v9469_v56 = vmul.f32 %v18356_v40, %v16984_v12  ;;  %v10153_v62 = vmul.f32 %v18292_v27, %v19592_v49  ;;  %v19593_v38 = vpack.c.bf16 %v18468_v60, %v18464_v29  ;;  %v12724_v60 = vld [vmem:[%s19433_s15 + $0x68] sm:$0xff] }
 0xfe3   :  { %9787 = vrot.lane.b32.xlu1 %v13387_v59, %s13864_s25  ;;  %v18520_v59 = vmul.f32 %v18334_v53, %v19586_v31  ;;  %v19589_v53 = vpack.c.bf16 %v18430_v25, %v18426_v18  ;;  %v19594_v36 = vpack.c.bf16 %v18478_v58, %v18474_v2  ;;  %v19595_v18 = vpack.c.bf16 %v18489_v33, %v18482_v51  ;;  %v12725_v51 = vld [vmem:[%s19433_s15 + $0x70] sm:$0xff] }
 0xfe4   :  { %v13425_v30 = vpack.c.bf16 %v10153_v62, %v10153_v62 }
 0xfe5   :  { %9785 = vrot.lane.b32.xlu0 %v13386_v50, %s13864_s25  ;;  %v18503_v50 = vmul.f32 %v18366_v45, %v19585_v32  ;;  %v19598_v58 = vpack.c.bf16 %v18520_v59, %v18516_v35 }
 0xfe7   :  { %9691 = vrot.lane.b32.xlu1 %v13379_v21, %s13863_s23  ;;  %v18507_v21 = vmul.f32 %v18372_v43, %v19586_v31 }
 0xfe9   :  { %9689 = vrot.lane.b32.xlu0 %v13378_v61, %s13863_s23  ;;  %v13362_v61 = vpack.c.bf16 %v9465_v46, %v18361_v0  ;;  %v13389_v46 = vpack.c.bf16 %v9745_v54, %v9745_v54  ;;  %v13380_v54 = vpack.c.bf16 %v9648_v48, %v18342_v4  ;;  %v13416_v48 = vpack.c.bf16 %v18356_v40, %v18346_v22 }
 0xfeb   :  { %9511 = vrot.lane.b32.xlu1 %v13363_v16, %s13868_s27  ;;  %v9744_v16 = vmul.f32 %v18346_v22, %v16949_v1 }
 0xfed   :  { %9509 = vrot.lane.b32.xlu0 %v13362_v61, %s13868_s27  ;;  %v9649_v61 = vmul.f32 %v18356_v40, %v16940_v11  ;;  %v13388_v7 = vpack.c.bf16 %v9744_v16, %v18323_v15  ;;  %v9651_v40 = vmul.f32 %v18366_v45, %v16962_v55 }
 0xfef   :  { %9599 = vrot.lane.b32.xlu1 %v13373_v63, %s13854_s24  ;;  %v13381_v63 = vpack.c.bf16 %v9649_v61, %v9649_v61  ;;  %v9748_v61 = vmul.f32 %v18372_v43, %v16936_v28 }
 0xff1   :  { %9597 = vrot.lane.b32.xlu0 %v13372_v14, %s13854_s24  ;;  %v9468_v14 = vmul.f32 %v18346_v22, %v17021_v52 }
 0xff3   :  { %9791 = vrot.lane.b32.xlu1 %v13389_v46, %s13864_s25  ;;  %v13365_v46 = vpack.c.bf16 %v9469_v56, %v9469_v56  ;;  %v13364_v16 = vpack.c.bf16 %v9468_v14, %v18361_v0  ;;  %v13391_v56 = vpack.c.bf16 %v9748_v61, %v9748_v61  ;;  %v9652_v14 = vmul.f32 %v18372_v43, %v16940_v11  ;;  %v19587_v61 = vld [vmem:[#allocation35_spill] sm:$0xff] }
 0xff5   :  { %9789 = vrot.lane.b32.xlu0 %v13388_v7, %s13864_s25  ;;  %v13375_v7 = vpack.c.bf16 %v18372_v43, %v18372_v43 }
 0xff7   :  { %9695 = vrot.lane.b32.xlu1 %v13381_v63, %s13863_s23  ;;  %v13374_v63 = vpack.c.bf16 %v18366_v45, %v18292_v27 }
 0xff9   :  { %9693 = vrot.lane.b32.xlu0 %v13380_v54, %s13863_s23  ;;  %v9747_v54 = vmul.f32 %v18366_v45, %v16949_v1 }
 0xffb   :  { %9515 = vrot.lane.b32.xlu1 %v13365_v46, %s13868_s27  ;;  %v13390_v22 = vpack.c.bf16 %v9747_v54, %v18323_v15  ;;  %v13383_v46 = vpack.c.bf16 %v9652_v14, %v9652_v14  ;;  %v12773_v54 = vld [vmem:[%s19434_s16 + $0x70] sm:$0xff] }
 0xffd   :  { %9513 = vrot.lane.b32.xlu0 %v13364_v16, %s13868_s27  ;;  %v13382_v16 = vpack.c.bf16 %v9651_v40, %v18342_v4  ;;  %v13418_v4 = vpack.c.bf16 %v18372_v43, %v18366_v45  ;;  %v12771_v40 = vld [vmem:[%s19434_s16 + $0x60] sm:$0xff] }
 0xfff   :  { %9603 = vrot.lane.b32.xlu1 %v13375_v7, %s13854_s24  ;;  %v9471_v7 = vmul.f32 %v18366_v45, %v17021_v52 }
0x1001   :  { %10101 = vrot.lane.b32.xlu0 %v13416_v48, %s13870_s7  ;;  %v9973_v48 = vmul.f32 %v18292_v27, %v19587_v61  ;;  %v13366_v15 = vpack.c.bf16 %v9471_v7, %v18361_v0  ;;  %v19588_v0 = vld [vmem:[#allocation36_spill] sm:$0xff] }
0x1002   :  { %v9877_v45 = vmul.f32 %v18292_v27, %v19588_v0  ;;  %v18647_v27 = vpop.permute.xlu1 %10107 }
0x1003   :  { %9795 = vrot.lane.b32.xlu1 %v13391_v56, %s13864_s25  ;;  %v13409_v56 = vpack.c.bf16 %v9973_v48, %v9973_v48 }
0x1004   :  { %v13401_v57 = vpack.c.bf16 %v9877_v45, %v9877_v45 }
0x1005   :  { %9601 = vrot.lane.b32.xlu0 %v13374_v63, %s13854_s24  ;;  %v9472_v63 = vmul.f32 %v18372_v43, %v16984_v12  ;;  %v19590_v43 = vpack.c.bf16 %v18443_v44, %v18439_v47  ;;  %v19596_v47 = vpack.c.bf16 %v18497_v19, %v18493_v37  ;;  %v12774_v37 = vld [vmem:[%s19434_s16 + $0x78] sm:$0xff] }
0x1007   :  { %10095 = vrot.lane.b32.xlu1 %v18296_v13, %s13870_s7 }
0x1009   :  { %9793 = vrot.lane.b32.xlu0 %v13390_v22, %s13864_s25 }
0x100b   :  { %9699 = vrot.lane.b32.xlu1 %v13383_v46, %s13863_s23 }
0x100d   :  { %9697 = vrot.lane.b32.xlu0 %v13382_v16, %s13863_s23 }
0x100f   :  { %10099 = vrot.lane.b32.xlu1 %v18296_v13, %s13870_s7  ;;  %v13367_v13 = vpack.c.bf16 %v9472_v63, %v9472_v63 }
0x1011   :  { %9517 = vrot.lane.b32.xlu0 %v13366_v15, %s13868_s27 }
0x1013   :  { %10019 = vrot.lane.b32.xlu1 %v13409_v56, %s13866_s26 }
0x1015   :  { %10105 = vrot.lane.b32.xlu0 %v13418_v4, %s13870_s7 }
0x1017   :  { %10023 = vrot.lane.b32.xlu1 %v13409_v56, %s13866_s26 }
0x1019   :  { %10097 = vrot.lane.b32.xlu0 %v13414_v41, %s13870_s7  ;;  %v19591_v41 = vpack.c.bf16 %v18455_v17, %v18451_v26  ;;  %v19597_v17 = vpack.c.bf16 %v18507_v21, %v18503_v50  ;;  %v12723_v50 = vld [vmem:[%s19433_s15 + $0x60] sm:$0xff]  ;;  %v12772_v21 = vld [vmem:[%s19434_s16 + $0x68] sm:$0xff] }
0x101b   :  { %9519 = vrot.lane.b32.xlu1 %v13367_v13, %s13868_s27 }
0x101d   :  { %10017 = vrot.lane.b32.xlu0 %v13408_v8, %s13866_s26  ;;  %v13617_v8 = vld [vmem:[#allocation15 + $0x64] ss:$12 sps:$4 sm:$0xff]  }
0x101e   :  { %10547 = vmatprep.mubr.bf16.mxu1 %v13617_v8 }
0x101f   :  { %10011 = vrot.lane.b32.xlu1 %v13409_v56, %s13866_s26 }
0x1021   :  { %10009 = vrot.lane.b32.xlu0 %v13404_v39, %s13866_s26 }
0x1023   :  { %10015 = vrot.lane.b32.xlu1 %v13409_v56, %s13866_s26 }
0x1025   :  { %10013 = vrot.lane.b32.xlu0 %v13406_v24, %s13866_s26  ;;  %v12726_v24 = vld [vmem:[%s19433_s15 + $0x78] sm:$0xff] }
0x1027   :  { %9923 = vrot.lane.b32.xlu1 %v13401_v57, %s13865_s3 }
0x1029   :  { %9921 = vrot.lane.b32.xlu0 %v19589_v53, %s13865_s3 }
0x102b   :  { %9927 = vrot.lane.b32.xlu1 %v13401_v57, %s13865_s3 }
0x102d   :  { %9913 = vrot.lane.b32.xlu0 %v19590_v43, %s13865_s3 }
0x102f   :  { %9915 = vrot.lane.b32.xlu1 %v13401_v57, %s13865_s3 }
0x1031   :  { %10021 = vrot.lane.b32.xlu0 %v19591_v41, %s13866_s26 }
0x1033   :  { %9919 = vrot.lane.b32.xlu1 %v13401_v57, %s13865_s3 }
0x1035   :  { %9917 = vrot.lane.b32.xlu0 %v19593_v38, %s13865_s3 }
0x1037   :  { %10199 = vrot.lane.b32.xlu1 %v13425_v30, %s13867_s10 }
0x1039   :  { %9925 = vrot.lane.b32.xlu0 %v19594_v36, %s13865_s3 }
0x103b   :  { %10203 = vrot.lane.b32.xlu1 %v13425_v30, %s13867_s10 }
0x103d   :  { %10197 = vrot.lane.b32.xlu0 %v19595_v18, %s13867_s10 }
0x103f   :  { %10191 = vrot.lane.b32.xlu1 %v13425_v30, %s13867_s10  ;;  %v18654_v25 = vpop.permute.xlu0 %9589 }
0x1041   :  { %v18656_v39 = vpop.permute.xlu1 %9591  ;;  %10189 = vrot.lane.b32.xlu0 %v19596_v47, %s13867_s10 }
0x1043   :  { %10195 = vrot.lane.b32.xlu1 %v13425_v30, %s13867_s10  ;;  %v18663_v44 = vpop.permute.xlu0 %9781 }
0x1045   :  { %v9784_v26 = vpop.permute.xlu1 %9783  ;;  %10201 = vrot.lane.b32.xlu0 %v19597_v17, %s13867_s10 }
0x1047   :  { %10296 = vperm.xlu1 %13559, %v12726_v24   ;;  %v18672_v29 = vpop.permute.xlu0 %9685  ;;  %v9798_v24 = vrot.slane %v9784_v26, 4 }
0x1049   :  { %v18677_v2 = vpop.permute.xlu1 %9687  ;;  %10193 = vrot.lane.b32.xlu0 %v19598_v58, %s13867_s10 }
0x104a   :  { %v9702_v32 = vrot.slane %v18677_v2, 4 }
0x104b   :  { %10286 = vperm.xlu1 %13559, %v12724_v60   ;;  %v18686_v33 = vpop.permute.xlu0 %9505 }
0x104d   :  { %v18691_v19 = vpop.permute.xlu1 %9507  ;;  %10291 = vperm.xlu0 %13558, %v12725_v51   ;;  %v9797_v51 = vrot.slane %v18663_v44, 4 }
0x104f   :  { %10651 = vperm.xlu1 %13559, %v12774_v37   ;;  %v18696_v59 = vpop.permute.xlu0 %10093 }
0x1051   :  { %v18701_v35 = vpop.permute.xlu1 %9595  ;;  %10281 = vperm.xlu0 %13558, %v12723_v50  }
0x1053   :  { %10641 = vperm.xlu1 %13559, %v12772_v21   ;;  %v18706_v14 = vpop.permute.xlu0 %9593 }
0x1055   :  { %v9788_v22 = vpop.permute.xlu1 %9787  ;;  %10646 = vperm.xlu0 %13558, %v12773_v54  }
0x1056   :  { %v9800_v8 = vrot.slane %v9788_v22, 4 }
0x1057   :  { %v9786_v46 = vpop.permute.xlu0 %9785 }
0x1058   :  { %v9799_v30 = vrot.slane %v9786_v46, 4 }
0x1059   :  { %v9692_v16 = vpop.permute.xlu1 %9691  ;;  %10636 = vperm.xlu0 %13558, %v12771_v40   ;;  %v9805_v40 = vsel %vm586_vm8, %v9797_v51, %v9798_v24 }
0x105a   :  { %v9807_v60 = vsel %vm586_vm8, %v9799_v30, %v9800_v8 }
0x105b   :  { %v18711_v7 = vpop.permute.xlu0 %9689  ;;  %v9808_v49 = vsel %vm756_vm2, %v9786_v46, %v9807_v60  ;;  %v9806_v46 = vsel %vm756_vm2, %v18663_v44, %v9805_v40  ;;  %v9704_v60 = vrot.slane %v9692_v16, 4 }
0x105c   :  { %v9703_v26 = vrot.slane %v18711_v7, 4  ;;  %v12745_v44 = vcombine.low %v9806_v46, %v9808_v49 }
0x105d   :  { %v18713_v48 = vpop.permute.xlu1 %9511 }
0x105e   :  { %v9711_v2 = vsel %vm586_vm8, %v9703_v26, %v9704_v60  ;;  %v9607_v26 = vrot.slane %v18706_v14, 4 }
0x105f   :  { %v18715_v15 = vpop.permute.xlu0 %9509 }
0x1061   :  { %v18717_v56 = vpop.permute.xlu1 %9599 }
0x1063   :  { %v18719_v4 = vpop.permute.xlu0 %9597 }
0x1064   :  { %v9609_v40 = vrot.slane %v18719_v4, 4 }
0x1065   :  { %v9792_v63 = vpop.permute.xlu1 %9791 }
0x1066   :  { %v9802_v17 = vrot.slane %v9792_v63, 4 }
0x1067   :  { %v9790_v13 = vpop.permute.xlu0 %9789 }
0x1068   :  { %v9801_v18 = vrot.slane %v9790_v13, 4 }
0x1069   :  { %v9696_v45 = vpop.permute.xlu1 %9695 }
0x106a   :  { %v9809_v37 = vsel %vm586_vm8, %v9801_v18, %v9802_v17  ;;  %v9706_v30 = vrot.slane %v9696_v45, 4  ;;  %v12746_v45 = vcombine.high %v9806_v46, %v9808_v49  ;;  %v9610_v49 = vrot.slane %v18717_v56, 4 }
0x106b   :  { %v9694_v57 = vpop.permute.xlu0 %9693  ;;  %v9810_v63 = vsel %vm756_vm2, %v9790_v13, %v9809_v37 }
0x106c   :  { %v9705_v0 = vrot.slane %v9694_v57, 4 }
0x106d   :  { %v18721_v53 = vpop.permute.xlu1 %9515 }
0x106e   :  { %v9713_v51 = vsel %vm586_vm8, %v9705_v0, %v9706_v30  ;;  %v9606_v30 = vrot.slane %v18656_v39, 4 }
0x106f   :  { %v18723_v43 = vpop.permute.xlu0 %9513  ;;  %v9714_v16 = vsel %vm698_vm1, %v9694_v57, %v9713_v51 }
0x1071   :  { %v9604_v41 = vpop.permute.xlu1 %9603 }
0x1073   :  { %v18725_v62 = vpop.permute.xlu0 %10101 }
0x1075   :  { %v9796_v38 = vpop.permute.xlu1 %9795 }
0x1076   :  { %v9804_v50 = vrot.slane %v9796_v38, 4 }
0x1077   :  { %v18727_v36 = vpop.permute.xlu0 %9601 }
0x1079   :  { %v18729_v47 = vpop.permute.xlu1 %10095 }
0x107b   :  { %v9794_v58 = vpop.permute.xlu0 %9793 }
0x107c   :  { %v9803_v21 = vrot.slane %v9794_v58, 4 }
0x107d   :  { %v9700_v54 = vpop.permute.xlu1 %9699 }
0x107e   :  { %v9811_v22 = vsel %vm586_vm8, %v9803_v21, %v9804_v50  ;;  %v9708_v18 = vrot.slane %v9700_v54, 4  ;;  %v9701_v50 = vrot.slane %v18672_v29, 4  ;;  %v9611_v21 = vrot.slane %v18727_v36, 4 }
0x107f   :  { %v9812_v8 = vsel %vm756_vm2, %v9794_v58, %v9811_v22  ;;  %v9698_v61 = vpop.permute.xlu0 %9697  ;;  %v9612_v22 = vrot.slane %v9604_v41, 4 }
0x1080   :  { %v12747_v31 = vcombine.low %v9810_v63, %v9812_v8  ;;  %v9707_v38 = vrot.slane %v9698_v61, 4  ;;  %v12748_v17 = vcombine.high %v9810_v63, %v9812_v8  ;;  %v9709_v0 = vsel %vm586_vm8, %v9701_v50, %v9702_v32 }
0x1081   :  { %v18743_v24 = vpop.permute.xlu1 %10099  ;;  %v9619_v57 = vsel %vm586_vm8, %v9611_v21, %v9612_v22  ;;  %v9710_v32 = vsel %vm698_vm1, %v18672_v29, %v9709_v0  ;;  %v9523_v21 = vrot.slane %v18715_v15, 4  ;;  %v9522_v22 = vrot.slane %v18691_v19, 4 }
0x1082   :  { %v9715_v13 = vsel %vm586_vm8, %v9707_v38, %v9708_v18  ;;  %10515 = vmatprep.subr.bf16.mxu1 %v12748_v17  ;;  %v9617_v18 = vsel %vm586_vm8, %v9609_v40, %v9610_v49  ;;  %v9605_v17 = vrot.slane %v18654_v25, 4  ;;  %v9620_v56 = vsel %vm631_vm7, %v18727_v36, %v9619_v57 }
0x1083   :  { %v9716_v58 = vsel %vm698_vm1, %v9698_v61, %v9715_v13  ;;  %10516 = vmatpush1.bf16.msra.mxu1 %v12747_v31  ;;  %v9518_v37 = vpop.permute.xlu0 %9517  ;;  %v9712_v31 = vsel %vm698_vm1, %v18711_v7, %v9711_v2  ;;  %v9608_v7 = vrot.slane %v18701_v35, 4  ;;  %v9618_v35 = vsel %vm631_vm7, %v18719_v4, %v9617_v18 }
0x1084   :  { %10517 = vmatprep.subr.bf16.mxu1 %v12746_v45  ;;  %v12744_v61 = vcombine.high %v9714_v16, %v9716_v58  ;;  %v12743_v41 = vcombine.low %v9714_v16, %v9716_v58  ;;  %v12742_v38 = vcombine.high %v9710_v32, %v9712_v31  ;;  %v9613_v29 = vsel %vm586_vm8, %v9605_v17, %v9606_v30 }
0x1085   :  { %v18752_v54 = vpop.permute.xlu1 %10019  ;;  %v9615_v39 = vsel %vm586_vm8, %v9607_v26, %v9608_v7  ;;  %v12741_v60 = vcombine.low %v9710_v32, %v9712_v31  ;;  %v9525_v13 = vrot.slane %v18723_v43, 4  ;;  %v9527_v45 = vrot.slane %v9518_v37, 4 }
0x1086   :  { %v12740_v50 = vcombine.high %v9618_v35, %v9620_v56  ;;  %v9616_v36 = vsel %vm631_vm7, %v18706_v14, %v9615_v39  ;;  %v9614_v4 = vsel %vm631_vm7, %v18654_v25, %v9613_v29  ;;  %v12739_v0 = vcombine.low %v9618_v35, %v9620_v56 }
0x1087   :  { %10518 = vmatpush1.bf16.msra.mxu1 %v12745_v44  ;;  %v18758_v63 = vpop.permute.xlu0 %10105  ;;  %v9526_v44 = vrot.slane %v18721_v53, 4  ;;  %v9524_v14 = vrot.slane %v18713_v48, 4  ;;  %v12738_v31 = vcombine.high %v9614_v4, %v9616_v36  ;;  %v9521_v49 = vrot.slane %v18686_v33, 4 }
0x1088   :  { %10519 = vmatprep.subr.bf16.mxu1 %v12744_v61  ;;  %v10115_v25 = vrot.slane %v18758_v63, 4  ;;  %v12737_v30 = vcombine.low %v9614_v4, %v9616_v36  ;;  %v10116_v32 = vrot.slane %v18647_v27, 4  ;;  %v10113_v7 = vrot.slane %v18725_v62, 4 }
0x1089   :  { %v18766_v8 = vpop.permute.xlu1 %10023  ;;  %v9533_v61 = vsel %vm586_vm8, %v9525_v13, %v9526_v44  ;;  %v9531_v57 = vsel %vm586_vm8, %v9523_v21, %v9524_v14  ;;  %v10114_v17 = vrot.slane %v18639_v34, 4  ;;  %v10110_v35 = vrot.slane %v18729_v47, 4 }
0x108a   :  { %v9534_v19 = vsel %vm588_vm6, %v18723_v43, %v9533_v61  ;;  %v10123_v56 = vsel %vm586_vm8, %v10115_v25, %v10116_v32 }
0x108b   :  { %10520 = vmatpush1.bf16.msra.mxu1 %v12743_v41  ;;  %v18773_v46 = vpop.permute.xlu0 %10097  ;;  %v9529_v41 = vsel %vm586_vm8, %v9521_v49, %v9522_v22  ;;  %v10124_v34 = vsel %vm933_vm9, %v18758_v63, %v10123_v56 }
0x108c   :  { %10521 = vmatprep.subr.bf16.mxu1 %v12742_v38  ;;  %v10111_v39 = vrot.slane %v18773_v46, 4  ;;  %v9530_v27 = vsel %vm588_vm6, %v18686_v33, %v9529_v41 }
0x108d   :  { %v9520_v51 = vpop.permute.xlu1 %9519 }
0x108e   :  { %v9528_v58 = vrot.slane %v9520_v51, 4 }
0x108f   :  { %10522 = vmatpush1.bf16.msra.mxu1 %v12741_v60  ;;  %v18782_v2 = vpop.permute.xlu0 %10017  ;;  %v10121_v60 = vsel %vm586_vm8, %v10113_v7, %v10114_v17 }
0x1090   :  { %v9535_v16 = vsel %vm586_vm8, %v9527_v45, %v9528_v58  ;;  %10523 = vmatprep.subr.bf16.mxu1 %v12740_v50  ;;  %v10109_v45 = vrot.slane %v18696_v59, 4  ;;  %v10122_v50 = vsel %vm933_vm9, %v18725_v62, %v10121_v60  ;;  %v10029_v44 = vrot.slane %v18782_v2, 4 }
0x1091   :  { %v18789_v40 = vpop.permute.xlu1 %10011  ;;  %v9536_v53 = vsel %vm588_vm6, %v9518_v37, %v9535_v16  ;;  %v9532_v37 = vsel %vm588_vm6, %v18715_v15, %v9531_v57  ;;  %v10112_v15 = vrot.slane %v18743_v24, 4  ;;  %v12764_v24 = vcombine.high %v10122_v50, %v10124_v34 }
0x1092   :  { %v12736_v18 = vcombine.high %v9534_v19, %v9536_v53  ;;  %v12735_v43 = vcombine.low %v9534_v19, %v9536_v53  ;;  %v12734_v51 = vcombine.high %v9530_v27, %v9532_v37  ;;  %v12733_v33 = vcombine.low %v9530_v27, %v9532_v37 }
0x1093   :  { %10524 = vmatpush1.bf16.msra.mxu1 %v12739_v0  ;;  %v18794_v26 = vpop.permute.xlu0 %10009  ;;  %v10119_v58 = vsel %vm586_vm8, %v10111_v39, %v10112_v15  ;;  %v10117_v47 = vsel %vm586_vm8, %v10109_v45, %v10110_v35  ;;  %v12763_v4 = vcombine.low %v10122_v50, %v10124_v34  ;;  %v10030_v62 = vrot.slane %v18752_v54, 4 }
0x1094   :  { %10525 = vmatprep.subr.bf16.mxu1 %v12738_v31  ;;  %v10120_v21 = vsel %vm933_vm9, %v18773_v46, %v10119_v58  ;;  %v10118_v0 = vsel %vm933_vm9, %v18696_v59, %v10117_v47  ;;  %v10025_v14 = vrot.slane %v18794_v26, 4  ;;  %v10032_v53 = vrot.slane %v18766_v8, 4 }
0x1095   :  { %v10016_v48 = vpop.permute.xlu1 %10015  ;;  %v12762_v31 = vcombine.high %v10118_v0, %v10120_v21  ;;  %v10037_v49 = vsel %vm586_vm8, %v10029_v44, %v10030_v62  ;;  %v10026_v57 = vrot.slane %v18789_v40, 4  ;;  %v12761_v59 = vcombine.low %v10118_v0, %v10120_v21  ;;  %v9828_v62 = vld [vmem:[#allocation3 + $0x70] sm:$0xff] }
0x1096   :  { %v10028_v61 = vrot.slane %v10016_v48, 4  ;;  %v10038_v48 = vsel %vm658_vm4, %v18782_v2, %v10037_v49 }
0x1097   :  { %10526 = vmatpush1.bf16.msra.mxu1 %v12737_v30  ;;  %v10014_v38 = vpop.permute.xlu0 %10013  ;;  %v10033_v54 = vsel %vm586_vm8, %v10025_v14, %v10026_v57 }
0x1098   :  { %10527 = vmatprep.subr.bf16.mxu1 %v12736_v18  ;;  %v10027_v16 = vrot.slane %v10014_v38, 4  ;;  %v10034_v56 = vsel %vm658_vm4, %v18794_v26, %v10033_v54 }
0x1099   :  { %v9924_v29 = vpop.permute.xlu1 %9923 }
0x109a   :  { %v10035_v25 = vsel %vm586_vm8, %v10027_v16, %v10028_v61  ;;  %v9934_v39 = vrot.slane %v9924_v29, 4 }
0x109b   :  { %10528 = vmatpush1.bf16.msra.mxu1 %v12735_v43  ;;  %v18817_v13 = vpop.permute.xlu0 %9921  ;;  %v10036_v8 = vsel %vm658_vm4, %v10014_v38, %v10035_v25  ;;  %v9824_v25 = vld [vmem:[#allocation3 + $0x30] sm:$0xff] }
0x109c   :  { %10529 = vmatprep.subr.bf16.mxu1 %v12734_v51  ;;  %v9933_v41 = vrot.slane %v18817_v13, 4  ;;  %v12758_v43 = vcombine.high %v10034_v56, %v10036_v8  ;;  %v12757_v58 = vcombine.low %v10034_v56, %v10036_v8  ;;  %v9822_v8 = vld [vmem:[#allocation3 + $0x10] sm:$0xff] }
0x109d   :  { %v9928_v36 = vpop.permute.xlu1 %9927 }
0x109e   :  { %v9941_v2 = vsel %vm586_vm8, %v9933_v41, %v9934_v39  ;;  %v9936_v15 = vrot.slane %v9928_v36, 4 }
0x109f   :  { %10530 = vmatpush1.bf16.msra.mxu1 %v12733_v33  ;;  %v9914_v63 = vpop.permute.xlu0 %9913  ;;  %v9942_v50 = vsel %vm716_vm3, %v18817_v13, %v9941_v2  ;;  %v9826_v13 = vld [vmem:[#allocation3 + $0x50] sm:$0xff] }
0x10a0   :  { %10531 = vmatprep.subr.bf16.mxu1 %v12764_v24  ;;  %v9929_v51 = vrot.slane %v9914_v63, 4 }
0x10a1   :  { %v9916_v22 = vpop.permute.xlu1 %9915 }
0x10a2   :  { %v9930_v60 = vrot.slane %v9916_v22, 4 }
0x10a3   :  { %10532 = vmatpush2.bf16.msra.mxu1 %v12763_v4  ;;  %v10022_v46 = vpop.permute.xlu0 %10021 }
0x10a4   :  { %v10031_v30 = vrot.slane %v10022_v46, 4  ;;  %10533 = vmatprep.subr.bf16.mxu1 %v12762_v31  ;;  %v9937_v26 = vsel %vm586_vm8, %v9929_v51, %v9930_v60 }
0x10a5   :  { %v9920_v19 = vpop.permute.xlu1 %9919  ;;  %v9938_v16 = vsel %vm716_vm3, %v9914_v63, %v9937_v26  ;;  %v13618_v26 = vld [vmem:[#allocation15 + $0x68] ss:$12 sps:$4 sm:$0xff]  }
0x10a6   :  { %v10039_v32 = vsel %vm586_vm8, %v10031_v30, %v10032_v53  ;;  %v9932_v35 = vrot.slane %v9920_v19, 4  ;;  %v13527_v53 = vpack.c.bf16 %v9828_v62, %v9826_v13  ;;  %v9825_v19 = vld [vmem:[#allocation3 + $0x48] sm:$0xff] }
0x10a7   :  { %v10040_v7 = vsel %vm658_vm4, %v10022_v46, %v10039_v32  ;;  %10534 = vmatpush2.bf16.msra.mxu1 %v12761_v59  ;;  %v9918_v40 = vpop.permute.xlu0 %9917  ;;  %v9827_v46 = vld [vmem:[#allocation3 + $0x68] sm:$0xff] }
0x10a8   :  { %v12759_v18 = vcombine.low %v10038_v48, %v10040_v7  ;;  %v12760_v37 = vcombine.high %v10038_v48, %v10040_v7  ;;  %v9931_v17 = vrot.slane %v9918_v40, 4  ;;  %v13526_v48 = vpack.c.bf16 %v9827_v46, %v9825_v19 }
0x10a9   :  { %v10200_v27 = vpop.permute.xlu1 %10199  ;;  %v13525_v7 = vpack.c.bf16 %v9824_v25, %v9822_v8 }
0x10aa   :  { %10535 = vmatprep.subr.bf16.mxu1 %v12760_v37  ;;  %v9939_v34 = vsel %vm586_vm8, %v9931_v17, %v9932_v35  ;;  %v10210_v31 = vrot.slane %v10200_v27, 4  ;;  %v9821_v35 = vld [vmem:[#allocation3 + $0x8] sm:$0xff] }
0x10ab   :  { %10536 = vmatpush2.bf16.msra.mxu1 %v12759_v18  ;;  %v9926_v38 = vpop.permute.xlu0 %9925  ;;  %v9940_v47 = vsel %vm716_vm3, %v9918_v40, %v9939_v34  ;;  %v9823_v40 = vld [vmem:[#allocation3 + $0x28] sm:$0xff] }
0x10ac   :  { %v9935_v45 = vrot.slane %v9926_v38, 4  ;;  %10537 = vmatprep.subr.bf16.mxu1 %v12758_v43  ;;  %v12754_v4 = vcombine.high %v9938_v16, %v9940_v47  ;;  %v12753_v61 = vcombine.low %v9938_v16, %v9940_v47  ;;  %v13524_v2 = vpack.c.bf16 %v9823_v40, %v9821_v35  ;;  %v18865_v47 = vld [vmem:[#allocation2 + $0x18] sm:$0xff] }
0x10ad   :  { %v10204_v33 = vpop.permute.xlu1 %10203  ;;  %v18898_v35 = vmul.f32 %v18865_v47, %v16938_v6 }
0x10ae   :  { %v9943_v29 = vsel %vm586_vm8, %v9935_v45, %v9936_v15  ;;  %v10212_v30 = vrot.slane %v10204_v33, 4  ;;  %v13615_v15 = vld [vmem:[#allocation15 + $0x60] ss:$12 sps:$4 sm:$0xff]   ;;  %v13619_v45 = vld [vmem:[#allocation15 + $0x7c] ss:$12 sps:$4 sm:$0xff]  }
0x10af   :  { %v9944_v24 = vsel %vm716_vm3, %v9926_v38, %v9943_v29  ;;  %10538 = vmatpush2.bf16.msra.mxu1 %v12757_v58  ;;  %v10198_v36 = vpop.permute.xlu0 %10197  ;;  %v13621_v29 = vld [vmem:[#allocation15 + $0x78] ss:$12 sps:$4 sm:$0xff]  }
0x10b0   :  { %v12755_v21 = vcombine.low %v9942_v50, %v9944_v24  ;;  %v12756_v44 = vcombine.high %v9942_v50, %v9944_v24  ;;  %v10209_v14 = vrot.slane %v10198_v36, 4  ;;  %v13622_v50 = vld [vmem:[#allocation15 + $0x80] ss:$12 sps:$4 sm:$0xff]   ;;  %v18869_v24 = vpack.c.bf16 %v18865_v47, %v18865_v47 }
0x10b1   :  { %v10192_v0 = vpop.permute.xlu1 %10191 }
0x10b2   :  { %10539 = vmatprep.subr.bf16.mxu1 %v12756_v44  ;;  %v10217_v63 = vsel %vm586_vm8, %v10209_v14, %v10210_v31  ;;  %v10206_v54 = vrot.slane %v10192_v0, 4  ;;  %11332 = vrot.lane.b32.xlu1 %v18869_v24, %s13870_s7 }
0x10b3   :  { %10540 = vmatpush2.bf16.msra.mxu1 %v12755_v21  ;;  %v10190_v22 = vpop.permute.xlu0 %10189  ;;  %v10218_v18 = vsel %vm547_vm5, %v10198_v36, %v10217_v63 }
0x10b4   :  { %10541 = vmatprep.subr.bf16.mxu1 %v12754_v4  ;;  %v10205_v49 = vrot.slane %v10190_v22, 4 }
0x10b5   :  { %v10196_v32 = vpop.permute.xlu1 %10195 }
0x10b6   :  { %v10213_v37 = vsel %vm586_vm8, %v10205_v49, %v10206_v54  ;;  %v10208_v39 = vrot.slane %v10196_v32, 4  ;;  %11336 = vrot.lane.b32.xlu1 %v18869_v24, %s13870_s7 }
0x10b7   :  { %10542 = vmatpush2.bf16.msra.mxu1 %v12753_v61  ;;  %v10202_v57 = vpop.permute.xlu0 %10201  ;;  %v10214_v51 = vsel %vm547_vm5, %v10190_v22, %v10213_v37 }
0x10b8   :  { %v10211_v59 = vrot.slane %v10202_v57, 4  ;;  %10543 = vmatprep.subr.bf16.mxu1 %v13527_v53 }
0x10ba   :  { %v10219_v41 = vsel %vm586_vm8, %v10211_v59, %v10212_v30  ;;  %11324 = vrot.lane.b32.xlu1 %v18869_v24, %s13870_s7 }
0x10bb   :  { %v10220_v17 = vsel %vm547_vm5, %v10202_v57, %v10219_v41  ;;  %10544 = vmatpush2.bf16.msra.mxu1 %v13526_v48  ;;  %v10194_v56 = vpop.permute.xlu0 %10193 }
0x10bc   :  { %v12767_v27 = vcombine.low %v10218_v18, %v10220_v17  ;;  %v12768_v43 = vcombine.high %v10218_v18, %v10220_v17  ;;  %v10207_v60 = vrot.slane %v10194_v56, 4  ;;  %10545 = vmatprep.subr.bf16.mxu1 %v13525_v7 }
0x10be   :  { %v10215_v38 = vsel %vm586_vm8, %v10207_v60, %v10208_v39  ;;  %10580 = vmatprep.subr.bf16.mxu0 %v12768_v43 }
0x10bf   :  { %v10216_v34 = vsel %vm547_vm5, %v10194_v56, %v10215_v38  ;;  %10546 = vmatpush2.bf16.msra.mxu1 %v13524_v2  ;;  %10581 = vmatpush1.bf16.msra.mxu0 %v12767_v27 }
0x10c0   :  { %v12765_v58 = vcombine.low %v10214_v51, %v10216_v34  ;;  %v12766_v33 = vcombine.high %v10214_v51, %v10216_v34 }
0x10c2   :  { %10548 = vmatmul.mubr.bf16.vlgmr.msra.gmra.mxu1 %v13615_v15  ;;  %10582 = vmatprep.subr.bf16.mxu0 %v12766_v33  ;;  %v18877_v21 = vpop.permute.xlu1 %10296 }
0x10c3   :  { %10583 = vmatpush1.bf16.msra.mxu0 %v12765_v58  ;;  %10557 = vmatprep.mubr.bf16.mxu1 %v13619_v45 }
0x10c6   :  { %12769 = vmatmul.mubr.msk.bf16.vlgmr.msra.gmra.mxu0 %vm2328_vm12, %v13618_v26  ;;  %v10287_v44 = vpop.permute.xlu1 %10286 }
0x10c7   :  { %10610 = vmatprep.mubr.bf16.mxu0 %v19515_v10 }
0x10c8   :  { %v10292_v36 = vpop.permute.xlu0 %10291 }
0x10ca   :  { %10558 = vmatmul.mubr.bf16.gmra.mxu1 %v13621_v29  ;;  %v18881_v61 = vpop.permute.xlu1 %10651 }
0x10cb   :  { %11762 = vmatprep.mubr.bf16.mxu1 %v19515_v10 }
0x10cc   :  { %v10282_v10 = vpop.permute.xlu0 %10281 }
0x10ce   :  { %12770 = vmatmul.mubr.msk.bf16.gmra.mxu0 %vm2328_vm12, %v13622_v50  ;;  %v10642_v18 = vpop.permute.xlu1 %10641 }
0x10d0   :  { %v18879_v16 = vpop.permute.xlu0 %10646 }
0x10d4   :  { %v10637_v13 = vpop.permute.xlu0 %10636 }
0x1182   :  { %v10549_v4 = vpop.f32.mrf.mxu1 }
0x1183   :  { %v10550_v22 = vadd.f32 %v10549_v4, %v10282_v10  ;;  %v18917_v4 = vmul.f32 %v18865_v47, %v16942_v5 }
0x1184   :  { %v10551_v0 = vpop.f32.mrf.mxu1 }
0x1185   :  { %v10552_v31 = vadd.f32 %v10551_v0, %v10282_v10 }
0x1186   :  { %v10553_v62 = vpop.f32.mrf.mxu1  ;;  %v10602_v14 = vpop.f32.mrf.mxu0 }
0x1187   :  { %v10603_v53 = vadd.f32 %v10602_v14, %v10550_v22  ;;  %v10554_v30 = vadd.f32 %v10553_v62, %v10287_v44 }
0x1188   :  { %v10555_v46 = vpop.f32.mrf.mxu1  ;;  %v10604_v49 = vpop.f32.mrf.mxu0 }
0x1189   :  { %vm10621_vm10 = vcmp.ge.f32.partialorder %v10603_v53, 0.0  ;;  %v10654_v57 = vmul.f32 %v10637_v13, %v10603_v53  ;;  %v10605_v25 = vadd.f32 %v10604_v49, %v10552_v31  ;;  %v10556_v54 = vadd.f32 %v10555_v46, %v10287_v44 }
0x118a   :  { %v10559_v63 = vpop.f32.mrf.mxu1  ;;  %v10606_v59 = vpop.f32.mrf.mxu0 }
0x118b   :  { %v18883_v19 = vsel %vm10621_vm10, %v10603_v53, %v10654_v57  ;;  %vm10622_vm11 = vcmp.ge.f32.partialorder %v10605_v25, 0.0  ;;  %v10655_v32 = vmul.f32 %v10637_v13, %v10605_v25  ;;  %v10607_v48 = vadd.f32 %v10606_v59, %v10554_v30 }
0x118c   :  { %10670 = vst [vmem:[#allocation3 + $0x8] sm:$0xff] %v18883_v19  ;;  %v10561_v8 = vpop.f32.mrf.mxu1  ;;  %v10608_v41 = vpop.f32.mrf.mxu0  ;;  %v13436_v7 = vpack.c.bf16 %v18883_v19, %v18865_v47  ;;  %v10967_v40 = vmul.f32 %v18883_v19, %v16949_v1  ;;  %v10560_v17 = vadd.f32 %v10559_v63, %v10292_v36  ;;  %v10871_v15 = vmul.f32 %v18883_v19, %v16962_v55 }
0x118d   :  { %v18890_v37 = vsel %vm10622_vm11, %v10605_v25, %v10655_v32  ;;  %v10609_v56 = vadd.f32 %v10608_v41, %v10556_v54  ;;  %vm10623_vm13 = vcmp.ge.f32.partialorder %v10607_v48, 0.0  ;;  %v10656_v39 = vmul.f32 %v10642_v18, %v10607_v48 }
0x118e   :  { %10671 = vst [vmem:[#allocation3 + $0x10] sm:$0xff] %v18890_v37  ;;  %v10563_v27 = vpop.f32.mrf.mxu1  ;;  %v10612_v43 = vpop.f32.mrf.mxu0  ;;  %10818 = vrot.lane.b32.xlu0 %v13436_v7, %s13854_s24  ;;  %v13437_v60 = vpack.c.bf16 %v18890_v37, %v18890_v37  ;;  %v10562_v34 = vadd.f32 %v10561_v8, %v10292_v36  ;;  %v13452_v33 = vpack.c.bf16 %v10967_v40, %v18898_v35 }
0x118f   :  { %vm10624_vm14 = vcmp.ge.f32.partialorder %v10609_v56, 0.0  ;;  %v10657_v2 = vmul.f32 %v10642_v18, %v10609_v56  ;;  %v10613_v38 = vadd.f32 %v10612_v43, %v10560_v17  ;;  %v18902_v51 = vsel %vm10623_vm13, %v10607_v48, %v10656_v39 }
0x1190   :  { %v10565_v45 = vpop.f32.mrf.mxu1  ;;  %v10614_v58 = vpop.f32.mrf.mxu0  ;;  %10820 = vrot.lane.b32.xlu1 %v13437_v60, %s13854_s24  ;;  %v10968_v26 = vmul.f32 %v18890_v37, %v16936_v28  ;;  %10672 = vst [vmem:[#allocation3 + $0x28] sm:$0xff] %v18902_v51  ;;  %v10564_v29 = vadd.f32 %v10563_v27, %v18877_v21  ;;  %v10872_v0 = vmul.f32 %v18890_v37, %v16940_v11 }
0x1191   :  { %v18909_v6 = vsel %vm10624_vm14, %v10609_v56, %v10657_v2  ;;  %vm10625_vm15 = vcmp.ge.f32.partialorder %v10613_v38, 0.0  ;;  %v10658_v50 = vmul.f32 %v18879_v16, %v10613_v38  ;;  %v10615_v36 = vadd.f32 %v10614_v58, %v10562_v34 }
0x1192   :  { %10673 = vst [vmem:[#allocation3 + $0x30] sm:$0xff] %v18909_v6  ;;  %v10616_v10 = vpop.f32.mrf.mxu0  ;;  %11010 = vrot.lane.b32.xlu0 %v13452_v33, %s13864_s25  ;;  %v13453_v44 = vpack.c.bf16 %v10968_v26, %v10968_v26  ;;  %v10566_v62 = vadd.f32 %v10565_v45, %v18877_v21  ;;  %v13444_v53 = vpack.c.bf16 %v10871_v15, %v18917_v4 }
0x1193   :  { %v18921_v22 = vsel %vm10625_vm15, %v10613_v38, %v10658_v50  ;;  %v10617_v14 = vadd.f32 %v10616_v10, %v10564_v29  ;;  %vm10626_vm10 = vcmp.ge.f32.partialorder %v10615_v36, 0.0  ;;  %v10659_v13 = vmul.f32 %v18879_v16, %v10615_v36 }
0x1194   :  { %10674 = vst [vmem:[#allocation3 + $0x48] sm:$0xff] %v18921_v22  ;;  %v10618_v31 = vpop.f32.mrf.mxu0  ;;  %11012 = vrot.lane.b32.xlu1 %v13453_v44, %s13864_s25  ;;  %v10691_v5 = vmul.f32 %v18883_v19, %v17021_v52  ;;  %v13445_v21 = vpack.c.bf16 %v10872_v0, %v10872_v0  ;;  %v18936_v16 = vmul.f32 %v18865_v47, %v17010_v23 }
0x1195   :  { %vm10627_vm11 = vcmp.ge.f32.partialorder %v10617_v14, 0.0  ;;  %v10660_v46 = vmul.f32 %v18881_v61, %v10617_v14  ;;  %v10619_v49 = vadd.f32 %v10618_v31, %v10566_v62  ;;  %v18931_v57 = vsel %vm10626_vm10, %v10615_v36, %v10659_v13 }
0x1196   :  { %10914 = vrot.lane.b32.xlu0 %v13444_v53, %s13863_s23  ;;  %v10692_v25 = vmul.f32 %v18890_v37, %v16984_v12  ;;  %10675 = vst [vmem:[#allocation3 + $0x50] sm:$0xff] %v18931_v57  ;;  %v13428_v59 = vpack.c.bf16 %v10691_v5, %v18936_v16  ;;  %v13480_v32 = vpack.c.bf16 %v18890_v37, %v18883_v19  ;;  %v19599_v5 = vld [vmem:[#allocation32_spill] sm:$0xff] }
0x1197   :  { %v18941_v30 = vsel %vm10627_vm11, %v10617_v14, %v10660_v46  ;;  %vm10628_vm13 = vcmp.ge.f32.partialorder %v10619_v49, 0.0  ;;  %v10661_v63 = vmul.f32 %v18881_v61, %v10619_v49  ;;  %v10971_v61 = vmul.f32 %v18909_v6, %v16936_v28 }
0x1198   :  { %10676 = vst [vmem:[#allocation3 + $0x68] sm:$0xff] %v18941_v30  ;;  %10916 = vrot.lane.b32.xlu1 %v13445_v21, %s13863_s23  ;;  %v13429_v23 = vpack.c.bf16 %v10692_v25, %v10692_v25  ;;  %v10970_v48 = vmul.f32 %v18902_v51, %v16949_v1  ;;  %v10875_v8 = vmul.f32 %v18909_v6, %v16940_v11 }
0x1199   :  { %v18947_v54 = vsel %vm10628_vm13, %v10619_v49, %v10661_v63  ;;  %v13439_v41 = vpack.c.bf16 %v18909_v6, %v18909_v6  ;;  %v10874_v7 = vmul.f32 %v18902_v51, %v16962_v55  ;;  %v13438_v40 = vpack.c.bf16 %v18902_v51, %v18865_v47  ;;  %v19600_v49 = vld [vmem:[#allocation34_spill] sm:$0xff] }
0x119a   :  { %10677 = vst [vmem:[#allocation3 + $0x70] sm:$0xff] %v18947_v54  ;;  %10734 = vrot.lane.b32.xlu0 %v13428_v59, %s13868_s27  ;;  %v13455_v18 = vpack.c.bf16 %v10971_v61, %v10971_v61  ;;  %v13454_v17 = vpack.c.bf16 %v10970_v48, %v18898_v35  ;;  %v13447_v56 = vpack.c.bf16 %v10875_v8, %v10875_v8 }
0x119b   :  { %v18971_v39 = vmul.f32 %v18921_v22, %v16884_v20  ;;  %v18975_v27 = vmul.f32 %v18931_v57, %v16890_v3  ;;  %v13446_v43 = vpack.c.bf16 %v10874_v7, %v18917_v4  ;;  %v10695_v60 = vmul.f32 %v18909_v6, %v16984_v12 }
0x119c   :  { %10736 = vrot.lane.b32.xlu1 %v13429_v23, %s13868_s27  ;;  %v18983_v2 = vmul.f32 %v18883_v19, %v16884_v20  ;;  %v18987_v38 = vmul.f32 %v18890_v37, %v16890_v3  ;;  %v18993_v34 = vmul.f32 %v18902_v51, %v16884_v20  ;;  %v18997_v45 = vmul.f32 %v18909_v6, %v16890_v3 }
0x119d   :  { %v13476_v15 = vpack.c.bf16 %v18975_v27, %v18971_v39  ;;  %v19001_v58 = vmul.f32 %v18921_v22, %v16906_v42  ;;  %v19008_v26 = vmul.f32 %v18931_v57, %v16913_v9  ;;  %v19012_v29 = vmul.f32 %v18883_v19, %v16906_v42  ;;  %v19201_v39 = vpop.permute.xlu1 %11332 }
0x119e   :  { %11322 = vrot.lane.b32.xlu0 %v13480_v32, %s13870_s7  ;;  %v13472_v33 = vpack.c.bf16 %v18987_v38, %v18983_v2  ;;  %v19016_v50 = vmul.f32 %v18890_v37, %v16913_v9  ;;  %v10694_v36 = vmul.f32 %v18902_v51, %v17021_v52  ;;  %v13474_v10 = vpack.c.bf16 %v18997_v45, %v18993_v34 }
0x119f   :  { %v19024_v44 = vmul.f32 %v18902_v51, %v16906_v42  ;;  %v19028_v0 = vmul.f32 %v18909_v6, %v16913_v9  ;;  %v13468_v62 = vpack.c.bf16 %v19008_v26, %v19001_v58  ;;  %v19037_v13 = vmul.f32 %v18941_v30, %v16884_v20 }
0x11a0   :  { %10824 = vrot.lane.b32.xlu1 %v13439_v41, %s13854_s24  ;;  %v13464_v14 = vpack.c.bf16 %v19016_v50, %v19012_v29  ;;  %v19041_v31 = vmul.f32 %v18947_v54, %v16890_v3  ;;  %v19047_v46 = vmul.f32 %v18921_v22, %v19599_v5  ;;  %v19051_v21 = vmul.f32 %v18931_v57, %v19600_v49 }
0x11a1   :  { %v13466_v53 = vpack.c.bf16 %v19028_v0, %v19024_v44  ;;  %v19055_v25 = vmul.f32 %v18941_v30, %v16906_v42  ;;  %v19062_v3 = vmul.f32 %v18947_v54, %v16913_v9  ;;  %v19066_v63 = vmul.f32 %v18883_v19, %v19599_v5  ;;  %v19212_v2 = vpop.permute.xlu1 %11336 }
0x11a2   :  { %10822 = vrot.lane.b32.xlu0 %v13438_v40, %s13854_s24  ;;  %v13478_v20 = vpack.c.bf16 %v19041_v31, %v19037_v13  ;;  %v19070_v59 = vmul.f32 %v18890_v37, %v19600_v49  ;;  %v13431_v23 = vpack.c.bf16 %v10695_v60, %v10695_v60  ;;  %v13492_v42 = vpack.c.bf16 %v19051_v21, %v19047_v46 }
0x11a3   :  { %v19076_v32 = vmul.f32 %v18941_v30, %v19599_v5  ;;  %v19080_v9 = vmul.f32 %v18947_v54, %v19600_v49  ;;  %v13470_v19 = vpack.c.bf16 %v19062_v3, %v19055_v25  ;;  %v19089_v61 = vmul.f32 %v18902_v51, %v19599_v5 }
0x11a4   :  { %11016 = vrot.lane.b32.xlu1 %v13455_v18, %s13864_s25  ;;  %v13488_v37 = vpack.c.bf16 %v19070_v59, %v19066_v63  ;;  %v19093_v48 = vmul.f32 %v18909_v6, %v19600_v49  ;;  %v13430_v41 = vpack.c.bf16 %v10694_v36, %v18936_v16  ;;  %v13441_v40 = vpack.c.bf16 %v18931_v57, %v18931_v57 }
0x11a5   :  { %v13494_v8 = vpack.c.bf16 %v19080_v9, %v19076_v32  ;;  %v10974_v18 = vmul.f32 %v18931_v57, %v16936_v28  ;;  %v13440_v60 = vpack.c.bf16 %v18921_v22, %v18865_v47  ;;  %v10973_v36 = vmul.f32 %v18921_v22, %v16949_v1 }
0x11a6   :  { %11014 = vrot.lane.b32.xlu0 %v13454_v17, %s13864_s25  ;;  %v13490_v7 = vpack.c.bf16 %v19093_v48, %v19089_v61  ;;  %v13482_v17 = vpack.c.bf16 %v18909_v6, %v18902_v51  ;;  %v10698_v51 = vmul.f32 %v18931_v57, %v16984_v12  ;;  %v10877_v49 = vmul.f32 %v18921_v22, %v16962_v55 }
0x11a7   :  { %v13456_v6 = vpack.c.bf16 %v10973_v36, %v18898_v35  ;;  %v10881_v36 = vmul.f32 %v18947_v54, %v16940_v11 }
0x11a8   :  { %10920 = vrot.lane.b32.xlu1 %v13447_v56, %s13863_s23  ;;  %v13457_v56 = vpack.c.bf16 %v10974_v18, %v10974_v18  ;;  %v13443_v18 = vpack.c.bf16 %v18947_v54, %v18947_v54 }
0x11aa   :  { %10918 = vrot.lane.b32.xlu0 %v13446_v43, %s13863_s23  ;;  %v10878_v43 = vmul.f32 %v18931_v57, %v16940_v11  ;;  %v10880_v11 = vmul.f32 %v18941_v30, %v16962_v55  ;;  %v10701_v55 = vmul.f32 %v18947_v54, %v16984_v12 }
0x11ac   :  { %10740 = vrot.lane.b32.xlu1 %v13431_v23, %s13868_s27  ;;  %v13449_v5 = vpack.c.bf16 %v10878_v43, %v10878_v43  ;;  %v13433_v23 = vpack.c.bf16 %v10698_v51, %v10698_v51  ;;  %v13451_v51 = vpack.c.bf16 %v10881_v36, %v10881_v36 }
0x11ae   :  { %10738 = vrot.lane.b32.xlu0 %v13430_v41, %s13868_s27  ;;  %v13448_v41 = vpack.c.bf16 %v10877_v49, %v18917_v4  ;;  %v10700_v49 = vmul.f32 %v18941_v30, %v17021_v52 }
0x11b0   :  { %10828 = vrot.lane.b32.xlu1 %v13441_v40, %s13854_s24  ;;  %v10697_v40 = vmul.f32 %v18921_v22, %v17021_v52  ;;  %v19602_v52 = vld [vmem:[#allocation36_spill] sm:$0xff] }
0x11b2   :  { %11326 = vrot.lane.b32.xlu0 %v13482_v17, %s13870_s7  ;;  %v10977_v17 = vmul.f32 %v18947_v54, %v16936_v28  ;;  %v13442_v28 = vpack.c.bf16 %v18941_v30, %v18865_v47 }
0x11b4   :  { %11020 = vrot.lane.b32.xlu1 %v13457_v56, %s13864_s25  ;;  %v13432_v56 = vpack.c.bf16 %v10697_v40, %v18936_v16  ;;  %v13459_v43 = vpack.c.bf16 %v10977_v17, %v10977_v17 }
0x11b6   :  { %10826 = vrot.lane.b32.xlu0 %v13440_v60, %s13854_s24  ;;  %v13484_v60 = vpack.c.bf16 %v18931_v57, %v18921_v22 }
0x11b8   :  { %10924 = vrot.lane.b32.xlu1 %v13449_v5, %s13863_s23  ;;  %v10976_v5 = vmul.f32 %v18941_v30, %v16949_v1  ;;  %v13450_v1 = vpack.c.bf16 %v10880_v11, %v18917_v4  ;;  %v13435_v4 = vpack.c.bf16 %v10701_v55, %v10701_v55 }
0x11ba   :  { %11018 = vrot.lane.b32.xlu0 %v13456_v6, %s13864_s25  ;;  %v19601_v6 = vld [vmem:[#allocation35_spill] sm:$0xff]  ;;  %v13458_v57 = vpack.c.bf16 %v10976_v5, %v18898_v35  ;;  %v13486_v35 = vpack.c.bf16 %v18947_v54, %v18941_v30 }
0x11bb   :  { %v11202_v22 = vmul.f32 %v18865_v47, %v19601_v6  ;;  %v19603_v30 = vld [vmem:[#allocation31_spill] sm:$0xff] }
0x11bc   :  { %10744 = vrot.lane.b32.xlu1 %v13433_v23, %s13868_s27  ;;  %v13434_v23 = vpack.c.bf16 %v10700_v49, %v18936_v16  ;;  %v11106_v16 = vmul.f32 %v18865_v47, %v19602_v52  ;;  %v11382_v54 = vmul.f32 %v18865_v47, %v19603_v30  ;;  %v11325_v47 = vpop.permute.xlu1 %11324 }
0x11bd   :  { %v11339_v11 = vrot.slane %v11325_v47, 4 }
0x11be   :  { %10922 = vrot.lane.b32.xlu0 %v13448_v41, %s13863_s23  ;;  %v13469_v12 = vpack.c.bf16 %v11106_v16, %v11106_v16  ;;  %v13493_v27 = vpack.c.bf16 %v11382_v54, %v11382_v54 }
0x11c0   :  { %10832 = vrot.lane.b32.xlu1 %v13443_v18, %s13854_s24 }
0x11c2   :  { %10742 = vrot.lane.b32.xlu0 %v13432_v56, %s13868_s27 }
0x11c4   :  { %11024 = vrot.lane.b32.xlu1 %v13459_v43, %s13864_s25 }
0x11c6   :  { %11330 = vrot.lane.b32.xlu0 %v13484_v60, %s13870_s7 }
0x11c8   :  { %11328 = vrot.lane.b32.xlu1 %v18869_v24, %s13870_s7  ;;  %v13477_v24 = vpack.c.bf16 %v11202_v22, %v11202_v22 }
0x11ca   :  { %10830 = vrot.lane.b32.xlu0 %v13442_v28, %s13854_s24 }
0x11cc   :  { %10928 = vrot.lane.b32.xlu1 %v13451_v51, %s13863_s23 }
0x11ce   :  { %11022 = vrot.lane.b32.xlu0 %v13458_v57, %s13864_s25 }
0x11d0   :  { %11248 = vrot.lane.b32.xlu1 %v13477_v24, %s13866_s26 }
0x11d2   :  { %10926 = vrot.lane.b32.xlu0 %v13450_v1, %s13863_s23 }
0x11d4   :  { %11252 = vrot.lane.b32.xlu1 %v13477_v24, %s13866_s26 }
0x11d6   :  { %10746 = vrot.lane.b32.xlu0 %v13434_v23, %s13868_s27 }
0x11d8   :  { %11240 = vrot.lane.b32.xlu1 %v13477_v24, %s13866_s26 }
0x11da   :  { %11334 = vrot.lane.b32.xlu0 %v13486_v35, %s13870_s7 }
0x11dc   :  { %10748 = vrot.lane.b32.xlu1 %v13435_v4, %s13868_s27 }
0x11de   :  { %11246 = vrot.lane.b32.xlu0 %v13476_v15, %s13866_s26 }
0x11e0   :  { %11244 = vrot.lane.b32.xlu1 %v13477_v24, %s13866_s26 }
0x11e2   :  { %11238 = vrot.lane.b32.xlu0 %v13472_v33, %s13866_s26  ;;  %v19231_v33 = vld [vmem:[#allocation16] sm:$0xff] }
0x11e3   :  { %v12844_v29 = vcombine.high %v19231_v33, %v19231_v33 }
0x11e4   :  { %11152 = vrot.lane.b32.xlu1 %v13469_v12, %s13865_s3 }
0x11e5   :  { %11721 = vmatprep.mubr.bf16.mxu0 %v12844_v29 }
0x11e6   :  { %11242 = vrot.lane.b32.xlu0 %v13474_v10, %s13866_s26 }
0x11e8   :  { %11156 = vrot.lane.b32.xlu1 %v13469_v12, %s13865_s3 }
0x11ea   :  { %11150 = vrot.lane.b32.xlu0 %v13468_v62, %s13865_s3  ;;  %v12883_v62 = vld [vmem:[%s19433_s15 + $0x80] sm:$0xff] }
0x11ec   :  { %11144 = vrot.lane.b32.xlu1 %v13469_v12, %s13865_s3 }
0x11ee   :  { %11142 = vrot.lane.b32.xlu0 %v13464_v14, %s13865_s3 }
0x11f0   :  { %11148 = vrot.lane.b32.xlu1 %v13469_v12, %s13865_s3 }
0x11f2   :  { %11146 = vrot.lane.b32.xlu0 %v13466_v53, %s13865_s3 }
0x11f4   :  { %11428 = vrot.lane.b32.xlu1 %v13493_v27, %s13867_s10 }
0x11f6   :  { %11250 = vrot.lane.b32.xlu0 %v13478_v20, %s13866_s26 }
0x11f8   :  { %11432 = vrot.lane.b32.xlu1 %v13493_v27, %s13867_s10 }
0x11fa   :  { %11426 = vrot.lane.b32.xlu0 %v13492_v42, %s13867_s10 }
0x11fc   :  { %11420 = vrot.lane.b32.xlu1 %v13493_v27, %s13867_s10 }
0x11fe   :  { %11154 = vrot.lane.b32.xlu0 %v13470_v19, %s13865_s3 }
0x1200   :  { %11424 = vrot.lane.b32.xlu1 %v13493_v27, %s13867_s10  ;;  %v10819_v38 = vpop.permute.xlu0 %10818 }
0x1201   :  { %v10834_v34 = vrot.slane %v10819_v38, 4 }
0x1202   :  { %v10821_v15 = vpop.permute.xlu1 %10820  ;;  %11418 = vrot.lane.b32.xlu0 %v13488_v37, %s13867_s10 }
0x1203   :  { %v10835_v45 = vrot.slane %v10821_v15, 4 }
0x1204   :  { %v19229_v58 = vpop.permute.xlu0 %11010 }
0x1205   :  { %v10842_v26 = vsel %vm586_vm8, %v10834_v34, %v10835_v45 }
0x1206   :  { %v19236_v50 = vpop.permute.xlu1 %11012  ;;  %11430 = vrot.lane.b32.xlu0 %v13494_v8, %s13867_s10  ;;  %v19243_v10 = vsel %vm631_vm7, %v10819_v38, %v10842_v26  ;;  %v11026_v26 = vrot.slane %v19229_v58, 4 }
0x1207   :  { %v11027_v27 = vrot.slane %v19236_v50, 4 }
0x1208   :  { %v19245_v44 = vpop.permute.xlu0 %10914 }
0x1209   :  { %v11034_v50 = vsel %vm586_vm8, %v11026_v26, %v11027_v27 }
0x120a   :  { %v19247_v0 = vpop.permute.xlu1 %10916  ;;  %11422 = vrot.lane.b32.xlu0 %v13490_v7, %s13867_s10 }
0x120c   :  { %v10735_v14 = vpop.permute.xlu0 %10734 }
0x120d   :  { %v10750_v31 = vrot.slane %v10735_v14, 4 }
0x120e   :  { %v10737_v13 = vpop.permute.xlu1 %10736  ;;  %11775 = vperm.xlu0 %13558, %v12883_v62  }
0x120f   :  { %v10751_v53 = vrot.slane %v10737_v13, 4 }
0x1210   :  { %v11323_v46 = vpop.permute.xlu0 %11322 }
0x1211   :  { %v10758_v21 = vsel %vm586_vm8, %v10750_v31, %v10751_v53  ;;  %v11338_v22 = vrot.slane %v11323_v46, 4 }
0x1212   :  { %v10825_v25 = vpop.permute.xlu1 %10824  ;;  %v19258_v20 = vsel %vm588_vm6, %v10735_v14, %v10758_v21 }
0x1213   :  { %v10837_v63 = vrot.slane %v10825_v25, 4  ;;  %v11346_v1 = vsel %vm586_vm8, %v11338_v22, %v11339_v11 }
0x1214   :  { %v10823_v3 = vpop.permute.xlu0 %10822  ;;  %v19293_v16 = vsel %vm933_vm9, %v11323_v46, %v11346_v1 }
0x1215   :  { %v10836_v59 = vrot.slane %v10823_v3, 4 }
0x1216   :  { %v11017_v42 = vpop.permute.xlu1 %11016 }
0x1217   :  { %v10844_v32 = vsel %vm586_vm8, %v10836_v59, %v10837_v63  ;;  %v11029_v12 = vrot.slane %v11017_v42, 4 }
0x1218   :  { %v19262_v9 = vsel %vm631_vm7, %v10823_v3, %v10844_v32  ;;  %v11015_v19 = vpop.permute.xlu0 %11014 }
0x1219   :  { %v12850_v37 = vcombine.low %v19243_v10, %v19262_v9  ;;  %v12851_v61 = vcombine.high %v19243_v10, %v19262_v9  ;;  %v11028_v55 = vrot.slane %v11015_v19, 4 }
0x121a   :  { %v19268_v48 = vpop.permute.xlu1 %10920 }
0x121b   :  { %v11036_v34 = vsel %vm586_vm8, %v11028_v55, %v11029_v12 }
0x121c   :  { %v19270_v8 = vpop.permute.xlu0 %10918  ;;  %v11037_v31 = vsel %vm756_vm2, %v11015_v19, %v11036_v34  ;;  %v11035_v19 = vsel %vm756_vm2, %v19229_v58, %v11034_v50 }
0x121d   :  { %v10932_v21 = vrot.slane %v19270_v8, 4  ;;  %v12859_v11 = vcombine.high %v11035_v19, %v11037_v31 }
0x121e   :  { %v19272_v7 = vpop.permute.xlu1 %10740 }
0x1220   :  { %v19274_v41 = vpop.permute.xlu0 %10738 }
0x1222   :  { %v19276_v40 = vpop.permute.xlu1 %10828 }
0x1224   :  { %v11327_v18 = vpop.permute.xlu0 %11326 }
0x1225   :  { %v11340_v49 = vrot.slane %v11327_v18, 4 }
0x1226   :  { %v11021_v17 = vpop.permute.xlu1 %11020 }
0x1227   :  { %v11031_v47 = vrot.slane %v11021_v17, 4 }
0x1228   :  { %v19278_v56 = vpop.permute.xlu0 %10826 }
0x1229   :  { %v10838_v27 = vrot.slane %v19278_v56, 4 }
0x122a   :  { %v10925_v43 = vpop.permute.xlu1 %10924 }
0x122b   :  { %v10935_v25 = vrot.slane %v10925_v43, 4 }
0x122c   :  { %v11019_v60 = vpop.permute.xlu0 %11018 }
0x122d   :  { %v11030_v4 = vrot.slane %v11019_v60, 4 }
0x122e   :  { %v19280_v36 = vpop.permute.xlu1 %10744 }
0x122f   :  { %v11038_v29 = vsel %vm586_vm8, %v11030_v4, %v11031_v47  ;;  %v12858_v4 = vcombine.low %v11035_v19, %v11037_v31  ;;  %v10755_v19 = vrot.slane %v19280_v36, 4 }
0x1230   :  { %v10923_v28 = vpop.permute.xlu0 %10922  ;;  %v11039_v3 = vsel %vm756_vm2, %v11019_v60, %v11038_v29 }
0x1231   :  { %v10934_v53 = vrot.slane %v10923_v28, 4 }
0x1232   :  { %v19282_v5 = vpop.permute.xlu1 %10832 }
0x1233   :  { %v10942_v43 = vsel %vm586_vm8, %v10934_v53, %v10935_v25  ;;  %v10841_v47 = vrot.slane %v19282_v5, 4 }
0x1234   :  { %v19284_v51 = vpop.permute.xlu0 %10742 }
0x1236   :  { %v11025_v6 = vpop.permute.xlu1 %11024 }
0x1237   :  { %v11033_v62 = vrot.slane %v11025_v6, 4  ;;  %v10931_v6 = vrot.slane %v19247_v0, 4 }
0x1238   :  { %v19286_v57 = vpop.permute.xlu0 %11330 }
0x1239   :  { %v11342_v58 = vrot.slane %v19286_v57, 4 }
0x123a   :  { %v11329_v24 = vpop.permute.xlu1 %11328 }
0x123b   :  { %v11341_v23 = vrot.slane %v11329_v24, 4  ;;  %v10933_v24 = vrot.slane %v19268_v48, 4  ;;  %v11343_v48 = vrot.slane %v19201_v39, 4  ;;  %v10839_v39 = vrot.slane %v19276_v40, 4 }
0x123c   :  { %v19289_v35 = vpop.permute.xlu0 %10830 }
0x123d   :  { %v11348_v52 = vsel %vm586_vm8, %v11340_v49, %v11341_v23  ;;  %v10930_v23 = vrot.slane %v19245_v44, 4  ;;  %v10940_v0 = vsel %vm586_vm8, %v10932_v21, %v10933_v24  ;;  %v10840_v55 = vrot.slane %v19289_v35, 4 }
0x123e   :  { %v10929_v30 = vpop.permute.xlu1 %10928  ;;  %v19296_v54 = vsel %vm933_vm9, %v11327_v18, %v11348_v52  ;;  %v10943_v52 = vsel %vm698_vm1, %v10923_v28, %v10942_v43  ;;  %v10941_v26 = vsel %vm698_vm1, %v19270_v8, %v10940_v0  ;;  %v11350_v28 = vsel %vm586_vm8, %v11342_v58, %v11343_v48 }
0x123f   :  { %v12874_v38 = vcombine.low %v19293_v16, %v19296_v54  ;;  %v12875_v15 = vcombine.high %v19293_v16, %v19296_v54  ;;  %v10937_v42 = vrot.slane %v10929_v30, 4  ;;  %v10938_v30 = vsel %vm586_vm8, %v10930_v23, %v10931_v6 }
0x1240   :  { %v11023_v45 = vpop.permute.xlu0 %11022  ;;  %v10939_v50 = vsel %vm698_vm1, %v19245_v44, %v10938_v30 }
0x1241   :  { %v11032_v14 = vrot.slane %v11023_v45, 4  ;;  %v12855_v53 = vcombine.high %v10939_v50, %v10941_v26 }
0x1242   :  { %v19306_v13 = vpop.permute.xlu1 %11248 }
0x1243   :  { %v11040_v46 = vsel %vm586_vm8, %v11032_v14, %v11033_v62  ;;  %v10848_v62 = vsel %vm586_vm8, %v10840_v55, %v10841_v47  ;;  %v11259_v10 = vrot.slane %v19306_v13, 4 }
0x1244   :  { %v11041_v63 = vsel %vm756_vm2, %v11023_v45, %v11040_v46  ;;  %v10927_v59 = vpop.permute.xlu0 %10926  ;;  %v11345_v45 = vrot.slane %v19212_v2, 4  ;;  %v10846_v2 = vsel %vm586_vm8, %v10838_v27, %v10839_v39  ;;  %v11351_v46 = vsel %vm933_vm9, %v19286_v57, %v11350_v28 }
0x1245   :  { %v12860_v32 = vcombine.low %v11039_v3, %v11041_v63  ;;  %v12861_v18 = vcombine.high %v11039_v3, %v11041_v63  ;;  %v10936_v17 = vrot.slane %v10927_v59, 4  ;;  %v10849_v40 = vsel %vm631_vm7, %v19289_v35, %v10848_v62 }
0x1246   :  { %v19317_v22 = vpop.permute.xlu1 %11252  ;;  %v10752_v35 = vrot.slane %v19274_v41, 4 }
0x1247   :  { %v10944_v60 = vsel %vm586_vm8, %v10936_v17, %v10937_v42  ;;  %11689 = vmatprep.subr.bf16.mxu0 %v12861_v18  ;;  %v10847_v42 = vsel %vm631_vm7, %v19278_v56, %v10846_v2  ;;  %v10754_v18 = vrot.slane %v19284_v51, 4 }
0x1248   :  { %v10945_v1 = vsel %vm698_vm1, %v10927_v59, %v10944_v60  ;;  %11690 = vmatpush1.bf16.msra.mxu0 %v12860_v32  ;;  %v10747_v49 = vpop.permute.xlu0 %10746  ;;  %v12854_v59 = vcombine.low %v10939_v50, %v10941_v26  ;;  %v12853_v17 = vcombine.high %v10847_v42, %v10849_v40  ;;  %v12852_v24 = vcombine.low %v10847_v42, %v10849_v40 }
0x1249   :  { %11691 = vmatprep.subr.bf16.mxu0 %v12859_v11  ;;  %v12857_v34 = vcombine.high %v10943_v52, %v10945_v1  ;;  %v12856_v5 = vcombine.low %v10943_v52, %v10945_v1  ;;  %v10756_v57 = vrot.slane %v10747_v49, 4  ;;  %v10753_v60 = vrot.slane %v19272_v7, 4 }
0x124a   :  { %v19329_v12 = vpop.permute.xlu1 %11240  ;;  %v10762_v56 = vsel %vm586_vm8, %v10754_v18, %v10755_v19 }
0x124b   :  { %v10760_v0 = vsel %vm586_vm8, %v10752_v35, %v10753_v60  ;;  %v10763_v36 = vsel %vm588_vm6, %v19284_v51, %v10762_v56 }
0x124c   :  { %11692 = vmatpush1.bf16.msra.mxu0 %v12858_v4  ;;  %v11335_v29 = vpop.permute.xlu0 %11334  ;;  %v10761_v7 = vsel %vm588_vm6, %v19274_v41, %v10760_v0 }
0x124d   :  { %v11344_v14 = vrot.slane %v11335_v29, 4  ;;  %11693 = vmatprep.subr.bf16.mxu0 %v12857_v34  ;;  %v12847_v52 = vcombine.high %v19258_v20, %v10761_v7  ;;  %v12846_v51 = vcombine.low %v19258_v20, %v10761_v7 }
0x124e   :  { %v10749_v31 = vpop.permute.xlu1 %10748 }
0x124f   :  { %v11352_v8 = vsel %vm586_vm8, %v11344_v14, %v11345_v45  ;;  %v10757_v44 = vrot.slane %v10749_v31, 4  ;;  %v11261_v45 = vrot.slane %v19317_v22, 4 }
0x1250   :  { %v11353_v21 = vsel %vm933_vm9, %v11335_v29, %v11352_v8  ;;  %11694 = vmatpush1.bf16.msra.mxu0 %v12856_v5  ;;  %v11247_v25 = vpop.permute.xlu0 %11246  ;;  %v11255_v29 = vrot.slane %v19329_v12, 4 }
0x1251   :  { %v12876_v3 = vcombine.low %v11351_v46, %v11353_v21  ;;  %v12877_v63 = vcombine.high %v11351_v46, %v11353_v21  ;;  %11695 = vmatprep.subr.bf16.mxu0 %v12855_v53  ;;  %v10764_v11 = vsel %vm586_vm8, %v10756_v57, %v10757_v44  ;;  %v11258_v47 = vrot.slane %v11247_v25, 4 }
0x1252   :  { %v11245_v32 = vpop.permute.xlu1 %11244  ;;  %v10765_v23 = vsel %vm588_vm6, %v10747_v49, %v10764_v11 }
0x1253   :  { %v12849_v55 = vcombine.high %v10763_v36, %v10765_v23  ;;  %v12848_v49 = vcombine.low %v10763_v36, %v10765_v23  ;;  %v11257_v9 = vrot.slane %v11245_v32, 4  ;;  %v11266_v39 = vsel %vm586_vm8, %v11258_v47, %v11259_v10  ;;  %v11057_v23 = vld [vmem:[#allocation3 + $0x70] sm:$0xff] }
0x1254   :  { %11696 = vmatpush1.bf16.msra.mxu0 %v12854_v59  ;;  %v11239_v6 = vpop.permute.xlu0 %11238  ;;  %v11267_v14 = vsel %vm658_vm4, %v11247_v25, %v11266_v39  ;;  %v11053_v10 = vld [vmem:[#allocation3 + $0x30] sm:$0xff] }
0x1255   :  { %11697 = vmatprep.subr.bf16.mxu0 %v12853_v17  ;;  %v11051_v39 = vld [vmem:[#allocation3 + $0x10] sm:$0xff] }
0x1256   :  { %v19355_v43 = vpop.permute.xlu1 %11152 }
0x1257   :  { %v11163_v46 = vrot.slane %v19355_v43, 4 }
0x1258   :  { %11698 = vmatpush1.bf16.msra.mxu0 %v12852_v24  ;;  %v11243_v1 = vpop.permute.xlu0 %11242 }
0x1259   :  { %11699 = vmatprep.subr.bf16.mxu0 %v12851_v61  ;;  %v11256_v41 = vrot.slane %v11243_v1, 4 }
0x125a   :  { %v11157_v58 = vpop.permute.xlu1 %11156 }
0x125b   :  { %v11264_v20 = vsel %vm586_vm8, %v11256_v41, %v11257_v9 }
0x125c   :  { %11700 = vmatpush1.bf16.msra.mxu0 %v12850_v37  ;;  %v11151_v48 = vpop.permute.xlu0 %11150  ;;  %v11254_v37 = vrot.slane %v11239_v6, 4  ;;  %v11265_v22 = vsel %vm658_vm4, %v11243_v1, %v11264_v20 }
0x125d   :  { %11701 = vmatprep.subr.bf16.mxu0 %v12849_v55  ;;  %v11162_v5 = vrot.slane %v11151_v48, 4 }
0x125e   :  { %v11145_v4 = vpop.permute.xlu1 %11144  ;;  %v11262_v13 = vsel %vm586_vm8, %v11254_v37, %v11255_v29 }
0x125f   :  { %v11263_v8 = vsel %vm658_vm4, %v11239_v6, %v11262_v13  ;;  %v11170_v16 = vsel %vm586_vm8, %v11162_v5, %v11163_v46  ;;  %v11159_v54 = vrot.slane %v11145_v4, 4  ;;  %v11052_v13 = vld [vmem:[#allocation3 + $0x28] sm:$0xff] }
0x1260   :  { %11702 = vmatpush1.bf16.msra.mxu0 %v12848_v49  ;;  %v11143_v61 = vpop.permute.xlu0 %11142  ;;  %v12871_v40 = vcombine.high %v11263_v8, %v11265_v22  ;;  %v12870_v59 = vcombine.low %v11263_v8, %v11265_v22  ;;  %v11171_v17 = vsel %vm716_vm3, %v11151_v48, %v11170_v16  ;;  %v11055_v49 = vld [vmem:[#allocation3 + $0x50] sm:$0xff] }
0x1261   :  { %11703 = vmatprep.subr.bf16.mxu0 %v12847_v52  ;;  %v11158_v21 = vrot.slane %v11143_v61, 4 }
0x1262   :  { %v11149_v30 = vpop.permute.xlu1 %11148 }
0x1263   :  { %v11161_v25 = vrot.slane %v11149_v30, 4  ;;  %v11166_v42 = vsel %vm586_vm8, %v11158_v21, %v11159_v54 }
0x1264   :  { %11704 = vmatpush1.bf16.msra.mxu0 %v12846_v51  ;;  %v11147_v27 = vpop.permute.xlu0 %11146  ;;  %v11167_v43 = vsel %vm716_vm3, %v11143_v61, %v11166_v42  ;;  %v13531_v51 = vpack.c.bf16 %v11057_v23, %v11055_v49  ;;  %v11056_v61 = vld [vmem:[#allocation3 + $0x68] sm:$0xff] }
0x1265   :  { %11705 = vmatprep.subr.bf16.mxu0 %v12877_v63  ;;  %v11160_v31 = vrot.slane %v11147_v27, 4 }
0x1266   :  { %v11429_v34 = vpop.permute.xlu1 %11428 }
0x1267   :  { %v11439_v56 = vrot.slane %v11429_v34, 4 }
0x1268   :  { %11706 = vmatpush2.bf16.msra.mxu0 %v12876_v3  ;;  %v11251_v26 = vpop.permute.xlu0 %11250  ;;  %v11165_v3 = vrot.slane %v11157_v58, 4 }
0x1269   :  { %v11260_v28 = vrot.slane %v11251_v26, 4  ;;  %11707 = vmatprep.subr.bf16.mxu0 %v12875_v15 }
0x126a   :  { %v11433_v15 = vpop.permute.xlu1 %11432 }
0x126b   :  { %v11268_v62 = vsel %vm586_vm8, %v11260_v28, %v11261_v45  ;;  %v11441_v0 = vrot.slane %v11433_v15, 4  ;;  %v13529_v28 = vpack.c.bf16 %v11053_v10, %v11051_v39 }
0x126c   :  { %v11269_v50 = vsel %vm658_vm4, %v11251_v26, %v11268_v62  ;;  %11708 = vmatpush2.bf16.msra.mxu0 %v12874_v38  ;;  %v11427_v12 = vpop.permute.xlu0 %11426  ;;  %v11168_v38 = vsel %vm586_vm8, %v11160_v31, %v11161_v25  ;;  %v11054_v26 = vld [vmem:[#allocation3 + $0x48] sm:$0xff]  ;;  %v12843_v31 = vcombine.low %v19231_v33, %v19231_v33 }
0x126d   :  { %v12872_v53 = vcombine.low %v11267_v14, %v11269_v50  ;;  %v12873_v2 = vcombine.high %v11267_v14, %v11269_v50  ;;  %v11169_v57 = vsel %vm716_vm3, %v11147_v27, %v11168_v38  ;;  %v11438_v19 = vrot.slane %v11427_v12, 4 }
0x126e   :  { %v11421_v32 = vpop.permute.xlu1 %11420  ;;  %v12867_v60 = vcombine.high %v11167_v43, %v11169_v57  ;;  %v12866_v48 = vcombine.low %v11167_v43, %v11169_v57  ;;  %v13530_v29 = vpack.c.bf16 %v11056_v61, %v11054_v26 }
0x126f   :  { %11709 = vmatprep.subr.bf16.mxu0 %v12873_v2  ;;  %v11446_v36 = vsel %vm586_vm8, %v11438_v19, %v11439_v56  ;;  %v11435_v4 = vrot.slane %v11421_v32, 4 }
0x1270   :  { %11710 = vmatpush2.bf16.msra.mxu0 %v12872_v53  ;;  %v11155_v63 = vpop.permute.xlu0 %11154  ;;  %v11447_v30 = vsel %vm547_vm5, %v11427_v12, %v11446_v36  ;;  %v11050_v12 = vld [vmem:[#allocation3 + $0x8] sm:$0xff] }
0x1271   :  { %v11164_v44 = vrot.slane %v11155_v63, 4  ;;  %11711 = vmatprep.subr.bf16.mxu0 %v12871_v40  ;;  %v13528_v5 = vpack.c.bf16 %v11052_v13, %v11050_v12  ;;  %v13625_v53 = vld [vmem:[#allocation16 + $0x8] ss:$0 sps:$4 sm:$0xff]  }
0x1272   :  { %v11425_v58 = vpop.permute.xlu1 %11424 }
0x1273   :  { %v11172_v18 = vsel %vm586_vm8, %v11164_v44, %v11165_v3  ;;  %v11437_v27 = vrot.slane %v11425_v58, 4 }
0x1274   :  { %v11173_v6 = vsel %vm716_vm3, %v11155_v63, %v11172_v18  ;;  %11712 = vmatpush2.bf16.msra.mxu0 %v12870_v59  ;;  %v11419_v35 = vpop.permute.xlu0 %11418  ;;  %v19604_v59 = vld [vmem:[#allocation33_spill] sm:$0xff]  ;;  %v19605_v18 = vld [vmem:[#allocation27_spill] sm:$0xff] }
0x1275   :  { %v12868_v11 = vcombine.low %v11171_v17, %v11173_v6  ;;  %v12869_v24 = vcombine.high %v11171_v17, %v11173_v6  ;;  %v11434_v55 = vrot.slane %v11419_v35, 4 }
0x1277   :  { %11713 = vmatprep.subr.bf16.mxu0 %v12869_v24  ;;  %v11442_v9 = vsel %vm586_vm8, %v11434_v55, %v11435_v4 }
0x1278   :  { %11714 = vmatpush2.bf16.msra.mxu0 %v12868_v11  ;;  %v11431_v1 = vpop.permute.xlu0 %11430  ;;  %v11443_v62 = vsel %vm547_vm5, %v11419_v35, %v11442_v9 }
0x1279   :  { %v11440_v7 = vrot.slane %v11431_v1, 4  ;;  %11715 = vmatprep.subr.bf16.mxu0 %v12867_v60 }
0x127b   :  { %v11448_v52 = vsel %vm586_vm8, %v11440_v7, %v11441_v0 }
0x127c   :  { %v11449_v47 = vsel %vm547_vm5, %v11431_v1, %v11448_v52  ;;  %11716 = vmatpush2.bf16.msra.mxu0 %v12866_v48  ;;  %v11423_v41 = vpop.permute.xlu0 %11422 }
0x127d   :  { %v12880_v37 = vcombine.low %v11447_v30, %v11449_v47  ;;  %v12881_v34 = vcombine.high %v11447_v30, %v11449_v47  ;;  %v11436_v45 = vrot.slane %v11423_v41, 4  ;;  %11717 = vmatprep.subr.bf16.mxu0 %v13531_v51 }
0x127f   :  { %v11444_v20 = vsel %vm586_vm8, %v11436_v45, %v11437_v27  ;;  %11742 = vmatprep.subr.bf16.mxu1 %v12881_v34 }
0x1280   :  { %v11445_v14 = vsel %vm547_vm5, %v11423_v41, %v11444_v20  ;;  %11718 = vmatpush2.bf16.msra.mxu0 %v13530_v29  ;;  %11743 = vmatpush1.bf16.msra.mxu1 %v12880_v37 }
0x1281   :  { %v12878_v22 = vcombine.low %v11443_v62, %v11445_v14  ;;  %v12879_v50 = vcombine.high %v11443_v62, %v11445_v14  ;;  %11719 = vmatprep.subr.bf16.mxu0 %v13529_v28 }
0x1283   :  { %11744 = vmatprep.subr.bf16.mxu1 %v12879_v50 }
0x1284   :  { %11720 = vmatpush2.bf16.msra.mxu0 %v13528_v5  ;;  %11745 = vmatpush1.bf16.msra.mxu1 %v12878_v22 }
0x1287   :  { %11722 = vmatmul.mubr.bf16.vlgmr.msra.gmra.mxu0 %v12843_v31  ;;  %12882 = vmatmul.mubr.msk.bf16.vlgmr.msra.gmra.mxu1 %vm2328_vm12, %v13625_v53 }
0x1289   :  { %v11776_v21 = vpop.permute.xlu0 %11775 }
0x1347   :  { %v11723_v2 = vpop.f32.mrf.mxu0  ;;  %v11764_v15 = vpop.f32.mrf.mxu1 }
0x1348   :  { %v11765_v8 = vadd.f32 %v11764_v15, %v11723_v2 }
0x1349   :  { %v11725_v46 = vpop.f32.mrf.mxu0  ;;  %v11766_v40 = vpop.f32.mrf.mxu1 }
0x134a   :  { %v11767_v25 = vadd.f32 %v11766_v40, %v11725_v46  ;;  %v11778_v16 = vadd.f32 %v11776_v21, %v11765_v8 }
0x134b   :  { %v11727_v3 = vpop.f32.mrf.mxu0  ;;  %v11768_v63 = vpop.f32.mrf.mxu1 }
0x134c   :  { %v11779_v54 = vadd.f32 %v11776_v21, %v11767_v25 }
0x134d   :  { %v11728_v38 = vpop.f32.mrf.mxu0  ;;  %v11769_v44 = vpop.f32.mrf.mxu1 }
0x134e   :  { %v11782_v33 = vcombine.low %v11778_v16, %v11779_v54 }
0x1350   :  { %v11789_v42 = vrot.slane %v11782_v33, %v19604_v59 }
0x1352   :  { %v11796_v32 = vrot.slane %v11789_v42, %v19604_v59 }
0x1354   :  { %v11798_v17 = vadd.f32 %v11796_v32, %v19605_v18 }
0x1356   :  { %11799 = vst.msk [vmem:[%s19437_s19] sm:$0x3] %vm14023_vm0, %v11798_v17 }
0x1357   :  { %11808 = vsyncpa [#allocation6], 1 }
0x1358   :  { %11809 = vsyncpa [#allocation8], 1 }
0x1359   :  { %11810 = vsyncpa [#allocation11], 1 }
0x135a   :  { %11811 = vsyncpa [#allocation14], 1 }
0x135b   :  { %11812 = vsyncpa [#allocation17], 1 }
0x135c   :  { %11813 = vsyncpa [#allocation20], 1 }

</bundles_post_ra>
